<compile_context>
chip_gen: v7x
topology: tpu7x:2x2x1
jax: 0.10.0
libtpu: 0.0.40
codegen_flags: <defaults>
</compile_context>

<pallas_src>
import functools

import jax
import jax.numpy as jnp
from jax.experimental import pallas as pl
from jax.experimental.pallas import tpu as pltpu


def _cdiv(a, b):
    return -(-a // b)


def _round_up(x, m):
    return ((x + m - 1) // m) * m


# ----------------------------------------------------------------------------
# Pallas kernels
# ----------------------------------------------------------------------------
def _mm_bias_act_kernel(x_ref, w_ref, b_ref, o_ref, *, activation, slope):
    acc = jnp.dot(x_ref[...], w_ref[...], preferred_element_type=jnp.float32)
    acc = acc + b_ref[...]
    if activation == "relu":
        acc = jnp.maximum(acc, 0.0)
    elif activation == "leaky":
        acc = jnp.where(acc >= 0.0, acc, jnp.float32(slope) * acc)
    elif activation == "sigmoid":
        acc = jax.nn.sigmoid(acc)
    o_ref[...] = acc.astype(o_ref.dtype)


def matmul_bias_act(x, w, b, activation="none", slope=0.0, out_dtype=jnp.bfloat16):
    """y = act(x @ w + b).  x:(M,K) bf16, w:(K,N) bf16, b:(1,N) f32 -> (M,N).

    Full-extent K and N blocks (weights resident in VMEM), grid only over M.
    The model is launch-overhead bound, so each layer runs in 1-2 M steps:
    2 steps give both v7x TensorCores work and enough pipelining to hide the
    (small) patch DMA; boundary blocks handle the M remainder.
    """
    M, K = x.shape
    Kw, N = w.shape
    assert K == Kw and b.shape == (1, N)
    xb = x.astype(jnp.bfloat16)

    if M >= 128:
        TM = _round_up(_cdiv(M, 2), 8)
    else:
        TM = _round_up(M, 8)
    grid = (_cdiv(M, TM),)

    kernel = functools.partial(_mm_bias_act_kernel, activation=activation, slope=slope)
    return pl.pallas_call(
        kernel,
        out_shape=jax.ShapeDtypeStruct((M, N), out_dtype),
        grid_spec=pltpu.PrefetchScalarGridSpec(
            num_scalar_prefetch=0,
            grid=grid,
            in_specs=[
                pl.BlockSpec((TM, K), lambda i: (i, 0)),   # streaming patch tiles
                pl.BlockSpec((K, N), lambda i: (0, 0)),    # resident weight
                pl.BlockSpec((1, N), lambda i: (0, 0)),    # resident bias
            ],
            out_specs=pl.BlockSpec((TM, N), lambda i: (i, 0)),
        ),
        compiler_params=pltpu.CompilerParams(dimension_semantics=("parallel",)),
    )(xb, w, b)


def _head_kernel(x_ref, wms_ref, bms_ref, eps_ref, wcvt_ref, bcvt_ref,
                 mean_ref, logvar_ref, d_ref, *, dpad):
    # mean/std linears (single concatenated matmul), reparametrization, and the
    # decoder-input linear (convertor + relu), all fused: z never leaves VMEM.
    acc = jnp.dot(x_ref[...], wms_ref[...], preferred_element_type=jnp.float32)
    acc = acc + bms_ref[...]
    mean = acc[:, :dpad]
    logvar = acc[:, dpad:]
    mean_ref[...] = mean
    logvar_ref[...] = logvar
    z = mean + eps_ref[...] * jnp.exp(0.5 * logvar)          # f32 math (v5e-safe)
    d = jnp.dot(z.astype(jnp.bfloat16), wcvt_ref[...],
                preferred_element_type=jnp.float32) + bcvt_ref[...]
    d_ref[...] = jnp.maximum(d, 0.0).astype(d_ref.dtype)


def head_forward(flat, arrs, eps, D=40, Dp=128):
    B = flat.shape[0]
    mean_p, logvar_p, d = pl.pallas_call(
        functools.partial(_head_kernel, dpad=Dp),
        out_shape=(
            jax.ShapeDtypeStruct((B, Dp), jnp.float32),
            jax.ShapeDtypeStruct((B, Dp), jnp.float32),
            jax.ShapeDtypeStruct((B, 512), jnp.bfloat16),
        ),
    )(flat.astype(jnp.bfloat16), arrs["wms"], arrs["bms"], eps,
      arrs["wcvt"], arrs["bcvt"])
    return mean_p[:, :D], logvar_p[:, :D], d


# ----------------------------------------------------------------------------
# Strided-slice im2col (no gathers) with lane-packing of T adjacent columns
# ----------------------------------------------------------------------------
def _extract_wide_patches(x, kh, Wp, row_stride, col_step, n_tiles):
    """x: (B, H, W, C) ->
    patches (B*OH*n_tiles, kh*Wp*C) with
      patch[(b, oh, tw), (di, j, c)] = x[b, oh*row_stride + di, tw*col_step + j, c]
    OH = (H - kh)//row_stride + 1.  Built from kh strided row slices plus
    n_tiles contiguous column slices (no integer-array indexing)."""
    B, H, W, C = x.shape
    OH = (H - kh) // row_stride + 1
    rows = [
        jax.lax.slice(x, (0, di, 0, 0),
                      (B, di + (OH - 1) * row_stride + 1, W, C),
                      (1, row_stride, 1, 1))
        for di in range(kh)
    ]
    xr = jnp.stack(rows, axis=2)                       # (B, OH, kh, W, C)
    tiles = [
        jax.lax.slice(xr, (0, 0, 0, tw * col_step, 0),
                      (B, OH, kh, tw * col_step + Wp, C))
        for tw in range(n_tiles)
    ]
    xt = jnp.stack(tiles, axis=2)                      # (B, OH, n_tiles, kh, Wp, C)
    return xt.reshape(B * OH * n_tiles, kh * Wp * C), OH


# ----------------------------------------------------------------------------
# Conv / ConvTranspose drivers (use pre-packed weights)
# ----------------------------------------------------------------------------
def conv2d_packed(x, arrs, m, activation="none", slope=0.0, out_dtype=jnp.bfloat16):
    # x: (B, H, W, C) NHWC.  T adjacent output columns packed into lanes.
    kh, kw, s, T, O = m["kh"], m["kw"], m["s"], m["T"], m["O"]
    B, H, W, C = x.shape
    OH = (H - kh) // s + 1
    OW = (W - kw) // s + 1
    n_tiles = _cdiv(OW, T)
    Wp = (T - 1) * s + kw
    col_step = T * s
    W_need = (n_tiles - 1) * col_step + Wp
    if W_need > W:
        x = jnp.pad(x, ((0, 0), (0, 0), (0, W_need - W), (0, 0)))
    patches, _ = _extract_wide_patches(x, kh, Wp, s, col_step, n_tiles)
    y = matmul_bias_act(patches, arrs["w"], arrs["b"], activation, slope, out_dtype)
    return y.reshape(B, OH, n_tiles * T, O)[:, :, :OW, :]


def conv_transpose2d_packed(x, arrs, m, activation="none", slope=0.0,
                            out_dtype=jnp.bfloat16):
    # x: (B, H, W, I) NHWC.  Sub-pixel (phase) decomposition: all s*s phases
    # share one stride-1 patch matrix (short phases zero-padded to nh x nw
    # taps), plus T adjacent columns packed into lanes -> one lane-dense matmul.
    kh, kw, nh, nw, s, T, O = (m["kh"], m["kw"], m["nh"], m["nw"], m["s"],
                               m["T"], m["O"])
    B, H, W, I = x.shape
    OH = (H - 1) * s + kh
    OW = (W - 1) * s + kw
    PH = H + nh - 1
    PW = W + nw - 1
    n_tiles = _cdiv(PW, T)
    Wp = (T - 1) + nw                      # inner conv has stride 1
    col_step = T
    W_need = (n_tiles - 1) * col_step + Wp
    extra = max(W_need - (W + 2 * (nw - 1)), 0)
    xp = jnp.pad(x, ((0, 0), (nh - 1, nh - 1), (nw - 1, nw - 1 + extra), (0, 0)))
    patches, _ = _extract_wide_patches(xp, nh, Wp, 1, col_step, n_tiles)
    y = matmul_bias_act(patches, arrs["w"], arrs["b"], activation, slope, out_dtype)
    y = y.reshape(B, PH, n_tiles * T, s, s, O)[:, :, :PW]
    # phase de-interleave: (B, PH, PW, rh, rw, O) -> (B, PH*s, PW*s, O)
    y = jnp.transpose(y, (0, 1, 3, 2, 4, 5)).reshape(B, PH * s, PW * s, O)
    return y[:, :OH, :OW, :]


# ----------------------------------------------------------------------------
# One-time weight packing (block-Toeplitz widening, phase packing, head fusion)
# ----------------------------------------------------------------------------
def _widen_weight(wk, T, step):
    # wk: (kh, kw, C, N0) correlation taps.  Returns (kh*Wp*C, T*N0) where
    # tile-position t uses columns [t*step, t*step + kw) of the wide patch.
    kh, kw, C, N0 = wk.shape
    Wp = (T - 1) * step + kw
    wide = jnp.zeros((kh, Wp, C, T, N0), wk.dtype)
    for t in range(T):
        wide = wide.at[:, t * step:t * step + kw, :, t, :].set(wk)
    return wide.reshape(kh * Wp * C, T * N0)


def pack_conv2d(w, b, T, s):
    # w: (O, I, kh, kw) PyTorch Conv2d layout; b: (O,)
    O, I, kh, kw = w.shape
    wk = jnp.transpose(w, (2, 3, 1, 0)).astype(jnp.float32)   # (kh, kw, I, O)
    wmat = _widen_weight(wk, T, s).astype(jnp.bfloat16)
    bias = jnp.tile(b.astype(jnp.float32), T).reshape(1, T * O)
    return dict(w=wmat, b=bias), dict(kh=kh, kw=kw, s=s, T=T, O=O)


def pack_conv_transpose2d(w, b, T, s):
    # w: (I, O, kh, kw) PyTorch ConvTranspose2d layout; b: (O,)
    # Phase (rh, rw) of the output is a stride-1 conv of the input with the
    # flipped sub-kernel w[:, :, rh::s, rw::s]; short phases are zero-padded
    # (zeros at the leading taps) to the max (nh, nw) so all phases share one
    # patch matrix.
    I, O, kh, kw = w.shape
    nh, nw = _cdiv(kh, s), _cdiv(kw, s)
    wk = jnp.zeros((nh, nw, I, s, s, O), jnp.float32)
    for rh in range(s):
        for rw in range(s):
            sub = w[:, :, rh::s, rw::s][:, :, ::-1, ::-1]        # (I, O, n_rh, n_rw)
            n_rh, n_rw = sub.shape[2], sub.shape[3]
            sub = jnp.transpose(sub, (2, 3, 0, 1)).astype(jnp.float32)
            wk = wk.at[nh - n_rh:, nw - n_rw:, :, rh, rw, :].set(sub)
    wk = wk.reshape(nh, nw, I, s * s * O)
    wmat = _widen_weight(wk, T, 1).astype(jnp.bfloat16)
    bias = jnp.tile(b.astype(jnp.float32), T * s * s).reshape(1, T * s * s * O)
    return dict(w=wmat, b=bias), dict(kh=kh, kw=kw, nh=nh, nw=nw, s=s, T=T, O=O)


def pack_head(mean_w, mean_b, std_w, std_b, cvt_w, cvt_b, D=40, Dp=128):
    K = mean_w.shape[0]
    wms = jnp.zeros((K, 2 * Dp), jnp.float32)
    wms = wms.at[:, :D].set(mean_w.astype(jnp.float32))
    wms = wms.at[:, Dp:Dp + D].set(std_w.astype(jnp.float32))
    bms = jnp.zeros((1, 2 * Dp), jnp.float32)
    bms = bms.at[0, :D].set(mean_b.astype(jnp.float32))
    bms = bms.at[0, Dp:Dp + D].set(std_b.astype(jnp.float32))
    # convertor weight zero-padded to Dp rows: garbage lanes of z (>=D) hit
    # zero rows and contribute nothing.
    wcvt = jnp.zeros((Dp, cvt_w.shape[1]), jnp.float32).at[:D, :].set(
        cvt_w.astype(jnp.float32))
    bcvt = cvt_b.reshape(1, -1).astype(jnp.float32)
    return dict(wms=wms.astype(jnp.bfloat16), bms=bms,
                wcvt=wcvt.astype(jnp.bfloat16), bcvt=bcvt)


def pack_params(p):
    """Pack raw (PyTorch-layout) params into matmul-ready matrices. Run once."""
    packed, meta = {}, {}
    # T chosen so N = T*O (conv) / T*s*s*O (conv-transpose) reaches 128 lanes
    # wherever the spatial extent allows it.
    for name, T in (("c1", 8), ("c2", 8), ("c3", 4), ("c4", 8)):
        packed[name], meta[name] = pack_conv2d(p[name + "_w"], p[name + "_b"], T, 2)
    for name, T in (("d1", 1), ("d2", 2), ("d3", 2), ("d4", 32)):
        packed[name], meta[name] = pack_conv_transpose2d(
            p[name + "_w"], p[name + "_b"], T, 2)
    packed["head"] = pack_head(p["mean_w"], p["mean_b"], p["std_w"], p["std_b"],
                               p["cvt_w"], p["cvt_b"])
    return packed, meta


# ----------------------------------------------------------------------------
# Parameters (deterministic synthetic init, PyTorch-style uniform(+-1/sqrt(fan_in)))
# ----------------------------------------------------------------------------
def init_params(key):
    def uni(k, shape, fan_in):
        bound = 1.0 / float(fan_in) ** 0.5
        return jax.random.uniform(k, shape, jnp.float32, -bound, bound)

    ks = iter(jax.random.split(key, 32))
    p = {}
    # encoder Conv2d weights: (O, I, k, k)
    p["c1_w"], p["c1_b"] = uni(next(ks), (16, 1, 4, 4), 16), uni(next(ks), (16,), 16)
    p["c2_w"], p["c2_b"] = uni(next(ks), (16, 16, 4, 4), 256), uni(next(ks), (16,), 256)
    p["c3_w"], p["c3_b"] = uni(next(ks), (32, 16, 4, 4), 256), uni(next(ks), (32,), 256)
    p["c4_w"], p["c4_b"] = uni(next(ks), (8, 32, 3, 3), 288), uni(next(ks), (8,), 288)
    # Linear weights stored as (in, out) for x @ w
    p["mean_w"], p["mean_b"] = uni(next(ks), (512, 40), 512), uni(next(ks), (40,), 512)
    p["std_w"], p["std_b"] = uni(next(ks), (512, 40), 512), uni(next(ks), (40,), 512)
    p["cvt_w"], p["cvt_b"] = uni(next(ks), (40, 512), 40), uni(next(ks), (512,), 40)
    # decoder ConvTranspose2d weights: (I, O, k, k)
    p["d1_w"], p["d1_b"] = uni(next(ks), (8, 32, 3, 3), 72), uni(next(ks), (32,), 72)
    p["d2_w"], p["d2_b"] = uni(next(ks), (32, 16, 4, 4), 512), uni(next(ks), (16,), 512)
    p["d3_w"], p["d3_b"] = uni(next(ks), (16, 16, 4, 4), 256), uni(next(ks), (16,), 256)
    p["d4_w"], p["d4_b"] = uni(next(ks), (16, 1, 4, 4), 256), uni(next(ks), (1,), 256)
    return p


# ----------------------------------------------------------------------------
# VAE forward
# ----------------------------------------------------------------------------
def make_vae_forward(meta):
    @jax.jit
    def vae_forward(packed, x_nchw, noise_key):
        B = x_nchw.shape[0]
        x = jnp.transpose(x_nchw, (0, 2, 3, 1)).astype(jnp.bfloat16)  # NCHW -> NHWC

        # ---- encode ----
        h = conv2d_packed(x, packed["c1"], meta["c1"], "relu")    # (B,74,74,16)
        h = conv2d_packed(h, packed["c2"], meta["c2"], "relu")    # (B,36,36,16)
        h = conv2d_packed(h, packed["c3"], meta["c3"], "none")    # (B,17,17,32)
        h = conv2d_packed(h, packed["c4"], meta["c4"], "relu")    # (B,8,8,8) + F.relu
        flat = jnp.transpose(h, (0, 3, 1, 2)).reshape(B, 8 * 8 * 8)  # torch (C,H,W) order

        # ---- mean/std + reparametrize + convertor (all fused in one kernel) ----
        eps = jax.random.normal(noise_key, (B, 128), jnp.float32)
        mean, logvar, d = head_forward(flat, packed["head"], eps)

        # ---- decode ----
        d = d.reshape(B, 8, 8, 8)                   # (B,C,H,W) per torch .view
        d = jnp.transpose(d, (0, 2, 3, 1))          # NHWC
        d = conv_transpose2d_packed(d, packed["d1"], meta["d1"], "leaky", 0.2)   # (B,17,17,32)
        d = conv_transpose2d_packed(d, packed["d2"], meta["d2"], "leaky", 0.1)   # (B,36,36,16)
        d = conv_transpose2d_packed(d, packed["d3"], meta["d3"], "leaky", 0.2)   # (B,74,74,16)
        d = conv_transpose2d_packed(d, packed["d4"], meta["d4"], "sigmoid",
                                    out_dtype=jnp.float32)                        # (B,150,150,1)
        decoded = jnp.transpose(d, (0, 3, 1, 2))    # back to NCHW
        return decoded, mean, logvar

    return vae_forward


if __name__ == "__main__":
    key = jax.random.PRNGKey(0)
    pkey, xkey, nkey = jax.random.split(key, 3)

    raw_params = init_params(pkey)
    packed, meta = pack_params(raw_params)          # one-time weight packing
    vae_forward = make_vae_forward(meta)

    # input spatial size 150x150 is implied by encoded.view(-1, 8*8*8)
    x = jax.random.normal(xkey, (2, 1, 150, 150), jnp.float32)

    decoded, mean, logvar = vae_forward(packed, x, nkey)
    jax.block_until_ready((decoded, mean, logvar))

    assert decoded.shape == (2, 1, 150, 150)
    assert mean.shape == (2, 40) and logvar.shape == (2, 40)
    assert bool(jnp.all(jnp.isfinite(decoded)))
    assert bool(jnp.all(decoded >= 0.0) and jnp.all(decoded <= 1.0))   # sigmoid range
    print("KERNEL_OK")
</pallas_src>

<mosaic_0001>
module attributes {stable_mosaic.version = 11 : i64} {
  func.func @_mm_bias_act_kernel(%arg0: i32, %arg1: memref<744x72xbf16, #tpu.memory_space<vmem>>, %arg2: memref<72x128xbf16, #tpu.memory_space<vmem>>, %arg3: memref<1x128xf32, #tpu.memory_space<vmem>>, %arg4: memref<744x128xbf16, #tpu.memory_space<vmem>>) attributes {dimension_semantics = [#tpu.dimension_semantics<parallel>], iteration_bounds = array<i64: 2>, scalar_prefetch = 0 : i64, scratch_operands = 0 : i64, tpu.core_type = #tpu.core_type<tc>, window_params = [{transform_indices = @transform_0, window_bounds = array<i64: 744, 72>}, {pipeline_mode = #tpu.pipeline_mode<synchronous>, transform_indices = @transform_1, window_bounds = array<i64: 72, 128>}, {pipeline_mode = #tpu.pipeline_mode<synchronous>, transform_indices = @transform_2, window_bounds = array<i64: 1, 128>}, {transform_indices = @transform_3, window_bounds = array<i64: 744, 128>}]} {
    %c0 = arith.constant 0 : index
    %c0_0 = arith.constant 0 : index
    %0 = vector.load %arg1[%c0, %c0_0] : memref<744x72xbf16, #tpu.memory_space<vmem>>, vector<744x72xbf16>
    %c0_1 = arith.constant 0 : index
    %c0_2 = arith.constant 0 : index
    %1 = vector.load %arg2[%c0_1, %c0_2] : memref<72x128xbf16, #tpu.memory_space<vmem>>, vector<72x128xbf16>
    %cst = arith.constant dense<0.000000e+00> : vector<744x128xf32>
    %2 = tpu.matmul %0, %1, %cst {dimension_numbers = #tpu.dot_dimension_numbers<[1], [0], [0], [1], [0, 0, 1, 1], [], []>} : vector<744x72xbf16>, vector<72x128xbf16>, vector<744x128xf32> -> vector<744x128xf32>
    %c0_3 = arith.constant 0 : index
    %c0_4 = arith.constant 0 : index
    %3 = vector.load %arg3[%c0_3, %c0_4] : memref<1x128xf32, #tpu.memory_space<vmem>>, vector<1x128xf32>
    %4 = vector.broadcast %3 : vector<1x128xf32> to vector<744x128xf32>
    %5 = arith.addf %2, %4 : vector<744x128xf32>
    %cst_5 = arith.constant 0.000000e+00 : f32
    %6 = vector.broadcast %cst_5 : f32 to vector<744x128xf32>
    %7 = arith.maximumf %5, %6 : vector<744x128xf32>
    %8 = arith.truncf %7 : vector<744x128xf32> to vector<744x128xbf16>
    %c0_6 = arith.constant 0 : index
    %c0_7 = arith.constant 0 : index
    %9 = vector.load %arg4[%c0_6, %c0_7] : memref<744x128xbf16, #tpu.memory_space<vmem>>, vector<744x128xbf16>
    tpu.vector_store %arg4[%c0_6, %c0_7], %8 {strides = array<i32>} : memref<744x128xbf16, #tpu.memory_space<vmem>>, vector<744x128xbf16>,
    return
  }
  func.func @transform_0(%arg0: i32) -> (i32, i32) {
    %c0_i32 = arith.constant 0 : i32
    %c0_i32_0 = arith.constant 0 : i32
    return %arg0, %c0_i32 : i32, i32
  }
  func.func @transform_1(%arg0: i32) -> (i32, i32) {
    %c0_i32 = arith.constant 0 : i32
    %c0_i32_0 = arith.constant 0 : i32
    %c0_i32_1 = arith.constant 0 : i32
    return %c0_i32, %c0_i32_0 : i32, i32
  }
  func.func @transform_2(%arg0: i32) -> (i32, i32) {
    %c0_i32 = arith.constant 0 : i32
    %c0_i32_0 = arith.constant 0 : i32
    %c0_i32_1 = arith.constant 0 : i32
    return %c0_i32, %c0_i32_0 : i32, i32
  }
  func.func @transform_3(%arg0: i32) -> (i32, i32) {
    %c0_i32 = arith.constant 0 : i32
    %c0_i32_0 = arith.constant 0 : i32
    return %arg0, %c0_i32 : i32, i32
  }
}

module attributes {stable_mosaic.version = 11 : i64} {
  func.func @_mm_bias_act_kernel(%arg0: i32, %arg1: memref<184x1152xbf16, #tpu.memory_space<vmem>>, %arg2: memref<1152x128xbf16, #tpu.memory_space<vmem>>, %arg3: memref<1x128xf32, #tpu.memory_space<vmem>>, %arg4: memref<184x128xbf16, #tpu.memory_space<vmem>>) attributes {dimension_semantics = [#tpu.dimension_semantics<parallel>], iteration_bounds = array<i64: 2>, scalar_prefetch = 0 : i64, scratch_operands = 0 : i64, tpu.core_type = #tpu.core_type<tc>, window_params = [{transform_indices = @transform_0, window_bounds = array<i64: 184, 1152>}, {pipeline_mode = #tpu.pipeline_mode<synchronous>, transform_indices = @transform_1, window_bounds = array<i64: 1152, 128>}, {pipeline_mode = #tpu.pipeline_mode<synchronous>, transform_indices = @transform_2, window_bounds = array<i64: 1, 128>}, {transform_indices = @transform_3, window_bounds = array<i64: 184, 128>}]} {
    %c0 = arith.constant 0 : index
    %c0_0 = arith.constant 0 : index
    %0 = vector.load %arg1[%c0, %c0_0] : memref<184x1152xbf16, #tpu.memory_space<vmem>>, vector<184x1152xbf16>
    %c0_1 = arith.constant 0 : index
    %c0_2 = arith.constant 0 : index
    %1 = vector.load %arg2[%c0_1, %c0_2] : memref<1152x128xbf16, #tpu.memory_space<vmem>>, vector<1152x128xbf16>
    %cst = arith.constant dense<0.000000e+00> : vector<184x128xf32>
    %2 = tpu.matmul %0, %1, %cst {dimension_numbers = #tpu.dot_dimension_numbers<[1], [0], [0], [1], [0, 0, 1, 1], [], []>} : vector<184x1152xbf16>, vector<1152x128xbf16>, vector<184x128xf32> -> vector<184x128xf32>
    %c0_3 = arith.constant 0 : index
    %c0_4 = arith.constant 0 : index
    %3 = vector.load %arg3[%c0_3, %c0_4] : memref<1x128xf32, #tpu.memory_space<vmem>>, vector<1x128xf32>
    %4 = vector.broadcast %3 : vector<1x128xf32> to vector<184x128xf32>
    %5 = arith.addf %2, %4 : vector<184x128xf32>
    %cst_5 = arith.constant 0.000000e+00 : f32
    %6 = vector.broadcast %cst_5 : f32 to vector<184x128xf32>
    %7 = arith.maximumf %5, %6 : vector<184x128xf32>
    %8 = arith.truncf %7 : vector<184x128xf32> to vector<184x128xbf16>
    %c0_6 = arith.constant 0 : index
    %c0_7 = arith.constant 0 : index
    %9 = vector.load %arg4[%c0_6, %c0_7] : memref<184x128xbf16, #tpu.memory_space<vmem>>, vector<184x128xbf16>
    tpu.vector_store %arg4[%c0_6, %c0_7], %8 {strides = array<i32>} : memref<184x128xbf16, #tpu.memory_space<vmem>>, vector<184x128xbf16>,
    return
  }
  func.func @transform_0(%arg0: i32) -> (i32, i32) {
    %c0_i32 = arith.constant 0 : i32
    %c0_i32_0 = arith.constant 0 : i32
    return %arg0, %c0_i32 : i32, i32
  }
  func.func @transform_1(%arg0: i32) -> (i32, i32) {
    %c0_i32 = arith.constant 0 : i32
    %c0_i32_0 = arith.constant 0 : i32
    %c0_i32_1 = arith.constant 0 : i32
    return %c0_i32, %c0_i32_0 : i32, i32
  }
  func.func @transform_2(%arg0: i32) -> (i32, i32) {
    %c0_i32 = arith.constant 0 : i32
    %c0_i32_0 = arith.constant 0 : i32
    %c0_i32_1 = arith.constant 0 : i32
    return %c0_i32, %c0_i32_0 : i32, i32
  }
  func.func @transform_3(%arg0: i32) -> (i32, i32) {
    %c0_i32 = arith.constant 0 : i32
    %c0_i32_0 = arith.constant 0 : i32
    return %arg0, %c0_i32 : i32, i32
  }
}

module attributes {stable_mosaic.version = 11 : i64} {
  func.func @_mm_bias_act_kernel(%arg0: i32, %arg1: memref<88x640xbf16, #tpu.memory_space<vmem>>, %arg2: memref<640x128xbf16, #tpu.memory_space<vmem>>, %arg3: memref<1x128xf32, #tpu.memory_space<vmem>>, %arg4: memref<88x128xbf16, #tpu.memory_space<vmem>>) attributes {dimension_semantics = [#tpu.dimension_semantics<parallel>], iteration_bounds = array<i64: 2>, scalar_prefetch = 0 : i64, scratch_operands = 0 : i64, tpu.core_type = #tpu.core_type<tc>, window_params = [{transform_indices = @transform_0, window_bounds = array<i64: 88, 640>}, {pipeline_mode = #tpu.pipeline_mode<synchronous>, transform_indices = @transform_1, window_bounds = array<i64: 640, 128>}, {pipeline_mode = #tpu.pipeline_mode<synchronous>, transform_indices = @transform_2, window_bounds = array<i64: 1, 128>}, {transform_indices = @transform_3, window_bounds = array<i64: 88, 128>}]} {
    %c0 = arith.constant 0 : index
    %c0_0 = arith.constant 0 : index
    %0 = vector.load %arg1[%c0, %c0_0] : memref<88x640xbf16, #tpu.memory_space<vmem>>, vector<88x640xbf16>
    %c0_1 = arith.constant 0 : index
    %c0_2 = arith.constant 0 : index
    %1 = vector.load %arg2[%c0_1, %c0_2] : memref<640x128xbf16, #tpu.memory_space<vmem>>, vector<640x128xbf16>
    %cst = arith.constant dense<0.000000e+00> : vector<88x128xf32>
    %2 = tpu.matmul %0, %1, %cst {dimension_numbers = #tpu.dot_dimension_numbers<[1], [0], [0], [1], [0, 0, 1, 1], [], []>} : vector<88x640xbf16>, vector<640x128xbf16>, vector<88x128xf32> -> vector<88x128xf32>
    %c0_3 = arith.constant 0 : index
    %c0_4 = arith.constant 0 : index
    %3 = vector.load %arg3[%c0_3, %c0_4] : memref<1x128xf32, #tpu.memory_space<vmem>>, vector<1x128xf32>
    %4 = vector.broadcast %3 : vector<1x128xf32> to vector<88x128xf32>
    %5 = arith.addf %2, %4 : vector<88x128xf32>
    %6 = arith.truncf %5 : vector<88x128xf32> to vector<88x128xbf16>
    %c0_5 = arith.constant 0 : index
    %c0_6 = arith.constant 0 : index
    %7 = vector.load %arg4[%c0_5, %c0_6] : memref<88x128xbf16, #tpu.memory_space<vmem>>, vector<88x128xbf16>
    tpu.vector_store %arg4[%c0_5, %c0_6], %6 {strides = array<i32>} : memref<88x128xbf16, #tpu.memory_space<vmem>>, vector<88x128xbf16>,
    return
  }
  func.func @transform_0(%arg0: i32) -> (i32, i32) {
    %c0_i32 = arith.constant 0 : i32
    %c0_i32_0 = arith.constant 0 : i32
    return %arg0, %c0_i32 : i32, i32
  }
  func.func @transform_1(%arg0: i32) -> (i32, i32) {
    %c0_i32 = arith.constant 0 : i32
    %c0_i32_0 = arith.constant 0 : i32
    %c0_i32_1 = arith.constant 0 : i32
    return %c0_i32, %c0_i32_0 : i32, i32
  }
  func.func @transform_2(%arg0: i32) -> (i32, i32) {
    %c0_i32 = arith.constant 0 : i32
    %c0_i32_0 = arith.constant 0 : i32
    %c0_i32_1 = arith.constant 0 : i32
    return %c0_i32, %c0_i32_0 : i32, i32
  }
  func.func @transform_3(%arg0: i32) -> (i32, i32) {
    %c0_i32 = arith.constant 0 : i32
    %c0_i32_0 = arith.constant 0 : i32
    return %arg0, %c0_i32 : i32, i32
  }
}

module attributes {stable_mosaic.version = 11 : i64} {
  func.func @_mm_bias_act_kernel(%arg0: i32, %arg1: memref<16x1632xbf16, #tpu.memory_space<vmem>>, %arg2: memref<1632x64xbf16, #tpu.memory_space<vmem>>, %arg3: memref<1x64xf32, #tpu.memory_space<vmem>>, %arg4: memref<16x64xbf16, #tpu.memory_space<vmem>>) attributes {dimension_semantics = [#tpu.dimension_semantics<parallel>], iteration_bounds = array<i64: 1>, scalar_prefetch = 0 : i64, scratch_operands = 0 : i64, tpu.core_type = #tpu.core_type<tc>, window_params = [{transform_indices = @transform_0, window_bounds = array<i64: 16, 1632>}, {pipeline_mode = #tpu.pipeline_mode<synchronous>, transform_indices = @transform_1, window_bounds = array<i64: 1632, 64>}, {pipeline_mode = #tpu.pipeline_mode<synchronous>, transform_indices = @transform_2, window_bounds = array<i64: 1, 64>}, {transform_indices = @transform_3, window_bounds = array<i64: 16, 64>}]} {
    %c0 = arith.constant 0 : index
    %c0_0 = arith.constant 0 : index
    %0 = vector.load %arg1[%c0, %c0_0] : memref<16x1632xbf16, #tpu.memory_space<vmem>>, vector<16x1632xbf16>
    %c0_1 = arith.constant 0 : index
    %c0_2 = arith.constant 0 : index
    %1 = vector.load %arg2[%c0_1, %c0_2] : memref<1632x64xbf16, #tpu.memory_space<vmem>>, vector<1632x64xbf16>
    %cst = arith.constant dense<0.000000e+00> : vector<16x64xf32>
    %2 = tpu.matmul %0, %1, %cst {dimension_numbers = #tpu.dot_dimension_numbers<[1], [0], [0], [1], [0, 0, 1, 1], [], []>} : vector<16x1632xbf16>, vector<1632x64xbf16>, vector<16x64xf32> -> vector<16x64xf32>
    %c0_3 = arith.constant 0 : index
    %c0_4 = arith.constant 0 : index
    %3 = vector.load %arg3[%c0_3, %c0_4] : memref<1x64xf32, #tpu.memory_space<vmem>>, vector<1x64xf32>
    %4 = vector.broadcast %3 : vector<1x64xf32> to vector<16x64xf32>
    %5 = arith.addf %2, %4 : vector<16x64xf32>
    %cst_5 = arith.constant 0.000000e+00 : f32
    %6 = vector.broadcast %cst_5 : f32 to vector<16x64xf32>
    %7 = arith.maximumf %5, %6 : vector<16x64xf32>
    %8 = arith.truncf %7 : vector<16x64xf32> to vector<16x64xbf16>
    %c0_6 = arith.constant 0 : index
    %c0_7 = arith.constant 0 : index
    %9 = vector.load %arg4[%c0_6, %c0_7] : memref<16x64xbf16, #tpu.memory_space<vmem>>, vector<16x64xbf16>
    tpu.vector_store %arg4[%c0_6, %c0_7], %8 {strides = array<i32>} : memref<16x64xbf16, #tpu.memory_space<vmem>>, vector<16x64xbf16>,
    return
  }
  func.func @transform_0(%arg0: i32) -> (i32, i32) {
    %c0_i32 = arith.constant 0 : i32
    %c0_i32_0 = arith.constant 0 : i32
    return %arg0, %c0_i32 : i32, i32
  }
  func.func @transform_1(%arg0: i32) -> (i32, i32) {
    %c0_i32 = arith.constant 0 : i32
    %c0_i32_0 = arith.constant 0 : i32
    %c0_i32_1 = arith.constant 0 : i32
    return %c0_i32, %c0_i32_0 : i32, i32
  }
  func.func @transform_2(%arg0: i32) -> (i32, i32) {
    %c0_i32 = arith.constant 0 : i32
    %c0_i32_0 = arith.constant 0 : i32
    %c0_i32_1 = arith.constant 0 : i32
    return %c0_i32, %c0_i32_0 : i32, i32
  }
  func.func @transform_3(%arg0: i32) -> (i32, i32) {
    %c0_i32 = arith.constant 0 : i32
    %c0_i32_0 = arith.constant 0 : i32
    return %arg0, %c0_i32 : i32, i32
  }
}

module attributes {stable_mosaic.version = 11 : i64} {
  func.func @_head_kernel(%arg0: memref<2x512xbf16, #tpu.memory_space<vmem>>, %arg1: memref<512x256xbf16, #tpu.memory_space<vmem>>, %arg2: memref<1x256xf32, #tpu.memory_space<vmem>>, %arg3: memref<2x128xf32, #tpu.memory_space<vmem>>, %arg4: memref<128x512xbf16, #tpu.memory_space<vmem>>, %arg5: memref<1x512xf32, #tpu.memory_space<vmem>>, %arg6: memref<2x128xf32, #tpu.memory_space<vmem>>, %arg7: memref<2x128xf32, #tpu.memory_space<vmem>>, %arg8: memref<2x512xbf16, #tpu.memory_space<vmem>>) attributes {dimension_semantics = [], scalar_prefetch = 0 : i64, scratch_operands = 0 : i64, tpu.core_type = #tpu.core_type<tc>} {
    %c0 = arith.constant 0 : index
    %c0_0 = arith.constant 0 : index
    %0 = vector.load %arg0[%c0, %c0_0] : memref<2x512xbf16, #tpu.memory_space<vmem>>, vector<2x512xbf16>
    %c0_1 = arith.constant 0 : index
    %c0_2 = arith.constant 0 : index
    %1 = vector.load %arg1[%c0_1, %c0_2] : memref<512x256xbf16, #tpu.memory_space<vmem>>, vector<512x256xbf16>
    %cst = arith.constant dense<0.000000e+00> : vector<2x256xf32>
    %2 = tpu.matmul %0, %1, %cst {dimension_numbers = #tpu.dot_dimension_numbers<[1], [0], [0], [1], [0, 0, 1, 1], [], []>} : vector<2x512xbf16>, vector<512x256xbf16>, vector<2x256xf32> -> vector<2x256xf32>
    %c0_3 = arith.constant 0 : index
    %c0_4 = arith.constant 0 : index
    %3 = vector.load %arg2[%c0_3, %c0_4] : memref<1x256xf32, #tpu.memory_space<vmem>>, vector<1x256xf32>
    %4 = vector.broadcast %3 : vector<1x256xf32> to vector<2x256xf32>
    %5 = arith.addf %2, %4 : vector<2x256xf32>
    %6 = vector.extract_strided_slice %5 {offsets = [0, 0], sizes = [2, 128], strides = [1, 1]} : vector<2x256xf32> to vector<2x128xf32>
    %7 = vector.extract_strided_slice %5 {offsets = [0, 128], sizes = [2, 128], strides = [1, 1]} : vector<2x256xf32> to vector<2x128xf32>
    %c0_5 = arith.constant 0 : index
    %c0_6 = arith.constant 0 : index
    %8 = vector.load %arg6[%c0_5, %c0_6] : memref<2x128xf32, #tpu.memory_space<vmem>>, vector<2x128xf32>
    tpu.vector_store %arg6[%c0_5, %c0_6], %6 {strides = array<i32>} : memref<2x128xf32, #tpu.memory_space<vmem>>, vector<2x128xf32>,
    %c0_7 = arith.constant 0 : index
    %c0_8 = arith.constant 0 : index
    %9 = vector.load %arg7[%c0_7, %c0_8] : memref<2x128xf32, #tpu.memory_space<vmem>>, vector<2x128xf32>
    tpu.vector_store %arg7[%c0_7, %c0_8], %7 {strides = array<i32>} : memref<2x128xf32, #tpu.memory_space<vmem>>, vector<2x128xf32>,
    %c0_9 = arith.constant 0 : index
    %c0_10 = arith.constant 0 : index
    %10 = vector.load %arg3[%c0_9, %c0_10] : memref<2x128xf32, #tpu.memory_space<vmem>>, vector<2x128xf32>
    %cst_11 = arith.constant 5.000000e-01 : f32
    %11 = vector.broadcast %cst_11 : f32 to vector<2x128xf32>
    %12 = arith.mulf %11, %7 : vector<2x128xf32>
    %13 = math.exp %12 : vector<2x128xf32>
    %14 = arith.mulf %10, %13 : vector<2x128xf32>
    %15 = arith.addf %6, %14 : vector<2x128xf32>
    %16 = arith.truncf %15 : vector<2x128xf32> to vector<2x128xbf16>
    %c0_12 = arith.constant 0 : index
    %c0_13 = arith.constant 0 : index
    %17 = vector.load %arg4[%c0_12, %c0_13] : memref<128x512xbf16, #tpu.memory_space<vmem>>, vector<128x512xbf16>
    %cst_14 = arith.constant dense<0.000000e+00> : vector<2x512xf32>
    %18 = tpu.matmul %16, %17, %cst_14 {dimension_numbers = #tpu.dot_dimension_numbers<[1], [0], [0], [1], [0, 0, 1, 1], [], []>} : vector<2x128xbf16>, vector<128x512xbf16>, vector<2x512xf32> -> vector<2x512xf32>
    %c0_15 = arith.constant 0 : index
    %c0_16 = arith.constant 0 : index
    %19 = vector.load %arg5[%c0_15, %c0_16] : memref<1x512xf32, #tpu.memory_space<vmem>>, vector<1x512xf32>
    %20 = vector.broadcast %19 : vector<1x512xf32> to vector<2x512xf32>
    %21 = arith.addf %18, %20 : vector<2x512xf32>
    %cst_17 = arith.constant 0.000000e+00 : f32
    %22 = vector.broadcast %cst_17 : f32 to vector<2x512xf32>
    %23 = arith.maximumf %21, %22 : vector<2x512xf32>
    %24 = arith.truncf %23 : vector<2x512xf32> to vector<2x512xbf16>
    %c0_18 = arith.constant 0 : index
    %c0_19 = arith.constant 0 : index
    %25 = vector.load %arg8[%c0_18, %c0_19] : memref<2x512xbf16, #tpu.memory_space<vmem>>, vector<2x512xbf16>
    tpu.vector_store %arg8[%c0_18, %c0_19], %24 {strides = array<i32>} : memref<2x512xbf16, #tpu.memory_space<vmem>>, vector<2x512xbf16>,
    return
  }
}

module attributes {stable_mosaic.version = 11 : i64} {
  func.func @_mm_bias_act_kernel(%arg0: i32, %arg1: memref<88x32xbf16, #tpu.memory_space<vmem>>, %arg2: memref<32x128xbf16, #tpu.memory_space<vmem>>, %arg3: memref<1x128xf32, #tpu.memory_space<vmem>>, %arg4: memref<88x128xbf16, #tpu.memory_space<vmem>>) attributes {dimension_semantics = [#tpu.dimension_semantics<parallel>], iteration_bounds = array<i64: 2>, scalar_prefetch = 0 : i64, scratch_operands = 0 : i64, tpu.core_type = #tpu.core_type<tc>, window_params = [{transform_indices = @transform_0, window_bounds = array<i64: 88, 32>}, {pipeline_mode = #tpu.pipeline_mode<synchronous>, transform_indices = @transform_1, window_bounds = array<i64: 32, 128>}, {pipeline_mode = #tpu.pipeline_mode<synchronous>, transform_indices = @transform_2, window_bounds = array<i64: 1, 128>}, {transform_indices = @transform_3, window_bounds = array<i64: 88, 128>}]} {
    %c0 = arith.constant 0 : index
    %c0_0 = arith.constant 0 : index
    %0 = vector.load %arg1[%c0, %c0_0] : memref<88x32xbf16, #tpu.memory_space<vmem>>, vector<88x32xbf16>
    %c0_1 = arith.constant 0 : index
    %c0_2 = arith.constant 0 : index
    %1 = vector.load %arg2[%c0_1, %c0_2] : memref<32x128xbf16, #tpu.memory_space<vmem>>, vector<32x128xbf16>
    %cst = arith.constant dense<0.000000e+00> : vector<88x128xf32>
    %2 = tpu.matmul %0, %1, %cst {dimension_numbers = #tpu.dot_dimension_numbers<[1], [0], [0], [1], [0, 0, 1, 1], [], []>} : vector<88x32xbf16>, vector<32x128xbf16>, vector<88x128xf32> -> vector<88x128xf32>
    %c0_3 = arith.constant 0 : index
    %c0_4 = arith.constant 0 : index
    %3 = vector.load %arg3[%c0_3, %c0_4] : memref<1x128xf32, #tpu.memory_space<vmem>>, vector<1x128xf32>
    %4 = vector.broadcast %3 : vector<1x128xf32> to vector<88x128xf32>
    %5 = arith.addf %2, %4 : vector<88x128xf32>
    %cst_5 = arith.constant 0.000000e+00 : f32
    %6 = vector.broadcast %cst_5 : f32 to vector<88x128xf32>
    %7 = arith.cmpf oge, %5, %6 : vector<88x128xf32>
    %cst_6 = arith.constant 2.000000e-01 : f32
    %8 = vector.broadcast %cst_6 : f32 to vector<88x128xf32>
    %9 = arith.mulf %8, %5 : vector<88x128xf32>
    %10 = arith.select %7, %5, %9 : vector<88x128xi1>, vector<88x128xf32>
    %11 = arith.truncf %10 : vector<88x128xf32> to vector<88x128xbf16>
    %c0_7 = arith.constant 0 : index
    %c0_8 = arith.constant 0 : index
    %12 = vector.load %arg4[%c0_7, %c0_8] : memref<88x128xbf16, #tpu.memory_space<vmem>>, vector<88x128xbf16>
    tpu.vector_store %arg4[%c0_7, %c0_8], %11 {strides = array<i32>} : memref<88x128xbf16, #tpu.memory_space<vmem>>, vector<88x128xbf16>,
    return
  }
  func.func @transform_0(%arg0: i32) -> (i32, i32) {
    %c0_i32 = arith.constant 0 : i32
    %c0_i32_0 = arith.constant 0 : i32
    return %arg0, %c0_i32 : i32, i32
  }
  func.func @transform_1(%arg0: i32) -> (i32, i32) {
    %c0_i32 = arith.constant 0 : i32
    %c0_i32_0 = arith.constant 0 : i32
    %c0_i32_1 = arith.constant 0 : i32
    return %c0_i32, %c0_i32_0 : i32, i32
  }
  func.func @transform_2(%arg0: i32) -> (i32, i32) {
    %c0_i32 = arith.constant 0 : i32
    %c0_i32_0 = arith.constant 0 : i32
    %c0_i32_1 = arith.constant 0 : i32
    return %c0_i32, %c0_i32_0 : i32, i32
  }
  func.func @transform_3(%arg0: i32) -> (i32, i32) {
    %c0_i32 = arith.constant 0 : i32
    %c0_i32_0 = arith.constant 0 : i32
    return %arg0, %c0_i32 : i32, i32
  }
}

module attributes {stable_mosaic.version = 11 : i64} {
  func.func @_mm_bias_act_kernel(%arg0: i32, %arg1: memref<168x192xbf16, #tpu.memory_space<vmem>>, %arg2: memref<192x128xbf16, #tpu.memory_space<vmem>>, %arg3: memref<1x128xf32, #tpu.memory_space<vmem>>, %arg4: memref<168x128xbf16, #tpu.memory_space<vmem>>) attributes {dimension_semantics = [#tpu.dimension_semantics<parallel>], iteration_bounds = array<i64: 2>, scalar_prefetch = 0 : i64, scratch_operands = 0 : i64, tpu.core_type = #tpu.core_type<tc>, window_params = [{transform_indices = @transform_0, window_bounds = array<i64: 168, 192>}, {pipeline_mode = #tpu.pipeline_mode<synchronous>, transform_indices = @transform_1, window_bounds = array<i64: 192, 128>}, {pipeline_mode = #tpu.pipeline_mode<synchronous>, transform_indices = @transform_2, window_bounds = array<i64: 1, 128>}, {transform_indices = @transform_3, window_bounds = array<i64: 168, 128>}]} {
    %c0 = arith.constant 0 : index
    %c0_0 = arith.constant 0 : index
    %0 = vector.load %arg1[%c0, %c0_0] : memref<168x192xbf16, #tpu.memory_space<vmem>>, vector<168x192xbf16>
    %c0_1 = arith.constant 0 : index
    %c0_2 = arith.constant 0 : index
    %1 = vector.load %arg2[%c0_1, %c0_2] : memref<192x128xbf16, #tpu.memory_space<vmem>>, vector<192x128xbf16>
    %cst = arith.constant dense<0.000000e+00> : vector<168x128xf32>
    %2 = tpu.matmul %0, %1, %cst {dimension_numbers = #tpu.dot_dimension_numbers<[1], [0], [0], [1], [0, 0, 1, 1], [], []>} : vector<168x192xbf16>, vector<192x128xbf16>, vector<168x128xf32> -> vector<168x128xf32>
    %c0_3 = arith.constant 0 : index
    %c0_4 = arith.constant 0 : index
    %3 = vector.load %arg3[%c0_3, %c0_4] : memref<1x128xf32, #tpu.memory_space<vmem>>, vector<1x128xf32>
    %4 = vector.broadcast %3 : vector<1x128xf32> to vector<168x128xf32>
    %5 = arith.addf %2, %4 : vector<168x128xf32>
    %cst_5 = arith.constant 0.000000e+00 : f32
    %6 = vector.broadcast %cst_5 : f32 to vector<168x128xf32>
    %7 = arith.cmpf oge, %5, %6 : vector<168x128xf32>
    %cst_6 = arith.constant 1.000000e-01 : f32
    %8 = vector.broadcast %cst_6 : f32 to vector<168x128xf32>
    %9 = arith.mulf %8, %5 : vector<168x128xf32>
    %10 = arith.select %7, %5, %9 : vector<168x128xi1>, vector<168x128xf32>
    %11 = arith.truncf %10 : vector<168x128xf32> to vector<168x128xbf16>
    %c0_7 = arith.constant 0 : index
    %c0_8 = arith.constant 0 : index
    %12 = vector.load %arg4[%c0_7, %c0_8] : memref<168x128xbf16, #tpu.memory_space<vmem>>, vector<168x128xbf16>
    tpu.vector_store %arg4[%c0_7, %c0_8], %11 {strides = array<i32>} : memref<168x128xbf16, #tpu.memory_space<vmem>>, vector<168x128xbf16>,
    return
  }
  func.func @transform_0(%arg0: i32) -> (i32, i32) {
    %c0_i32 = arith.constant 0 : i32
    %c0_i32_0 = arith.constant 0 : i32
    return %arg0, %c0_i32 : i32, i32
  }
  func.func @transform_1(%arg0: i32) -> (i32, i32) {
    %c0_i32 = arith.constant 0 : i32
    %c0_i32_0 = arith.constant 0 : i32
    %c0_i32_1 = arith.constant 0 : i32
    return %c0_i32, %c0_i32_0 : i32, i32
  }
  func.func @transform_2(%arg0: i32) -> (i32, i32) {
    %c0_i32 = arith.constant 0 : i32
    %c0_i32_0 = arith.constant 0 : i32
    %c0_i32_1 = arith.constant 0 : i32
    return %c0_i32, %c0_i32_0 : i32, i32
  }
  func.func @transform_3(%arg0: i32) -> (i32, i32) {
    %c0_i32 = arith.constant 0 : i32
    %c0_i32_0 = arith.constant 0 : i32
    return %arg0, %c0_i32 : i32, i32
  }
}

module attributes {stable_mosaic.version = 11 : i64} {
  func.func @_mm_bias_act_kernel(%arg0: i32, %arg1: memref<704x96xbf16, #tpu.memory_space<vmem>>, %arg2: memref<96x128xbf16, #tpu.memory_space<vmem>>, %arg3: memref<1x128xf32, #tpu.memory_space<vmem>>, %arg4: memref<704x128xbf16, #tpu.memory_space<vmem>>) attributes {dimension_semantics = [#tpu.dimension_semantics<parallel>], iteration_bounds = array<i64: 2>, scalar_prefetch = 0 : i64, scratch_operands = 0 : i64, tpu.core_type = #tpu.core_type<tc>, window_params = [{transform_indices = @transform_0, window_bounds = array<i64: 704, 96>}, {pipeline_mode = #tpu.pipeline_mode<synchronous>, transform_indices = @transform_1, window_bounds = array<i64: 96, 128>}, {pipeline_mode = #tpu.pipeline_mode<synchronous>, transform_indices = @transform_2, window_bounds = array<i64: 1, 128>}, {transform_indices = @transform_3, window_bounds = array<i64: 704, 128>}]} {
    %c0 = arith.constant 0 : index
    %c0_0 = arith.constant 0 : index
    %0 = vector.load %arg1[%c0, %c0_0] : memref<704x96xbf16, #tpu.memory_space<vmem>>, vector<704x96xbf16>
    %c0_1 = arith.constant 0 : index
    %c0_2 = arith.constant 0 : index
    %1 = vector.load %arg2[%c0_1, %c0_2] : memref<96x128xbf16, #tpu.memory_space<vmem>>, vector<96x128xbf16>
    %cst = arith.constant dense<0.000000e+00> : vector<704x128xf32>
    %2 = tpu.matmul %0, %1, %cst {dimension_numbers = #tpu.dot_dimension_numbers<[1], [0], [0], [1], [0, 0, 1, 1], [], []>} : vector<704x96xbf16>, vector<96x128xbf16>, vector<704x128xf32> -> vector<704x128xf32>
    %c0_3 = arith.constant 0 : index
    %c0_4 = arith.constant 0 : index
    %3 = vector.load %arg3[%c0_3, %c0_4] : memref<1x128xf32, #tpu.memory_space<vmem>>, vector<1x128xf32>
    %4 = vector.broadcast %3 : vector<1x128xf32> to vector<704x128xf32>
    %5 = arith.addf %2, %4 : vector<704x128xf32>
    %cst_5 = arith.constant 0.000000e+00 : f32
    %6 = vector.broadcast %cst_5 : f32 to vector<704x128xf32>
    %7 = arith.cmpf oge, %5, %6 : vector<704x128xf32>
    %cst_6 = arith.constant 2.000000e-01 : f32
    %8 = vector.broadcast %cst_6 : f32 to vector<704x128xf32>
    %9 = arith.mulf %8, %5 : vector<704x128xf32>
    %10 = arith.select %7, %5, %9 : vector<704x128xi1>, vector<704x128xf32>
    %11 = arith.truncf %10 : vector<704x128xf32> to vector<704x128xbf16>
    %c0_7 = arith.constant 0 : index
    %c0_8 = arith.constant 0 : index
    %12 = vector.load %arg4[%c0_7, %c0_8] : memref<704x128xbf16, #tpu.memory_space<vmem>>, vector<704x128xbf16>
    tpu.vector_store %arg4[%c0_7, %c0_8], %11 {strides = array<i32>} : memref<704x128xbf16, #tpu.memory_space<vmem>>, vector<704x128xbf16>,
    return
  }
  func.func @transform_0(%arg0: i32) -> (i32, i32) {
    %c0_i32 = arith.constant 0 : i32
    %c0_i32_0 = arith.constant 0 : i32
    return %arg0, %c0_i32 : i32, i32
  }
  func.func @transform_1(%arg0: i32) -> (i32, i32) {
    %c0_i32 = arith.constant 0 : i32
    %c0_i32_0 = arith.constant 0 : i32
    %c0_i32_1 = arith.constant 0 : i32
    return %c0_i32, %c0_i32_0 : i32, i32
  }
  func.func @transform_2(%arg0: i32) -> (i32, i32) {
    %c0_i32 = arith.constant 0 : i32
    %c0_i32_0 = arith.constant 0 : i32
    %c0_i32_1 = arith.constant 0 : i32
    return %c0_i32, %c0_i32_0 : i32, i32
  }
  func.func @transform_3(%arg0: i32) -> (i32, i32) {
    %c0_i32 = arith.constant 0 : i32
    %c0_i32_0 = arith.constant 0 : i32
    return %arg0, %c0_i32 : i32, i32
  }
}

module attributes {stable_mosaic.version = 11 : i64} {
  func.func @_mm_bias_act_kernel(%arg0: i32, %arg1: memref<232x1056xbf16, #tpu.memory_space<vmem>>, %arg2: memref<1056x128xbf16, #tpu.memory_space<vmem>>, %arg3: memref<1x128xf32, #tpu.memory_space<vmem>>, %arg4: memref<232x128xf32, #tpu.memory_space<vmem>>) attributes {dimension_semantics = [#tpu.dimension_semantics<parallel>], iteration_bounds = array<i64: 2>, scalar_prefetch = 0 : i64, scratch_operands = 0 : i64, tpu.core_type = #tpu.core_type<tc>, window_params = [{transform_indices = @transform_0, window_bounds = array<i64: 232, 1056>}, {pipeline_mode = #tpu.pipeline_mode<synchronous>, transform_indices = @transform_1, window_bounds = array<i64: 1056, 128>}, {pipeline_mode = #tpu.pipeline_mode<synchronous>, transform_indices = @transform_2, window_bounds = array<i64: 1, 128>}, {transform_indices = @transform_3, window_bounds = array<i64: 232, 128>}]} {
    %c0 = arith.constant 0 : index
    %c0_0 = arith.constant 0 : index
    %0 = vector.load %arg1[%c0, %c0_0] : memref<232x1056xbf16, #tpu.memory_space<vmem>>, vector<232x1056xbf16>
    %c0_1 = arith.constant 0 : index
    %c0_2 = arith.constant 0 : index
    %1 = vector.load %arg2[%c0_1, %c0_2] : memref<1056x128xbf16, #tpu.memory_space<vmem>>, vector<1056x128xbf16>
    %cst = arith.constant dense<0.000000e+00> : vector<232x128xf32>
    %2 = tpu.matmul %0, %1, %cst {dimension_numbers = #tpu.dot_dimension_numbers<[1], [0], [0], [1], [0, 0, 1, 1], [], []>} : vector<232x1056xbf16>, vector<1056x128xbf16>, vector<232x128xf32> -> vector<232x128xf32>
    %c0_3 = arith.constant 0 : index
    %c0_4 = arith.constant 0 : index
    %3 = vector.load %arg3[%c0_3, %c0_4] : memref<1x128xf32, #tpu.memory_space<vmem>>, vector<1x128xf32>
    %4 = vector.broadcast %3 : vector<1x128xf32> to vector<232x128xf32>
    %5 = arith.addf %2, %4 : vector<232x128xf32>
    %6 = arith.negf %5 : vector<232x128xf32>
    %7 = math.exp %6 : vector<232x128xf32>
    %cst_5 = arith.constant 1.000000e+00 : f32
    %8 = vector.broadcast %cst_5 : f32 to vector<232x128xf32>
    %9 = arith.addf %8, %7 : vector<232x128xf32>
    %10 = arith.divf %8, %9 : vector<232x128xf32>
    %c0_6 = arith.constant 0 : index
    %c0_7 = arith.constant 0 : index
    %11 = vector.load %arg4[%c0_6, %c0_7] : memref<232x128xf32, #tpu.memory_space<vmem>>, vector<232x128xf32>
    tpu.vector_store %arg4[%c0_6, %c0_7], %10 {strides = array<i32>} : memref<232x128xf32, #tpu.memory_space<vmem>>, vector<232x128xf32>,
    return
  }
  func.func @transform_0(%arg0: i32) -> (i32, i32) {
    %c0_i32 = arith.constant 0 : i32
    %c0_i32_0 = arith.constant 0 : i32
    return %arg0, %c0_i32 : i32, i32
  }
  func.func @transform_1(%arg0: i32) -> (i32, i32) {
    %c0_i32 = arith.constant 0 : i32
    %c0_i32_0 = arith.constant 0 : i32
    %c0_i32_1 = arith.constant 0 : i32
    return %c0_i32, %c0_i32_0 : i32, i32
  }
  func.func @transform_2(%arg0: i32) -> (i32, i32) {
    %c0_i32 = arith.constant 0 : i32
    %c0_i32_0 = arith.constant 0 : i32
    %c0_i32_1 = arith.constant 0 : i32
    return %c0_i32, %c0_i32_0 : i32, i32
  }
  func.func @transform_3(%arg0: i32) -> (i32, i32) {
    %c0_i32 = arith.constant 0 : i32
    %c0_i32_0 = arith.constant 0 : i32
    return %arg0, %c0_i32 : i32, i32
  }
}

</mosaic_0001>

<bundles_post_ra>
// kernel: vae_forward.9
= control target key start
LH: loop header
LB: loop body
LE: loop exit
PB: predicated region body
PF: predicated region fallthrough
CT: control target
= control target key end

     0   :  { %s3238_s12 = smov 0   ;;  %s3240_s13 = smov 0   ;;  %s3837_s0 = inlined_call_operand.vmem [shape: bf16[1480,72], index: 0, kind: input, shape index: {}]   ;;  %s3838_s1 = inlined_call_operand.vmem [shape: bf16[72,128], index: 1, kind: input, shape index: {}]   ;;  %s3839_s2 = inlined_call_operand.vmem [shape: f32[1,128], index: 2, kind: input, shape index: {}]   ;;  %s3840_s3 = inlined_call_operand.vmem [shape: bf16[1480,128], index: 3, kind: output, shape index: {}]  }
   0x1   :  { %s3242_s14 = smov 0  }
   0x2 LB: > { %s3251_s15 = sadd.s32 4294967295, %s3182_s14   ;;  %s3253_s16 = sadd.s32 1, %s3182_s14   ;;  %s3182_s14 = sphi %s3242_s14, %s3847_s14   ;;  %s3178_s13 = sphi %s3240_s13, %s3846_s13   ;;  %s3174_s12 = sphi %s3238_s12, %s3845_s12  }
   0x3   : > { %s85_s17 = ssub.s32 %s3182_s14, %s3253_s16  ;;  %s88_s18 = sadd.s32 1, %s3178_s13 }
   0x4   : > { %p86_p0 = scmp.eq.s32.totalorder %s85_s17, 0  ;;  %p98_p1 = scmp.ne.s32.totalorder %s3178_s13, %s3174_s12 }
   0x5   : > { %p99_p2 = scmp.eq.s32.totalorder %s3251_s15, 1  ;;  %p2144_p3 = scmp.ge.s32.totalorder %s3182_s14, 1 }
   0x6   : > { %s3261_s19 = scalar_select %p86_p0, %s3178_s13, %s88_s18  }
   0x7   : > { %p3263_p4 = por %p99_p2, %p98_p1  ;;  %p146_p5 = scmp.lt.s32.totalorder %s3182_s14, 3 }
   0x9   : > { %p147_p6 = pnand %p2144_p3, %p146_p5 }
   0xa   : > { %v3076_v0 = vld [vmem:[%s3838_s1] sm:$0xff] (!%p147_p6)   ;;  %v3216_v1 = vmov (!%p147_p6), 0.0   ;;  %v3077_v2 = vld [vmem:[%s3838_s1 + $0x8] sm:$0xff] (!%p147_p6)   ;;  %s3278_s25 = smul.u32 (!%p147_p6), 93, %s3251_s15  ;;  %vm3217_vm0 = vmmov (!%p147_p6), 0   ;;  %v3078_v3 = vld [vmem:[%s3838_s1 + $0x10] sm:$0xff] (!%p147_p6)  }
   0xb   : > { %150 = sbr.rel (%p147_p6) target bundleno = 527 (0x20f), region = 32  ;;  %2777 = vmatprep.subr.bf16.mxu0 (!%p147_p6), %v3216_v1  ;;  %2975 = vmatprep.subr.bf16.mxu1 (!%p147_p6), %v3216_v1  ;;  %v3079_v4 = vld [vmem:[%s3838_s1 + $0x18] sm:$0xff] (!%p147_p6)   ;;  %v3080_v5 = vld [vmem:[%s3838_s1 + $0x20] ss:$0 sps:$4 sm:$0xff] (!%p147_p6)   ;;  %vm704_vm1 = vcmask (!%p147_p6), 1043456   ;;  %vm562_vm2 = vcmask (!%p147_p6), 588800  }
   0xc   : > { %2778 = vmatpush3.bf16.msra.mxu0 (!%p147_p6), %v3076_v0  ;;  %2980 = vmatpush3.bf16.msra.mxu1 (!%p147_p6), %v3076_v0  ;;  %p178_p7 = scmp.lt.s32.totalorder (!%p147_p6), %s3278_s25, 184  ;;  %v706_v6 = vsel (!%p147_p6), %vm704_vm1, %v3080_v5, 0  ;;  %v3493_v54 = vld [vmem:[%s3839_s2] ss:$0 sm:$0xff] (!%p147_p6)  ;;  %s170_s14 = sand.u32 (!%p147_p6), 1, %s3174_s12  }
   0xd   : > { %2779 = vmatprep.subr.bf16.mxu0 (!%p147_p6), %v3216_v1  ;;  %2976 = vmatprep.subr.bf16.mxu1 (!%p147_p6), %v3216_v1  ;;  %s2985_s17 = smul.u32 (!%p147_p6), 372, %s170_s14 }
   0xe   : > { %2787 = vmatprep.mubr.msk.bf16.mxu0 (!%p147_p6), %vm3217_vm0, %v3216_v1  ;;  %2883 = vmatprep.mubr.msk.bf16.mxu1 (!%p147_p6), %vm3217_vm0, %v3216_v1 }
   0xf   : > { %s3500_s12 = scalar_lea.vmem (!%p147_p6), [#allocation2], %s2985_s17  }
  0x10   : > { %2780 = vmatpush3.bf16.msra.mxu0 (!%p147_p6), %v3077_v2  ;;  %2981 = vmatpush3.bf16.msra.mxu1 (!%p147_p6), %v3077_v2 }
  0x11   : > { %2781 = vmatprep.subr.bf16.mxu0 (!%p147_p6), %v3216_v1  ;;  %2977 = vmatprep.subr.bf16.mxu1 (!%p147_p6), %v3216_v1 }
  0x12   : > { %s179_s28 = scalar_select %p178_p7, %s3278_s25, 184 }
  0x13   : > { %s1683_s18 = ssub.s32 (%p3263_p4), 185, %s3278_s25  ;;  %s2447_s21 = smul.u32 (%p3263_p4), 372, %s3251_s15 }
  0x14   : > { %s2145_s29 = sshll.u32 %s179_s28, 2  ;;  %2782 = vmatpush3.bf16.msra.mxu0 %v3078_v3  ;;  %2982 = vmatpush3.bf16.msra.mxu1 %v3078_v3  ;;  %p1684_p8 = scmp.lt.s32.totalorder (%p3263_p4), %s1683_s18, 93 }
  0x15   : > { %s3297_s7 = scalar_lea.vmem %s3837_s0, %s2145_s29  ;;  %2783 = vmatprep.subr.bf16.mxu0 %v3216_v1  ;;  %2978 = vmatprep.subr.bf16.mxu1 %v3216_v1  ;;  %s3645_s24 = scalar_lea.vmem (%p3263_p4), %s3840_s3, %s2447_s21  }
  0x16   : > { %v3081_v7 = vld [vmem:[%s3297_s7] sm:$0xff]   ;;  %v3083_v9 = vld [vmem:[%s3297_s7 + $0x8] sm:$0xff]   ;;  %v3085_v11 = vld [vmem:[%s3297_s7 + $0x10] sm:$0xff]  }
  0x17   : > { %v3082_v8 = vld [vmem:[%s3297_s7 + $0xc0] sm:$0xff]   ;;  %v3084_v10 = vld [vmem:[%s3297_s7 + $0xc8] sm:$0xff]   ;;  %v3086_v12 = vld [vmem:[%s3297_s7 + $0xd0] sm:$0xff]  }
  0x18   : > { %2784 = vmatpush3.bf16.msra.mxu0 %v3079_v4  ;;  %2983 = vmatpush3.bf16.msra.mxu1 %v3079_v4  ;;  %v3087_v13 = vld [vmem:[%s3297_s7 + $0x18] sm:$0xff]   ;;  %v3089_v15 = vld [vmem:[%s3297_s7 + $0x20] sm:$0xff]   ;;  %v3091_v17 = vld [vmem:[%s3297_s7 + $0x28] sm:$0xff]  }
  0x19   : > { %2785 = vmatprep.subr.bf16.mxu0 %v3216_v1  ;;  %2979 = vmatprep.subr.bf16.mxu1 %v3216_v1  ;;  %v3088_v14 = vld [vmem:[%s3297_s7 + $0xd8] sm:$0xff]   ;;  %v3090_v16 = vld [vmem:[%s3297_s7 + $0xe0] sm:$0xff]   ;;  %v3092_v18 = vld [vmem:[%s3297_s7 + $0xe8] sm:$0xff]  }
  0x1a   : > { %v3093_v19 = vld [vmem:[%s3297_s7 + $0x30] sm:$0xff]   ;;  %v3095_v21 = vld [vmem:[%s3297_s7 + $0x38] sm:$0xff]   ;;  %v3097_v23 = vld [vmem:[%s3297_s7 + $0x40] sm:$0xff]  }
  0x1b   : > { %v3094_v20 = vld [vmem:[%s3297_s7 + $0xf0] sm:$0xff]   ;;  %v3096_v22 = vld [vmem:[%s3297_s7 + $0xf8] sm:$0xff]   ;;  %v3098_v24 = vld [vmem:[%s3297_s7 + $0x100] sm:$0xff]  }
  0x1c   : > { %2786 = vmatpush3.bf16.msra.mxu0 %v706_v6  ;;  %2984 = vmatpush3.bf16.msra.mxu1 %v706_v6  ;;  %v3099_v25 = vld [vmem:[%s3297_s7 + $0x48] sm:$0xff]   ;;  %v3101_v27 = vld [vmem:[%s3297_s7 + $0x50] sm:$0xff]   ;;  %v3103_v29 = vld [vmem:[%s3297_s7 + $0x58] sm:$0xff]  }
  0x1d   : > { %v3100_v26 = vld [vmem:[%s3297_s7 + $0x108] sm:$0xff]   ;;  %v3102_v28 = vld [vmem:[%s3297_s7 + $0x110] sm:$0xff]   ;;  %v3104_v30 = vld [vmem:[%s3297_s7 + $0x118] sm:$0xff]  }
  0x1e   : > { %v3105_v31 = vld [vmem:[%s3297_s7 + $0x60] sm:$0xff]   ;;  %v3107_v33 = vld [vmem:[%s3297_s7 + $0x68] sm:$0xff]   ;;  %v3109_v35 = vld [vmem:[%s3297_s7 + $0x70] sm:$0xff]  }
  0x1f   : > { %2788 = vmatmul.mubr.msk.bf16.vlgmr.msra.gmra.mrb[0].mxu0 %vm562_vm2, %v3081_v7  ;;  %2884 = vmatmul.mubr.msk.bf16.vlgmr.msra.gmra.mrb[0].mxu1 %vm562_vm2, %v3082_v8  ;;  %v3106_v32 = vld [vmem:[%s3297_s7 + $0x120] sm:$0xff]   ;;  %v3108_v34 = vld [vmem:[%s3297_s7 + $0x128] sm:$0xff]   ;;  %v3110_v36 = vld [vmem:[%s3297_s7 + $0x130] sm:$0xff]  }
  0x20   : > { %2791 = vmatprep.mubr.msk.bf16.mxu0 %vm3217_vm0, %v3216_v1  ;;  %2887 = vmatprep.mubr.msk.bf16.mxu1 %vm3217_vm0, %v3216_v1  ;;  %v3111_v37 = vld [vmem:[%s3297_s7 + $0x78] sm:$0xff]   ;;  %v3113_v39 = vld [vmem:[%s3297_s7 + $0x80] sm:$0xff]   ;;  %v3115_v41 = vld [vmem:[%s3297_s7 + $0x88] sm:$0xff]  }
  0x21   : > { %v3112_v38 = vld [vmem:[%s3297_s7 + $0x138] sm:$0xff]   ;;  %v3114_v40 = vld [vmem:[%s3297_s7 + $0x140] sm:$0xff]   ;;  %v3116_v42 = vld [vmem:[%s3297_s7 + $0x148] sm:$0xff]  }
  0x22   : > { %v3117_v43 = vld [vmem:[%s3297_s7 + $0x90] sm:$0xff]   ;;  %v3119_v45 = vld [vmem:[%s3297_s7 + $0x98] sm:$0xff]   ;;  %v3121_v47 = vld [vmem:[%s3297_s7 + $0xa0] sm:$0xff]  }
  0x23   : > { %v3118_v44 = vld [vmem:[%s3297_s7 + $0x150] sm:$0xff]   ;;  %v3120_v46 = vld [vmem:[%s3297_s7 + $0x158] sm:$0xff]   ;;  %v3122_v48 = vld [vmem:[%s3297_s7 + $0x160] sm:$0xff]  }
  0x24   : > { %v3123_v49 = vld [vmem:[%s3297_s7 + $0xa8] sm:$0xff]   ;;  %v3125_v51 = vld [vmem:[%s3297_s7 + $0xb0] sm:$0xff]   ;;  %v3127_v53 = vld [vmem:[%s3297_s7 + $0xb8] sm:$0xff]  }
  0x25   : > { %v3124_v50 = vld [vmem:[%s3297_s7 + $0x168] sm:$0xff]   ;;  %v3126_v52 = vld [vmem:[%s3297_s7 + $0x170] ss:$0 sps:$4 sm:$0xff]  }
  0x27   : > { %2792 = vmatmul.mubr.msk.bf16.gmra.mrb[4].mxu0 %vm562_vm2, %v3083_v9  ;;  %2888 = vmatmul.mubr.msk.bf16.gmra.mrb[4].mxu1 %vm562_vm2, %v3084_v10 }
  0x28   : > { %2795 = vmatprep.mubr.msk.bf16.mxu0 %vm3217_vm0, %v3216_v1  ;;  %2891 = vmatprep.mubr.msk.bf16.mxu1 %vm3217_vm0, %v3216_v1 }
  0x2f   : > { %2796 = vmatmul.mubr.msk.bf16.gmra.mrb[8].mxu0 %vm562_vm2, %v3085_v11  ;;  %2892 = vmatmul.mubr.msk.bf16.gmra.mrb[8].mxu1 %vm562_vm2, %v3086_v12 }
  0x30   : > { %2799 = vmatprep.mubr.msk.bf16.mxu0 %vm3217_vm0, %v3216_v1  ;;  %2895 = vmatprep.mubr.msk.bf16.mxu1 %vm3217_vm0, %v3216_v1 }
  0x37   : > { %2800 = vmatmul.mubr.msk.bf16.gmra.mrb[12].mxu0 %vm562_vm2, %v3087_v13  ;;  %2896 = vmatmul.mubr.msk.bf16.gmra.mrb[12].mxu1 %vm562_vm2, %v3088_v14 }
  0x38   : > { %2803 = vmatprep.mubr.msk.bf16.mxu0 %vm3217_vm0, %v3216_v1  ;;  %2899 = vmatprep.mubr.msk.bf16.mxu1 %vm3217_vm0, %v3216_v1 }
  0x3f   : > { %2804 = vmatmul.mubr.msk.bf16.gmra.mrb[16].mxu0 %vm562_vm2, %v3089_v15  ;;  %2900 = vmatmul.mubr.msk.bf16.gmra.mrb[16].mxu1 %vm562_vm2, %v3090_v16 }
  0x40   : > { %2807 = vmatprep.mubr.msk.bf16.mxu0 %vm3217_vm0, %v3216_v1  ;;  %2903 = vmatprep.mubr.msk.bf16.mxu1 %vm3217_vm0, %v3216_v1 }
  0x47   : > { %2808 = vmatmul.mubr.msk.bf16.gmra.mrb[20].mxu0 %vm562_vm2, %v3091_v17  ;;  %2904 = vmatmul.mubr.msk.bf16.gmra.mrb[20].mxu1 %vm562_vm2, %v3092_v18 }
  0x48   : > { %2811 = vmatprep.mubr.msk.bf16.mxu0 %vm3217_vm0, %v3216_v1  ;;  %2907 = vmatprep.mubr.msk.bf16.mxu1 %vm3217_vm0, %v3216_v1 }
  0x4f   : > { %2812 = vmatmul.mubr.msk.bf16.gmra.mrb[24].mxu0 %vm562_vm2, %v3093_v19  ;;  %2908 = vmatmul.mubr.msk.bf16.gmra.mrb[24].mxu1 %vm562_vm2, %v3094_v20 }
  0x50   : > { %2815 = vmatprep.mubr.msk.bf16.mxu0 %vm3217_vm0, %v3216_v1  ;;  %2911 = vmatprep.mubr.msk.bf16.mxu1 %vm3217_vm0, %v3216_v1 }
  0x57   : > { %2816 = vmatmul.mubr.msk.bf16.gmra.mrb[28].mxu0 %vm562_vm2, %v3095_v21  ;;  %2912 = vmatmul.mubr.msk.bf16.gmra.mrb[28].mxu1 %vm562_vm2, %v3096_v22 }
  0x58   : > { %2819 = vmatprep.mubr.msk.bf16.mxu0 %vm3217_vm0, %v3216_v1  ;;  %2915 = vmatprep.mubr.msk.bf16.mxu1 %vm3217_vm0, %v3216_v1 }
  0x5f   : > { %2820 = vmatmul.mubr.msk.bf16.gmra.mrb[32].mxu0 %vm562_vm2, %v3097_v23  ;;  %2916 = vmatmul.mubr.msk.bf16.gmra.mrb[32].mxu1 %vm562_vm2, %v3098_v24 }
  0x60   : > { %2823 = vmatprep.mubr.msk.bf16.mxu0 %vm3217_vm0, %v3216_v1  ;;  %2919 = vmatprep.mubr.msk.bf16.mxu1 %vm3217_vm0, %v3216_v1 }
  0x67   : > { %2824 = vmatmul.mubr.msk.bf16.gmra.mrb[36].mxu0 %vm562_vm2, %v3099_v25  ;;  %2920 = vmatmul.mubr.msk.bf16.gmra.mrb[36].mxu1 %vm562_vm2, %v3100_v26 }
  0x68   : > { %2827 = vmatprep.mubr.msk.bf16.mxu0 %vm3217_vm0, %v3216_v1  ;;  %2923 = vmatprep.mubr.msk.bf16.mxu1 %vm3217_vm0, %v3216_v1 }
  0x6f   : > { %2828 = vmatmul.mubr.msk.bf16.gmra.mrb[40].mxu0 %vm562_vm2, %v3101_v27  ;;  %2924 = vmatmul.mubr.msk.bf16.gmra.mrb[40].mxu1 %vm562_vm2, %v3102_v28 }
  0x70   : > { %2831 = vmatprep.mubr.msk.bf16.mxu0 %vm3217_vm0, %v3216_v1  ;;  %2927 = vmatprep.mubr.msk.bf16.mxu1 %vm3217_vm0, %v3216_v1 }
  0x77   : > { %2832 = vmatmul.mubr.msk.bf16.gmra.mrb[44].mxu0 %vm562_vm2, %v3103_v29  ;;  %2928 = vmatmul.mubr.msk.bf16.gmra.mrb[44].mxu1 %vm562_vm2, %v3104_v30 }
  0x78   : > { %2835 = vmatprep.mubr.msk.bf16.mxu0 %vm3217_vm0, %v3216_v1  ;;  %2931 = vmatprep.mubr.msk.bf16.mxu1 %vm3217_vm0, %v3216_v1 }
  0x7f   : > { %2836 = vmatmul.mubr.msk.bf16.gmra.mrb[48].mxu0 %vm562_vm2, %v3105_v31  ;;  %2932 = vmatmul.mubr.msk.bf16.gmra.mrb[48].mxu1 %vm562_vm2, %v3106_v32 }
  0x80   : > { %2839 = vmatprep.mubr.msk.bf16.mxu0 %vm3217_vm0, %v3216_v1  ;;  %2935 = vmatprep.mubr.msk.bf16.mxu1 %vm3217_vm0, %v3216_v1 }
  0x87   : > { %2840 = vmatmul.mubr.msk.bf16.gmra.mrb[52].mxu0 %vm562_vm2, %v3107_v33  ;;  %2936 = vmatmul.mubr.msk.bf16.gmra.mrb[52].mxu1 %vm562_vm2, %v3108_v34 }
  0x88   : > { %2843 = vmatprep.mubr.msk.bf16.mxu0 %vm3217_vm0, %v3216_v1  ;;  %2939 = vmatprep.mubr.msk.bf16.mxu1 %vm3217_vm0, %v3216_v1 }
  0x8f   : > { %2844 = vmatmul.mubr.msk.bf16.gmra.mrb[56].mxu0 %vm562_vm2, %v3109_v35  ;;  %2940 = vmatmul.mubr.msk.bf16.gmra.mrb[56].mxu1 %vm562_vm2, %v3110_v36 }
  0x90   : > { %2847 = vmatprep.mubr.msk.bf16.mxu0 %vm3217_vm0, %v3216_v1  ;;  %2943 = vmatprep.mubr.msk.bf16.mxu1 %vm3217_vm0, %v3216_v1 }
  0x97   : > { %2848 = vmatmul.mubr.msk.bf16.gmra.mrb[60].mxu0 %vm562_vm2, %v3111_v37  ;;  %2944 = vmatmul.mubr.msk.bf16.gmra.mrb[60].mxu1 %vm562_vm2, %v3112_v38 }
  0x98   : > { %2851 = vmatprep.mubr.msk.bf16.mxu0 %vm3217_vm0, %v3216_v1  ;;  %2947 = vmatprep.mubr.msk.bf16.mxu1 %vm3217_vm0, %v3216_v1 }
  0x9f   : > { %2852 = vmatmul.mubr.msk.bf16.gmra.mrb[64].mxu0 %vm562_vm2, %v3113_v39  ;;  %2948 = vmatmul.mubr.msk.bf16.gmra.mrb[64].mxu1 %vm562_vm2, %v3114_v40 }
  0xa0   : > { %2855 = vmatprep.mubr.msk.bf16.mxu0 %vm3217_vm0, %v3216_v1  ;;  %2951 = vmatprep.mubr.msk.bf16.mxu1 %vm3217_vm0, %v3216_v1 }
  0xa7   : > { %2856 = vmatmul.mubr.msk.bf16.gmra.mrb[68].mxu0 %vm562_vm2, %v3115_v41  ;;  %2952 = vmatmul.mubr.msk.bf16.gmra.mrb[68].mxu1 %vm562_vm2, %v3116_v42 }
  0xa8   : > { %2859 = vmatprep.mubr.msk.bf16.mxu0 %vm3217_vm0, %v3216_v1  ;;  %2955 = vmatprep.mubr.msk.bf16.mxu1 %vm3217_vm0, %v3216_v1 }
  0xaf   : > { %2860 = vmatmul.mubr.msk.bf16.gmra.mrb[72].mxu0 %vm562_vm2, %v3117_v43  ;;  %2956 = vmatmul.mubr.msk.bf16.gmra.mrb[72].mxu1 %vm562_vm2, %v3118_v44 }
  0xb0   : > { %2863 = vmatprep.mubr.msk.bf16.mxu0 %vm3217_vm0, %v3216_v1  ;;  %2959 = vmatprep.mubr.msk.bf16.mxu1 %vm3217_vm0, %v3216_v1 }
  0xb7   : > { %2864 = vmatmul.mubr.msk.bf16.gmra.mrb[76].mxu0 %vm562_vm2, %v3119_v45  ;;  %2960 = vmatmul.mubr.msk.bf16.gmra.mrb[76].mxu1 %vm562_vm2, %v3120_v46 }
  0xb8   : > { %2867 = vmatprep.mubr.msk.bf16.mxu0 %vm3217_vm0, %v3216_v1  ;;  %2963 = vmatprep.mubr.msk.bf16.mxu1 %vm3217_vm0, %v3216_v1 }
  0xbf   : > { %2868 = vmatmul.mubr.msk.bf16.gmra.mrb[80].mxu0 %vm562_vm2, %v3121_v47  ;;  %2964 = vmatmul.mubr.msk.bf16.gmra.mrb[80].mxu1 %vm562_vm2, %v3122_v48 }
  0xc0   : > { %2871 = vmatprep.mubr.msk.bf16.mxu0 %vm3217_vm0, %v3216_v1  ;;  %2967 = vmatprep.mubr.msk.bf16.mxu1 %vm3217_vm0, %v3216_v1 }
  0xc7   : > { %2872 = vmatmul.mubr.msk.bf16.gmra.mrb[84].mxu0 %vm562_vm2, %v3123_v49  ;;  %2968 = vmatmul.mubr.msk.bf16.gmra.mrb[84].mxu1 %vm562_vm2, %v3124_v50 }
  0xc8   : > { %2875 = vmatprep.mubr.msk.bf16.mxu0 %vm3217_vm0, %v3216_v1  ;;  %2971 = vmatprep.mubr.msk.bf16.mxu1 %vm3217_vm0, %v3216_v1 }
  0xcf   : > { %2876 = vmatmul.mubr.msk.bf16.gmra.mrb[88].mxu0 %vm562_vm2, %v3125_v51  ;;  %2972 = vmatmul.mubr.msk.bf16.gmra.mrb[88].mxu1 %vm562_vm2, %v3126_v52 }
  0xd0   : > { %2879 = vmatprep.mubr.msk.bf16.mxu0 %vm3217_vm0, %v3216_v1 }
  0xd7   : > { %2880 = vmatmul.mubr.msk.bf16.gmra.mrb[92].mxu0 %vm562_vm2, %v3127_v53 }
  0xf2   : > { %v742_v55 = vpop.f32.mrb[0].mxu0  ;;  %v934_v56 = vpop.f32.mrb[0].mxu1 }
  0xf3   : > { %v743_v57 = vadd.f32 %v3493_v54, %v742_v55  ;;  %v2789_v58 = vpop.f32.mrb[1].mxu0  ;;  %v935_v59 = vadd.f32 %v3493_v54, %v934_v56  ;;  %v2885_v60 = vpop.f32.mrb[1].mxu1 }
  0xf4   : > { %v745_v61 = vpop.f32.mrb[2].mxu0  ;;  %v937_v62 = vpop.f32.mrb[2].mxu1 }
  0xf5   : > { %v746_v63 = vadd.f32 %v3493_v54, %v745_v61  ;;  %v2790_v0 = vpop.f32.mrb[3].mxu0  ;;  %v1164_v1 = vmax.f32 %v935_v59, 0.0  ;;  %v938_v2 = vadd.f32 %v3493_v54, %v937_v62  ;;  %v2886_v3 = vpop.f32.mrb[3].mxu1  ;;  %v1116_v4 = vmax.f32 %v743_v57, 0.0 }
  0xf7   : > { %v1117_v5 = vmax.f32 %v746_v63, 0.0  ;;  %v1165_v6 = vmax.f32 %v938_v2, 0.0 }
  0xf9   : > { %v2453_v7 = vpack.c.bf16 %v1117_v5, %v1116_v4  ;;  %v2573_v8 = vpack.c.bf16 %v1165_v6, %v1164_v1 }
  0xfa   : > { %v750_v9 = vpop.f32.mrb[4].mxu0  ;;  %v942_v10 = vpop.f32.mrb[4].mxu1 }
  0xfb   : > { %2454 = vst [vmem:[%s3500_s12] sm:$0xff] %v2453_v7   ;;  %v751_v11 = vadd.f32 %v3493_v54, %v750_v9  ;;  %v2793_v12 = vpop.f32.mrb[5].mxu0  ;;  %2703 = vst [vmem:[%s3500_s12 + $0xc0] sm:$0xff] %v2573_v8   ;;  %v943_v13 = vadd.f32 %v3493_v54, %v942_v10  ;;  %v2889_v14 = vpop.f32.mrb[5].mxu1 }
  0xfc   : > { %v753_v15 = vpop.f32.mrb[6].mxu0  ;;  %v945_v16 = vpop.f32.mrb[6].mxu1 }
  0xfd   : > { %v754_v17 = vadd.f32 %v3493_v54, %v753_v15  ;;  %v2794_v18 = vpop.f32.mrb[7].mxu0  ;;  %v1166_v19 = vmax.f32 %v943_v13, 0.0  ;;  %v946_v20 = vadd.f32 %v3493_v54, %v945_v16  ;;  %v2890_v21 = vpop.f32.mrb[7].mxu1  ;;  %v1118_v22 = vmax.f32 %v751_v11, 0.0 }
  0xff   : > { %v1119_v23 = vmax.f32 %v754_v17, 0.0  ;;  %v1167_v24 = vmax.f32 %v946_v20, 0.0 }
 0x101   : > { %v2458_v25 = vpack.c.bf16 %v1119_v23, %v1118_v22  ;;  %v2578_v26 = vpack.c.bf16 %v1167_v24, %v1166_v19 }
 0x102   : > { %v758_v27 = vpop.f32.mrb[8].mxu0  ;;  %v950_v28 = vpop.f32.mrb[8].mxu1 }
 0x103   : > { %2680 = vst [vmem:[%s3500_s12 + $0x8] sm:$0xff] %v2458_v25   ;;  %v759_v29 = vadd.f32 %v3493_v54, %v758_v27  ;;  %v2797_v30 = vpop.f32.mrb[9].mxu0  ;;  %2704 = vst [vmem:[%s3500_s12 + $0xc8] sm:$0xff] %v2578_v26   ;;  %v951_v31 = vadd.f32 %v3493_v54, %v950_v28  ;;  %v2893_v32 = vpop.f32.mrb[9].mxu1 }
 0x104   : > { %v761_v33 = vpop.f32.mrb[10].mxu0  ;;  %v953_v34 = vpop.f32.mrb[10].mxu1 }
 0x105   : > { %v762_v35 = vadd.f32 %v3493_v54, %v761_v33  ;;  %v2798_v36 = vpop.f32.mrb[11].mxu0  ;;  %v1168_v37 = vmax.f32 %v951_v31, 0.0  ;;  %v954_v38 = vadd.f32 %v3493_v54, %v953_v34  ;;  %v2894_v39 = vpop.f32.mrb[11].mxu1  ;;  %v1120_v40 = vmax.f32 %v759_v29, 0.0 }
 0x107   : > { %v1121_v41 = vmax.f32 %v762_v35, 0.0  ;;  %v1169_v42 = vmax.f32 %v954_v38, 0.0 }
 0x109   : > { %v2463_v43 = vpack.c.bf16 %v1121_v41, %v1120_v40  ;;  %v2583_v44 = vpack.c.bf16 %v1169_v42, %v1168_v37 }
 0x10a   : > { %v766_v45 = vpop.f32.mrb[12].mxu0  ;;  %v958_v46 = vpop.f32.mrb[12].mxu1 }
 0x10b   : > { %2681 = vst [vmem:[%s3500_s12 + $0x10] sm:$0xff] %v2463_v43   ;;  %v767_v47 = vadd.f32 %v3493_v54, %v766_v45  ;;  %v2801_v48 = vpop.f32.mrb[13].mxu0  ;;  %2705 = vst [vmem:[%s3500_s12 + $0xd0] sm:$0xff] %v2583_v44   ;;  %v959_v49 = vadd.f32 %v3493_v54, %v958_v46  ;;  %v2897_v50 = vpop.f32.mrb[13].mxu1 }
 0x10c   : > { %v769_v51 = vpop.f32.mrb[14].mxu0  ;;  %v961_v52 = vpop.f32.mrb[14].mxu1 }
 0x10d   : > { %v770_v53 = vadd.f32 %v3493_v54, %v769_v51  ;;  %v2802_v55 = vpop.f32.mrb[15].mxu0  ;;  %v1170_v56 = vmax.f32 %v959_v49, 0.0  ;;  %v962_v57 = vadd.f32 %v3493_v54, %v961_v52  ;;  %v2898_v58 = vpop.f32.mrb[15].mxu1  ;;  %v1122_v59 = vmax.f32 %v767_v47, 0.0 }
 0x10f   : > { %v1123_v60 = vmax.f32 %v770_v53, 0.0  ;;  %v1171_v61 = vmax.f32 %v962_v57, 0.0 }
 0x111   : > { %v2468_v62 = vpack.c.bf16 %v1123_v60, %v1122_v59  ;;  %v2588_v63 = vpack.c.bf16 %v1171_v61, %v1170_v56 }
 0x112   : > { %v774_v0 = vpop.f32.mrb[16].mxu0  ;;  %v966_v1 = vpop.f32.mrb[16].mxu1 }
 0x113   : > { %2682 = vst [vmem:[%s3500_s12 + $0x18] sm:$0xff] %v2468_v62   ;;  %v775_v2 = vadd.f32 %v3493_v54, %v774_v0  ;;  %v2805_v3 = vpop.f32.mrb[17].mxu0  ;;  %2706 = vst [vmem:[%s3500_s12 + $0xd8] sm:$0xff] %v2588_v63   ;;  %v967_v4 = vadd.f32 %v3493_v54, %v966_v1  ;;  %v2901_v5 = vpop.f32.mrb[17].mxu1 }
 0x114   : > { %v777_v6 = vpop.f32.mrb[18].mxu0  ;;  %v969_v7 = vpop.f32.mrb[18].mxu1 }
 0x115   : > { %v778_v8 = vadd.f32 %v3493_v54, %v777_v6  ;;  %v2806_v9 = vpop.f32.mrb[19].mxu0  ;;  %v1172_v10 = vmax.f32 %v967_v4, 0.0  ;;  %v970_v11 = vadd.f32 %v3493_v54, %v969_v7  ;;  %v2902_v12 = vpop.f32.mrb[19].mxu1  ;;  %v1124_v13 = vmax.f32 %v775_v2, 0.0 }
 0x117   : > { %v1125_v14 = vmax.f32 %v778_v8, 0.0  ;;  %v1173_v15 = vmax.f32 %v970_v11, 0.0 }
 0x119   : > { %v2473_v16 = vpack.c.bf16 %v1125_v14, %v1124_v13  ;;  %v2593_v17 = vpack.c.bf16 %v1173_v15, %v1172_v10 }
 0x11a   : > { %v782_v18 = vpop.f32.mrb[20].mxu0  ;;  %v974_v19 = vpop.f32.mrb[20].mxu1 }
 0x11b   : > { %2683 = vst [vmem:[%s3500_s12 + $0x20] sm:$0xff] %v2473_v16   ;;  %v783_v20 = vadd.f32 %v3493_v54, %v782_v18  ;;  %v2809_v21 = vpop.f32.mrb[21].mxu0  ;;  %2707 = vst [vmem:[%s3500_s12 + $0xe0] sm:$0xff] %v2593_v17   ;;  %v975_v22 = vadd.f32 %v3493_v54, %v974_v19  ;;  %v2905_v23 = vpop.f32.mrb[21].mxu1 }
 0x11c   : > { %v785_v24 = vpop.f32.mrb[22].mxu0  ;;  %v977_v25 = vpop.f32.mrb[22].mxu1 }
 0x11d   : > { %v786_v26 = vadd.f32 %v3493_v54, %v785_v24  ;;  %v2810_v27 = vpop.f32.mrb[23].mxu0  ;;  %v1174_v28 = vmax.f32 %v975_v22, 0.0  ;;  %v978_v29 = vadd.f32 %v3493_v54, %v977_v25  ;;  %v2906_v30 = vpop.f32.mrb[23].mxu1  ;;  %v1126_v31 = vmax.f32 %v783_v20, 0.0 }
 0x11f   : > { %v1127_v32 = vmax.f32 %v786_v26, 0.0  ;;  %v1175_v33 = vmax.f32 %v978_v29, 0.0 }
 0x121   : > { %v2478_v34 = vpack.c.bf16 %v1127_v32, %v1126_v31  ;;  %v2598_v35 = vpack.c.bf16 %v1175_v33, %v1174_v28 }
 0x122   : > { %v790_v36 = vpop.f32.mrb[24].mxu0  ;;  %v982_v37 = vpop.f32.mrb[24].mxu1 }
 0x123   : > { %2684 = vst [vmem:[%s3500_s12 + $0x28] sm:$0xff] %v2478_v34   ;;  %v791_v38 = vadd.f32 %v3493_v54, %v790_v36  ;;  %v2813_v39 = vpop.f32.mrb[25].mxu0  ;;  %2708 = vst [vmem:[%s3500_s12 + $0xe8] sm:$0xff] %v2598_v35   ;;  %v983_v40 = vadd.f32 %v3493_v54, %v982_v37  ;;  %v2909_v41 = vpop.f32.mrb[25].mxu1 }
 0x124   : > { %v793_v42 = vpop.f32.mrb[26].mxu0  ;;  %v985_v43 = vpop.f32.mrb[26].mxu1 }
 0x125   : > { %v794_v44 = vadd.f32 %v3493_v54, %v793_v42  ;;  %v2814_v45 = vpop.f32.mrb[27].mxu0  ;;  %v1176_v46 = vmax.f32 %v983_v40, 0.0  ;;  %v986_v47 = vadd.f32 %v3493_v54, %v985_v43  ;;  %v2910_v48 = vpop.f32.mrb[27].mxu1  ;;  %v1128_v49 = vmax.f32 %v791_v38, 0.0 }
 0x127   : > { %v1129_v50 = vmax.f32 %v794_v44, 0.0  ;;  %v1177_v51 = vmax.f32 %v986_v47, 0.0 }
 0x129   : > { %v2483_v52 = vpack.c.bf16 %v1129_v50, %v1128_v49  ;;  %v2603_v53 = vpack.c.bf16 %v1177_v51, %v1176_v46 }
 0x12a   : > { %v798_v55 = vpop.f32.mrb[28].mxu0  ;;  %v990_v56 = vpop.f32.mrb[28].mxu1 }
 0x12b   : > { %2685 = vst [vmem:[%s3500_s12 + $0x30] sm:$0xff] %v2483_v52   ;;  %v799_v57 = vadd.f32 %v3493_v54, %v798_v55  ;;  %v2817_v58 = vpop.f32.mrb[29].mxu0  ;;  %2709 = vst [vmem:[%s3500_s12 + $0xf0] sm:$0xff] %v2603_v53   ;;  %v991_v59 = vadd.f32 %v3493_v54, %v990_v56  ;;  %v2913_v60 = vpop.f32.mrb[29].mxu1 }
 0x12c   : > { %v801_v61 = vpop.f32.mrb[30].mxu0  ;;  %v993_v62 = vpop.f32.mrb[30].mxu1 }
 0x12d   : > { %v802_v63 = vadd.f32 %v3493_v54, %v801_v61  ;;  %v2818_v0 = vpop.f32.mrb[31].mxu0  ;;  %v1178_v1 = vmax.f32 %v991_v59, 0.0  ;;  %v994_v2 = vadd.f32 %v3493_v54, %v993_v62  ;;  %v2914_v3 = vpop.f32.mrb[31].mxu1  ;;  %v1130_v4 = vmax.f32 %v799_v57, 0.0 }
 0x12f   : > { %v1131_v5 = vmax.f32 %v802_v63, 0.0  ;;  %v1179_v6 = vmax.f32 %v994_v2, 0.0 }
 0x131   : > { %v2488_v7 = vpack.c.bf16 %v1131_v5, %v1130_v4  ;;  %v2608_v8 = vpack.c.bf16 %v1179_v6, %v1178_v1 }
 0x132   : > { %v806_v9 = vpop.f32.mrb[32].mxu0  ;;  %v998_v10 = vpop.f32.mrb[32].mxu1 }
 0x133   : > { %2686 = vst [vmem:[%s3500_s12 + $0x38] sm:$0xff] %v2488_v7   ;;  %v807_v11 = vadd.f32 %v3493_v54, %v806_v9  ;;  %v2821_v12 = vpop.f32.mrb[33].mxu0  ;;  %2710 = vst [vmem:[%s3500_s12 + $0xf8] sm:$0xff] %v2608_v8   ;;  %v999_v13 = vadd.f32 %v3493_v54, %v998_v10  ;;  %v2917_v14 = vpop.f32.mrb[33].mxu1 }
 0x134   : > { %v809_v15 = vpop.f32.mrb[34].mxu0  ;;  %v1001_v16 = vpop.f32.mrb[34].mxu1 }
 0x135   : > { %v810_v17 = vadd.f32 %v3493_v54, %v809_v15  ;;  %v2822_v18 = vpop.f32.mrb[35].mxu0  ;;  %v1180_v19 = vmax.f32 %v999_v13, 0.0  ;;  %v1002_v20 = vadd.f32 %v3493_v54, %v1001_v16  ;;  %v2918_v21 = vpop.f32.mrb[35].mxu1  ;;  %v1132_v22 = vmax.f32 %v807_v11, 0.0 }
 0x137   : > { %v1133_v23 = vmax.f32 %v810_v17, 0.0  ;;  %v1181_v24 = vmax.f32 %v1002_v20, 0.0 }
 0x139   : > { %v2493_v25 = vpack.c.bf16 %v1133_v23, %v1132_v22  ;;  %v2613_v26 = vpack.c.bf16 %v1181_v24, %v1180_v19 }
 0x13a   : > { %v814_v27 = vpop.f32.mrb[36].mxu0  ;;  %v1006_v28 = vpop.f32.mrb[36].mxu1 }
 0x13b   : > { %2687 = vst [vmem:[%s3500_s12 + $0x40] sm:$0xff] %v2493_v25   ;;  %v815_v29 = vadd.f32 %v3493_v54, %v814_v27  ;;  %v2825_v30 = vpop.f32.mrb[37].mxu0  ;;  %2711 = vst [vmem:[%s3500_s12 + $0x100] sm:$0xff] %v2613_v26   ;;  %v1007_v31 = vadd.f32 %v3493_v54, %v1006_v28  ;;  %v2921_v32 = vpop.f32.mrb[37].mxu1 }
 0x13c   : > { %v817_v33 = vpop.f32.mrb[38].mxu0  ;;  %v1009_v34 = vpop.f32.mrb[38].mxu1 }
 0x13d   : > { %v818_v35 = vadd.f32 %v3493_v54, %v817_v33  ;;  %v2826_v36 = vpop.f32.mrb[39].mxu0  ;;  %v1182_v37 = vmax.f32 %v1007_v31, 0.0  ;;  %v1010_v38 = vadd.f32 %v3493_v54, %v1009_v34  ;;  %v2922_v39 = vpop.f32.mrb[39].mxu1  ;;  %v1134_v40 = vmax.f32 %v815_v29, 0.0 }
 0x13f   : > { %v1135_v41 = vmax.f32 %v818_v35, 0.0  ;;  %v1183_v42 = vmax.f32 %v1010_v38, 0.0 }
 0x141   : > { %v2498_v43 = vpack.c.bf16 %v1135_v41, %v1134_v40  ;;  %v2618_v44 = vpack.c.bf16 %v1183_v42, %v1182_v37 }
 0x142   : > { %v822_v45 = vpop.f32.mrb[40].mxu0  ;;  %v1014_v46 = vpop.f32.mrb[40].mxu1 }
 0x143   : > { %2688 = vst [vmem:[%s3500_s12 + $0x48] sm:$0xff] %v2498_v43   ;;  %v823_v47 = vadd.f32 %v3493_v54, %v822_v45  ;;  %v2829_v48 = vpop.f32.mrb[41].mxu0  ;;  %2712 = vst [vmem:[%s3500_s12 + $0x108] sm:$0xff] %v2618_v44   ;;  %v1015_v49 = vadd.f32 %v3493_v54, %v1014_v46  ;;  %v2925_v50 = vpop.f32.mrb[41].mxu1 }
 0x144   : > { %v825_v51 = vpop.f32.mrb[42].mxu0  ;;  %v1017_v52 = vpop.f32.mrb[42].mxu1 }
 0x145   : > { %v826_v53 = vadd.f32 %v3493_v54, %v825_v51  ;;  %v2830_v55 = vpop.f32.mrb[43].mxu0  ;;  %v1184_v56 = vmax.f32 %v1015_v49, 0.0  ;;  %v1018_v57 = vadd.f32 %v3493_v54, %v1017_v52  ;;  %v2926_v58 = vpop.f32.mrb[43].mxu1  ;;  %v1136_v59 = vmax.f32 %v823_v47, 0.0 }
 0x147   : > { %v1137_v60 = vmax.f32 %v826_v53, 0.0  ;;  %v1185_v61 = vmax.f32 %v1018_v57, 0.0 }
 0x149   : > { %v2503_v62 = vpack.c.bf16 %v1137_v60, %v1136_v59  ;;  %v2623_v63 = vpack.c.bf16 %v1185_v61, %v1184_v56 }
 0x14a   : > { %v830_v0 = vpop.f32.mrb[44].mxu0  ;;  %v1022_v1 = vpop.f32.mrb[44].mxu1 }
 0x14b   : > { %2689 = vst [vmem:[%s3500_s12 + $0x50] sm:$0xff] %v2503_v62   ;;  %v831_v2 = vadd.f32 %v3493_v54, %v830_v0  ;;  %v2833_v3 = vpop.f32.mrb[45].mxu0  ;;  %2713 = vst [vmem:[%s3500_s12 + $0x110] sm:$0xff] %v2623_v63   ;;  %v1023_v4 = vadd.f32 %v3493_v54, %v1022_v1  ;;  %v2929_v5 = vpop.f32.mrb[45].mxu1 }
 0x14c   : > { %v833_v6 = vpop.f32.mrb[46].mxu0  ;;  %v1025_v7 = vpop.f32.mrb[46].mxu1 }
 0x14d   : > { %v834_v8 = vadd.f32 %v3493_v54, %v833_v6  ;;  %v2834_v9 = vpop.f32.mrb[47].mxu0  ;;  %v1186_v10 = vmax.f32 %v1023_v4, 0.0  ;;  %v1026_v11 = vadd.f32 %v3493_v54, %v1025_v7  ;;  %v2930_v12 = vpop.f32.mrb[47].mxu1  ;;  %v1138_v13 = vmax.f32 %v831_v2, 0.0 }
 0x14f   : > { %v1139_v14 = vmax.f32 %v834_v8, 0.0  ;;  %v1187_v15 = vmax.f32 %v1026_v11, 0.0 }
 0x151   : > { %v2508_v16 = vpack.c.bf16 %v1139_v14, %v1138_v13  ;;  %v2628_v17 = vpack.c.bf16 %v1187_v15, %v1186_v10 }
 0x152   : > { %v838_v18 = vpop.f32.mrb[48].mxu0  ;;  %v1030_v19 = vpop.f32.mrb[48].mxu1 }
 0x153   : > { %2690 = vst [vmem:[%s3500_s12 + $0x58] sm:$0xff] %v2508_v16   ;;  %v839_v20 = vadd.f32 %v3493_v54, %v838_v18  ;;  %v2837_v21 = vpop.f32.mrb[49].mxu0  ;;  %2714 = vst [vmem:[%s3500_s12 + $0x118] sm:$0xff] %v2628_v17   ;;  %v1031_v22 = vadd.f32 %v3493_v54, %v1030_v19  ;;  %v2933_v23 = vpop.f32.mrb[49].mxu1 }
 0x154   : > { %v841_v24 = vpop.f32.mrb[50].mxu0  ;;  %v1033_v25 = vpop.f32.mrb[50].mxu1 }
 0x155   : > { %v842_v26 = vadd.f32 %v3493_v54, %v841_v24  ;;  %v2838_v27 = vpop.f32.mrb[51].mxu0  ;;  %v1188_v28 = vmax.f32 %v1031_v22, 0.0  ;;  %v1034_v29 = vadd.f32 %v3493_v54, %v1033_v25  ;;  %v2934_v30 = vpop.f32.mrb[51].mxu1  ;;  %v1140_v31 = vmax.f32 %v839_v20, 0.0 }
 0x157   : > { %v1141_v32 = vmax.f32 %v842_v26, 0.0  ;;  %v1189_v33 = vmax.f32 %v1034_v29, 0.0 }
 0x159   : > { %v2513_v34 = vpack.c.bf16 %v1141_v32, %v1140_v31  ;;  %v2633_v35 = vpack.c.bf16 %v1189_v33, %v1188_v28 }
 0x15a   : > { %v846_v36 = vpop.f32.mrb[52].mxu0  ;;  %v1038_v37 = vpop.f32.mrb[52].mxu1 }
 0x15b   : > { %2691 = vst [vmem:[%s3500_s12 + $0x60] sm:$0xff] %v2513_v34   ;;  %v847_v38 = vadd.f32 %v3493_v54, %v846_v36  ;;  %v2841_v39 = vpop.f32.mrb[53].mxu0  ;;  %2715 = vst [vmem:[%s3500_s12 + $0x120] sm:$0xff] %v2633_v35   ;;  %v1039_v40 = vadd.f32 %v3493_v54, %v1038_v37  ;;  %v2937_v41 = vpop.f32.mrb[53].mxu1 }
 0x15c   : > { %v849_v42 = vpop.f32.mrb[54].mxu0  ;;  %v1041_v43 = vpop.f32.mrb[54].mxu1 }
 0x15d   : > { %v850_v44 = vadd.f32 %v3493_v54, %v849_v42  ;;  %v2842_v45 = vpop.f32.mrb[55].mxu0  ;;  %v1190_v46 = vmax.f32 %v1039_v40, 0.0  ;;  %v1042_v47 = vadd.f32 %v3493_v54, %v1041_v43  ;;  %v2938_v48 = vpop.f32.mrb[55].mxu1  ;;  %v1142_v49 = vmax.f32 %v847_v38, 0.0 }
 0x15f   : > { %v1143_v50 = vmax.f32 %v850_v44, 0.0  ;;  %v1191_v51 = vmax.f32 %v1042_v47, 0.0 }
 0x161   : > { %v2518_v52 = vpack.c.bf16 %v1143_v50, %v1142_v49  ;;  %v2638_v53 = vpack.c.bf16 %v1191_v51, %v1190_v46 }
 0x162   : > { %v854_v55 = vpop.f32.mrb[56].mxu0  ;;  %v1046_v56 = vpop.f32.mrb[56].mxu1 }
 0x163   : > { %2692 = vst [vmem:[%s3500_s12 + $0x68] sm:$0xff] %v2518_v52   ;;  %v855_v57 = vadd.f32 %v3493_v54, %v854_v55  ;;  %v2845_v58 = vpop.f32.mrb[57].mxu0  ;;  %2716 = vst [vmem:[%s3500_s12 + $0x128] sm:$0xff] %v2638_v53   ;;  %v1047_v59 = vadd.f32 %v3493_v54, %v1046_v56  ;;  %v2941_v60 = vpop.f32.mrb[57].mxu1 }
 0x164   : > { %v857_v61 = vpop.f32.mrb[58].mxu0  ;;  %v1049_v62 = vpop.f32.mrb[58].mxu1 }
 0x165   : > { %v858_v63 = vadd.f32 %v3493_v54, %v857_v61  ;;  %v2846_v0 = vpop.f32.mrb[59].mxu0  ;;  %v1192_v1 = vmax.f32 %v1047_v59, 0.0  ;;  %v1050_v2 = vadd.f32 %v3493_v54, %v1049_v62  ;;  %v2942_v3 = vpop.f32.mrb[59].mxu1  ;;  %v1144_v4 = vmax.f32 %v855_v57, 0.0 }
 0x167   : > { %v1145_v5 = vmax.f32 %v858_v63, 0.0  ;;  %v1193_v6 = vmax.f32 %v1050_v2, 0.0 }
 0x169   : > { %v2523_v7 = vpack.c.bf16 %v1145_v5, %v1144_v4  ;;  %v2643_v8 = vpack.c.bf16 %v1193_v6, %v1192_v1 }
 0x16a   : > { %v862_v9 = vpop.f32.mrb[60].mxu0  ;;  %v1054_v10 = vpop.f32.mrb[60].mxu1 }
 0x16b   : > { %2693 = vst [vmem:[%s3500_s12 + $0x70] sm:$0xff] %v2523_v7   ;;  %v863_v11 = vadd.f32 %v3493_v54, %v862_v9  ;;  %v2849_v12 = vpop.f32.mrb[61].mxu0  ;;  %2717 = vst [vmem:[%s3500_s12 + $0x130] sm:$0xff] %v2643_v8   ;;  %v1055_v13 = vadd.f32 %v3493_v54, %v1054_v10  ;;  %v2945_v14 = vpop.f32.mrb[61].mxu1 }
 0x16c   : > { %v865_v15 = vpop.f32.mrb[62].mxu0  ;;  %v1057_v16 = vpop.f32.mrb[62].mxu1 }
 0x16d   : > { %v866_v17 = vadd.f32 %v3493_v54, %v865_v15  ;;  %v2850_v18 = vpop.f32.mrb[63].mxu0  ;;  %v1194_v19 = vmax.f32 %v1055_v13, 0.0  ;;  %v1058_v20 = vadd.f32 %v3493_v54, %v1057_v16  ;;  %v2946_v21 = vpop.f32.mrb[63].mxu1  ;;  %v1146_v22 = vmax.f32 %v863_v11, 0.0 }
 0x16f   : > { %v1147_v23 = vmax.f32 %v866_v17, 0.0  ;;  %v1195_v24 = vmax.f32 %v1058_v20, 0.0 }
 0x171   : > { %v2528_v25 = vpack.c.bf16 %v1147_v23, %v1146_v22  ;;  %v2648_v26 = vpack.c.bf16 %v1195_v24, %v1194_v19 }
 0x172   : > { %v870_v27 = vpop.f32.mrb[64].mxu0  ;;  %v1062_v28 = vpop.f32.mrb[64].mxu1 }
 0x173   : > { %2694 = vst [vmem:[%s3500_s12 + $0x78] sm:$0xff] %v2528_v25   ;;  %v871_v29 = vadd.f32 %v3493_v54, %v870_v27  ;;  %v2853_v30 = vpop.f32.mrb[65].mxu0  ;;  %2718 = vst [vmem:[%s3500_s12 + $0x138] sm:$0xff] %v2648_v26   ;;  %v1063_v31 = vadd.f32 %v3493_v54, %v1062_v28  ;;  %v2949_v32 = vpop.f32.mrb[65].mxu1 }
 0x174   : > { %v873_v33 = vpop.f32.mrb[66].mxu0  ;;  %v1065_v34 = vpop.f32.mrb[66].mxu1 }
 0x175   : > { %v874_v35 = vadd.f32 %v3493_v54, %v873_v33  ;;  %v2854_v36 = vpop.f32.mrb[67].mxu0  ;;  %v1196_v37 = vmax.f32 %v1063_v31, 0.0  ;;  %v1066_v38 = vadd.f32 %v3493_v54, %v1065_v34  ;;  %v2950_v39 = vpop.f32.mrb[67].mxu1  ;;  %v1148_v40 = vmax.f32 %v871_v29, 0.0 }
 0x177   : > { %v1149_v41 = vmax.f32 %v874_v35, 0.0  ;;  %v1197_v42 = vmax.f32 %v1066_v38, 0.0 }
 0x179   : > { %v2533_v43 = vpack.c.bf16 %v1149_v41, %v1148_v40  ;;  %v2653_v44 = vpack.c.bf16 %v1197_v42, %v1196_v37 }
 0x17a   : > { %v878_v45 = vpop.f32.mrb[68].mxu0  ;;  %v1070_v46 = vpop.f32.mrb[68].mxu1 }
 0x17b   : > { %2695 = vst [vmem:[%s3500_s12 + $0x80] sm:$0xff] %v2533_v43   ;;  %v879_v47 = vadd.f32 %v3493_v54, %v878_v45  ;;  %v2857_v48 = vpop.f32.mrb[69].mxu0  ;;  %2719 = vst [vmem:[%s3500_s12 + $0x140] sm:$0xff] %v2653_v44   ;;  %v1071_v49 = vadd.f32 %v3493_v54, %v1070_v46  ;;  %v2953_v50 = vpop.f32.mrb[69].mxu1 }
 0x17c   : > { %v881_v51 = vpop.f32.mrb[70].mxu0  ;;  %v1073_v52 = vpop.f32.mrb[70].mxu1 }
 0x17d   : > { %v882_v53 = vadd.f32 %v3493_v54, %v881_v51  ;;  %v2858_v55 = vpop.f32.mrb[71].mxu0  ;;  %v1198_v56 = vmax.f32 %v1071_v49, 0.0  ;;  %v1074_v57 = vadd.f32 %v3493_v54, %v1073_v52  ;;  %v2954_v58 = vpop.f32.mrb[71].mxu1  ;;  %v1150_v59 = vmax.f32 %v879_v47, 0.0 }
 0x17f   : > { %v1151_v60 = vmax.f32 %v882_v53, 0.0  ;;  %v1199_v61 = vmax.f32 %v1074_v57, 0.0 }
 0x181   : > { %v2538_v62 = vpack.c.bf16 %v1151_v60, %v1150_v59  ;;  %v2658_v63 = vpack.c.bf16 %v1199_v61, %v1198_v56 }
 0x182   : > { %v886_v0 = vpop.f32.mrb[72].mxu0  ;;  %v1078_v1 = vpop.f32.mrb[72].mxu1 }
 0x183   : > { %2696 = vst [vmem:[%s3500_s12 + $0x88] sm:$0xff] %v2538_v62   ;;  %v887_v2 = vadd.f32 %v3493_v54, %v886_v0  ;;  %v2861_v3 = vpop.f32.mrb[73].mxu0  ;;  %2720 = vst [vmem:[%s3500_s12 + $0x148] sm:$0xff] %v2658_v63   ;;  %v1079_v4 = vadd.f32 %v3493_v54, %v1078_v1  ;;  %v2957_v5 = vpop.f32.mrb[73].mxu1 }
 0x184   : > { %v889_v6 = vpop.f32.mrb[74].mxu0  ;;  %v1081_v7 = vpop.f32.mrb[74].mxu1 }
 0x185   : > { %v890_v8 = vadd.f32 %v3493_v54, %v889_v6  ;;  %v2862_v9 = vpop.f32.mrb[75].mxu0  ;;  %v1200_v10 = vmax.f32 %v1079_v4, 0.0  ;;  %v1082_v11 = vadd.f32 %v3493_v54, %v1081_v7  ;;  %v2958_v12 = vpop.f32.mrb[75].mxu1  ;;  %v1152_v13 = vmax.f32 %v887_v2, 0.0 }
 0x187   : > { %v1153_v14 = vmax.f32 %v890_v8, 0.0  ;;  %v1201_v15 = vmax.f32 %v1082_v11, 0.0 }
 0x189   : > { %v2543_v16 = vpack.c.bf16 %v1153_v14, %v1152_v13  ;;  %v2663_v17 = vpack.c.bf16 %v1201_v15, %v1200_v10 }
 0x18a   : > { %v894_v18 = vpop.f32.mrb[76].mxu0  ;;  %v1086_v19 = vpop.f32.mrb[76].mxu1 }
 0x18b   : > { %2697 = vst [vmem:[%s3500_s12 + $0x90] sm:$0xff] %v2543_v16   ;;  %v895_v20 = vadd.f32 %v3493_v54, %v894_v18  ;;  %v2865_v21 = vpop.f32.mrb[77].mxu0  ;;  %2721 = vst [vmem:[%s3500_s12 + $0x150] sm:$0xff] %v2663_v17   ;;  %v1087_v22 = vadd.f32 %v3493_v54, %v1086_v19  ;;  %v2961_v23 = vpop.f32.mrb[77].mxu1 }
 0x18c   : > { %v897_v24 = vpop.f32.mrb[78].mxu0  ;;  %v1089_v25 = vpop.f32.mrb[78].mxu1 }
 0x18d   : > { %v898_v26 = vadd.f32 %v3493_v54, %v897_v24  ;;  %v2866_v27 = vpop.f32.mrb[79].mxu0  ;;  %v1202_v28 = vmax.f32 %v1087_v22, 0.0  ;;  %v1090_v29 = vadd.f32 %v3493_v54, %v1089_v25  ;;  %v2962_v30 = vpop.f32.mrb[79].mxu1  ;;  %v1154_v31 = vmax.f32 %v895_v20, 0.0 }
 0x18f   : > { %v1155_v32 = vmax.f32 %v898_v26, 0.0  ;;  %v1203_v33 = vmax.f32 %v1090_v29, 0.0 }
 0x191   : > { %v2548_v34 = vpack.c.bf16 %v1155_v32, %v1154_v31  ;;  %v2668_v35 = vpack.c.bf16 %v1203_v33, %v1202_v28 }
 0x192   : > { %v902_v36 = vpop.f32.mrb[80].mxu0  ;;  %v1094_v37 = vpop.f32.mrb[80].mxu1 }
 0x193   : > { %2698 = vst [vmem:[%s3500_s12 + $0x98] sm:$0xff] %v2548_v34   ;;  %v903_v38 = vadd.f32 %v3493_v54, %v902_v36  ;;  %v2869_v39 = vpop.f32.mrb[81].mxu0  ;;  %2722 = vst [vmem:[%s3500_s12 + $0x158] sm:$0xff] %v2668_v35   ;;  %v1095_v40 = vadd.f32 %v3493_v54, %v1094_v37  ;;  %v2965_v41 = vpop.f32.mrb[81].mxu1 }
 0x194   : > { %v905_v42 = vpop.f32.mrb[82].mxu0  ;;  %v1097_v43 = vpop.f32.mrb[82].mxu1 }
 0x195   : > { %v906_v44 = vadd.f32 %v3493_v54, %v905_v42  ;;  %v2870_v45 = vpop.f32.mrb[83].mxu0  ;;  %v1204_v46 = vmax.f32 %v1095_v40, 0.0  ;;  %v1098_v47 = vadd.f32 %v3493_v54, %v1097_v43  ;;  %v2966_v48 = vpop.f32.mrb[83].mxu1  ;;  %v1156_v49 = vmax.f32 %v903_v38, 0.0 }
 0x197   : > { %v1157_v50 = vmax.f32 %v906_v44, 0.0  ;;  %v1205_v51 = vmax.f32 %v1098_v47, 0.0 }
 0x199   : > { %v2553_v52 = vpack.c.bf16 %v1157_v50, %v1156_v49  ;;  %v2673_v53 = vpack.c.bf16 %v1205_v51, %v1204_v46 }
 0x19a   : > { %v910_v55 = vpop.f32.mrb[84].mxu0  ;;  %v1102_v56 = vpop.f32.mrb[84].mxu1 }
 0x19b   : > { %2699 = vst [vmem:[%s3500_s12 + $0xa0] sm:$0xff] %v2553_v52   ;;  %v911_v57 = vadd.f32 %v3493_v54, %v910_v55  ;;  %v2873_v58 = vpop.f32.mrb[85].mxu0  ;;  %2723 = vst [vmem:[%s3500_s12 + $0x160] sm:$0xff] %v2673_v53   ;;  %v1103_v59 = vadd.f32 %v3493_v54, %v1102_v56  ;;  %v2969_v60 = vpop.f32.mrb[85].mxu1 }
 0x19c   : > { %v913_v61 = vpop.f32.mrb[86].mxu0  ;;  %v1105_v62 = vpop.f32.mrb[86].mxu1 }
 0x19d   : > { %v914_v63 = vadd.f32 %v3493_v54, %v913_v61  ;;  %v2874_v0 = vpop.f32.mrb[87].mxu0  ;;  %v1206_v1 = vmax.f32 %v1103_v59, 0.0  ;;  %v1106_v2 = vadd.f32 %v3493_v54, %v1105_v62  ;;  %v2970_v3 = vpop.f32.mrb[87].mxu1  ;;  %v1158_v4 = vmax.f32 %v911_v57, 0.0 }
 0x19f   : > { %v1159_v5 = vmax.f32 %v914_v63, 0.0  ;;  %v1207_v6 = vmax.f32 %v1106_v2, 0.0 }
 0x1a1   : > { %v2558_v7 = vpack.c.bf16 %v1159_v5, %v1158_v4  ;;  %v2678_v8 = vpack.c.bf16 %v1207_v6, %v1206_v1 }
 0x1a2   : > { %v918_v9 = vpop.f32.mrb[88].mxu0  ;;  %v1110_v10 = vpop.f32.mrb[88].mxu1 }
 0x1a3   : > { %2700 = vst [vmem:[%s3500_s12 + $0xa8] sm:$0xff] %v2558_v7   ;;  %v919_v11 = vadd.f32 %v3493_v54, %v918_v9  ;;  %v2877_v12 = vpop.f32.mrb[89].mxu0  ;;  %2724 = vst [vmem:[%s3500_s12 + $0x168] sm:$0xff] %v2678_v8   ;;  %v1111_v13 = vadd.f32 %v3493_v54, %v1110_v10  ;;  %v2973_v14 = vpop.f32.mrb[89].mxu1 }
 0x1a4   : > { %v921_v15 = vpop.f32.mrb[90].mxu0  ;;  %v1113_v16 = vpop.f32.mrb[90].mxu1 }
 0x1a5   : > { %v922_v17 = vadd.f32 %v3493_v54, %v921_v15  ;;  %v2878_v18 = vpop.f32.mrb[91].mxu0  ;;  %v1208_v19 = vmax.f32 %v1111_v13, 0.0  ;;  %v2974_v20 = vpop.f32.mrb[91].mxu1  ;;  %v1160_v21 = vmax.f32 %v919_v11, 0.0 }
 0x1a7   : > { %v1161_v22 = vmax.f32 %v922_v17, 0.0  ;;  %v2446_v23 = vpack.c.bf16 %v1208_v19, %v1208_v19 }
 0x1a9   : > { %v2563_v24 = vpack.c.bf16 %v1161_v22, %v1160_v21  ;;  %1674 = vst [vmem:[%s3500_s12 + $0x170] sm:$0xf] %v2446_v23 }
 0x1aa   : > { %v926_v25 = vpop.f32.mrb[92].mxu0 }
 0x1ab   : > { %2701 = vst [vmem:[%s3500_s12 + $0xb0] sm:$0xff] %v2563_v24   ;;  %v927_v26 = vadd.f32 %v3493_v54, %v926_v25  ;;  %v2881_v27 = vpop.f32.mrb[93].mxu0 }
 0x1ac   : > { %v929_v28 = vpop.f32.mrb[94].mxu0 }
 0x1ad   : > { %v930_v29 = vadd.f32 %v3493_v54, %v929_v28  ;;  %v2882_v30 = vpop.f32.mrb[95].mxu0  ;;  %v1162_v31 = vmax.f32 %v927_v26, 0.0  ;;  %1681 = sbr.rel (!%p3263_p4) target bundleno = 527 (0x20f), region = 36 }
 0x1af   : > { %v1163_v32 = vmax.f32 %v930_v29, 0.0 }
 0x1b1   : > { %v2568_v33 = vpack.c.bf16 %v1163_v32, %v1162_v31 }
 0x1b3   : > { %2702 = vst [vmem:[%s3500_s12 + $0xb8] sm:$0xff] %v2568_v33  }
 0x1b4   : > { %s3849_s18 = smov (!%p1684_p8, %s1683_s18), 93 }
 0x1b5   : > { %s2339_s26 = sshll.u32 %s3849_s18, 6 }
 0x1b6   : > { %p2342_p9 = scmp.eq.s32.totalorder %s2339_s26, 0 }
 0x1b7   : > { %s3651_s27 = sshrl.u32 (!%p2342_p9), %s3849_s18, 6 }
 0x1b8   : > { %1692 = sbr.rel (%p2342_p9) target bundleno = 527 (0x20f), region = 40  ;;  %p2343_p10 = scmp.le.s32.totalorder (!%p2342_p9), %s3651_s27, 0 }
 0x1bf   : > { %2097 = sbr.rel (%p2343_p10) target bundleno = 506 (0x1fa), region = 112  ;;  %s3842_s15 = smov (!%p2343_p10), %s3645_s24 }
 0x1c0   : > { %s3843_s20 = smov (!%p2343_p10), %s3500_s12  ;;  %s3660_s25 = smov (!%p2343_p10), 0  }
 0x1c1   : > { %s3662_s28 = smov (!%p2343_p10), 0  }
 0x1c6 LB: >> { %v1708_v54 = vld [vmem:[%s3190_s20] sm:$0xf]  ;;  %v1710_v34 = vld [vmem:[%s3190_s20 + $0x4] sm:$0xf]  ;;  %v1712_v35 = vld [vmem:[%s3190_s20 + $0x8] sm:$0xf]  ;;  %s3198_s28 = sphi %s3662_s28, %s1702_s28   ;;  %s3194_s25 = sphi %s3660_s25, %s3844_s25   ;;  %s3190_s20 = sphi %s3843_s20, %s1841_s20   ;;  %s3186_s15 = sphi %s3842_s15, %s1842_s15  }
 0x1c7   : >> { %1709 = vst [vmem:[%s3186_s15] sm:$0xf] %v1708_v54  ;;  %1711 = vst [vmem:[%s3186_s15 + $0x4] sm:$0xf] %v1710_v34  ;;  %v1714_v36 = vld [vmem:[%s3190_s20 + $0xc] sm:$0xf]  ;;  %s1836_s29 = sadd.s32 1, %s3194_s25 }
 0x1c8   : >> { %1713 = vst [vmem:[%s3186_s15 + $0x8] sm:$0xf] %v1712_v35  ;;  %v1716_v37 = vld [vmem:[%s3190_s20 + $0x10] sm:$0xf]  ;;  %v1718_v38 = vld [vmem:[%s3190_s20 + $0x14] sm:$0xf]  ;;  %p1837_p11 = scmp.ge.s32.totalorder %s1836_s29, %s3651_s27 }
 0x1c9   : >> { %1715 = vst [vmem:[%s3186_s15 + $0xc] sm:$0xf] %v1714_v36  ;;  %1717 = vst [vmem:[%s3186_s15 + $0x10] sm:$0xf] %v1716_v37  ;;  %v1720_v39 = vld [vmem:[%s3190_s20 + $0x18] sm:$0xf] }
 0x1ca   : >> { %1719 = vst [vmem:[%s3186_s15 + $0x14] sm:$0xf] %v1718_v38  ;;  %v1722_v40 = vld [vmem:[%s3190_s20 + $0x1c] sm:$0xf]  ;;  %v1724_v41 = vld [vmem:[%s3190_s20 + $0x20] sm:$0xf] }
 0x1cb   : >> { %1721 = vst [vmem:[%s3186_s15 + $0x18] sm:$0xf] %v1720_v39  ;;  %1723 = vst [vmem:[%s3186_s15 + $0x1c] sm:$0xf] %v1722_v40  ;;  %v1726_v42 = vld [vmem:[%s3190_s20 + $0x24] sm:$0xf] }
 0x1cc   : >> { %1725 = vst [vmem:[%s3186_s15 + $0x20] sm:$0xf] %v1724_v41  ;;  %v1728_v43 = vld [vmem:[%s3190_s20 + $0x28] sm:$0xf]  ;;  %v1730_v44 = vld [vmem:[%s3190_s20 + $0x2c] sm:$0xf] }
 0x1cd   : >> { %1727 = vst [vmem:[%s3186_s15 + $0x24] sm:$0xf] %v1726_v42  ;;  %1729 = vst [vmem:[%s3186_s15 + $0x28] sm:$0xf] %v1728_v43  ;;  %v1732_v45 = vld [vmem:[%s3190_s20 + $0x30] sm:$0xf] }
 0x1ce   : >> { %1731 = vst [vmem:[%s3186_s15 + $0x2c] sm:$0xf] %v1730_v44  ;;  %v1734_v46 = vld [vmem:[%s3190_s20 + $0x34] sm:$0xf]  ;;  %v1736_v47 = vld [vmem:[%s3190_s20 + $0x38] sm:$0xf] }
 0x1cf   : >> { %1733 = vst [vmem:[%s3186_s15 + $0x30] sm:$0xf] %v1732_v45  ;;  %1735 = vst [vmem:[%s3186_s15 + $0x34] sm:$0xf] %v1734_v46  ;;  %v1738_v48 = vld [vmem:[%s3190_s20 + $0x3c] sm:$0xf] }
 0x1d0   : >> { %1737 = vst [vmem:[%s3186_s15 + $0x38] sm:$0xf] %v1736_v47  ;;  %v1740_v49 = vld [vmem:[%s3190_s20 + $0x40] sm:$0xf]  ;;  %v1742_v50 = vld [vmem:[%s3190_s20 + $0x44] sm:$0xf] }
 0x1d1   : >> { %1739 = vst [vmem:[%s3186_s15 + $0x3c] sm:$0xf] %v1738_v48  ;;  %1741 = vst [vmem:[%s3186_s15 + $0x40] sm:$0xf] %v1740_v49  ;;  %v1744_v51 = vld [vmem:[%s3190_s20 + $0x48] sm:$0xf] }
 0x1d2   : >> { %1743 = vst [vmem:[%s3186_s15 + $0x44] sm:$0xf] %v1742_v50  ;;  %v1746_v52 = vld [vmem:[%s3190_s20 + $0x4c] sm:$0xf]  ;;  %v1748_v53 = vld [vmem:[%s3190_s20 + $0x50] sm:$0xf] }
 0x1d3   : >> { %1745 = vst [vmem:[%s3186_s15 + $0x48] sm:$0xf] %v1744_v51  ;;  %1747 = vst [vmem:[%s3186_s15 + $0x4c] sm:$0xf] %v1746_v52  ;;  %v1750_v55 = vld [vmem:[%s3190_s20 + $0x54] sm:$0xf] }
 0x1d4   : >> { %1749 = vst [vmem:[%s3186_s15 + $0x50] sm:$0xf] %v1748_v53  ;;  %v1752_v56 = vld [vmem:[%s3190_s20 + $0x58] sm:$0xf]  ;;  %v1754_v57 = vld [vmem:[%s3190_s20 + $0x5c] sm:$0xf] }
 0x1d5   : >> { %1751 = vst [vmem:[%s3186_s15 + $0x54] sm:$0xf] %v1750_v55  ;;  %1753 = vst [vmem:[%s3186_s15 + $0x58] sm:$0xf] %v1752_v56  ;;  %v1756_v58 = vld [vmem:[%s3190_s20 + $0x60] sm:$0xf] }
 0x1d6   : >> { %1755 = vst [vmem:[%s3186_s15 + $0x5c] sm:$0xf] %v1754_v57  ;;  %v1758_v59 = vld [vmem:[%s3190_s20 + $0x64] sm:$0xf]  ;;  %v1760_v60 = vld [vmem:[%s3190_s20 + $0x68] sm:$0xf] }
 0x1d7   : >> { %1757 = vst [vmem:[%s3186_s15 + $0x60] sm:$0xf] %v1756_v58  ;;  %1759 = vst [vmem:[%s3186_s15 + $0x64] sm:$0xf] %v1758_v59  ;;  %v1762_v61 = vld [vmem:[%s3190_s20 + $0x6c] sm:$0xf] }
 0x1d8   : >> { %1761 = vst [vmem:[%s3186_s15 + $0x68] sm:$0xf] %v1760_v60  ;;  %v1764_v62 = vld [vmem:[%s3190_s20 + $0x70] sm:$0xf]  ;;  %v1766_v63 = vld [vmem:[%s3190_s20 + $0x74] sm:$0xf] }
 0x1d9   : >> { %1763 = vst [vmem:[%s3186_s15 + $0x6c] sm:$0xf] %v1762_v61  ;;  %1765 = vst [vmem:[%s3186_s15 + $0x70] sm:$0xf] %v1764_v62  ;;  %v1768_v0 = vld [vmem:[%s3190_s20 + $0x78] sm:$0xf] }
 0x1da   : >> { %1767 = vst [vmem:[%s3186_s15 + $0x74] sm:$0xf] %v1766_v63  ;;  %v1770_v1 = vld [vmem:[%s3190_s20 + $0x7c] sm:$0xf]  ;;  %v1772_v2 = vld [vmem:[%s3190_s20 + $0x80] sm:$0xf] }
 0x1db   : >> { %1769 = vst [vmem:[%s3186_s15 + $0x78] sm:$0xf] %v1768_v0  ;;  %1771 = vst [vmem:[%s3186_s15 + $0x7c] sm:$0xf] %v1770_v1  ;;  %v1774_v3 = vld [vmem:[%s3190_s20 + $0x84] sm:$0xf] }
 0x1dc   : >> { %1773 = vst [vmem:[%s3186_s15 + $0x80] sm:$0xf] %v1772_v2  ;;  %v1776_v4 = vld [vmem:[%s3190_s20 + $0x88] sm:$0xf]  ;;  %v1778_v5 = vld [vmem:[%s3190_s20 + $0x8c] sm:$0xf] }
 0x1dd   : >> { %1775 = vst [vmem:[%s3186_s15 + $0x84] sm:$0xf] %v1774_v3  ;;  %1777 = vst [vmem:[%s3186_s15 + $0x88] sm:$0xf] %v1776_v4  ;;  %v1780_v6 = vld [vmem:[%s3190_s20 + $0x90] sm:$0xf] }
 0x1de   : >> { %1779 = vst [vmem:[%s3186_s15 + $0x8c] sm:$0xf] %v1778_v5  ;;  %v1782_v7 = vld [vmem:[%s3190_s20 + $0x94] sm:$0xf]  ;;  %v1784_v8 = vld [vmem:[%s3190_s20 + $0x98] sm:$0xf] }
 0x1df   : >> { %1781 = vst [vmem:[%s3186_s15 + $0x90] sm:$0xf] %v1780_v6  ;;  %1783 = vst [vmem:[%s3186_s15 + $0x94] sm:$0xf] %v1782_v7  ;;  %v1786_v9 = vld [vmem:[%s3190_s20 + $0x9c] sm:$0xf] }
 0x1e0   : >> { %1785 = vst [vmem:[%s3186_s15 + $0x98] sm:$0xf] %v1784_v8  ;;  %v1788_v10 = vld [vmem:[%s3190_s20 + $0xa0] sm:$0xf]  ;;  %v1790_v11 = vld [vmem:[%s3190_s20 + $0xa4] sm:$0xf] }
 0x1e1   : >> { %1787 = vst [vmem:[%s3186_s15 + $0x9c] sm:$0xf] %v1786_v9  ;;  %1789 = vst [vmem:[%s3186_s15 + $0xa0] sm:$0xf] %v1788_v10  ;;  %v1792_v12 = vld [vmem:[%s3190_s20 + $0xa8] sm:$0xf] }
 0x1e2   : >> { %1791 = vst [vmem:[%s3186_s15 + $0xa4] sm:$0xf] %v1790_v11  ;;  %v1794_v13 = vld [vmem:[%s3190_s20 + $0xac] sm:$0xf]  ;;  %v1796_v14 = vld [vmem:[%s3190_s20 + $0xb0] sm:$0xf] }
 0x1e3   : >> { %1793 = vst [vmem:[%s3186_s15 + $0xa8] sm:$0xf] %v1792_v12  ;;  %1795 = vst [vmem:[%s3186_s15 + $0xac] sm:$0xf] %v1794_v13  ;;  %v1798_v15 = vld [vmem:[%s3190_s20 + $0xb4] sm:$0xf] }
 0x1e4   : >> { %1797 = vst [vmem:[%s3186_s15 + $0xb0] sm:$0xf] %v1796_v14  ;;  %v1800_v16 = vld [vmem:[%s3190_s20 + $0xb8] sm:$0xf]  ;;  %v1802_v17 = vld [vmem:[%s3190_s20 + $0xbc] sm:$0xf] }
 0x1e5   : >> { %1799 = vst [vmem:[%s3186_s15 + $0xb4] sm:$0xf] %v1798_v15  ;;  %1801 = vst [vmem:[%s3186_s15 + $0xb8] sm:$0xf] %v1800_v16  ;;  %v1804_v18 = vld [vmem:[%s3190_s20 + $0xc0] sm:$0xf] }
 0x1e6   : >> { %1803 = vst [vmem:[%s3186_s15 + $0xbc] sm:$0xf] %v1802_v17  ;;  %v1806_v19 = vld [vmem:[%s3190_s20 + $0xc4] sm:$0xf]  ;;  %v1808_v20 = vld [vmem:[%s3190_s20 + $0xc8] sm:$0xf] }
 0x1e7   : >> { %1805 = vst [vmem:[%s3186_s15 + $0xc0] sm:$0xf] %v1804_v18  ;;  %1807 = vst [vmem:[%s3186_s15 + $0xc4] sm:$0xf] %v1806_v19  ;;  %v1810_v21 = vld [vmem:[%s3190_s20 + $0xcc] sm:$0xf] }
 0x1e8   : >> { %1809 = vst [vmem:[%s3186_s15 + $0xc8] sm:$0xf] %v1808_v20  ;;  %v1812_v22 = vld [vmem:[%s3190_s20 + $0xd0] sm:$0xf]  ;;  %v1814_v23 = vld [vmem:[%s3190_s20 + $0xd4] sm:$0xf] }
 0x1e9   : >> { %1811 = vst [vmem:[%s3186_s15 + $0xcc] sm:$0xf] %v1810_v21  ;;  %1813 = vst [vmem:[%s3186_s15 + $0xd0] sm:$0xf] %v1812_v22  ;;  %v1816_v24 = vld [vmem:[%s3190_s20 + $0xd8] sm:$0xf] }
 0x1ea   : >> { %1815 = vst [vmem:[%s3186_s15 + $0xd4] sm:$0xf] %v1814_v23  ;;  %v1818_v25 = vld [vmem:[%s3190_s20 + $0xdc] sm:$0xf]  ;;  %v1820_v26 = vld [vmem:[%s3190_s20 + $0xe0] sm:$0xf] }
 0x1eb   : >> { %1817 = vst [vmem:[%s3186_s15 + $0xd8] sm:$0xf] %v1816_v24  ;;  %1819 = vst [vmem:[%s3186_s15 + $0xdc] sm:$0xf] %v1818_v25  ;;  %v1822_v27 = vld [vmem:[%s3190_s20 + $0xe4] sm:$0xf] }
 0x1ec   : >> { %1821 = vst [vmem:[%s3186_s15 + $0xe0] sm:$0xf] %v1820_v26  ;;  %v1824_v28 = vld [vmem:[%s3190_s20 + $0xe8] sm:$0xf]  ;;  %v1826_v29 = vld [vmem:[%s3190_s20 + $0xec] sm:$0xf] }
 0x1ed   : >> { %1823 = vst [vmem:[%s3186_s15 + $0xe4] sm:$0xf] %v1822_v27  ;;  %1825 = vst [vmem:[%s3186_s15 + $0xe8] sm:$0xf] %v1824_v28  ;;  %v1828_v30 = vld [vmem:[%s3190_s20 + $0xf0] sm:$0xf] }
 0x1ee   : >> { %1827 = vst [vmem:[%s3186_s15 + $0xec] sm:$0xf] %v1826_v29  ;;  %v1830_v31 = vld [vmem:[%s3190_s20 + $0xf4] sm:$0xf]  ;;  %v1832_v32 = vld [vmem:[%s3190_s20 + $0xf8] sm:$0xf] }
 0x1ef   : >> { %1829 = vst [vmem:[%s3186_s15 + $0xf0] sm:$0xf] %v1828_v30  ;;  %1831 = vst [vmem:[%s3186_s15 + $0xf4] sm:$0xf] %v1830_v31  ;;  %v1834_v33 = vld [vmem:[%s3190_s20 + $0xfc] sm:$0xf] }
 0x1f0   : >> { %1833 = vst [vmem:[%s3186_s15 + $0xf8] sm:$0xf] %v1832_v32  ;;  %1835 = vst [vmem:[%s3186_s15 + $0xfc] sm:$0xf] %v1834_v33  ;;  %s3851_s29 = smov (%p1837_p11, %s1836_s29), 0  ;;  %s1702_s28 = sadd.s32 1, %s3198_s28  }
 0x1f1   : >> { %s2344_s30 = sshll.u32 %s3851_s29, 8  ;;  %p1701_p12 = scmp.ge.s32.totalorder %s1702_s28, %s3651_s27 }
 0x1f2   : >> { %s1841_s20 = scalar_lea.vmem %s3500_s12, %s2344_s30 [#allocation2]   ;;  %s1842_s15 = scalar_lea.vmem %s3645_s24, %s2344_s30  }
 0x1f3   : >> { %s3844_s25 = smov %s3851_s29  ;;  %1704 = sbr.rel (!%p1701_p12) target bundleno = 454 (0x1c6), region = 118 }
 0x1fa PF: > { %s3819_s4 = sand.u32 63, %s3849_s18   ;;  %s2448_s5 = sshll.u32 %s3651_s27, 8 }
 0x1fb   : > { %s1847_s6 = scalar_lea.vmem %s3500_s12, %s2448_s5 [#allocation2]   ;;  %s1849_s7 = scalar_lea.vmem %s3645_s24, %s2448_s5  }
 0x1fc   : > { %p2349_p13 = scmp.le.s32.totalorder %s3819_s4, 0 }
 0x1fd   : > { %s3200_s8 = smov (!%p2349_p13), %s1849_s7   ;;  %s3204_s9 = smov (!%p2349_p13), %s1847_s6  }
 0x1fe   : > { %2111 = sbr.rel (%p2349_p13) target bundleno = 527 (0x20f), region = 123  ;;  %s3208_s10 = smov (!%p2349_p13), 0  }
 0x1ff   : > { %s3212_s11 = smov (!%p2349_p13), 0  }
 0x205 LB: >> { %v1859_v54 = vld [vmem:[%s3206_s9] sm:$0xf]  ;;  %s1861_s14 = sadd.s32 1, %s3210_s10  ;;  %s1853_s11 = sadd.s32 1, %s3214_s11   ;;  %s3214_s11 = sphi %s3212_s11, %s1853_s11   ;;  %s3210_s10 = sphi %s3208_s10, %s3209_s10   ;;  %s3206_s9 = sphi %s3204_s9, %s1866_s9   ;;  %s3202_s8 = sphi %s3200_s8, %s1867_s8  }
 0x206   : >> { %1860 = vst [vmem:[%s3202_s8] sm:$0xf] %v1859_v54  ;;  %p1862_p0 = scmp.ge.s32.totalorder %s1861_s14, %s3819_s4  ;;  %p1852_p1 = scmp.ge.s32.totalorder %s1853_s11, %s3819_s4 }
 0x208   : >> { %s3853_s14 = smov (%p1862_p0, %s1861_s14), 0  ;;  %1855 = sbr.rel (!%p1852_p1) target bundleno = 517 (0x205), region = 129 }
 0x209   : >> { %s2350_s17 = sshll.u32 %s3853_s14, 2  ;;  %s3209_s10 = smov %s3853_s14  }
 0x20a   : >> { %s1866_s9 = scalar_lea.vmem %s1847_s6, %s2350_s17 [#allocation2]   ;;  %s1867_s8 = scalar_lea.vmem %s1849_s7, %s2350_s17  }
 0x20f PF: > { %p10_p2 = scmp.ge.s32.totalorder %s3253_s16, 4   ;;  %s3845_s12 = smov %s3178_s13 }
 0x210   : > { %s3846_s13 = smov %s3261_s19  ;;  %s3847_s14 = smov %s3253_s16 }
 0x211   :  { %12 = sbr.rel (!%p10_p2) target bundleno = 2 (0x2), region = 140 }

// kernel: vae_forward.10
= control target key start
LH: loop header
LB: loop body
LE: loop exit
PB: predicated region body
PF: predicated region fallthrough
CT: control target
= control target key end

     0   :  { %s3685_s12 = smov 0   ;;  %s3687_s13 = smov 0   ;;  %s4337_s0 = inlined_call_operand.vmem [shape: bf16[360,1152], index: 0, kind: input, shape index: {}]   ;;  %s4338_s1 = inlined_call_operand.vmem [shape: bf16[1152,128], index: 1, kind: input, shape index: {}]   ;;  %s4339_s2 = inlined_call_operand.vmem [shape: f32[1,128], index: 2, kind: input, shape index: {}]   ;;  %s4340_s3 = inlined_call_operand.vmem [shape: bf16[360,128], index: 3, kind: output, shape index: {}]  }
   0x1   :  { %s3689_s14 = smov 0  }
   0x2 LB: > { %s3698_s15 = sadd.s32 4294967295, %s3631_s14   ;;  %s3700_s16 = sadd.s32 1, %s3631_s14   ;;  %s3631_s14 = sphi %s3689_s14, %s4347_s14   ;;  %s3627_s13 = sphi %s3687_s13, %s4346_s13   ;;  %s3623_s12 = sphi %s3685_s12, %s4345_s12  }
   0x3   : > { %s85_s17 = ssub.s32 %s3631_s14, %s3700_s16  ;;  %s88_s18 = sadd.s32 1, %s3627_s13 }
   0x4   : > { %p86_p0 = scmp.eq.s32.totalorder %s85_s17, 0  ;;  %p98_p1 = scmp.ne.s32.totalorder %s3627_s13, %s3623_s12 }
   0x5   : > { %p99_p2 = scmp.eq.s32.totalorder %s3698_s15, 1  ;;  %p2523_p3 = scmp.ge.s32.totalorder %s3631_s14, 1 }
   0x6   : > { %s3708_s19 = scalar_select %p86_p0, %s3627_s13, %s88_s18  }
   0x7   : > { %p3710_p4 = por %p99_p2, %p98_p1  ;;  %p149_p5 = scmp.lt.s32.totalorder %s3631_s14, 3 }
   0x9   : > { %p150_p6 = pnand %p2523_p3, %p149_p5 }
   0xa   : > { %v3349_v0 = vld [vmem:[%s4338_s1 + $0x40] sm:$0xff] (!%p150_p6)   ;;  %v3353_v4 = vld [vmem:[%s4338_s1 + $0x48] sm:$0xff] (!%p150_p6)   ;;  %v3357_v8 = vld [vmem:[%s4338_s1 + $0x50] sm:$0xff] (!%p150_p6)   ;;  %s3757_s28 = smul.u32 (!%p150_p6), 23, %s3698_s15 }
   0xb   : > { %153 = sbr.rel (%p150_p6) target bundleno = 552 (0x228), region = 32  ;;  %v3350_v1 = vld [vmem:[%s4338_s1 + $0xc0] sm:$0xff] (!%p150_p6)   ;;  %2830 = vmatprep.subr.bf16.mxu0 (!%p150_p6), %v3349_v0  ;;  %v3354_v5 = vld [vmem:[%s4338_s1 + $0xc8] sm:$0xff] (!%p150_p6)   ;;  %v3358_v9 = vld [vmem:[%s4338_s1 + $0xd0] sm:$0xff] (!%p150_p6)  }
   0xc   : > { %v3351_v2 = vld [vmem:[%s4338_s1] sm:$0xff] (!%p150_p6)   ;;  %2918 = vmatprep.subr.bf16.mxu1 (!%p150_p6), %v3350_v1  ;;  %v3355_v6 = vld [vmem:[%s4338_s1 + $0x8] sm:$0xff] (!%p150_p6)   ;;  %v3359_v10 = vld [vmem:[%s4338_s1 + $0x10] sm:$0xff] (!%p150_p6)   ;;  %p184_p7 = scmp.lt.s32.totalorder (!%p150_p6), %s3757_s28, 44 }
   0xd   : > { %v3352_v3 = vld [vmem:[%s4338_s1 + $0x80] sm:$0xff] (!%p150_p6)   ;;  %2831 = vmatpush3.bf16.msra.mxu0 (!%p150_p6), %v3351_v2  ;;  %v3356_v7 = vld [vmem:[%s4338_s1 + $0x88] sm:$0xff] (!%p150_p6)   ;;  %v3360_v11 = vld [vmem:[%s4338_s1 + $0x90] sm:$0xff] (!%p150_p6)  }
   0xe   : > { %2919 = vmatpush3.bf16.msra.mxu1 (!%p150_p6), %v3352_v3  ;;  %2832 = vmatprep.subr.bf16.mxu0 (!%p150_p6), %v3353_v4  ;;  %v3361_v12 = vld [vmem:[%s4338_s1 + $0x58] sm:$0xff] (!%p150_p6)   ;;  %v3365_v16 = vld [vmem:[%s4338_s1 + $0x60] sm:$0xff] (!%p150_p6)   ;;  %v3369_v20 = vld [vmem:[%s4338_s1 + $0x68] sm:$0xff] (!%p150_p6)  }
   0xf   : > { %2920 = vmatprep.subr.bf16.mxu1 (!%p150_p6), %v3354_v5  ;;  %v3362_v13 = vld [vmem:[%s4338_s1 + $0xd8] sm:$0xff] (!%p150_p6)   ;;  %v3366_v17 = vld [vmem:[%s4338_s1 + $0xe0] sm:$0xff] (!%p150_p6)   ;;  %v3370_v21 = vld [vmem:[%s4338_s1 + $0xe8] sm:$0xff] (!%p150_p6)  }
  0x10   : > { %v3363_v14 = vld [vmem:[%s4338_s1 + $0x18] sm:$0xff] (!%p150_p6)   ;;  %v3367_v18 = vld [vmem:[%s4338_s1 + $0x20] sm:$0xff] (!%p150_p6)   ;;  %v3371_v22 = vld [vmem:[%s4338_s1 + $0x28] sm:$0xff] (!%p150_p6)  }
  0x11   : > { %2833 = vmatpush3.bf16.msra.mxu0 (!%p150_p6), %v3355_v6  ;;  %v3364_v15 = vld [vmem:[%s4338_s1 + $0x98] sm:$0xff] (!%p150_p6)   ;;  %v3368_v19 = vld [vmem:[%s4338_s1 + $0xa0] sm:$0xff] (!%p150_p6)   ;;  %v3372_v23 = vld [vmem:[%s4338_s1 + $0xa8] sm:$0xff] (!%p150_p6)  }
  0x12   : > { %2921 = vmatpush3.bf16.msra.mxu1 %v3356_v7  ;;  %2834 = vmatprep.subr.bf16.mxu0 %v3357_v8  ;;  %s185_s24 = scalar_select %p184_p7, %s3757_s28, 44  ;;  %v3373_v24 = vld [vmem:[%s4338_s1 + $0x70] sm:$0xff]   ;;  %v3377_v28 = vld [vmem:[%s4338_s1 + $0x78] sm:$0xff]   ;;  %v3387_v36 = vld [vmem:[%s4338_s1 + $0x140] sm:$0xff]  }
  0x13   : > { %2922 = vmatprep.subr.bf16.mxu1 %v3358_v9  ;;  %v3374_v25 = vld [vmem:[%s4338_s1 + $0xf0] sm:$0xff]   ;;  %v3378_v29 = vld [vmem:[%s4338_s1 + $0xf8] sm:$0xff]   ;;  %v3388_v37 = vld [vmem:[%s4338_s1 + $0x1c0] sm:$0xff]   ;;  %s2224_s10 = ssub.s32 (%p3710_p4), 45, %s3757_s28  ;;  %s2764_s11 = smul.u32 (%p3710_p4), 92, %s3698_s15 }
  0x14   : > { %s3259_s7 = smul.u32 36, %s185_s24  ;;  %v3375_v26 = vld [vmem:[%s4338_s1 + $0x30] sm:$0xff]   ;;  %v3379_v30 = vld [vmem:[%s4338_s1 + $0x38] sm:$0xff]   ;;  %v3389_v38 = vld [vmem:[%s4338_s1 + $0x100] sm:$0xff]   ;;  %p2225_p8 = scmp.lt.s32.totalorder (%p3710_p4), %s2224_s10, 23 }
  0x15   : > { %2835 = vmatpush3.bf16.msra.mxu0 %v3359_v10  ;;  %v3376_v27 = vld [vmem:[%s4338_s1 + $0xb0] sm:$0xff]   ;;  %v3380_v31 = vld [vmem:[%s4338_s1 + $0xb8] sm:$0xff]   ;;  %v3390_v39 = vld [vmem:[%s4338_s1 + $0x180] sm:$0xff]   ;;  %s4232_s18 = scalar_lea.vmem (%p3710_p4), %s4340_s3, %s2764_s11  }
  0x16   : > { %2923 = vmatpush3.bf16.msra.mxu1 %v3360_v11  ;;  %2836 = vmatprep.subr.bf16.mxu0 %v3361_v12  ;;  %s3812_s24 = scalar_lea.vmem %s4337_s0, %s3259_s7  ;;  %v3397_v44 = vld [vmem:[%s4338_s1 + $0x148] sm:$0xff]   ;;  %v3413_v54 = vld [vmem:[%s4338_s1 + $0x150] sm:$0xff]   ;;  %v3423_v62 = vld [vmem:[%s4338_s1 + $0x158] sm:$0xff]  }
  0x17   : > { %2924 = vmatprep.subr.bf16.mxu1 %v3362_v13  ;;  %v3381_v32 = vld [vmem:[%s3812_s24] ss:$36 sps:$4 sm:$0xff]   ;;  %v3384_v34 = vld [vmem:[%s3812_s24 + $0x8] ss:$36 sps:$4 sm:$0xff]   ;;  %v3393_v41 = vld [vmem:[%s3812_s24 + $0x54] ss:$36 sps:$4 sm:$0xff]  }
  0x18   : > { %v3383_v33 = vld [vmem:[%s3812_s24 + $0x4] ss:$36 sps:$4 sm:$0xff]   ;;  %v3386_v35 = vld [vmem:[%s3812_s24 + $0xc] ss:$36 sps:$4 sm:$0xff]   ;;  %v3401_v48 = vld [vmem:[%s3812_s24 + $0x94] ss:$36 sps:$4 sm:$0xff]  }
  0x19   : > { %2837 = vmatpush3.bf16.msra.mxu0 %v3363_v14  ;;  %1469 = vmatprep.mubr.bf16.mxu0 %v3383_v33  ;;  %v3391_v40 = vld [vmem:[%s3812_s24 + $0x4c] ss:$36 sps:$4 sm:$0xff]   ;;  %v3403_v49 = vld [vmem:[%s3812_s24 + $0x9c] ss:$36 sps:$4 sm:$0xff]   ;;  %v3409_v53 = vld [vmem:[%s3812_s24 + $0xe4] ss:$36 sps:$4 sm:$0xff]  }
  0x1a   : > { %2925 = vmatpush3.bf16.msra.mxu1 %v3364_v15  ;;  %2838 = vmatprep.subr.bf16.mxu0 %v3365_v16  ;;  %v3395_v42 = vld [vmem:[%s3812_s24 + $0x48] ss:$36 sps:$4 sm:$0xff]   ;;  %v3396_v43 = vld [vmem:[%s3812_s24 + $0x50] ss:$36 sps:$4 sm:$0xff]   ;;  %v3406_v51 = vld [vmem:[%s3812_s24 + $0x98] ss:$36 sps:$4 sm:$0xff]  }
  0x1b   : > { %2926 = vmatprep.subr.bf16.mxu1 %v3366_v17  ;;  %1597 = vmatprep.mubr.bf16.mxu1 %v3386_v35  ;;  %v3398_v45 = vld [vmem:[%s4338_s1 + $0x1c8] sm:$0xff]   ;;  %v3405_v50 = vld [vmem:[%s3812_s24 + $0x90] ss:$36 sps:$4 sm:$0xff]   ;;  %v3407_v52 = vld [vmem:[%s3812_s24 + $0xdc] ss:$36 sps:$4 sm:$0xff]  }
  0x1c   : > { %v3399_v46 = vld [vmem:[%s4338_s1 + $0x108] sm:$0xff]   ;;  %v3414_v55 = vld [vmem:[%s4338_s1 + $0x1d0] sm:$0xff]   ;;  %v3411_v58 = vld [vmem:[%s3812_s24 + $0xd8] ss:$36 sps:$4 sm:$0xff]  }
  0x1d   : > { %2839 = vmatpush3.bf16.msra.mxu0 %v3367_v18  ;;  %v3400_v47 = vld [vmem:[%s4338_s1 + $0x188] sm:$0xff]   ;;  %v3415_v56 = vld [vmem:[%s4338_s1 + $0x110] sm:$0xff]   ;;  %v3412_v59 = vld [vmem:[%s3812_s24 + $0xe0] ss:$36 sps:$4 sm:$0xff]  }
  0x1e   : > { %2927 = vmatpush3.bf16.msra.mxu1 %v3368_v19  ;;  %2840 = vmatprep.subr.bf16.mxu0 %v3369_v20  ;;  %v3416_v57 = vld [vmem:[%s4338_s1 + $0x190] sm:$0xff]   ;;  %v3417_v60 = vld [vmem:[%s3812_s24 + $0x124] ss:$36 sps:$4 sm:$0xff]   ;;  %v3424_v63 = vld [vmem:[%s4338_s1 + $0x1d8] sm:$0xff]  }
  0x1f   : > { %2928 = vmatprep.subr.bf16.mxu1 %v3370_v21  ;;  %v3419_v61 = vld [vmem:[%s3812_s24 + $0x12c] ss:$36 sps:$4 sm:$0xff]   ;;  %v3425_v0 = vld [vmem:[%s4338_s1 + $0x118] sm:$0xff]   ;;  %v3421_v2 = vld [vmem:[%s3812_s24 + $0x120] ss:$36 sps:$4 sm:$0xff]  }
  0x20   : > { %v3426_v1 = vld [vmem:[%s4338_s1 + $0x198] sm:$0xff]   ;;  %v3422_v3 = vld [vmem:[%s3812_s24 + $0x128] ss:$36 sps:$4 sm:$0xff]   ;;  %v3439_v6 = vld [vmem:[%s4338_s1 + $0x160] sm:$0xff]  }
  0x21   : > { %2841 = vmatpush3.bf16.msra.mxu0 %v3371_v22  ;;  %v3427_v4 = vld [vmem:[%s3812_s24 + $0x16c] ss:$36 sps:$4 sm:$0xff]   ;;  %v3429_v5 = vld [vmem:[%s3812_s24 + $0x174] ss:$36 sps:$4 sm:$0xff]   ;;  %v3440_v7 = vld [vmem:[%s4338_s1 + $0x1e0] sm:$0xff]  }
  0x22   : > { %2929 = vmatpush3.bf16.msra.mxu1 %v3372_v23  ;;  %2842 = vmatprep.subr.bf16.mxu0 %v3373_v24  ;;  %v3441_v8 = vld [vmem:[%s4338_s1 + $0x120] sm:$0xff]   ;;  %v3431_v10 = vld [vmem:[%s3812_s24 + $0x168] ss:$36 sps:$4 sm:$0xff]   ;;  %v3432_v11 = vld [vmem:[%s3812_s24 + $0x170] ss:$36 sps:$4 sm:$0xff]  }
  0x23   : > { %2930 = vmatprep.subr.bf16.mxu1 %v3374_v25  ;;  %v3442_v9 = vld [vmem:[%s4338_s1 + $0x1a0] sm:$0xff]   ;;  %v3433_v12 = vld [vmem:[%s3812_s24 + $0x1b4] ss:$36 sps:$4 sm:$0xff]   ;;  %v3449_v14 = vld [vmem:[%s4338_s1 + $0x168] sm:$0xff]  }
  0x24   : > { %v3435_v13 = vld [vmem:[%s3812_s24 + $0x1bc] ss:$36 sps:$4 sm:$0xff]   ;;  %v3450_v15 = vld [vmem:[%s4338_s1 + $0x1e8] sm:$0xff]   ;;  %v3437_v18 = vld [vmem:[%s3812_s24 + $0x1b0] ss:$36 sps:$4 sm:$0xff]  }
  0x25   : > { %2843 = vmatpush3.bf16.msra.mxu0 %v3375_v26  ;;  %v3451_v16 = vld [vmem:[%s4338_s1 + $0x128] sm:$0xff]   ;;  %v3438_v19 = vld [vmem:[%s3812_s24 + $0x1b8] ss:$36 sps:$4 sm:$0xff]   ;;  %v3465_v22 = vld [vmem:[%s4338_s1 + $0x170] sm:$0xff]  }
  0x26   : > { %2931 = vmatpush3.bf16.msra.mxu1 %v3376_v27  ;;  %2844 = vmatprep.subr.bf16.mxu0 %v3377_v28  ;;  %v3452_v17 = vld [vmem:[%s4338_s1 + $0x1a8] sm:$0xff]   ;;  %v3443_v20 = vld [vmem:[%s3812_s24 + $0x1fc] ss:$36 sps:$4 sm:$0xff]   ;;  %v3466_v23 = vld [vmem:[%s4338_s1 + $0x1f0] sm:$0xff]  }
  0x27   : > { %2932 = vmatprep.subr.bf16.mxu1 %v3378_v29  ;;  %v3445_v21 = vld [vmem:[%s3812_s24 + $0x204] ss:$36 sps:$4 sm:$0xff]   ;;  %v3467_v24 = vld [vmem:[%s4338_s1 + $0x130] sm:$0xff]   ;;  %v3447_v26 = vld [vmem:[%s3812_s24 + $0x1f8] ss:$36 sps:$4 sm:$0xff]  }
  0x28   : > { %v3468_v25 = vld [vmem:[%s4338_s1 + $0x1b0] sm:$0xff]   ;;  %v3448_v27 = vld [vmem:[%s3812_s24 + $0x200] ss:$36 sps:$4 sm:$0xff]   ;;  %v3478_v33 = vld [vmem:[%s4338_s1 + $0x1b8] sm:$0xff]  }
  0x29   : > { %2845 = vmatpush3.bf16.msra.mxu0 %v3379_v30  ;;  %v3453_v28 = vld [vmem:[%s3812_s24 + $0x244] ss:$36 sps:$4 sm:$0xff]   ;;  %v3455_v29 = vld [vmem:[%s3812_s24 + $0x24c] ss:$36 sps:$4 sm:$0xff]   ;;  %v3475_v30 = vld [vmem:[%s4338_s1 + $0x178] sm:$0xff]  }
  0x2a   : > { %2933 = vmatpush3.bf16.msra.mxu1 %v3380_v31  ;;  %3006 = vmatprep.subr.bf16.mxu0 %v3387_v36  ;;  %v3476_v31 = vld [vmem:[%s4338_s1 + $0x1f8] sm:$0xff]   ;;  %v3458_v35 = vld [vmem:[%s3812_s24 + $0x248] ss:$36 sps:$4 sm:$0xff]  }
  0x2b   : > { %3094 = vmatprep.subr.bf16.mxu1 %v3388_v37  ;;  %v3459_v36 = vld [vmem:[%s3812_s24 + $0x28c] ss:$36 sps:$4 sm:$0xff]   ;;  %v3489_v37 = vld [vmem:[%s4338_s1 + $0x200] sm:$0xff]  }
  0x2c   : > { %1470 = vmatmul.mubr.bf16.vlgmr.msra.gmra.mrb[0].mxu0 %v3381_v32  ;;  %v3477_v32 = vld [vmem:[%s4338_s1 + $0x138] sm:$0xff]  }
  0x2d   : > { %1598 = vmatmul.mubr.bf16.vlgmr.msra.gmra.mrb[0].mxu1 %v3384_v34  ;;  %3007 = vmatpush3.bf16.msra.mxu0 %v3389_v38  ;;  %v3457_v34 = vld [vmem:[%s3812_s24 + $0x240] ss:$36 sps:$4 sm:$0xff]   ;;  %v3461_v38 = vld [vmem:[%s3812_s24 + $0x294] ss:$36 sps:$4 sm:$0xff]  }
  0x2e   : > { %3095 = vmatpush3.bf16.msra.mxu1 %v3390_v39  ;;  %1477 = vmatprep.mubr.bf16.mxu0 %v3391_v40  ;;  %v3463_v39 = vld [vmem:[%s3812_s24 + $0x288] ss:$36 sps:$4 sm:$0xff]   ;;  %v3464_v40 = vld [vmem:[%s3812_s24 + $0x290] ss:$36 sps:$4 sm:$0xff]  }
  0x2f   : > { %1605 = vmatprep.mubr.bf16.mxu1 %v3393_v41  ;;  %3008 = vmatprep.subr.bf16.mxu0 %v3397_v44  ;;  %v3469_v41 = vld [vmem:[%s3812_s24 + $0x2d4] ss:$36 sps:$4 sm:$0xff]   ;;  %v312_v44 = vld [vmem:[%s3812_s24 + $0x320] sm:$0xff] }
  0x30   : > { %3096 = vmatprep.subr.bf16.mxu1 %v3398_v45  ;;  %v3473_v45 = vld [vmem:[%s3812_s24 + $0x2d0] ss:$36 sps:$4 sm:$0xff]  }
  0x31   : > { %3009 = vmatpush3.bf16.msra.mxu0 %v3399_v46  ;;  %v3474_v46 = vld [vmem:[%s3812_s24 + $0x2d8] ss:$36 sps:$4 sm:$0xff]  }
  0x32   : > { %3097 = vmatpush3.bf16.msra.mxu1 %v3400_v47  ;;  %3010 = vmatprep.subr.bf16.mxu0 %v3413_v54  ;;  %v3486_v54 = vld [vmem:[%s3812_s24 + $0x18] ss:$36 sps:$4 sm:$0xff]  }
  0x33   : > { %3098 = vmatprep.subr.bf16.mxu1 %v3414_v55  ;;  %v3490_v55 = vld [vmem:[%s3812_s24 + $0x5c] ss:$36 sps:$4 sm:$0xff]  }
  0x34   : > { %1478 = vmatmul.mubr.bf16.gmra.mrb[4].mxu0 %v3395_v42  ;;  %v3471_v42 = vld [vmem:[%s3812_s24 + $0x2dc] ss:$36 sps:$4 sm:$0xff]  }
  0x35   : > { %1606 = vmatmul.mubr.bf16.gmra.mrb[4].mxu1 %v3396_v43  ;;  %1485 = vmatprep.mubr.bf16.mxu0 %v3401_v48  ;;  %v311_v43 = vld [vmem:[%s3812_s24 + $0x318] sm:$0xff]  ;;  %v2628_v48 = vcombine.high %v312_v44, %v312_v44 }
  0x36   : > { %1613 = vmatprep.mubr.bf16.mxu1 %v3403_v49  ;;  %3011 = vmatpush3.bf16.msra.mxu0 %v3415_v56  ;;  %v2626_v47 = vcombine.high %v311_v43, %v311_v43  ;;  %v2625_v49 = vcombine.low %v311_v43, %v311_v43  ;;  %v3492_v56 = vld [vmem:[%s3812_s24 + $0x64] ss:$36 sps:$4 sm:$0xff]  }
  0x37   : > { %3099 = vmatpush3.bf16.msra.mxu1 %v3416_v57  ;;  %3012 = vmatprep.subr.bf16.mxu0 %v3423_v62  ;;  %v3496_v57 = vld [vmem:[%s4338_s1 + $0x208] sm:$0xff]  }
  0x38   : > { %3100 = vmatprep.subr.bf16.mxu1 %v3424_v63  ;;  %v3499_v62 = vld [vmem:[%s3812_s24 + $0xac] ss:$36 sps:$4 sm:$0xff]   ;;  %v3516_v63 = vld [vmem:[%s4338_s1 + $0x218] sm:$0xff]  }
  0x3a   : > { %3013 = vmatpush3.bf16.msra.mxu0 %v3425_v0  ;;  %v3529_v0 = vld [vmem:[%s4338_s1 + $0x220] sm:$0xff]  }
  0x3b   : > { %3101 = vmatpush3.bf16.msra.mxu1 %v3426_v1  ;;  %3014 = vmatprep.subr.bf16.mxu0 %v3439_v6  ;;  %v3501_v1 = vld [vmem:[%s3812_s24 + $0xa0] ss:$36 sps:$4 sm:$0xff]   ;;  %v3549_v6 = vld [vmem:[%s4338_s1 + $0x230] sm:$0xff]  }
  0x3c   : > { %1486 = vmatmul.mubr.bf16.gmra.mrb[8].mxu0 %v3405_v50  ;;  %3102 = vmatprep.subr.bf16.mxu1 %v3440_v7  ;;  %v2627_v50 = vcombine.low %v312_v44, %v312_v44  ;;  %v3507_v7 = vld [vmem:[%s3812_s24 + $0xe8] ss:$36 sps:$4 sm:$0xff]   ;;  %v3561_v44 = vld [vmem:[%s3812_s24 + $0x20] ss:$36 sps:$4 sm:$0xff]  }
  0x3d   : > { %1614 = vmatmul.mubr.bf16.gmra.mrb[8].mxu1 %v3406_v51  ;;  %1493 = vmatprep.mubr.bf16.mxu0 %v3407_v52  ;;  %v3485_v51 = vld [vmem:[%s3812_s24 + $0x14] ss:$36 sps:$4 sm:$0xff]   ;;  %v3488_v52 = vld [vmem:[%s3812_s24 + $0x1c] ss:$36 sps:$4 sm:$0xff]  }
  0x3e   : > { %1621 = vmatprep.mubr.bf16.mxu1 %v3409_v53  ;;  %3015 = vmatpush3.bf16.msra.mxu0 %v3441_v8  ;;  %v3483_v53 = vld [vmem:[%s3812_s24 + $0x10] ss:$36 sps:$4 sm:$0xff]  }
  0x3f   : > { %3103 = vmatpush3.bf16.msra.mxu1 %v3442_v9  ;;  %3016 = vmatprep.subr.bf16.mxu0 %v3449_v14  ;;  %v3508_v8 = vld [vmem:[%s3812_s24 + $0xf0] ss:$36 sps:$4 sm:$0xff]   ;;  %v3517_v14 = vld [vmem:[%s3812_s24 + $0x17c] ss:$36 sps:$4 sm:$0xff]  }
  0x40   : > { %3104 = vmatprep.subr.bf16.mxu1 %v3450_v15  ;;  %v3510_v9 = vld [vmem:[%s3812_s24 + $0x134] ss:$36 sps:$4 sm:$0xff]   ;;  %v3519_v15 = vld [vmem:[%s3812_s24 + $0x184] ss:$36 sps:$4 sm:$0xff]  }
  0x42   : > { %3017 = vmatpush3.bf16.msra.mxu0 %v3451_v16  ;;  %v3521_v16 = vld [vmem:[%s3812_s24 + $0x178] ss:$36 sps:$4 sm:$0xff]  }
  0x43   : > { %3105 = vmatpush3.bf16.msra.mxu1 %v3452_v17  ;;  %3018 = vmatprep.subr.bf16.mxu0 %v3465_v22  ;;  %v3522_v17 = vld [vmem:[%s3812_s24 + $0x180] ss:$36 sps:$4 sm:$0xff]   ;;  %v3530_v22 = vld [vmem:[%s3812_s24 + $0x20c] ss:$36 sps:$4 sm:$0xff]  }
  0x44   : > { %1494 = vmatmul.mubr.bf16.gmra.mrb[12].mxu0 %v3411_v58  ;;  %3106 = vmatprep.subr.bf16.mxu1 %v3466_v23  ;;  %v3509_v58 = vld [vmem:[%s4338_s1 + $0x210] sm:$0xff]  }
  0x45   : > { %1622 = vmatmul.mubr.bf16.gmra.mrb[12].mxu1 %v3412_v59  ;;  %1501 = vmatprep.mubr.bf16.mxu0 %v3417_v60  ;;  %v3494_v59 = vld [vmem:[%s3812_s24 + $0x58] ss:$36 sps:$4 sm:$0xff]   ;;  %v3495_v60 = vld [vmem:[%s3812_s24 + $0x60] ss:$36 sps:$4 sm:$0xff]  }
  0x46   : > { %1629 = vmatprep.mubr.bf16.mxu1 %v3419_v61  ;;  %3019 = vmatpush3.bf16.msra.mxu0 %v3467_v24  ;;  %v3497_v61 = vld [vmem:[%s3812_s24 + $0xa4] ss:$36 sps:$4 sm:$0xff]   ;;  %v3532_v23 = vld [vmem:[%s3812_s24 + $0x214] ss:$36 sps:$4 sm:$0xff]  }
  0x47   : > { %3107 = vmatpush3.bf16.msra.mxu1 %v3468_v25  ;;  %3020 = vmatprep.subr.bf16.mxu0 %v3475_v30  ;;  %v3534_v24 = vld [vmem:[%s3812_s24 + $0x208] ss:$36 sps:$4 sm:$0xff]   ;;  %v3535_v25 = vld [vmem:[%s3812_s24 + $0x210] ss:$36 sps:$4 sm:$0xff]   ;;  %v3543_v30 = vld [vmem:[%s3812_s24 + $0x29c] ss:$36 sps:$4 sm:$0xff]  }
  0x48   : > { %3108 = vmatprep.subr.bf16.mxu1 %v3476_v31  ;;  %v3545_v31 = vld [vmem:[%s3812_s24 + $0x2a4] ss:$36 sps:$4 sm:$0xff]  }
  0x4a   : > { %3021 = vmatpush3.bf16.msra.mxu0 %v3477_v32  ;;  %v3547_v32 = vld [vmem:[%s3812_s24 + $0x298] ss:$36 sps:$4 sm:$0xff]  }
  0x4b   : > { %3109 = vmatpush3.bf16.msra.mxu1 %v3478_v33  ;;  %3202 = vmatprep.subr.bf16.mxu0 %v3489_v37  ;;  %v3548_v33 = vld [vmem:[%s3812_s24 + $0x2a0] ss:$36 sps:$4 sm:$0xff]  }
  0x4c   : > { %1502 = vmatmul.mubr.bf16.gmra.mrb[16].mxu0 %v3421_v2  ;;  %3242 = vmatprep.subr.bf16.mxu1 %v3489_v37  ;;  %v3502_v2 = vld [vmem:[%s3812_s24 + $0xa8] ss:$36 sps:$4 sm:$0xff]  }
  0x4d   : > { %1630 = vmatmul.mubr.bf16.gmra.mrb[16].mxu1 %v3422_v3  ;;  %1509 = vmatprep.mubr.bf16.mxu0 %v3427_v4  ;;  %v3503_v3 = vld [vmem:[%s3812_s24 + $0xec] ss:$36 sps:$4 sm:$0xff]   ;;  %v3505_v4 = vld [vmem:[%s3812_s24 + $0xf4] ss:$36 sps:$4 sm:$0xff]  }
  0x4e   : > { %1637 = vmatprep.mubr.bf16.mxu1 %v3429_v5  ;;  %v3536_v5 = vld [vmem:[%s4338_s1 + $0x228] sm:$0xff]  }
  0x54   : > { %1510 = vmatmul.mubr.bf16.gmra.mrb[20].mxu0 %v3431_v10  ;;  %v3512_v10 = vld [vmem:[%s3812_s24 + $0x13c] ss:$36 sps:$4 sm:$0xff]  }
  0x55   : > { %1638 = vmatmul.mubr.bf16.gmra.mrb[20].mxu1 %v3432_v11  ;;  %1517 = vmatprep.mubr.bf16.mxu0 %v3433_v12  ;;  %v3556_v11 = vld [vmem:[%s4338_s1 + $0x238] sm:$0xff]   ;;  %v3514_v12 = vld [vmem:[%s3812_s24 + $0x130] ss:$36 sps:$4 sm:$0xff]  }
  0x56   : > { %1645 = vmatprep.mubr.bf16.mxu1 %v3435_v13  ;;  %v3515_v13 = vld [vmem:[%s3812_s24 + $0x138] ss:$36 sps:$4 sm:$0xff]  }
  0x5c   : > { %1518 = vmatmul.mubr.bf16.gmra.mrb[24].mxu0 %v3437_v18  ;;  %v3523_v18 = vld [vmem:[%s3812_s24 + $0x1c4] ss:$36 sps:$4 sm:$0xff]  }
  0x5d   : > { %1646 = vmatmul.mubr.bf16.gmra.mrb[24].mxu1 %v3438_v19  ;;  %1525 = vmatprep.mubr.bf16.mxu0 %v3443_v20  ;;  %v3525_v19 = vld [vmem:[%s3812_s24 + $0x1cc] ss:$36 sps:$4 sm:$0xff]   ;;  %v3527_v20 = vld [vmem:[%s3812_s24 + $0x1c0] ss:$36 sps:$4 sm:$0xff]  }
  0x5e   : > { %1653 = vmatprep.mubr.bf16.mxu1 %v3445_v21  ;;  %v3528_v21 = vld [vmem:[%s3812_s24 + $0x1c8] ss:$36 sps:$4 sm:$0xff]  }
  0x64   : > { %1526 = vmatmul.mubr.bf16.gmra.mrb[28].mxu0 %v3447_v26  ;;  %v3537_v26 = vld [vmem:[%s3812_s24 + $0x254] ss:$36 sps:$4 sm:$0xff]  }
  0x65   : > { %1654 = vmatmul.mubr.bf16.gmra.mrb[28].mxu1 %v3448_v27  ;;  %1533 = vmatprep.mubr.bf16.mxu0 %v3453_v28  ;;  %v3539_v27 = vld [vmem:[%s3812_s24 + $0x25c] ss:$36 sps:$4 sm:$0xff]   ;;  %v3541_v28 = vld [vmem:[%s3812_s24 + $0x250] ss:$36 sps:$4 sm:$0xff]  }
  0x66   : > { %1661 = vmatprep.mubr.bf16.mxu1 %v3455_v29  ;;  %v3542_v29 = vld [vmem:[%s3812_s24 + $0x258] ss:$36 sps:$4 sm:$0xff]  }
  0x6c   : > { %1534 = vmatmul.mubr.bf16.gmra.mrb[32].mxu0 %v3457_v34  ;;  %v3550_v34 = vld [vmem:[%s3812_s24 + $0x2e4] ss:$36 sps:$4 sm:$0xff]  }
  0x6d   : > { %1662 = vmatmul.mubr.bf16.gmra.mrb[32].mxu1 %v3458_v35  ;;  %1541 = vmatprep.mubr.bf16.mxu0 %v3459_v36  ;;  %v3552_v35 = vld [vmem:[%s3812_s24 + $0x2ec] ss:$36 sps:$4 sm:$0xff]  }
  0x6e   : > { %1669 = vmatprep.mubr.bf16.mxu1 %v3461_v38  ;;  %v313_v36 = vld [vmem:[%s3812_s24 + $0x328] sm:$0xff]  ;;  %v3554_v38 = vld [vmem:[%s3812_s24 + $0x2e0] ss:$36 sps:$4 sm:$0xff]  }
  0x74   : > { %1542 = vmatmul.mubr.bf16.gmra.mrb[36].mxu0 %v3463_v39  ;;  %v3555_v39 = vld [vmem:[%s3812_s24 + $0x2e8] ss:$36 sps:$4 sm:$0xff]  }
  0x75   : > { %1670 = vmatmul.mubr.bf16.gmra.mrb[36].mxu1 %v3464_v40  ;;  %1549 = vmatprep.mubr.bf16.mxu0 %v3469_v41  ;;  %v2630_v40 = vcombine.high %v313_v36, %v313_v36 }
  0x76   : > { %1677 = vmatprep.mubr.bf16.mxu1 %v3471_v42  ;;  %v2629_v42 = vcombine.low %v313_v36, %v313_v36 }
  0x7c   : > { %1550 = vmatmul.mubr.bf16.gmra.mrb[40].mxu0 %v3473_v45  ;;  %v3562_v45 = vld [vmem:[%s3812_s24 + $0x1d0] ss:$36 sps:$4 sm:$0xff]  }
  0x7d   : > { %1678 = vmatmul.mubr.bf16.gmra.mrb[40].mxu1 %v3474_v46  ;;  %1557 = vmatprep.mubr.bf16.mxu0 %v2626_v47  ;;  %v3563_v46 = vld [vmem:[%s3812_s24 + $0x68] ss:$36 sps:$4 sm:$0xff]   ;;  %v3564_v47 = vld [vmem:[%s3812_s24 + $0x218] ss:$36 sps:$4 sm:$0xff]  }
  0x7e   : > { %1685 = vmatprep.mubr.bf16.mxu1 %v2628_v48  ;;  %v3565_v48 = vld [vmem:[%s3812_s24 + $0xb0] ss:$36 sps:$4 sm:$0xff]  }
  0x84   : > { %1558 = vmatmul.mubr.bf16.gmra.mrb[44].mxu0 %v2625_v49  ;;  %v3566_v49 = vld [vmem:[%s3812_s24 + $0x260] ss:$36 sps:$4 sm:$0xff]  }
  0x85   : > { %1686 = vmatmul.mubr.bf16.gmra.mrb[44].mxu1 %v2627_v50  ;;  %1725 = vmatprep.mubr.bf16.mxu0 %v3485_v51  ;;  %v3567_v50 = vld [vmem:[%s3812_s24 + $0xf8] ss:$36 sps:$4 sm:$0xff]   ;;  %v3568_v51 = vld [vmem:[%s3812_s24 + $0x2a8] ss:$36 sps:$4 sm:$0xff]  }
  0x86   : > { %1853 = vmatprep.mubr.bf16.mxu1 %v3488_v52  ;;  %v3569_v52 = vld [vmem:[%s3812_s24 + $0x140] ss:$36 sps:$4 sm:$0xff]  }
  0x8c   : > { %1726 = vmatmul.mubr.bf16.vlgmr.msra.gmra.mrb[48].mxu0 %v3483_v53  ;;  %v3570_v53 = vld [vmem:[%s3812_s24 + $0x2f0] ss:$36 sps:$4 sm:$0xff]  }
  0x8d   : > { %1854 = vmatmul.mubr.bf16.vlgmr.msra.gmra.mrb[48].mxu1 %v3486_v54  ;;  %3203 = vmatpush3.bf16.msra.mxu0 %v3489_v37  ;;  %v3571_v54 = vld [vmem:[%s3812_s24 + $0x188] ss:$36 sps:$4 sm:$0xff]  }
  0x8e   : > { %3250 = vmatpush3.bf16.msra.mxu1 %v3489_v37  ;;  %1733 = vmatprep.mubr.bf16.mxu0 %v3490_v55  ;;  %v314_v37 = vld [vmem:[%s3812_s24 + $0x330] sm:$0xff]  ;;  %v3572_v55 = vld [vmem:[%s3812_s24 + $0x338] ss:$0 sps:$4 sm:$0xff]   ;;  %s175_s24 = sand.u32 1, %s3623_s12  }
  0x8f   : > { %1861 = vmatprep.mubr.bf16.mxu1 %v3492_v56  ;;  %3204 = vmatprep.subr.bf16.mxu0 %v3496_v57  ;;  %v2632_v41 = vcombine.high %v314_v37, %v314_v37  ;;  %v2631_v43 = vcombine.low %v314_v37, %v314_v37  ;;  %s3258_s9 = smul.u32 92, %s175_s24 }
  0x90   : > { %3243 = vmatprep.subr.bf16.mxu1 %v3496_v57 }
  0x91   : > { %3205 = vmatpush3.bf16.msra.mxu0 %v3496_v57  ;;  %s4196_s12 = scalar_lea.vmem [#allocation2], %s3258_s9  }
  0x92   : > { %3251 = vmatpush3.bf16.msra.mxu1 %v3496_v57  ;;  %3206 = vmatprep.subr.bf16.mxu0 %v3509_v58 }
  0x93   : > { %3244 = vmatprep.subr.bf16.mxu1 %v3509_v58 }
  0x94   : > { %1734 = vmatmul.mubr.bf16.gmra.mrb[52].mxu0 %v3494_v59 }
  0x95   : > { %1862 = vmatmul.mubr.bf16.gmra.mrb[52].mxu1 %v3495_v60  ;;  %1741 = vmatprep.mubr.bf16.mxu0 %v3497_v61 }
  0x96   : > { %1869 = vmatprep.mubr.bf16.mxu1 %v3499_v62  ;;  %3207 = vmatpush3.bf16.msra.mxu0 %v3509_v58 }
  0x97   : > { %3252 = vmatpush3.bf16.msra.mxu1 %v3509_v58  ;;  %3208 = vmatprep.subr.bf16.mxu0 %v3516_v63  ;;  %v4047_v58 = vld [vmem:[%s4339_s2] ss:$0 sm:$0xff] }
  0x98   : > { %3245 = vmatprep.subr.bf16.mxu1 %v3516_v63 }
  0x9a   : > { %3209 = vmatpush3.bf16.msra.mxu0 %v3516_v63 }
  0x9b   : > { %3253 = vmatpush3.bf16.msra.mxu1 %v3516_v63  ;;  %3210 = vmatprep.subr.bf16.mxu0 %v3529_v0 }
  0x9c   : > { %1742 = vmatmul.mubr.bf16.gmra.mrb[56].mxu0 %v3501_v1  ;;  %3246 = vmatprep.subr.bf16.mxu1 %v3529_v0 }
  0x9d   : > { %1870 = vmatmul.mubr.bf16.gmra.mrb[56].mxu1 %v3502_v2  ;;  %1749 = vmatprep.mubr.bf16.mxu0 %v3503_v3 }
  0x9e   : > { %1877 = vmatprep.mubr.bf16.mxu1 %v3505_v4  ;;  %3211 = vmatpush3.bf16.msra.mxu0 %v3529_v0 }
  0x9f   : > { %3254 = vmatpush3.bf16.msra.mxu1 %v3529_v0  ;;  %3212 = vmatprep.subr.bf16.mxu0 %v3536_v5 }
  0xa0   : > { %3247 = vmatprep.subr.bf16.mxu1 %v3536_v5 }
  0xa2   : > { %3213 = vmatpush3.bf16.msra.mxu0 %v3536_v5 }
  0xa3   : > { %3255 = vmatpush3.bf16.msra.mxu1 %v3536_v5  ;;  %3214 = vmatprep.subr.bf16.mxu0 %v3549_v6 }
  0xa4   : > { %1750 = vmatmul.mubr.bf16.gmra.mrb[60].mxu0 %v3507_v7  ;;  %3248 = vmatprep.subr.bf16.mxu1 %v3549_v6 }
  0xa5   : > { %1878 = vmatmul.mubr.bf16.gmra.mrb[60].mxu1 %v3508_v8  ;;  %1757 = vmatprep.mubr.bf16.mxu0 %v3510_v9 }
  0xa6   : > { %1885 = vmatprep.mubr.bf16.mxu1 %v3512_v10  ;;  %3215 = vmatpush3.bf16.msra.mxu0 %v3549_v6 }
  0xa7   : > { %3256 = vmatpush3.bf16.msra.mxu1 %v3549_v6  ;;  %3216 = vmatprep.subr.bf16.mxu0 %v3556_v11 }
  0xa8   : > { %3249 = vmatprep.subr.bf16.mxu1 %v3556_v11 }
  0xaa   : > { %3217 = vmatpush3.bf16.msra.mxu0 %v3556_v11 }
  0xab   : > { %3257 = vmatpush3.bf16.msra.mxu1 %v3556_v11 }
  0xac   : > { %1758 = vmatmul.mubr.bf16.gmra.mrb[64].mxu0 %v3514_v12 }
  0xad   : > { %1886 = vmatmul.mubr.bf16.gmra.mrb[64].mxu1 %v3515_v13  ;;  %1765 = vmatprep.mubr.bf16.mxu0 %v3517_v14 }
  0xae   : > { %1893 = vmatprep.mubr.bf16.mxu1 %v3519_v15 }
  0xb4   : > { %1766 = vmatmul.mubr.bf16.gmra.mrb[68].mxu0 %v3521_v16 }
  0xb5   : > { %1894 = vmatmul.mubr.bf16.gmra.mrb[68].mxu1 %v3522_v17  ;;  %1773 = vmatprep.mubr.bf16.mxu0 %v3523_v18 }
  0xb6   : > { %1901 = vmatprep.mubr.bf16.mxu1 %v3525_v19 }
  0xbc   : > { %1774 = vmatmul.mubr.bf16.gmra.mrb[72].mxu0 %v3527_v20 }
  0xbd   : > { %1902 = vmatmul.mubr.bf16.gmra.mrb[72].mxu1 %v3528_v21  ;;  %1781 = vmatprep.mubr.bf16.mxu0 %v3530_v22 }
  0xbe   : > { %1909 = vmatprep.mubr.bf16.mxu1 %v3532_v23 }
  0xc4   : > { %1782 = vmatmul.mubr.bf16.gmra.mrb[76].mxu0 %v3534_v24 }
  0xc5   : > { %1910 = vmatmul.mubr.bf16.gmra.mrb[76].mxu1 %v3535_v25  ;;  %1789 = vmatprep.mubr.bf16.mxu0 %v3537_v26 }
  0xc6   : > { %1917 = vmatprep.mubr.bf16.mxu1 %v3539_v27 }
  0xcc   : > { %1790 = vmatmul.mubr.bf16.gmra.mrb[80].mxu0 %v3541_v28 }
  0xcd   : > { %1918 = vmatmul.mubr.bf16.gmra.mrb[80].mxu1 %v3542_v29  ;;  %1797 = vmatprep.mubr.bf16.mxu0 %v3543_v30 }
  0xce   : > { %1925 = vmatprep.mubr.bf16.mxu1 %v3545_v31 }
  0xd4   : > { %1798 = vmatmul.mubr.bf16.gmra.mrb[84].mxu0 %v3547_v32 }
  0xd5   : > { %1926 = vmatmul.mubr.bf16.gmra.mrb[84].mxu1 %v3548_v33  ;;  %1805 = vmatprep.mubr.bf16.mxu0 %v3550_v34 }
  0xd6   : > { %1933 = vmatprep.mubr.bf16.mxu1 %v3552_v35 }
  0xdc   : > { %1806 = vmatmul.mubr.bf16.gmra.mrb[88].mxu0 %v3554_v38 }
  0xdd   : > { %1934 = vmatmul.mubr.bf16.gmra.mrb[88].mxu1 %v3555_v39  ;;  %1813 = vmatprep.mubr.bf16.mxu0 %v2630_v40 }
  0xde   : > { %1941 = vmatprep.mubr.bf16.mxu1 %v2632_v41 }
  0xe4   : > { %1814 = vmatmul.mubr.bf16.gmra.mrb[92].mxu0 %v2629_v42 }
  0xe5   : > { %1942 = vmatmul.mubr.bf16.gmra.mrb[92].mxu1 %v2631_v43  ;;  %3218 = vmatprep.mubr.bf16.mxu0 %v3561_v44 }
  0xe6   : > { %3230 = vmatprep.mubr.bf16.mxu1 %v3562_v45 }
  0xec   : > { %3219 = vmatmul.mubr.bf16.vlgmr.msra.gmra.mrb[96].mxu0 %v3563_v46 }
  0xed   : > { %3231 = vmatmul.mubr.bf16.vlgmr.msra.gmra.mrb[96].mxu1 %v3564_v47  ;;  %3222 = vmatprep.mubr.bf16.mxu0 %v3565_v48 }
  0xee   : > { %3234 = vmatprep.mubr.bf16.mxu1 %v3566_v49 }
  0xf4   : > { %3223 = vmatmul.mubr.bf16.gmra.mrb[100].mxu0 %v3567_v50 }
  0xf5   : > { %3235 = vmatmul.mubr.bf16.gmra.mrb[100].mxu1 %v3568_v51  ;;  %3226 = vmatprep.mubr.bf16.mxu0 %v3569_v52 }
  0xf6   : > { %3238 = vmatprep.mubr.bf16.mxu1 %v3570_v53 }
  0xfc   : > { %3227 = vmatmul.mubr.bf16.gmra.mrb[104].mxu0 %v3571_v54 }
  0xfd   : > { %3239 = vmatmul.mubr.bf16.gmra.mrb[104].mxu1 %v3572_v55 }
  0xff   : > { %v2846_v56 = vpop.f32.mrb[0].mxu0 }
 0x100   : > { %v2934_v57 = vpop.f32.mrb[0].mxu1  ;;  %v2847_v59 = vpop.f32.mrb[1].mxu0 }
 0x101   : > { %v2848_v60 = vadd.f32 %v2847_v59, %v2846_v56  ;;  %v2935_v61 = vpop.f32.mrb[1].mxu1  ;;  %v2849_v62 = vpop.f32.mrb[2].mxu0 }
 0x102   : > { %v2936_v63 = vadd.f32 %v2935_v61, %v2934_v57  ;;  %v2937_v0 = vpop.f32.mrb[2].mxu1  ;;  %v2850_v1 = vpop.f32.mrb[3].mxu0 }
 0x103   : > { %v1472_v2 = vadd.f32 %v2848_v60, %v4047_v58  ;;  %v2851_v3 = vadd.f32 %v2850_v1, %v2849_v62  ;;  %v2938_v4 = vpop.f32.mrb[3].mxu1 }
 0x104   : > { %v2939_v5 = vadd.f32 %v2938_v4, %v2937_v0 }
 0x105   : > { %v4050_v6 = vadd.f32 %v2936_v63, %v1472_v2  ;;  %v1475_v7 = vadd.f32 %v2851_v3, %v4047_v58 }
 0x107   : > { %v4053_v8 = vadd.f32 %v2939_v5, %v1475_v7  ;;  %v2852_v9 = vpop.f32.mrb[4].mxu0 }
 0x108   : > { %v2940_v10 = vpop.f32.mrb[4].mxu1  ;;  %v2853_v11 = vpop.f32.mrb[5].mxu0 }
 0x109   : > { %v2854_v12 = vadd.f32 %v2853_v11, %v2852_v9  ;;  %v2941_v13 = vpop.f32.mrb[5].mxu1  ;;  %v2855_v14 = vpop.f32.mrb[6].mxu0 }
 0x10a   : > { %v2942_v15 = vadd.f32 %v2941_v13, %v2940_v10  ;;  %v2943_v16 = vpop.f32.mrb[6].mxu1  ;;  %v2856_v17 = vpop.f32.mrb[7].mxu0 }
 0x10b   : > { %v1480_v18 = vadd.f32 %v2854_v12, %v4047_v58  ;;  %v2857_v19 = vadd.f32 %v2856_v17, %v2855_v14  ;;  %v2944_v20 = vpop.f32.mrb[7].mxu1 }
 0x10c   : > { %v2945_v21 = vadd.f32 %v2944_v20, %v2943_v16 }
 0x10d   : > { %v4056_v22 = vadd.f32 %v2942_v15, %v1480_v18  ;;  %v1483_v23 = vadd.f32 %v2857_v19, %v4047_v58 }
 0x10f   : > { %v4059_v24 = vadd.f32 %v2945_v21, %v1483_v23  ;;  %v2858_v25 = vpop.f32.mrb[8].mxu0 }
 0x110   : > { %v2946_v26 = vpop.f32.mrb[8].mxu1  ;;  %v2859_v27 = vpop.f32.mrb[9].mxu0 }
 0x111   : > { %v2860_v28 = vadd.f32 %v2859_v27, %v2858_v25  ;;  %v2947_v29 = vpop.f32.mrb[9].mxu1  ;;  %v2861_v30 = vpop.f32.mrb[10].mxu0 }
 0x112   : > { %v2948_v31 = vadd.f32 %v2947_v29, %v2946_v26  ;;  %v2949_v32 = vpop.f32.mrb[10].mxu1  ;;  %v2862_v33 = vpop.f32.mrb[11].mxu0 }
 0x113   : > { %v1488_v34 = vadd.f32 %v2860_v28, %v4047_v58  ;;  %v2863_v35 = vadd.f32 %v2862_v33, %v2861_v30  ;;  %v2950_v36 = vpop.f32.mrb[11].mxu1 }
 0x114   : > { %v2951_v37 = vadd.f32 %v2950_v36, %v2949_v32 }
 0x115   : > { %v4062_v38 = vadd.f32 %v2948_v31, %v1488_v34  ;;  %v1491_v39 = vadd.f32 %v2863_v35, %v4047_v58 }
 0x117   : > { %v4065_v40 = vadd.f32 %v2951_v37, %v1491_v39  ;;  %v2864_v41 = vpop.f32.mrb[12].mxu0 }
 0x118   : > { %v2952_v42 = vpop.f32.mrb[12].mxu1  ;;  %v2865_v43 = vpop.f32.mrb[13].mxu0 }
 0x119   : > { %v2866_v44 = vadd.f32 %v2865_v43, %v2864_v41  ;;  %v2953_v45 = vpop.f32.mrb[13].mxu1  ;;  %v2867_v46 = vpop.f32.mrb[14].mxu0 }
 0x11a   : > { %v2954_v47 = vadd.f32 %v2953_v45, %v2952_v42  ;;  %v2955_v48 = vpop.f32.mrb[14].mxu1  ;;  %v2868_v49 = vpop.f32.mrb[15].mxu0 }
 0x11b   : > { %v1496_v50 = vadd.f32 %v2866_v44, %v4047_v58  ;;  %v2869_v51 = vadd.f32 %v2868_v49, %v2867_v46  ;;  %v2956_v52 = vpop.f32.mrb[15].mxu1 }
 0x11c   : > { %v2957_v53 = vadd.f32 %v2956_v52, %v2955_v48 }
 0x11d   : > { %v4068_v54 = vadd.f32 %v2954_v47, %v1496_v50  ;;  %v1499_v55 = vadd.f32 %v2869_v51, %v4047_v58 }
 0x11f   : > { %v4071_v56 = vadd.f32 %v2957_v53, %v1499_v55  ;;  %v2870_v57 = vpop.f32.mrb[16].mxu0 }
 0x120   : > { %v2958_v59 = vpop.f32.mrb[16].mxu1  ;;  %v2871_v60 = vpop.f32.mrb[17].mxu0 }
 0x121   : > { %v2872_v61 = vadd.f32 %v2871_v60, %v2870_v57  ;;  %v2959_v62 = vpop.f32.mrb[17].mxu1  ;;  %v2873_v63 = vpop.f32.mrb[18].mxu0 }
 0x122   : > { %v2960_v0 = vadd.f32 %v2959_v62, %v2958_v59  ;;  %v2961_v1 = vpop.f32.mrb[18].mxu1  ;;  %v2874_v2 = vpop.f32.mrb[19].mxu0 }
 0x123   : > { %v1504_v3 = vadd.f32 %v2872_v61, %v4047_v58  ;;  %v2875_v4 = vadd.f32 %v2874_v2, %v2873_v63  ;;  %v2962_v5 = vpop.f32.mrb[19].mxu1 }
 0x124   : > { %v2963_v7 = vadd.f32 %v2962_v5, %v2961_v1 }
 0x125   : > { %v4074_v9 = vadd.f32 %v2960_v0, %v1504_v3  ;;  %v1507_v10 = vadd.f32 %v2875_v4, %v4047_v58 }
 0x127   : > { %v4077_v11 = vadd.f32 %v2963_v7, %v1507_v10  ;;  %v2876_v12 = vpop.f32.mrb[20].mxu0 }
 0x128   : > { %v2964_v13 = vpop.f32.mrb[20].mxu1  ;;  %v2877_v14 = vpop.f32.mrb[21].mxu0 }
 0x129   : > { %v2878_v15 = vadd.f32 %v2877_v14, %v2876_v12  ;;  %v2965_v16 = vpop.f32.mrb[21].mxu1  ;;  %v2879_v17 = vpop.f32.mrb[22].mxu0 }
 0x12a   : > { %v2966_v18 = vadd.f32 %v2965_v16, %v2964_v13  ;;  %v2967_v19 = vpop.f32.mrb[22].mxu1  ;;  %v2880_v20 = vpop.f32.mrb[23].mxu0 }
 0x12b   : > { %v1512_v21 = vadd.f32 %v2878_v15, %v4047_v58  ;;  %v2881_v23 = vadd.f32 %v2880_v20, %v2879_v17  ;;  %v2968_v25 = vpop.f32.mrb[23].mxu1 }
 0x12c   : > { %v2969_v26 = vadd.f32 %v2968_v25, %v2967_v19 }
 0x12d   : > { %v4080_v27 = vadd.f32 %v2966_v18, %v1512_v21  ;;  %v1515_v28 = vadd.f32 %v2881_v23, %v4047_v58 }
 0x12f   : > { %v4083_v29 = vadd.f32 %v2969_v26, %v1515_v28  ;;  %v2882_v30 = vpop.f32.mrb[24].mxu0 }
 0x130   : > { %v2970_v31 = vpop.f32.mrb[24].mxu1  ;;  %v2883_v32 = vpop.f32.mrb[25].mxu0 }
 0x131   : > { %v2884_v33 = vadd.f32 %v2883_v32, %v2882_v30  ;;  %v2971_v34 = vpop.f32.mrb[25].mxu1  ;;  %v2885_v35 = vpop.f32.mrb[26].mxu0 }
 0x132   : > { %v2972_v36 = vadd.f32 %v2971_v34, %v2970_v31  ;;  %v2973_v37 = vpop.f32.mrb[26].mxu1  ;;  %v2886_v39 = vpop.f32.mrb[27].mxu0 }
 0x133   : > { %v1520_v41 = vadd.f32 %v2884_v33, %v4047_v58  ;;  %v2887_v42 = vadd.f32 %v2886_v39, %v2885_v35  ;;  %v2974_v43 = vpop.f32.mrb[27].mxu1 }
 0x134   : > { %v2975_v44 = vadd.f32 %v2974_v43, %v2973_v37 }
 0x135   : > { %v4086_v45 = vadd.f32 %v2972_v36, %v1520_v41  ;;  %v1523_v46 = vadd.f32 %v2887_v42, %v4047_v58 }
 0x137   : > { %v4089_v47 = vadd.f32 %v2975_v44, %v1523_v46  ;;  %v2888_v48 = vpop.f32.mrb[28].mxu0 }
 0x138   : > { %v2976_v49 = vpop.f32.mrb[28].mxu1  ;;  %v2889_v50 = vpop.f32.mrb[29].mxu0 }
 0x139   : > { %v2890_v51 = vadd.f32 %v2889_v50, %v2888_v48  ;;  %v2977_v52 = vpop.f32.mrb[29].mxu1  ;;  %v2891_v53 = vpop.f32.mrb[30].mxu0 }
 0x13a   : > { %v2978_v55 = vadd.f32 %v2977_v52, %v2976_v49  ;;  %v2979_v57 = vpop.f32.mrb[30].mxu1  ;;  %v2892_v59 = vpop.f32.mrb[31].mxu0 }
 0x13b   : > { %v1528_v60 = vadd.f32 %v2890_v51, %v4047_v58  ;;  %v2893_v61 = vadd.f32 %v2892_v59, %v2891_v53  ;;  %v2980_v62 = vpop.f32.mrb[31].mxu1 }
 0x13c   : > { %v2981_v63 = vadd.f32 %v2980_v62, %v2979_v57 }
 0x13d   : > { %v4092_v0 = vadd.f32 %v2978_v55, %v1528_v60  ;;  %v1531_v1 = vadd.f32 %v2893_v61, %v4047_v58 }
 0x13f   : > { %v4095_v2 = vadd.f32 %v2981_v63, %v1531_v1  ;;  %v2894_v3 = vpop.f32.mrb[32].mxu0 }
 0x140   : > { %v2982_v4 = vpop.f32.mrb[32].mxu1  ;;  %v2895_v5 = vpop.f32.mrb[33].mxu0 }
 0x141   : > { %v2896_v7 = vadd.f32 %v2895_v5, %v2894_v3  ;;  %v2983_v10 = vpop.f32.mrb[33].mxu1  ;;  %v2897_v12 = vpop.f32.mrb[34].mxu0 }
 0x142   : > { %v2984_v13 = vadd.f32 %v2983_v10, %v2982_v4  ;;  %v2985_v14 = vpop.f32.mrb[34].mxu1  ;;  %v2898_v15 = vpop.f32.mrb[35].mxu0 }
 0x143   : > { %v1536_v16 = vadd.f32 %v2896_v7, %v4047_v58  ;;  %v2899_v17 = vadd.f32 %v2898_v15, %v2897_v12  ;;  %v2986_v18 = vpop.f32.mrb[35].mxu1 }
 0x144   : > { %v2987_v19 = vadd.f32 %v2986_v18, %v2985_v14 }
 0x145   : > { %v4098_v20 = vadd.f32 %v2984_v13, %v1536_v16  ;;  %v1539_v21 = vadd.f32 %v2899_v17, %v4047_v58 }
 0x147   : > { %v4101_v23 = vadd.f32 %v2987_v19, %v1539_v21  ;;  %v2900_v25 = vpop.f32.mrb[36].mxu0 }
 0x148   : > { %v2988_v26 = vpop.f32.mrb[36].mxu1  ;;  %v2901_v28 = vpop.f32.mrb[37].mxu0 }
 0x149   : > { %v2902_v30 = vadd.f32 %v2901_v28, %v2900_v25  ;;  %v2989_v31 = vpop.f32.mrb[37].mxu1  ;;  %v2903_v32 = vpop.f32.mrb[38].mxu0 }
 0x14a   : > { %v2990_v33 = vadd.f32 %v2989_v31, %v2988_v26  ;;  %v2991_v34 = vpop.f32.mrb[38].mxu1  ;;  %v2904_v35 = vpop.f32.mrb[39].mxu0 }
 0x14b   : > { %v1544_v36 = vadd.f32 %v2902_v30, %v4047_v58  ;;  %v2905_v37 = vadd.f32 %v2904_v35, %v2903_v32  ;;  %v2992_v39 = vpop.f32.mrb[39].mxu1 }
 0x14c   : > { %v2993_v41 = vadd.f32 %v2992_v39, %v2991_v34 }
 0x14d   : > { %v4104_v42 = vadd.f32 %v2990_v33, %v1544_v36  ;;  %v1547_v43 = vadd.f32 %v2905_v37, %v4047_v58 }
 0x14f   : > { %v4107_v44 = vadd.f32 %v2993_v41, %v1547_v43  ;;  %v2906_v46 = vpop.f32.mrb[40].mxu0 }
 0x150   : > { %v2994_v48 = vpop.f32.mrb[40].mxu1  ;;  %v2907_v49 = vpop.f32.mrb[41].mxu0 }
 0x151   : > { %v2908_v50 = vadd.f32 %v2907_v49, %v2906_v46  ;;  %v2995_v51 = vpop.f32.mrb[41].mxu1  ;;  %v2909_v52 = vpop.f32.mrb[42].mxu0 }
 0x152   : > { %v2996_v53 = vadd.f32 %v2995_v51, %v2994_v48  ;;  %v2997_v55 = vpop.f32.mrb[42].mxu1  ;;  %v2910_v57 = vpop.f32.mrb[43].mxu0 }
 0x153   : > { %v1552_v59 = vadd.f32 %v2908_v50, %v4047_v58  ;;  %v2911_v60 = vadd.f32 %v2910_v57, %v2909_v52  ;;  %v2998_v61 = vpop.f32.mrb[43].mxu1 }
 0x154   : > { %v2999_v62 = vadd.f32 %v2998_v61, %v2997_v55 }
 0x155   : > { %v4110_v63 = vadd.f32 %v2996_v53, %v1552_v59  ;;  %v1555_v1 = vadd.f32 %v2911_v60, %v4047_v58 }
 0x157   : > { %v4113_v3 = vadd.f32 %v2999_v62, %v1555_v1  ;;  %v2912_v4 = vpop.f32.mrb[44].mxu0 }
 0x158   : > { %v3000_v5 = vpop.f32.mrb[44].mxu1  ;;  %v2913_v7 = vpop.f32.mrb[45].mxu0 }
 0x159   : > { %v2914_v10 = vadd.f32 %v2913_v7, %v2912_v4  ;;  %v3001_v12 = vpop.f32.mrb[45].mxu1  ;;  %v2915_v13 = vpop.f32.mrb[46].mxu0 }
 0x15a   : > { %v3002_v14 = vadd.f32 %v3001_v12, %v3000_v5  ;;  %v3003_v15 = vpop.f32.mrb[46].mxu1  ;;  %v2916_v16 = vpop.f32.mrb[47].mxu0 }
 0x15b   : > { %v1560_v17 = vadd.f32 %v2914_v10, %v4047_v58  ;;  %v3004_v18 = vpop.f32.mrb[47].mxu1 }
 0x15d   : > { %v4116_v19 = vadd.f32 %v3002_v14, %v1560_v17 }
 0x15f   : > { %v3022_v21 = vpop.f32.mrb[48].mxu0 }
 0x160   : > { %v3110_v25 = vpop.f32.mrb[48].mxu1  ;;  %v3023_v26 = vpop.f32.mrb[49].mxu0 }
 0x161   : > { %v3024_v28 = vadd.f32 %v3023_v26, %v3022_v21  ;;  %v3111_v30 = vpop.f32.mrb[49].mxu1  ;;  %v3025_v31 = vpop.f32.mrb[50].mxu0 }
 0x162   : > { %v3112_v32 = vadd.f32 %v3111_v30, %v3110_v25  ;;  %v3113_v33 = vpop.f32.mrb[50].mxu1  ;;  %v3026_v34 = vpop.f32.mrb[51].mxu0 }
 0x163   : > { %v1728_v35 = vadd.f32 %v3024_v28, %v4050_v6  ;;  %v3027_v36 = vadd.f32 %v3026_v34, %v3025_v31  ;;  %v3114_v37 = vpop.f32.mrb[51].mxu1 }
 0x164   : > { %v3115_v39 = vadd.f32 %v3114_v37, %v3113_v33 }
 0x165   : > { %v1731_v41 = vadd.f32 %v3027_v36, %v4053_v8  ;;  %v4120_v58 = vadd.f32 %v3112_v32, %v1728_v35 }
 0x167   : > { %v3028_v43 = vpop.f32.mrb[52].mxu0  ;;  %v4122_v46 = vadd.f32 %v3115_v39, %v1731_v41 }
 0x168   : > { %v3116_v48 = vpop.f32.mrb[52].mxu1  ;;  %v3029_v49 = vpop.f32.mrb[53].mxu0 }
 0x169   : > { %v3030_v50 = vadd.f32 %v3029_v49, %v3028_v43  ;;  %v3117_v51 = vpop.f32.mrb[53].mxu1  ;;  %v3031_v52 = vpop.f32.mrb[54].mxu0 }
 0x16a   : > { %v3118_v53 = vadd.f32 %v3117_v51, %v3116_v48  ;;  %v3119_v55 = vpop.f32.mrb[54].mxu1  ;;  %v3032_v57 = vpop.f32.mrb[55].mxu0 }
 0x16b   : > { %v1736_v6 = vadd.f32 %v3030_v50, %v4056_v22  ;;  %v3033_v59 = vadd.f32 %v3032_v57, %v3031_v52  ;;  %v3120_v60 = vpop.f32.mrb[55].mxu1 }
 0x16c   : > { %v3121_v61 = vadd.f32 %v3120_v60, %v3119_v55 }
 0x16d   : > { %v1739_v8 = vadd.f32 %v3033_v59, %v4059_v24  ;;  %v4126_v62 = vadd.f32 %v3118_v53, %v1736_v6 }
 0x16f   : > { %v3034_v1 = vpop.f32.mrb[56].mxu0  ;;  %v4128_v4 = vadd.f32 %v3121_v61, %v1739_v8 }
 0x170   : > { %v3122_v5 = vpop.f32.mrb[56].mxu1  ;;  %v3035_v7 = vpop.f32.mrb[57].mxu0 }
 0x171   : > { %v3036_v10 = vadd.f32 %v3035_v7, %v3034_v1  ;;  %v3123_v12 = vpop.f32.mrb[57].mxu1  ;;  %v3037_v13 = vpop.f32.mrb[58].mxu0 }
 0x172   : > { %v3124_v14 = vadd.f32 %v3123_v12, %v3122_v5  ;;  %v3125_v15 = vpop.f32.mrb[58].mxu1  ;;  %v3038_v16 = vpop.f32.mrb[59].mxu0 }
 0x173   : > { %v1744_v22 = vadd.f32 %v3036_v10, %v4062_v38  ;;  %v3039_v17 = vadd.f32 %v3038_v16, %v3037_v13  ;;  %v3126_v18 = vpop.f32.mrb[59].mxu1 }
 0x174   : > { %v3127_v21 = vadd.f32 %v3126_v18, %v3125_v15 }
 0x175   : > { %v1747_v24 = vadd.f32 %v3039_v17, %v4065_v40  ;;  %v4132_v25 = vadd.f32 %v3124_v14, %v1744_v22 }
 0x177   : > { %v3040_v26 = vpop.f32.mrb[60].mxu0  ;;  %v4134_v28 = vadd.f32 %v3127_v21, %v1747_v24 }
 0x178   : > { %v3128_v30 = vpop.f32.mrb[60].mxu1  ;;  %v3041_v31 = vpop.f32.mrb[61].mxu0 }
 0x179   : > { %v3042_v32 = vadd.f32 %v3041_v31, %v3040_v26  ;;  %v3129_v33 = vpop.f32.mrb[61].mxu1  ;;  %v3043_v34 = vpop.f32.mrb[62].mxu0 }
 0x17a   : > { %v3130_v35 = vadd.f32 %v3129_v33, %v3128_v30  ;;  %v3131_v36 = vpop.f32.mrb[62].mxu1  ;;  %v3044_v37 = vpop.f32.mrb[63].mxu0 }
 0x17b   : > { %v1752_v38 = vadd.f32 %v3042_v32, %v4068_v54  ;;  %v3045_v39 = vadd.f32 %v3044_v37, %v3043_v34  ;;  %v3132_v41 = vpop.f32.mrb[63].mxu1 }
 0x17c   : > { %v3133_v43 = vadd.f32 %v3132_v41, %v3131_v36 }
 0x17d   : > { %v1755_v40 = vadd.f32 %v3045_v39, %v4071_v56  ;;  %v4138_v48 = vadd.f32 %v3130_v35, %v1752_v38 }
 0x17f   : > { %v3046_v49 = vpop.f32.mrb[64].mxu0  ;;  %v4140_v50 = vadd.f32 %v3133_v43, %v1755_v40 }
 0x180   : > { %v3134_v51 = vpop.f32.mrb[64].mxu1  ;;  %v3047_v52 = vpop.f32.mrb[65].mxu0 }
 0x181   : > { %v3048_v53 = vadd.f32 %v3047_v52, %v3046_v49  ;;  %v3135_v55 = vpop.f32.mrb[65].mxu1  ;;  %v3049_v57 = vpop.f32.mrb[66].mxu0 }
 0x182   : > { %v3136_v6 = vadd.f32 %v3135_v55, %v3134_v51  ;;  %v3137_v59 = vpop.f32.mrb[66].mxu1  ;;  %v3050_v60 = vpop.f32.mrb[67].mxu0 }
 0x183   : > { %v1760_v54 = vadd.f32 %v3048_v53, %v4074_v9  ;;  %v3051_v61 = vadd.f32 %v3050_v60, %v3049_v57  ;;  %v3138_v8 = vpop.f32.mrb[67].mxu1 }
 0x184   : > { %v3139_v1 = vadd.f32 %v3138_v8, %v3137_v59 }
 0x185   : > { %v1763_v56 = vadd.f32 %v3051_v61, %v4077_v11  ;;  %v4144_v5 = vadd.f32 %v3136_v6, %v1760_v54 }
 0x187   : > { %v3052_v7 = vpop.f32.mrb[68].mxu0  ;;  %v4146_v10 = vadd.f32 %v3139_v1, %v1763_v56 }
 0x188   : > { %v3140_v12 = vpop.f32.mrb[68].mxu1  ;;  %v3053_v13 = vpop.f32.mrb[69].mxu0 }
 0x189   : > { %v3054_v14 = vadd.f32 %v3053_v13, %v3052_v7  ;;  %v3141_v15 = vpop.f32.mrb[69].mxu1  ;;  %v3055_v16 = vpop.f32.mrb[70].mxu0 }
 0x18a   : > { %v3142_v22 = vadd.f32 %v3141_v15, %v3140_v12  ;;  %v3143_v17 = vpop.f32.mrb[70].mxu1  ;;  %v3056_v18 = vpop.f32.mrb[71].mxu0 }
 0x18b   : > { %v1768_v9 = vadd.f32 %v3054_v14, %v4080_v27  ;;  %v3057_v21 = vadd.f32 %v3056_v18, %v3055_v16  ;;  %v3144_v24 = vpop.f32.mrb[71].mxu1 }
 0x18c   : > { %v3145_v26 = vadd.f32 %v3144_v24, %v3143_v17 }
 0x18d   : > { %v1771_v11 = vadd.f32 %v3057_v21, %v4083_v29  ;;  %v4150_v30 = vadd.f32 %v3142_v22, %v1768_v9 }
 0x18f   : > { %v3058_v31 = vpop.f32.mrb[72].mxu0  ;;  %v4152_v32 = vadd.f32 %v3145_v26, %v1771_v11 }
 0x190   : > { %v3146_v33 = vpop.f32.mrb[72].mxu1  ;;  %v3059_v34 = vpop.f32.mrb[73].mxu0 }
 0x191   : > { %v3060_v35 = vadd.f32 %v3059_v34, %v3058_v31  ;;  %v3147_v36 = vpop.f32.mrb[73].mxu1  ;;  %v3061_v37 = vpop.f32.mrb[74].mxu0 }
 0x192   : > { %v3148_v38 = vadd.f32 %v3147_v36, %v3146_v33  ;;  %v3149_v39 = vpop.f32.mrb[74].mxu1  ;;  %v3062_v41 = vpop.f32.mrb[75].mxu0 }
 0x193   : > { %v1776_v27 = vadd.f32 %v3060_v35, %v4086_v45  ;;  %v3063_v43 = vadd.f32 %v3062_v41, %v3061_v37  ;;  %v3150_v40 = vpop.f32.mrb[75].mxu1 }
 0x194   : > { %v3151_v49 = vadd.f32 %v3150_v40, %v3149_v39 }
 0x195   : > { %v1779_v29 = vadd.f32 %v3063_v43, %v4089_v47  ;;  %v4156_v51 = vadd.f32 %v3148_v38, %v1776_v27 }
 0x197   : > { %v3064_v52 = vpop.f32.mrb[76].mxu0  ;;  %v4158_v53 = vadd.f32 %v3151_v49, %v1779_v29 }
 0x198   : > { %v3152_v55 = vpop.f32.mrb[76].mxu1  ;;  %v3065_v57 = vpop.f32.mrb[77].mxu0 }
 0x199   : > { %v3066_v6 = vadd.f32 %v3065_v57, %v3064_v52  ;;  %v3153_v59 = vpop.f32.mrb[77].mxu1  ;;  %v3067_v60 = vpop.f32.mrb[78].mxu0 }
 0x19a   : > { %v3154_v54 = vadd.f32 %v3153_v59, %v3152_v55  ;;  %v3155_v61 = vpop.f32.mrb[78].mxu1  ;;  %v3068_v8 = vpop.f32.mrb[79].mxu0 }
 0x19b   : > { %v1784_v45 = vadd.f32 %v3066_v6, %v4092_v0  ;;  %v3069_v1 = vadd.f32 %v3068_v8, %v3067_v60  ;;  %v3156_v56 = vpop.f32.mrb[79].mxu1 }
 0x19c   : > { %v3157_v7 = vadd.f32 %v3156_v56, %v3155_v61 }
 0x19d   : > { %v1787_v47 = vadd.f32 %v3069_v1, %v4095_v2  ;;  %v4162_v12 = vadd.f32 %v3154_v54, %v1784_v45 }
 0x19f   : > { %v3070_v13 = vpop.f32.mrb[80].mxu0  ;;  %v4164_v14 = vadd.f32 %v3157_v7, %v1787_v47 }
 0x1a0   : > { %v3158_v15 = vpop.f32.mrb[80].mxu1  ;;  %v3071_v16 = vpop.f32.mrb[81].mxu0 }
 0x1a1   : > { %v3072_v22 = vadd.f32 %v3071_v16, %v3070_v13  ;;  %v3159_v17 = vpop.f32.mrb[81].mxu1  ;;  %v3073_v18 = vpop.f32.mrb[82].mxu0 }
 0x1a2   : > { %v3160_v9 = vadd.f32 %v3159_v17, %v3158_v15  ;;  %v3161_v21 = vpop.f32.mrb[82].mxu1  ;;  %v3074_v24 = vpop.f32.mrb[83].mxu0 }
 0x1a3   : > { %v1792_v0 = vadd.f32 %v3072_v22, %v4098_v20  ;;  %v3075_v26 = vadd.f32 %v3074_v24, %v3073_v18  ;;  %v3162_v11 = vpop.f32.mrb[83].mxu1 }
 0x1a4   : > { %v3163_v31 = vadd.f32 %v3162_v11, %v3161_v21 }
 0x1a5   : > { %v1795_v2 = vadd.f32 %v3075_v26, %v4101_v23  ;;  %v4168_v33 = vadd.f32 %v3160_v9, %v1792_v0 }
 0x1a7   : > { %v3076_v34 = vpop.f32.mrb[84].mxu0  ;;  %v4170_v35 = vadd.f32 %v3163_v31, %v1795_v2 }
 0x1a8   : > { %v3164_v36 = vpop.f32.mrb[84].mxu1  ;;  %v3077_v37 = vpop.f32.mrb[85].mxu0 }
 0x1a9   : > { %v3078_v38 = vadd.f32 %v3077_v37, %v3076_v34  ;;  %v3165_v39 = vpop.f32.mrb[85].mxu1  ;;  %v3079_v41 = vpop.f32.mrb[86].mxu0 }
 0x1aa   : > { %v3166_v27 = vadd.f32 %v3165_v39, %v3164_v36  ;;  %v3167_v43 = vpop.f32.mrb[86].mxu1  ;;  %v3080_v40 = vpop.f32.mrb[87].mxu0 }
 0x1ab   : > { %v1800_v20 = vadd.f32 %v3078_v38, %v4104_v42  ;;  %v3081_v49 = vadd.f32 %v3080_v40, %v3079_v41  ;;  %v3168_v29 = vpop.f32.mrb[87].mxu1 }
 0x1ac   : > { %v3169_v52 = vadd.f32 %v3168_v29, %v3167_v43 }
 0x1ad   : > { %v1803_v23 = vadd.f32 %v3081_v49, %v4107_v44  ;;  %v4174_v55 = vadd.f32 %v3166_v27, %v1800_v20 }
 0x1af   : > { %v3082_v57 = vpop.f32.mrb[88].mxu0  ;;  %v4176_v6 = vadd.f32 %v3169_v52, %v1803_v23 }
 0x1b0   : > { %v3170_v59 = vpop.f32.mrb[88].mxu1  ;;  %v3083_v60 = vpop.f32.mrb[89].mxu0 }
 0x1b1   : > { %v3084_v54 = vadd.f32 %v3083_v60, %v3082_v57  ;;  %v3171_v61 = vpop.f32.mrb[89].mxu1  ;;  %v3085_v8 = vpop.f32.mrb[90].mxu0 }
 0x1b2   : > { %v3172_v45 = vadd.f32 %v3171_v61, %v3170_v59  ;;  %v3173_v1 = vpop.f32.mrb[90].mxu1  ;;  %v3086_v56 = vpop.f32.mrb[91].mxu0 }
 0x1b3   : > { %v1808_v42 = vadd.f32 %v3084_v54, %v4110_v63  ;;  %v3087_v7 = vadd.f32 %v3086_v56, %v3085_v8  ;;  %v3174_v47 = vpop.f32.mrb[91].mxu1 }
 0x1b4   : > { %v3175_v13 = vadd.f32 %v3174_v47, %v3173_v1 }
 0x1b5   : > { %v1811_v44 = vadd.f32 %v3087_v7, %v4113_v3  ;;  %v4180_v15 = vadd.f32 %v3172_v45, %v1808_v42 }
 0x1b7   : > { %v3088_v16 = vpop.f32.mrb[92].mxu0  ;;  %v4182_v22 = vadd.f32 %v3175_v13, %v1811_v44 }
 0x1b8   : > { %v3176_v17 = vpop.f32.mrb[92].mxu1  ;;  %v3089_v18 = vpop.f32.mrb[93].mxu0 }
 0x1b9   : > { %v3090_v9 = vadd.f32 %v3089_v18, %v3088_v16  ;;  %v3177_v21 = vpop.f32.mrb[93].mxu1  ;;  %v3091_v24 = vpop.f32.mrb[94].mxu0 }
 0x1ba   : > { %v3178_v0 = vadd.f32 %v3177_v21, %v3176_v17  ;;  %v3179_v26 = vpop.f32.mrb[94].mxu1  ;;  %v3092_v11 = vpop.f32.mrb[95].mxu0 }
 0x1bb   : > { %v1816_v63 = vadd.f32 %v3090_v9, %v4116_v19  ;;  %v3180_v31 = vpop.f32.mrb[95].mxu1 }
 0x1bd   : > { %v4185_v2 = vadd.f32 %v3178_v0, %v1816_v63 }
 0x1bf   : > { %v3220_v3 = vpop.f32.mrb[96].mxu0 }
 0x1c0   : > { %v1992_v34 = vadd.f32 %v3220_v3, %v4126_v62  ;;  %v3232_v36 = vpop.f32.mrb[96].mxu1  ;;  %v1983_v37 = vpop.f32.mrb[97].mxu0 }
 0x1c1   : > { %v2040_v38 = vadd.f32 %v3232_v36, %v4162_v12  ;;  %v1984_v39 = vadd.f32 %v1983_v37, %v4120_v58  ;;  %v2031_v41 = vpop.f32.mrb[97].mxu1  ;;  %v3221_v27 = vpop.f32.mrb[98].mxu0 }
 0x1c2   : > { %v2032_v43 = vadd.f32 %v2031_v41, %v4156_v51  ;;  %v1995_v19 = vadd.f32 %v3221_v27, %v4128_v4  ;;  %v3233_v40 = vpop.f32.mrb[98].mxu1  ;;  %v1986_v20 = vpop.f32.mrb[99].mxu0  ;;  %v2079_v52 = vmax.f32 %v1992_v34, 0.0 }
 0x1c3   : > { %v2043_v49 = vadd.f32 %v3233_v40, %v4164_v14  ;;  %v1987_v29 = vadd.f32 %v1986_v20, %v4122_v46  ;;  %v2034_v62 = vpop.f32.mrb[99].mxu1  ;;  %v2091_v57 = vmax.f32 %v2040_v38, 0.0  ;;  %v2077_v58 = vmax.f32 %v1984_v39, 0.0 }
 0x1c4   : > { %v2080_v23 = vmax.f32 %v1995_v19, 0.0  ;;  %v2035_v12 = vadd.f32 %v2034_v62, %v4158_v53  ;;  %v2089_v54 = vmax.f32 %v2032_v43, 0.0 }
 0x1c5   : > { %v2092_v59 = vmax.f32 %v2043_v49, 0.0  ;;  %v2078_v60 = vmax.f32 %v1987_v29, 0.0 }
 0x1c6   : > { %v2773_v61 = vpack.c.bf16 %v2080_v23, %v2079_v52  ;;  %v2090_v51 = vmax.f32 %v2035_v12, 0.0 }
 0x1c7   : > { %v2803_v8 = vpack.c.bf16 %v2092_v59, %v2091_v57  ;;  %v2768_v4 = vpack.c.bf16 %v2078_v60, %v2077_v58  ;;  %v3224_v45 = vpop.f32.mrb[100].mxu0 }
 0x1c8   : > { %2820 = vst [vmem:[%s4196_s12 + $0x8] sm:$0xff] %v2773_v61   ;;  %v2798_v46 = vpack.c.bf16 %v2090_v51, %v2089_v54  ;;  %v2008_v53 = vadd.f32 %v3224_v45, %v4138_v48  ;;  %v3236_v14 = vpop.f32.mrb[100].mxu1  ;;  %v1999_v1 = vpop.f32.mrb[101].mxu0 }
 0x1c9   : > { %2826 = vst [vmem:[%s4196_s12 + $0x38] sm:$0xff] %v2803_v8   ;;  %2769 = vst [vmem:[%s4196_s12] sm:$0xff] %v2768_v4   ;;  %v2056_v56 = vadd.f32 %v3236_v14, %v4174_v55  ;;  %v2000_v42 = vadd.f32 %v1999_v1, %v4132_v25  ;;  %v2047_v7 = vpop.f32.mrb[101].mxu1  ;;  %v3225_v47 = vpop.f32.mrb[102].mxu0 }
 0x1ca   : > { %2825 = vst [vmem:[%s4196_s12 + $0x30] sm:$0xff] %v2798_v46   ;;  %v2048_v13 = vadd.f32 %v2047_v7, %v4168_v33  ;;  %v2011_v44 = vadd.f32 %v3225_v47, %v4140_v50  ;;  %v3237_v16 = vpop.f32.mrb[102].mxu1  ;;  %v2002_v17 = vpop.f32.mrb[103].mxu0  ;;  %v2083_v21 = vmax.f32 %v2008_v53, 0.0 }
 0x1cb   : > { %v2059_v18 = vadd.f32 %v3237_v16, %v4176_v6  ;;  %v2003_v48 = vadd.f32 %v2002_v17, %v4134_v28  ;;  %v2050_v9 = vpop.f32.mrb[103].mxu1  ;;  %v2095_v25 = vmax.f32 %v2056_v56, 0.0  ;;  %v2081_v0 = vmax.f32 %v2000_v42, 0.0 }
 0x1cc   : > { %v2084_v24 = vmax.f32 %v2011_v44, 0.0  ;;  %v2051_v55 = vadd.f32 %v2050_v9, %v4170_v35  ;;  %v2093_v11 = vmax.f32 %v2048_v13, 0.0 }
 0x1cd   : > { %v2096_v26 = vmax.f32 %v2059_v18, 0.0  ;;  %v2082_v33 = vmax.f32 %v2003_v48, 0.0 }
 0x1ce   : > { %v2783_v50 = vpack.c.bf16 %v2084_v24, %v2083_v21  ;;  %v2094_v63 = vmax.f32 %v2051_v55, 0.0 }
 0x1cf   : > { %v2813_v31 = vpack.c.bf16 %v2096_v26, %v2095_v25  ;;  %v2778_v6 = vpack.c.bf16 %v2082_v33, %v2081_v0  ;;  %v3228_v3 = vpop.f32.mrb[104].mxu0 }
 0x1d0   : > { %2822 = vst [vmem:[%s4196_s12 + $0x18] sm:$0xff] %v2783_v50   ;;  %v2808_v28 = vpack.c.bf16 %v2094_v63, %v2093_v11  ;;  %v2024_v34 = vadd.f32 %v3228_v3, %v4150_v30  ;;  %v3240_v36 = vpop.f32.mrb[104].mxu1  ;;  %v2015_v37 = vpop.f32.mrb[105].mxu0 }
 0x1d1   : > { %2828 = vst [vmem:[%s4196_s12 + $0x48] sm:$0xff] %v2813_v31   ;;  %2821 = vst [vmem:[%s4196_s12 + $0x10] sm:$0xff] %v2778_v6   ;;  %v2072_v35 = vadd.f32 %v3240_v36, %v4185_v2  ;;  %v2016_v38 = vadd.f32 %v2015_v37, %v4144_v5  ;;  %v2063_v39 = vpop.f32.mrb[105].mxu1  ;;  %v3229_v41 = vpop.f32.mrb[106].mxu0 }
 0x1d2   : > { %2827 = vst [vmem:[%s4196_s12 + $0x40] sm:$0xff] %v2808_v28   ;;  %v2064_v27 = vadd.f32 %v2063_v39, %v4180_v15  ;;  %v2027_v43 = vadd.f32 %v3229_v41, %v4152_v32  ;;  %v3241_v19 = vpop.f32.mrb[106].mxu1  ;;  %v2018_v40 = vpop.f32.mrb[107].mxu0  ;;  %v2087_v2 = vmax.f32 %v2024_v34, 0.0 }
 0x1d3   : > { %v2099_v30 = vmax.f32 %v2072_v35, 0.0  ;;  %v2019_v20 = vadd.f32 %v2018_v40, %v4146_v10  ;;  %v2066_v49 = vpop.f32.mrb[107].mxu1  ;;  %v2085_v52 = vmax.f32 %v2016_v38, 0.0 }
 0x1d4   : > { %v2088_v29 = vmax.f32 %v2027_v43, 0.0  ;;  %v2067_v5 = vadd.f32 %v2066_v49, %v4182_v22  ;;  %v2097_v15 = vmax.f32 %v2064_v27, 0.0  ;;  %2222 = sbr.rel (!%p3710_p4) target bundleno = 552 (0x228), region = 36 }
 0x1d5   : > { %v2763_v62 = vpack.c.bf16 %v2099_v30, %v2099_v30  ;;  %v2086_v23 = vmax.f32 %v2019_v20, 0.0 }
 0x1d6   : > { %v2793_v12 = vpack.c.bf16 %v2088_v29, %v2087_v2  ;;  %v2098_v57 = vmax.f32 %v2067_v5, 0.0 }
 0x1d7   : > { %2215 = vst [vmem:[%s4196_s12 + $0x58] sm:$0xf] %v2763_v62  ;;  %v2788_v32 = vpack.c.bf16 %v2086_v23, %v2085_v52 }
 0x1d8   : > { %2824 = vst [vmem:[%s4196_s12 + $0x28] sm:$0xff] %v2793_v12   ;;  %v2818_v58 = vpack.c.bf16 %v2098_v57, %v2097_v15 }
 0x1d9   : > { %2823 = vst [vmem:[%s4196_s12 + $0x20] sm:$0xff] %v2788_v32  }
 0x1da   : > { %2829 = vst [vmem:[%s4196_s12 + $0x50] sm:$0xff] %v2818_v58  }
 0x1db   : > { %s4349_s10 = smov (!%p2225_p8, %s2224_s10), 23 }
 0x1dc   : > { %s2729_s21 = sshll.u32 %s4349_s10, 6 }
 0x1dd   : > { %p2732_p9 = scmp.eq.s32.totalorder %s2729_s21, 0 }
 0x1de   : > { %3573 = sdivrem.u32 (!%p2732_p9), %s4349_s10, 23 }
 0x1df   : > { %2233 = sbr.rel (%p2732_p9) target bundleno = 552 (0x228), region = 40 }
 0x1e7   : > { %s4238_s20 = spop.drf %3573 }
 0x1e8   : > { %p2733_p10 = scmp.le.s32.totalorder %s4238_s20, 0 }
 0x1e9   : > { %s4342_s15 = smov (!%p2733_p10), %s4232_s18  ;;  %s4343_s28 = smov (!%p2733_p10), %s4196_s12 }
 0x1ea   : > { %2476 = sbr.rel (%p2733_p10) target bundleno = 523 (0x20b), region = 112  ;;  %s4247_s22 = smov (!%p2733_p10), 0  }
 0x1eb   : > { %s4249_s23 = smov (!%p2733_p10), 0  }
 0x1f1 LB: >> { %v2250_v10 = vld [vmem:[%s3639_s28] sm:$0xf]  ;;  %v2252_v22 = vld [vmem:[%s3639_s28 + $0x4] sm:$0xf]  ;;  %v2254_v59 = vld [vmem:[%s3639_s28 + $0x8] sm:$0xf]  ;;  %s3647_s23 = sphi %s4249_s23, %s2244_s23   ;;  %s3643_s22 = sphi %s4247_s22, %s4344_s22   ;;  %s3639_s28 = sphi %s4343_s28, %s2301_s28   ;;  %s3635_s15 = sphi %s4342_s15, %s2302_s15  }
 0x1f2   : >> { %2251 = vst [vmem:[%s3635_s15] sm:$0xf] %v2250_v10  ;;  %2253 = vst [vmem:[%s3635_s15 + $0x4] sm:$0xf] %v2252_v22  ;;  %v2256_v60 = vld [vmem:[%s3639_s28 + $0xc] sm:$0xf]  ;;  %s2296_s25 = sadd.s32 1, %s3643_s22 }
 0x1f3   : >> { %2255 = vst [vmem:[%s3635_s15 + $0x8] sm:$0xf] %v2254_v59  ;;  %v2258_v54 = vld [vmem:[%s3639_s28 + $0x10] sm:$0xf]  ;;  %v2260_v61 = vld [vmem:[%s3639_s28 + $0x14] sm:$0xf]  ;;  %p2297_p11 = scmp.ge.s32.totalorder %s2296_s25, %s4238_s20 }
 0x1f4   : >> { %2257 = vst [vmem:[%s3635_s15 + $0xc] sm:$0xf] %v2256_v60  ;;  %2259 = vst [vmem:[%s3635_s15 + $0x10] sm:$0xf] %v2258_v54  ;;  %v2262_v51 = vld [vmem:[%s3639_s28 + $0x18] sm:$0xf] }
 0x1f5   : >> { %2261 = vst [vmem:[%s3635_s15 + $0x14] sm:$0xf] %v2260_v61  ;;  %v2264_v8 = vld [vmem:[%s3639_s28 + $0x1c] sm:$0xf]  ;;  %v2266_v4 = vld [vmem:[%s3639_s28 + $0x20] sm:$0xf] }
 0x1f6   : >> { %2263 = vst [vmem:[%s3635_s15 + $0x18] sm:$0xf] %v2262_v51  ;;  %2265 = vst [vmem:[%s3635_s15 + $0x1c] sm:$0xf] %v2264_v8  ;;  %v2268_v45 = vld [vmem:[%s3639_s28 + $0x24] sm:$0xf] }
 0x1f7   : >> { %2267 = vst [vmem:[%s3635_s15 + $0x20] sm:$0xf] %v2266_v4  ;;  %v2270_v46 = vld [vmem:[%s3639_s28 + $0x28] sm:$0xf]  ;;  %v2272_v53 = vld [vmem:[%s3639_s28 + $0x2c] sm:$0xf] }
 0x1f8   : >> { %2269 = vst [vmem:[%s3635_s15 + $0x24] sm:$0xf] %v2268_v45  ;;  %2271 = vst [vmem:[%s3635_s15 + $0x28] sm:$0xf] %v2270_v46  ;;  %v2274_v14 = vld [vmem:[%s3639_s28 + $0x30] sm:$0xf] }
 0x1f9   : >> { %2273 = vst [vmem:[%s3635_s15 + $0x2c] sm:$0xf] %v2272_v53  ;;  %v2276_v1 = vld [vmem:[%s3639_s28 + $0x34] sm:$0xf]  ;;  %v2278_v56 = vld [vmem:[%s3639_s28 + $0x38] sm:$0xf] }
 0x1fa   : >> { %2275 = vst [vmem:[%s3635_s15 + $0x30] sm:$0xf] %v2274_v14  ;;  %2277 = vst [vmem:[%s3635_s15 + $0x34] sm:$0xf] %v2276_v1  ;;  %v2280_v42 = vld [vmem:[%s3639_s28 + $0x3c] sm:$0xf] }
 0x1fb   : >> { %2279 = vst [vmem:[%s3635_s15 + $0x38] sm:$0xf] %v2278_v56  ;;  %v2282_v7 = vld [vmem:[%s3639_s28 + $0x40] sm:$0xf]  ;;  %v2284_v47 = vld [vmem:[%s3639_s28 + $0x44] sm:$0xf] }
 0x1fc   : >> { %2281 = vst [vmem:[%s3635_s15 + $0x3c] sm:$0xf] %v2280_v42  ;;  %2283 = vst [vmem:[%s3635_s15 + $0x40] sm:$0xf] %v2282_v7  ;;  %v2286_v13 = vld [vmem:[%s3639_s28 + $0x48] sm:$0xf] }
 0x1fd   : >> { %2285 = vst [vmem:[%s3635_s15 + $0x44] sm:$0xf] %v2284_v47  ;;  %v2288_v44 = vld [vmem:[%s3639_s28 + $0x4c] sm:$0xf]  ;;  %v2290_v16 = vld [vmem:[%s3639_s28 + $0x50] sm:$0xf] }
 0x1fe   : >> { %2287 = vst [vmem:[%s3635_s15 + $0x48] sm:$0xf] %v2286_v13  ;;  %2289 = vst [vmem:[%s3635_s15 + $0x4c] sm:$0xf] %v2288_v44  ;;  %v2292_v17 = vld [vmem:[%s3639_s28 + $0x54] sm:$0xf] }
 0x1ff   : >> { %2291 = vst [vmem:[%s3635_s15 + $0x50] sm:$0xf] %v2290_v16  ;;  %v2294_v18 = vld [vmem:[%s3639_s28 + $0x58] sm:$0xf]  ;;  %2293 = vst [vmem:[%s3635_s15 + $0x54] sm:$0xf] %v2292_v17 }
 0x200   : >> { %2295 = vst [vmem:[%s3635_s15 + $0x58] sm:$0xf] %v2294_v18  ;;  %s4351_s25 = smov (%p2297_p11, %s2296_s25), 0  ;;  %s2244_s23 = sadd.s32 1, %s3647_s23  }
 0x201   : >> { %s2299_s26 = smul.u32 92, %s4351_s25  ;;  %p2243_p12 = scmp.ge.s32.totalorder %s2244_s23, %s4238_s20 }
 0x202   : >> { %s4344_s22 = smov %s4351_s25 }
 0x203   : >> { %s2301_s28 = scalar_lea.vmem %s4196_s12, %s2299_s26 [#allocation2]   ;;  %s2302_s15 = scalar_lea.vmem %s4232_s18, %s2299_s26  }
 0x204   : > { %2246 = sbr.rel (!%p2243_p12) target bundleno = 497 (0x1f1), region = 118 }
 0x20b PF: > { %3575 = sdivrem.u32 %s4349_s10, 23 }
 0x20c   : > { %s2734_s27 = smul.u32 92, %s4238_s20 }
 0x20e   : > { %s2307_s29 = scalar_lea.vmem %s4196_s12, %s2734_s27 [#allocation2]   ;;  %s2309_s30 = scalar_lea.vmem %s4232_s18, %s2734_s27  }
 0x214   : > { %s3576_s4 = spop.drf %3575 }
 0x215   : > { %p2736_p13 = scmp.le.s32.totalorder %s3576_s4, 0 }
 0x216   : > { %s3649_s5 = smov (!%p2736_p13), %s2309_s30   ;;  %s3653_s6 = smov (!%p2736_p13), %s2307_s29  }
 0x217   : > { %2490 = sbr.rel (%p2736_p13) target bundleno = 552 (0x228), region = 123  ;;  %s3657_s7 = smov (!%p2736_p13), 0  }
 0x218   : > { %s3661_s8 = smov (!%p2736_p13), 0  }
 0x21e LB: >> { %v2319_v48 = vld [vmem:[%s3655_s6] sm:$0xf]  ;;  %s2321_s24 = sadd.s32 1, %s3659_s7  ;;  %s2313_s8 = sadd.s32 1, %s3663_s8   ;;  %s3663_s8 = sphi %s3661_s8, %s2313_s8   ;;  %s3659_s7 = sphi %s3657_s7, %s3658_s7   ;;  %s3655_s6 = sphi %s3653_s6, %s2326_s6   ;;  %s3651_s5 = sphi %s3649_s5, %s2327_s5  }
 0x21f   : >> { %2320 = vst [vmem:[%s3651_s5] sm:$0xf] %v2319_v48  ;;  %p2322_p0 = scmp.ge.s32.totalorder %s2321_s24, %s3576_s4  ;;  %p2312_p1 = scmp.ge.s32.totalorder %s2313_s8, %s3576_s4 }
 0x221   : >> { %s4353_s24 = smov (%p2322_p0, %s2321_s24), 0  ;;  %2315 = sbr.rel (!%p2312_p1) target bundleno = 542 (0x21e), region = 129 }
 0x222   : >> { %s2737_s9 = sshll.u32 %s4353_s24, 2  ;;  %s3658_s7 = smov %s4353_s24  }
 0x223   : >> { %s2326_s6 = scalar_lea.vmem %s2307_s29, %s2737_s9 [#allocation2]   ;;  %s2327_s5 = scalar_lea.vmem %s2309_s30, %s2737_s9  }
 0x228 PF: > { %p10_p2 = scmp.ge.s32.totalorder %s3700_s16, 4   ;;  %s4345_s12 = smov %s3627_s13 }
 0x229   : > { %s4346_s13 = smov %s3708_s19  ;;  %s4347_s14 = smov %s3700_s16 }
 0x22a   :  { %12 = sbr.rel (!%p10_p2) target bundleno = 2 (0x2), region = 140 }

// kernel: vae_forward.11
= control target key start
LH: loop header
LB: loop body
LE: loop exit
PB: predicated region body
PF: predicated region fallthrough
CT: control target
= control target key end

     0   :  { %s1448_s12 = smov 0   ;;  %s1649_s0 = inlined_call_operand.vmem [shape: bf16[170,640], index: 0, kind: input, shape index: {}]   ;;  %s1650_s1 = inlined_call_operand.vmem [shape: bf16[640,128], index: 1, kind: input, shape index: {}]   ;;  %s1651_s2 = inlined_call_operand.vmem [shape: f32[1,128], index: 2, kind: input, shape index: {}]   ;;  %s1652_s3 = inlined_call_operand.vmem [shape: bf16[170,128], index: 3, kind: output, shape index: {}]  }
   0x1 LB: > { %s1038_s13 = sadd.s32 4294967295, %s1426_s12   ;;  %p1042_p0 = scmp.ge.s32.totalorder %s1426_s12, 1  ;;  %s1426_s12 = sphi %s1448_s12, %s13_s12  }
   0x2   : > { %p139_p1 = scmp.lt.s32.totalorder %s1426_s12, 3 }
   0x4   : > { %p140_p2 = pnand %p1042_p0, %p139_p1 }
   0x5   : > { %v1340_v0 = vld [vmem:[%s1650_s1 + $0x40] sm:$0xff] (!%p140_p2)   ;;  %v1344_v4 = vld [vmem:[%s1650_s1 + $0x48] sm:$0xff] (!%p140_p2)   ;;  %v1348_v8 = vld [vmem:[%s1650_s1 + $0x50] sm:$0xff] (!%p140_p2)   ;;  %s164_s17 = smul.u32 (!%p140_p2), 11, %s1038_s13 }
   0x6   : > { %143 = sbr.rel (%p140_p2) target bundleno = 316 (0x13c), region = 32  ;;  %v1341_v1 = vld [vmem:[%s1650_s1 + $0xc0] sm:$0xff] (!%p140_p2)   ;;  %1169 = vmatprep.subr.bf16.mxu0 (!%p140_p2), %v1340_v0  ;;  %v1345_v5 = vld [vmem:[%s1650_s1 + $0xc8] sm:$0xff] (!%p140_p2)   ;;  %v1349_v9 = vld [vmem:[%s1650_s1 + $0xd0] sm:$0xff] (!%p140_p2)  }
   0x7   : > { %v1342_v2 = vld [vmem:[%s1650_s1] sm:$0xff] (!%p140_p2)   ;;  %1221 = vmatprep.subr.bf16.mxu1 (!%p140_p2), %v1341_v1  ;;  %v1346_v6 = vld [vmem:[%s1650_s1 + $0x8] sm:$0xff] (!%p140_p2)   ;;  %v1350_v10 = vld [vmem:[%s1650_s1 + $0x10] sm:$0xff] (!%p140_p2)   ;;  %p165_p3 = scmp.lt.s32.totalorder (!%p140_p2), %s164_s17, 21 }
   0x8   : > { %v1343_v3 = vld [vmem:[%s1650_s1 + $0x80] sm:$0xff] (!%p140_p2)   ;;  %1170 = vmatpush3.bf16.msra.mxu0 (!%p140_p2), %v1342_v2  ;;  %v1347_v7 = vld [vmem:[%s1650_s1 + $0x88] sm:$0xff] (!%p140_p2)   ;;  %v1351_v11 = vld [vmem:[%s1650_s1 + $0x90] sm:$0xff] (!%p140_p2)  }
   0x9   : > { %1222 = vmatpush3.bf16.msra.mxu1 (!%p140_p2), %v1343_v3  ;;  %1171 = vmatprep.subr.bf16.mxu0 (!%p140_p2), %v1344_v4  ;;  %v1352_v12 = vld [vmem:[%s1650_s1 + $0x58] sm:$0xff] (!%p140_p2)   ;;  %v1356_v16 = vld [vmem:[%s1650_s1 + $0x60] sm:$0xff] (!%p140_p2)   ;;  %v1360_v20 = vld [vmem:[%s1650_s1 + $0x68] sm:$0xff] (!%p140_p2)  }
   0xa   : > { %1223 = vmatprep.subr.bf16.mxu1 (!%p140_p2), %v1345_v5  ;;  %v1353_v13 = vld [vmem:[%s1650_s1 + $0xd8] sm:$0xff] (!%p140_p2)   ;;  %v1357_v17 = vld [vmem:[%s1650_s1 + $0xe0] sm:$0xff] (!%p140_p2)   ;;  %v1361_v21 = vld [vmem:[%s1650_s1 + $0xe8] sm:$0xff] (!%p140_p2)  }
   0xb   : > { %v1354_v14 = vld [vmem:[%s1650_s1 + $0x18] sm:$0xff] (!%p140_p2)   ;;  %v1358_v18 = vld [vmem:[%s1650_s1 + $0x20] sm:$0xff] (!%p140_p2)   ;;  %v1362_v22 = vld [vmem:[%s1650_s1 + $0x28] sm:$0xff] (!%p140_p2)  }
   0xc   : > { %1172 = vmatpush3.bf16.msra.mxu0 (!%p140_p2), %v1346_v6  ;;  %v1355_v15 = vld [vmem:[%s1650_s1 + $0x98] sm:$0xff] (!%p140_p2)   ;;  %v1359_v19 = vld [vmem:[%s1650_s1 + $0xa0] sm:$0xff] (!%p140_p2)   ;;  %v1363_v23 = vld [vmem:[%s1650_s1 + $0xa8] sm:$0xff] (!%p140_p2)  }
   0xd   : > { %1224 = vmatpush3.bf16.msra.mxu1 %v1347_v7  ;;  %1173 = vmatprep.subr.bf16.mxu0 %v1348_v8  ;;  %s1654_s17 = smov (!%p165_p3, %s164_s17), 21  ;;  %v1364_v24 = vld [vmem:[%s1650_s1 + $0x70] sm:$0xff]   ;;  %v1368_v28 = vld [vmem:[%s1650_s1 + $0x78] sm:$0xff]   ;;  %v1378_v36 = vld [vmem:[%s1650_s1 + $0x100] sm:$0xff]  }
   0xe   : > { %1225 = vmatprep.subr.bf16.mxu1 %v1349_v9  ;;  %v1365_v25 = vld [vmem:[%s1650_s1 + $0xf0] sm:$0xff]   ;;  %s1331_s16 = smul.u32 20, %s1654_s17  ;;  %v1369_v29 = vld [vmem:[%s1650_s1 + $0xf8] sm:$0xff]   ;;  %v1379_v37 = vld [vmem:[%s1650_s1 + $0x108] sm:$0xff]   ;;  %s1044_s13 = sshll.u32 %s1654_s17, 2 }
   0xf   : > { %v1366_v26 = vld [vmem:[%s1650_s1 + $0x30] sm:$0xff]   ;;  %v1370_v30 = vld [vmem:[%s1650_s1 + $0x38] sm:$0xff]   ;;  %v1400_v47 = vld [vmem:[%s1650_s1 + $0x120] sm:$0xff]   ;;  %s175_s28 = scalar_lea.vmem %s1652_s3, %s1044_s13 }
  0x10   : > { %1174 = vmatpush3.bf16.msra.mxu0 %v1350_v10  ;;  %v1367_v27 = vld [vmem:[%s1650_s1 + $0xb0] sm:$0xff]   ;;  %s1554_s27 = scalar_lea.vmem %s1649_s0, %s1331_s16  ;;  %v1371_v31 = vld [vmem:[%s1650_s1 + $0xb8] sm:$0xff]   ;;  %v1401_v51 = vld [vmem:[%s1650_s1 + $0x128] sm:$0xff]  }
  0x11   : > { %1226 = vmatpush3.bf16.msra.mxu1 %v1351_v11  ;;  %1175 = vmatprep.subr.bf16.mxu0 %v1352_v12  ;;  %v1372_v32 = vld [vmem:[%s1554_s27] ss:$20 sps:$4 sm:$0xff]   ;;  %v1374_v33 = vld [vmem:[%s1554_s27 + $0x4] ss:$20 sps:$4 sm:$0xff]   ;;  %v1375_v34 = vld [vmem:[%s1554_s27 + $0x8] ss:$20 sps:$4 sm:$0xff]  }
  0x12   : > { %1227 = vmatprep.subr.bf16.mxu1 %v1353_v13  ;;  %v1377_v35 = vld [vmem:[%s1554_s27 + $0xc] ss:$20 sps:$4 sm:$0xff]   ;;  %718 = vmatprep.mubr.bf16.mxu0 %v1374_v33  ;;  %v1382_v39 = vld [vmem:[%s1554_s27 + $0x34] ss:$20 sps:$4 sm:$0xff]   ;;  %v1385_v41 = vld [vmem:[%s1554_s27 + $0x30] ss:$20 sps:$4 sm:$0xff]  }
  0x13   : > { %798 = vmatprep.mubr.bf16.mxu1 %v1377_v35  ;;  %v1380_v38 = vld [vmem:[%s1554_s27 + $0x2c] ss:$20 sps:$4 sm:$0xff]   ;;  %v1384_v40 = vld [vmem:[%s1554_s27 + $0x28] ss:$20 sps:$4 sm:$0xff]   ;;  %v1386_v42 = vld [vmem:[%s1650_s1 + $0x110] sm:$0xff]  }
  0x14   : > { %1176 = vmatpush3.bf16.msra.mxu0 %v1354_v14  ;;  %v1387_v43 = vld [vmem:[%s1554_s27 + $0x54] ss:$20 sps:$4 sm:$0xff]   ;;  %v1389_v44 = vld [vmem:[%s1554_s27 + $0x5c] ss:$20 sps:$4 sm:$0xff]   ;;  %v1392_v48 = vld [vmem:[%s1554_s27 + $0x58] ss:$20 sps:$4 sm:$0xff]  }
  0x15   : > { %1228 = vmatpush3.bf16.msra.mxu1 %v1355_v15  ;;  %1177 = vmatprep.subr.bf16.mxu0 %v1356_v16  ;;  %v1393_v45 = vld [vmem:[%s1650_s1 + $0x118] sm:$0xff]   ;;  %v1391_v46 = vld [vmem:[%s1554_s27 + $0x50] ss:$20 sps:$4 sm:$0xff]   ;;  %v1399_v54 = vld [vmem:[%s1554_s27 + $0x80] ss:$20 sps:$4 sm:$0xff]  }
  0x16   : > { %1229 = vmatprep.subr.bf16.mxu1 %v1357_v17  ;;  %v1394_v49 = vld [vmem:[%s1554_s27 + $0x7c] ss:$20 sps:$4 sm:$0xff]   ;;  %v1396_v50 = vld [vmem:[%s1554_s27 + $0x84] ss:$20 sps:$4 sm:$0xff]   ;;  %v1404_v56 = vld [vmem:[%s1554_s27 + $0xac] ss:$20 sps:$4 sm:$0xff]  }
  0x17   : > { %v1398_v52 = vld [vmem:[%s1554_s27 + $0x78] ss:$20 sps:$4 sm:$0xff]   ;;  %v1408_v53 = vld [vmem:[%s1650_s1 + $0x130] sm:$0xff]   ;;  %v1407_v61 = vld [vmem:[%s1554_s27 + $0xa8] ss:$20 sps:$4 sm:$0xff]  }
  0x18   : > { %1178 = vmatpush3.bf16.msra.mxu0 %v1358_v18  ;;  %v1402_v55 = vld [vmem:[%s1554_s27 + $0xa4] ss:$20 sps:$4 sm:$0xff]   ;;  %v208_v58 = vld [vmem:[%s1554_s27 + $0xc8] sm:$0xff]  ;;  %v209_v59 = vld [vmem:[%s1554_s27 + $0xd0] sm:$0xff] }
  0x19   : > { %1230 = vmatpush3.bf16.msra.mxu1 %v1359_v19  ;;  %1179 = vmatprep.subr.bf16.mxu0 %v1360_v20  ;;  %v1413_v57 = vld [vmem:[%s1650_s1 + $0x138] sm:$0xff]   ;;  %v1406_v60 = vld [vmem:[%s1554_s27 + $0xa0] ss:$20 sps:$4 sm:$0xff]   ;;  %v1072_v62 = vcombine.high %v208_v58, %v208_v58  ;;  %v1074_v63 = vcombine.high %v209_v59, %v209_v59  ;;  %v1071_v0 = vcombine.low %v208_v58, %v208_v58  ;;  %v1414_v2 = vld [vmem:[%s1554_s27 + $0x10] ss:$20 sps:$4 sm:$0xff]  }
  0x1a   : > { %1231 = vmatprep.subr.bf16.mxu1 %v1361_v21  ;;  %v1073_v1 = vcombine.low %v209_v59, %v209_v59  ;;  %v1415_v3 = vld [vmem:[%s1554_s27 + $0x60] ss:$20 sps:$4 sm:$0xff]   ;;  %v1416_v4 = vld [vmem:[%s1554_s27 + $0x38] ss:$20 sps:$4 sm:$0xff]   ;;  %v1417_v5 = vld [vmem:[%s1554_s27 + $0x88] ss:$20 sps:$4 sm:$0xff]  }
  0x1b   : > { %v1418_v6 = vld [vmem:[%s1554_s27 + $0xb0] ss:$20 sps:$4 sm:$0xff]   ;;  %v1419_v7 = vld [vmem:[%s1554_s27 + $0xd8] ss:$0 sps:$4 sm:$0xff]   ;;  %v1617_v10 = vld [vmem:[%s1651_s2] ss:$0 sm:$0xff] }
  0x1c   : > { %1180 = vmatpush3.bf16.msra.mxu0 %v1362_v22 }
  0x1d   : > { %1232 = vmatpush3.bf16.msra.mxu1 %v1363_v23  ;;  %1181 = vmatprep.subr.bf16.mxu0 %v1364_v24 }
  0x1e   : > { %1233 = vmatprep.subr.bf16.mxu1 %v1365_v25 }
  0x20   : > { %1182 = vmatpush3.bf16.msra.mxu0 %v1366_v26 }
  0x21   : > { %1234 = vmatpush3.bf16.msra.mxu1 %v1367_v27  ;;  %1183 = vmatprep.subr.bf16.mxu0 %v1368_v28 }
  0x22   : > { %1235 = vmatprep.subr.bf16.mxu1 %v1369_v29 }
  0x24   : > { %1184 = vmatpush3.bf16.msra.mxu0 %v1370_v30 }
  0x25   : > { %1236 = vmatpush3.bf16.msra.mxu1 %v1371_v31  ;;  %1287 = vmatprep.subr.bf16.mxu0 %v1378_v36 }
  0x26   : > { %1315 = vmatprep.subr.bf16.mxu1 %v1378_v36 }
  0x27   : > { %719 = vmatmul.mubr.bf16.vlgmr.msra.gmra.mrb[0].mxu0 %v1372_v32 }
  0x28   : > { %799 = vmatmul.mubr.bf16.vlgmr.msra.gmra.mrb[0].mxu1 %v1375_v34  ;;  %726 = vmatprep.mubr.bf16.mxu0 %v1380_v38 }
  0x29   : > { %1323 = vmatpush3.bf16.msra.mxu1 %v1378_v36  ;;  %806 = vmatprep.mubr.bf16.mxu1 %v1382_v39 }
  0x2a   : > { %1316 = vmatprep.subr.bf16.mxu1 %v1379_v37  ;;  %1288 = vmatpush3.bf16.msra.mxu0 %v1378_v36 }
  0x2b   : > { %1289 = vmatprep.subr.bf16.mxu0 %v1379_v37 }
  0x2d   : > { %1324 = vmatpush3.bf16.msra.mxu1 %v1379_v37 }
  0x2e   : > { %1317 = vmatprep.subr.bf16.mxu1 %v1386_v42  ;;  %1290 = vmatpush3.bf16.msra.mxu0 %v1379_v37 }
  0x2f   : > { %727 = vmatmul.mubr.bf16.gmra.mrb[4].mxu0 %v1384_v40  ;;  %1291 = vmatprep.subr.bf16.mxu0 %v1386_v42 }
  0x30   : > { %807 = vmatmul.mubr.bf16.gmra.mrb[4].mxu1 %v1385_v41  ;;  %734 = vmatprep.mubr.bf16.mxu0 %v1387_v43 }
  0x31   : > { %1325 = vmatpush3.bf16.msra.mxu1 %v1386_v42  ;;  %814 = vmatprep.mubr.bf16.mxu1 %v1389_v44 }
  0x32   : > { %1318 = vmatprep.subr.bf16.mxu1 %v1393_v45  ;;  %1292 = vmatpush3.bf16.msra.mxu0 %v1386_v42 }
  0x33   : > { %1293 = vmatprep.subr.bf16.mxu0 %v1393_v45 }
  0x35   : > { %1326 = vmatpush3.bf16.msra.mxu1 %v1393_v45 }
  0x36   : > { %1319 = vmatprep.subr.bf16.mxu1 %v1400_v47  ;;  %1294 = vmatpush3.bf16.msra.mxu0 %v1393_v45 }
  0x37   : > { %735 = vmatmul.mubr.bf16.gmra.mrb[8].mxu0 %v1391_v46  ;;  %1295 = vmatprep.subr.bf16.mxu0 %v1400_v47 }
  0x38   : > { %815 = vmatmul.mubr.bf16.gmra.mrb[8].mxu1 %v1392_v48  ;;  %742 = vmatprep.mubr.bf16.mxu0 %v1394_v49 }
  0x39   : > { %822 = vmatprep.mubr.bf16.mxu1 %v1396_v50  ;;  %1327 = vmatpush3.bf16.msra.mxu1 %v1400_v47 }
  0x3a   : > { %1320 = vmatprep.subr.bf16.mxu1 %v1401_v51  ;;  %1296 = vmatpush3.bf16.msra.mxu0 %v1400_v47 }
  0x3b   : > { %1297 = vmatprep.subr.bf16.mxu0 %v1401_v51 }
  0x3d   : > { %1328 = vmatpush3.bf16.msra.mxu1 %v1401_v51 }
  0x3e   : > { %1321 = vmatprep.subr.bf16.mxu1 %v1408_v53  ;;  %1298 = vmatpush3.bf16.msra.mxu0 %v1401_v51 }
  0x3f   : > { %743 = vmatmul.mubr.bf16.gmra.mrb[12].mxu0 %v1398_v52  ;;  %1299 = vmatprep.subr.bf16.mxu0 %v1408_v53 }
  0x40   : > { %823 = vmatmul.mubr.bf16.gmra.mrb[12].mxu1 %v1399_v54  ;;  %750 = vmatprep.mubr.bf16.mxu0 %v1402_v55 }
  0x41   : > { %830 = vmatprep.mubr.bf16.mxu1 %v1404_v56  ;;  %1329 = vmatpush3.bf16.msra.mxu1 %v1408_v53 }
  0x42   : > { %1322 = vmatprep.subr.bf16.mxu1 %v1413_v57  ;;  %1300 = vmatpush3.bf16.msra.mxu0 %v1408_v53 }
  0x43   : > { %1301 = vmatprep.subr.bf16.mxu0 %v1413_v57 }
  0x45   : > { %1330 = vmatpush3.bf16.msra.mxu1 %v1413_v57 }
  0x46   : > { %1302 = vmatpush3.bf16.msra.mxu0 %v1413_v57 }
  0x47   : > { %751 = vmatmul.mubr.bf16.gmra.mrb[16].mxu0 %v1406_v60 }
  0x48   : > { %831 = vmatmul.mubr.bf16.gmra.mrb[16].mxu1 %v1407_v61  ;;  %758 = vmatprep.mubr.bf16.mxu0 %v1072_v62 }
  0x49   : > { %838 = vmatprep.mubr.bf16.mxu1 %v1074_v63 }
  0x4f   : > { %759 = vmatmul.mubr.bf16.gmra.mrb[20].mxu0 %v1071_v0 }
  0x50   : > { %839 = vmatmul.mubr.bf16.gmra.mrb[20].mxu1 %v1073_v1  ;;  %1303 = vmatprep.mubr.bf16.mxu0 %v1414_v2 }
  0x51   : > { %1307 = vmatprep.mubr.bf16.mxu1 %v1415_v3 }
  0x57   : > { %1304 = vmatmul.mubr.bf16.vlgmr.msra.gmra.mrb[24].mxu0 %v1416_v4 }
  0x58   : > { %1308 = vmatmul.mubr.bf16.vlgmr.msra.gmra.mrb[24].mxu1 %v1417_v5 }
  0x59   : > { %1311 = vmatprep.mubr.bf16.mxu1 %v1418_v6 }
  0x60   : > { %1312 = vmatmul.mubr.bf16.gmra.mrb[28].mxu1 %v1419_v7 }
  0xfa   : > { %v1185_v8 = vpop.f32.mrb[0].mxu0 }
  0xfb   : > { %v1237_v9 = vpop.f32.mrb[0].mxu1  ;;  %v1186_v11 = vpop.f32.mrb[1].mxu0 }
  0xfc   : > { %v1187_v12 = vadd.f32 %v1186_v11, %v1185_v8  ;;  %v1238_v13 = vpop.f32.mrb[1].mxu1  ;;  %v1188_v14 = vpop.f32.mrb[2].mxu0 }
  0xfd   : > { %v1239_v15 = vadd.f32 %v1238_v13, %v1237_v9  ;;  %v1240_v16 = vpop.f32.mrb[2].mxu1  ;;  %v1189_v17 = vpop.f32.mrb[3].mxu0 }
  0xfe   : > { %v721_v18 = vadd.f32 %v1187_v12, %v1617_v10  ;;  %v1190_v19 = vadd.f32 %v1189_v17, %v1188_v14  ;;  %v1241_v20 = vpop.f32.mrb[3].mxu1 }
  0xff   : > { %v1242_v21 = vadd.f32 %v1241_v20, %v1240_v16 }
 0x100   : > { %v724_v22 = vadd.f32 %v1190_v19, %v1617_v10  ;;  %v1621_v23 = vadd.f32 %v1239_v15, %v721_v18 }
 0x102   : > { %v1191_v24 = vpop.f32.mrb[4].mxu0  ;;  %v1623_v25 = vadd.f32 %v1242_v21, %v724_v22 }
 0x103   : > { %v1243_v26 = vpop.f32.mrb[4].mxu1  ;;  %v1192_v27 = vpop.f32.mrb[5].mxu0 }
 0x104   : > { %v1193_v28 = vadd.f32 %v1192_v27, %v1191_v24  ;;  %v1244_v29 = vpop.f32.mrb[5].mxu1  ;;  %v1194_v30 = vpop.f32.mrb[6].mxu0 }
 0x105   : > { %v1245_v31 = vadd.f32 %v1244_v29, %v1243_v26  ;;  %v1246_v32 = vpop.f32.mrb[6].mxu1  ;;  %v1195_v33 = vpop.f32.mrb[7].mxu0 }
 0x106   : > { %v729_v34 = vadd.f32 %v1193_v28, %v1617_v10  ;;  %v1196_v35 = vadd.f32 %v1195_v33, %v1194_v30  ;;  %v1247_v36 = vpop.f32.mrb[7].mxu1 }
 0x107   : > { %v1248_v37 = vadd.f32 %v1247_v36, %v1246_v32 }
 0x108   : > { %v732_v38 = vadd.f32 %v1196_v35, %v1617_v10  ;;  %v1627_v39 = vadd.f32 %v1245_v31, %v729_v34 }
 0x10a   : > { %v1197_v40 = vpop.f32.mrb[8].mxu0  ;;  %v1629_v41 = vadd.f32 %v1248_v37, %v732_v38 }
 0x10b   : > { %v1249_v42 = vpop.f32.mrb[8].mxu1  ;;  %v1198_v43 = vpop.f32.mrb[9].mxu0 }
 0x10c   : > { %v1199_v44 = vadd.f32 %v1198_v43, %v1197_v40  ;;  %v1250_v45 = vpop.f32.mrb[9].mxu1  ;;  %v1200_v46 = vpop.f32.mrb[10].mxu0 }
 0x10d   : > { %v1251_v47 = vadd.f32 %v1250_v45, %v1249_v42  ;;  %v1252_v48 = vpop.f32.mrb[10].mxu1  ;;  %v1201_v49 = vpop.f32.mrb[11].mxu0 }
 0x10e   : > { %v737_v50 = vadd.f32 %v1199_v44, %v1617_v10  ;;  %v1202_v51 = vadd.f32 %v1201_v49, %v1200_v46  ;;  %v1253_v52 = vpop.f32.mrb[11].mxu1 }
 0x10f   : > { %v1254_v53 = vadd.f32 %v1253_v52, %v1252_v48 }
 0x110   : > { %v740_v54 = vadd.f32 %v1202_v51, %v1617_v10  ;;  %v817_v55 = vadd.f32 %v1251_v47, %v737_v50 }
 0x112   : > { %v1203_v56 = vpop.f32.mrb[12].mxu0  ;;  %v820_v57 = vadd.f32 %v1254_v53, %v740_v54 }
 0x113   : > { %v1255_v58 = vpop.f32.mrb[12].mxu1  ;;  %v1204_v59 = vpop.f32.mrb[13].mxu0 }
 0x114   : > { %v1205_v60 = vadd.f32 %v1204_v59, %v1203_v56  ;;  %v1256_v61 = vpop.f32.mrb[13].mxu1  ;;  %v1206_v62 = vpop.f32.mrb[14].mxu0 }
 0x115   : > { %v1257_v63 = vadd.f32 %v1256_v61, %v1255_v58  ;;  %v1258_v0 = vpop.f32.mrb[14].mxu1  ;;  %v1207_v1 = vpop.f32.mrb[15].mxu0 }
 0x116   : > { %v745_v2 = vadd.f32 %v1205_v60, %v1617_v10  ;;  %v1208_v3 = vadd.f32 %v1207_v1, %v1206_v62  ;;  %v1259_v4 = vpop.f32.mrb[15].mxu1 }
 0x117   : > { %v1260_v5 = vadd.f32 %v1259_v4, %v1258_v0 }
 0x118   : > { %v748_v6 = vadd.f32 %v1208_v3, %v1617_v10  ;;  %v825_v7 = vadd.f32 %v1257_v63, %v745_v2 }
 0x11a   : > { %v1209_v8 = vpop.f32.mrb[16].mxu0  ;;  %v828_v9 = vadd.f32 %v1260_v5, %v748_v6 }
 0x11b   : > { %v1261_v11 = vpop.f32.mrb[16].mxu1  ;;  %v1210_v12 = vpop.f32.mrb[17].mxu0 }
 0x11c   : > { %v1211_v13 = vadd.f32 %v1210_v12, %v1209_v8  ;;  %v1262_v14 = vpop.f32.mrb[17].mxu1  ;;  %v1212_v15 = vpop.f32.mrb[18].mxu0 }
 0x11d   : > { %v1263_v16 = vadd.f32 %v1262_v14, %v1261_v11  ;;  %v1264_v17 = vpop.f32.mrb[18].mxu1  ;;  %v1213_v18 = vpop.f32.mrb[19].mxu0 }
 0x11e   : > { %v753_v19 = vadd.f32 %v1211_v13, %v1617_v10  ;;  %v1214_v20 = vadd.f32 %v1213_v18, %v1212_v15  ;;  %v1265_v21 = vpop.f32.mrb[19].mxu1 }
 0x11f   : > { %v1266_v22 = vadd.f32 %v1265_v21, %v1264_v17 }
 0x120   : > { %v756_v24 = vadd.f32 %v1214_v20, %v1617_v10  ;;  %v833_v26 = vadd.f32 %v1263_v16, %v753_v19 }
 0x122   : > { %v1215_v27 = vpop.f32.mrb[20].mxu0  ;;  %v836_v28 = vadd.f32 %v1266_v22, %v756_v24 }
 0x123   : > { %v1267_v29 = vpop.f32.mrb[20].mxu1  ;;  %v1216_v30 = vpop.f32.mrb[21].mxu0 }
 0x124   : > { %v1217_v31 = vadd.f32 %v1216_v30, %v1215_v27  ;;  %v1268_v32 = vpop.f32.mrb[21].mxu1  ;;  %v1218_v33 = vpop.f32.mrb[22].mxu0 }
 0x125   : > { %v1269_v34 = vadd.f32 %v1268_v32, %v1267_v29  ;;  %v1270_v35 = vpop.f32.mrb[22].mxu1  ;;  %v1219_v36 = vpop.f32.mrb[23].mxu0 }
 0x126   : > { %v761_v37 = vadd.f32 %v1217_v31, %v1617_v10  ;;  %v1271_v38 = vpop.f32.mrb[23].mxu1 }
 0x128   : > { %v841_v40 = vadd.f32 %v1269_v34, %v761_v37 }
 0x12a   : > { %v1305_v42 = vpop.f32.mrb[24].mxu0 }
 0x12b   : > { %v889_v43 = vadd.f32 %v1305_v42, %v1627_v39  ;;  %v1309_v44 = vpop.f32.mrb[24].mxu1  ;;  %v880_v45 = vpop.f32.mrb[25].mxu0 }
 0x12c   : > { %v905_v46 = vadd.f32 %v1309_v44, %v825_v7  ;;  %v881_v47 = vadd.f32 %v880_v45, %v1621_v23  ;;  %v896_v48 = vpop.f32.mrb[25].mxu1  ;;  %v1306_v49 = vpop.f32.mrb[26].mxu0 }
 0x12d   : > { %v897_v50 = vadd.f32 %v896_v48, %v817_v55  ;;  %v892_v51 = vadd.f32 %v1306_v49, %v1629_v41  ;;  %v1310_v52 = vpop.f32.mrb[26].mxu1  ;;  %v883_v53 = vpop.f32.mrb[27].mxu0 }
 0x12e   : > { %v908_v10 = vadd.f32 %v1310_v52, %v828_v9  ;;  %v884_v39 = vadd.f32 %v883_v53, %v1623_v25  ;;  %v899_v54 = vpop.f32.mrb[27].mxu1 }
 0x12f   : > { %v1148_v56 = vpack.c.bf16 %v892_v51, %v889_v43  ;;  %v900_v58 = vadd.f32 %v899_v54, %v820_v57 }
 0x130   : > { %v1158_v59 = vpack.c.bf16 %v908_v10, %v905_v46  ;;  %v1143_v60 = vpack.c.bf16 %v884_v39, %v881_v47 }
 0x131   : > { %1165 = vst [vmem:[%s175_s28 + $0x8] sm:$0xff] %v1148_v56   ;;  %v1153_v23 = vpack.c.bf16 %v900_v58, %v897_v50 }
 0x132   : > { %1167 = vst [vmem:[%s175_s28 + $0x18] sm:$0xff] %v1158_v59   ;;  %1144 = vst [vmem:[%s175_s28] sm:$0xff] %v1143_v60  }
 0x133   : > { %1166 = vst [vmem:[%s175_s28 + $0x10] sm:$0xff] %v1153_v23   ;;  %v1313_v41 = vpop.f32.mrb[28].mxu1 }
 0x134   : > { %v921_v55 = vadd.f32 %v1313_v41, %v841_v40  ;;  %v912_v61 = vpop.f32.mrb[29].mxu1 }
 0x135   : > { %v913_v62 = vadd.f32 %v912_v61, %v833_v26  ;;  %v1314_v63 = vpop.f32.mrb[30].mxu1 }
 0x136   : > { %v1139_v0 = vpack.c.bf16 %v921_v55, %v921_v55  ;;  %v915_v1 = vpop.f32.mrb[31].mxu1 }
 0x137   : > { %v916_v2 = vadd.f32 %v915_v1, %v836_v28 }
 0x138   : > { %981 = vst [vmem:[%s175_s28 + $0x28] sm:$0xf] %v1139_v0 }
 0x139   : > { %v1163_v25 = vpack.c.bf16 %v916_v2, %v913_v62 }
 0x13b   : > { %1168 = vst [vmem:[%s175_s28 + $0x20] sm:$0xff] %v1163_v25  }
 0x13c PF: > { %s13_s12 = sadd.s32 1, %s1426_s12  }
 0x13d   : > { %p10_p4 = scmp.ge.s32.totalorder %s13_s12, 4  }
 0x13f   :  { %12 = sbr.rel (!%p10_p4) target bundleno = 1 (0x1), region = 62 }

// kernel: vae_forward.12
= control target key start
LH: loop header
LB: loop body
LE: loop exit
PB: predicated region body
PF: predicated region fallthrough
CT: control target
= control target key end

     0   :  { %vm1625_vm0 = vmmov 0   ;;  %vm917_vm1 = vcmask 785408   ;;  %vm1218_vm2 = vcmask 519168   ;;  %s2000_s1 = inlined_call_operand.vmem [shape: bf16[1632,64], index: 1, kind: input, shape index: {}]   ;;  %s2001_s0 = inlined_call_operand.vmem [shape: bf16[16,1632], index: 0, kind: input, shape index: {}]   ;;  %s2002_s2 = inlined_call_operand.vmem [shape: f32[1,64], index: 2, kind: input, shape index: {}]   ;;  %s2003_s3 = inlined_call_operand.vmem [shape: bf16[16,64], index: 3, kind: output, shape index: {}]  }
   0x1   :  { %v1503_v0 = vld [vmem:[%s2000_s1 + $0x40] sm:$0xff]   ;;  %v1507_v4 = vld [vmem:[%s2000_s1 + $0x48] sm:$0xff]   ;;  %v1511_v8 = vld [vmem:[%s2000_s1 + $0x50] sm:$0xff]  }
   0x2   :  { %v1504_v1 = vld [vmem:[%s2000_s1] sm:$0xff]   ;;  %1346 = vmatprep.subr.bf16.mxu0 %v1503_v0  ;;  %v1508_v5 = vld [vmem:[%s2000_s1 + $0x8] sm:$0xff]   ;;  %v1512_v9 = vld [vmem:[%s2000_s1 + $0x10] sm:$0xff]  }
   0x3   :  { %v1505_v2 = vld [vmem:[%s2000_s1 + $0xc0] sm:$0xff]   ;;  %1347 = vmatpush3.bf16.msra.mxu0 %v1504_v1  ;;  %v1509_v6 = vld [vmem:[%s2000_s1 + $0xc8] sm:$0xff]   ;;  %v1513_v10 = vld [vmem:[%s2000_s1 + $0xd0] sm:$0xff]  }
   0x4   :  { %v1506_v3 = vld [vmem:[%s2000_s1 + $0x80] sm:$0xff]   ;;  %1368 = vmatprep.subr.bf16.mxu1 %v1505_v2  ;;  %1348 = vmatprep.subr.bf16.mxu0 %v1507_v4  ;;  %v1510_v7 = vld [vmem:[%s2000_s1 + $0x88] sm:$0xff]   ;;  %v1514_v11 = vld [vmem:[%s2000_s1 + $0x90] sm:$0xff]  }
   0x5   :  { %1369 = vmatpush3.bf16.msra.mxu1 %v1506_v3  ;;  %v1515_v12 = vld [vmem:[%s2000_s1 + $0x58] sm:$0xff]   ;;  %v1519_v16 = vld [vmem:[%s2000_s1 + $0x60] sm:$0xff]   ;;  %v1523_v20 = vld [vmem:[%s2000_s1 + $0x68] sm:$0xff]  }
   0x6   :  { %1370 = vmatprep.subr.bf16.mxu1 %v1509_v6  ;;  %v1516_v13 = vld [vmem:[%s2000_s1 + $0x18] sm:$0xff]   ;;  %v1520_v17 = vld [vmem:[%s2000_s1 + $0x20] sm:$0xff]   ;;  %v1524_v21 = vld [vmem:[%s2000_s1 + $0x28] sm:$0xff]  }
   0x7   :  { %1349 = vmatpush3.bf16.msra.mxu0 %v1508_v5  ;;  %v1517_v14 = vld [vmem:[%s2000_s1 + $0xd8] sm:$0xff]   ;;  %v1521_v18 = vld [vmem:[%s2000_s1 + $0xe0] sm:$0xff]   ;;  %v1525_v22 = vld [vmem:[%s2000_s1 + $0xe8] sm:$0xff]  }
   0x8   :  { %1350 = vmatprep.subr.bf16.mxu0 %v1511_v8  ;;  %v1518_v15 = vld [vmem:[%s2000_s1 + $0x98] sm:$0xff]   ;;  %v1522_v19 = vld [vmem:[%s2000_s1 + $0xa0] sm:$0xff]   ;;  %v1526_v23 = vld [vmem:[%s2000_s1 + $0xa8] sm:$0xff]  }
   0x9   :  { %1371 = vmatpush3.bf16.msra.mxu1 %v1510_v7  ;;  %v1527_v24 = vld [vmem:[%s2000_s1 + $0x70] sm:$0xff]   ;;  %v1531_v28 = vld [vmem:[%s2000_s1 + $0x78] sm:$0xff]   ;;  %v1538_v34 = vld [vmem:[%s2000_s1 + $0x140] sm:$0xff]  }
   0xa   :  { %1372 = vmatprep.subr.bf16.mxu1 %v1513_v10  ;;  %v1528_v25 = vld [vmem:[%s2000_s1 + $0x30] sm:$0xff]   ;;  %v1532_v29 = vld [vmem:[%s2000_s1 + $0x38] sm:$0xff]   ;;  %v1541_v36 = vld [vmem:[%s2001_s0 + $0xc] ss:$52 sps:$4 sm:$0xff]  }
   0xb   :  { %1351 = vmatpush3.bf16.msra.mxu0 %v1512_v9  ;;  %v1529_v26 = vld [vmem:[%s2000_s1 + $0xf0] sm:$0xff]   ;;  %v1533_v30 = vld [vmem:[%s2000_s1 + $0xf8] sm:$0xff]   ;;  %v1542_v37 = vld [vmem:[%s2000_s1 + $0x100] sm:$0xff]   ;;  %994 = vmatprep.mubr.bf16.mxu1 %v1541_v36 }
   0xc   :  { %1352 = vmatprep.subr.bf16.mxu0 %v1515_v12  ;;  %v1530_v27 = vld [vmem:[%s2000_s1 + $0xb0] sm:$0xff]   ;;  %v1536_v32 = vld [vmem:[%s2001_s0 + $0x4] ss:$52 sps:$4 sm:$0xff]   ;;  %v1539_v35 = vld [vmem:[%s2001_s0 + $0x8] ss:$52 sps:$4 sm:$0xff]  }
   0xd   :  { %1373 = vmatpush3.bf16.msra.mxu1 %v1514_v11  ;;  %v1534_v31 = vld [vmem:[%s2001_s0] ss:$52 sps:$4 sm:$0xff]   ;;  %v1537_v33 = vld [vmem:[%s2000_s1 + $0xb8] sm:$0xff]   ;;  %953 = vmatprep.mubr.bf16.mxu0 %v1536_v32  ;;  %v1545_v40 = vld [vmem:[%s2000_s1 + $0x148] sm:$0xff]  }
   0xe   :  { %1374 = vmatprep.subr.bf16.mxu1 %v1517_v14  ;;  %v1543_v38 = vld [vmem:[%s2000_s1 + $0x1c0] sm:$0xff]   ;;  %v1546_v41 = vld [vmem:[%s2000_s1 + $0x108] sm:$0xff]   ;;  %v1549_v44 = vld [vmem:[%s2000_s1 + $0x150] sm:$0xff]  }
   0xf   :  { %1353 = vmatpush3.bf16.msra.mxu0 %v1516_v13  ;;  %v1544_v39 = vld [vmem:[%s2000_s1 + $0x180] sm:$0xff]   ;;  %v1547_v42 = vld [vmem:[%s2000_s1 + $0x1c8] sm:$0xff]   ;;  %v1550_v45 = vld [vmem:[%s2000_s1 + $0x110] sm:$0xff]  }
  0x10   :  { %1354 = vmatprep.subr.bf16.mxu0 %v1519_v16  ;;  %v1548_v43 = vld [vmem:[%s2000_s1 + $0x188] sm:$0xff]   ;;  %v1551_v46 = vld [vmem:[%s2000_s1 + $0x1d0] sm:$0xff]   ;;  %v1553_v48 = vld [vmem:[%s2000_s1 + $0x158] sm:$0xff]  }
  0x11   :  { %1375 = vmatpush3.bf16.msra.mxu1 %v1518_v15  ;;  %v1552_v47 = vld [vmem:[%s2000_s1 + $0x190] sm:$0xff]   ;;  %v1554_v49 = vld [vmem:[%s2000_s1 + $0x118] sm:$0xff]   ;;  %v1557_v52 = vld [vmem:[%s2000_s1 + $0x160] sm:$0xff]  }
  0x12   :  { %1376 = vmatprep.subr.bf16.mxu1 %v1521_v18  ;;  %v1555_v50 = vld [vmem:[%s2000_s1 + $0x1d8] sm:$0xff]   ;;  %v1558_v53 = vld [vmem:[%s2000_s1 + $0x120] sm:$0xff]   ;;  %v1561_v56 = vld [vmem:[%s2000_s1 + $0x168] sm:$0xff]  }
  0x13   :  { %1355 = vmatpush3.bf16.msra.mxu0 %v1520_v17  ;;  %v1556_v51 = vld [vmem:[%s2000_s1 + $0x198] sm:$0xff]   ;;  %v1559_v54 = vld [vmem:[%s2000_s1 + $0x1e0] sm:$0xff]   ;;  %v1562_v57 = vld [vmem:[%s2000_s1 + $0x128] sm:$0xff]  }
  0x14   :  { %1356 = vmatprep.subr.bf16.mxu0 %v1523_v20  ;;  %v1560_v55 = vld [vmem:[%s2000_s1 + $0x1a0] sm:$0xff]   ;;  %v1563_v58 = vld [vmem:[%s2000_s1 + $0x1e8] sm:$0xff]   ;;  %v1565_v60 = vld [vmem:[%s2000_s1 + $0x170] sm:$0xff]  }
  0x15   :  { %1377 = vmatpush3.bf16.msra.mxu1 %v1522_v19  ;;  %v1564_v59 = vld [vmem:[%s2000_s1 + $0x1a8] sm:$0xff]   ;;  %v1566_v61 = vld [vmem:[%s2000_s1 + $0x130] sm:$0xff]   ;;  %v1569_v0 = vld [vmem:[%s2000_s1 + $0x178] sm:$0xff]  }
  0x16   :  { %1378 = vmatprep.subr.bf16.mxu1 %v1525_v22  ;;  %v1567_v62 = vld [vmem:[%s2000_s1 + $0x1f0] sm:$0xff]   ;;  %v1570_v1 = vld [vmem:[%s2000_s1 + $0x138] sm:$0xff]   ;;  %v1576_v6 = vld [vmem:[%s2000_s1 + $0x240] sm:$0xff]  }
  0x17   :  { %1357 = vmatpush3.bf16.msra.mxu0 %v1524_v21  ;;  %v1568_v63 = vld [vmem:[%s2000_s1 + $0x1b0] sm:$0xff]   ;;  %v1571_v2 = vld [vmem:[%s2000_s1 + $0x1f8] sm:$0xff]   ;;  %v1580_v9 = vld [vmem:[%s2000_s1 + $0x200] sm:$0xff]  }
  0x18   :  { %1358 = vmatprep.subr.bf16.mxu0 %v1527_v24  ;;  %v1572_v3 = vld [vmem:[%s2001_s0 + $0x10] ss:$52 sps:$4 sm:$0xff]   ;;  %v1574_v4 = vld [vmem:[%s2001_s0 + $0x14] ss:$52 sps:$4 sm:$0xff]   ;;  %v1575_v5 = vld [vmem:[%s2000_s1 + $0x1b8] sm:$0xff]  }
  0x19   :  { %1379 = vmatpush3.bf16.msra.mxu1 %v1526_v23  ;;  %v1577_v7 = vld [vmem:[%s2001_s0 + $0x18] ss:$52 sps:$4 sm:$0xff]   ;;  %v1579_v8 = vld [vmem:[%s2001_s0 + $0x1c] ss:$52 sps:$4 sm:$0xff]   ;;  %v1581_v10 = vld [vmem:[%s2000_s1 + $0x2c0] sm:$0xff]  }
  0x1a   :  { %1380 = vmatprep.subr.bf16.mxu1 %v1529_v26  ;;  %v1582_v11 = vld [vmem:[%s2000_s1 + $0x280] sm:$0xff]   ;;  %v1583_v12 = vld [vmem:[%s2000_s1 + $0x248] sm:$0xff]   ;;  %v1587_v16 = vld [vmem:[%s2000_s1 + $0x250] sm:$0xff]  }
  0x1b   :  { %1359 = vmatpush3.bf16.msra.mxu0 %v1528_v25  ;;  %v1584_v13 = vld [vmem:[%s2000_s1 + $0x208] sm:$0xff]   ;;  %v1588_v17 = vld [vmem:[%s2000_s1 + $0x210] sm:$0xff]   ;;  %v1591_v20 = vld [vmem:[%s2000_s1 + $0x258] sm:$0xff]  }
  0x1c   :  { %1360 = vmatprep.subr.bf16.mxu0 %v1531_v28  ;;  %v1585_v14 = vld [vmem:[%s2000_s1 + $0x2c8] sm:$0xff]   ;;  %v1589_v18 = vld [vmem:[%s2000_s1 + $0x2d0] sm:$0xff]   ;;  %v1592_v21 = vld [vmem:[%s2000_s1 + $0x218] sm:$0xff]  }
  0x1d   :  { %1381 = vmatpush3.bf16.msra.mxu1 %v1530_v27  ;;  %v1586_v15 = vld [vmem:[%s2000_s1 + $0x288] sm:$0xff]   ;;  %v1590_v19 = vld [vmem:[%s2000_s1 + $0x290] sm:$0xff]   ;;  %v1593_v22 = vld [vmem:[%s2000_s1 + $0x2d8] sm:$0xff]  }
  0x1e   :  { %1382 = vmatprep.subr.bf16.mxu1 %v1533_v30  ;;  %v1594_v23 = vld [vmem:[%s2000_s1 + $0x298] sm:$0xff]   ;;  %v1595_v24 = vld [vmem:[%s2000_s1 + $0x260] sm:$0xff]   ;;  %v1599_v28 = vld [vmem:[%s2000_s1 + $0x268] sm:$0xff]  }
  0x1f   :  { %1361 = vmatpush3.bf16.msra.mxu0 %v1532_v29  ;;  %v1596_v25 = vld [vmem:[%s2000_s1 + $0x220] sm:$0xff]   ;;  %v1600_v29 = vld [vmem:[%s2000_s1 + $0x228] sm:$0xff]   ;;  %v1603_v32 = vld [vmem:[%s2000_s1 + $0x270] sm:$0xff]  }
  0x20   :  { %1390 = vmatprep.subr.bf16.mxu0 %v1538_v34  ;;  %v1597_v26 = vld [vmem:[%s2000_s1 + $0x2e0] sm:$0xff]   ;;  %v1601_v30 = vld [vmem:[%s2000_s1 + $0x2e8] sm:$0xff]   ;;  %v1605_v34 = vld [vmem:[%s2000_s1 + $0x2f0] sm:$0xff]  }
  0x21   :  { %1383 = vmatpush3.bf16.msra.mxu1 %v1537_v33  ;;  %v1598_v27 = vld [vmem:[%s2000_s1 + $0x2a0] sm:$0xff]   ;;  %v1604_v33 = vld [vmem:[%s2000_s1 + $0x230] sm:$0xff]   ;;  %v1607_v36 = vld [vmem:[%s2000_s1 + $0x278] sm:$0xff]  }
  0x22   :  { %954 = vmatmul.mubr.bf16.vlgmr.msra.gmra.mrb[0].mxu0 %v1534_v31  ;;  %1412 = vmatprep.subr.bf16.mxu1 %v1543_v38  ;;  %v1602_v31 = vld [vmem:[%s2000_s1 + $0x2a8] sm:$0xff]   ;;  %v1609_v38 = vld [vmem:[%s2000_s1 + $0x2f8] sm:$0xff]  }
  0x23   :  { %1391 = vmatpush3.bf16.msra.mxu0 %v1542_v37  ;;  %1035 = vmatprep.mubr.bf16.mxu0 %v1574_v4  ;;  %v1608_v37 = vld [vmem:[%s2000_s1 + $0x238] sm:$0xff]  }
  0x24   :  { %995 = vmatmul.mubr.bf16.vlgmr.msra.gmra.mrb[0].mxu1 %v1539_v35  ;;  %1392 = vmatprep.subr.bf16.mxu0 %v1545_v40  ;;  %v1606_v35 = vld [vmem:[%s2000_s1 + $0x2b0] sm:$0xff]   ;;  %v1612_v40 = vld [vmem:[%s2001_s0 + $0x24] ss:$52 sps:$4 sm:$0xff]  }
  0x25   :  { %1413 = vmatpush3.bf16.msra.mxu1 %v1544_v39  ;;  %1076 = vmatprep.mubr.bf16.mxu1 %v1579_v8  ;;  %v1610_v39 = vld [vmem:[%s2001_s0 + $0x20] ss:$52 sps:$4 sm:$0xff]  }
  0x26   :  { %1414 = vmatprep.subr.bf16.mxu1 %v1547_v42  ;;  %v1624_v42 = vmov 0.0  }
  0x27   :  { %1393 = vmatpush3.bf16.msra.mxu0 %v1546_v41  ;;  %v1613_v41 = vld [vmem:[%s2000_s1 + $0x2b8] sm:$0xff]  }
  0x28   :  { %1394 = vmatprep.subr.bf16.mxu0 %v1549_v44  ;;  %v1616_v44 = vld [vmem:[%s2001_s0 + $0x2c] ss:$52 sps:$4 sm:$0xff]  }
  0x29   :  { %1415 = vmatpush3.bf16.msra.mxu1 %v1548_v43  ;;  %v1614_v43 = vld [vmem:[%s2001_s0 + $0x28] ss:$52 sps:$4 sm:$0xff]  }
  0x2a   :  { %1416 = vmatprep.subr.bf16.mxu1 %v1551_v46  ;;  %v1618_v46 = vld [vmem:[%s2000_s1 + $0x308] sm:$0xff]  }
  0x2b   :  { %1395 = vmatpush3.bf16.msra.mxu0 %v1550_v45  ;;  %v1617_v45 = vld [vmem:[%s2000_s1 + $0x300] sm:$0xff]  }
  0x2c   :  { %1396 = vmatprep.subr.bf16.mxu0 %v1553_v48  ;;  %v1620_v48 = vld [vmem:[%s2000_s1 + $0x318] sm:$0xff]  }
  0x2d   :  { %1417 = vmatpush3.bf16.msra.mxu1 %v1552_v47  ;;  %v1619_v47 = vld [vmem:[%s2000_s1 + $0x310] sm:$0xff]  }
  0x2e   :  { %1418 = vmatprep.subr.bf16.mxu1 %v1555_v50  ;;  %v1622_v50 = vld [vmem:[%s2000_s1 + $0x328] sm:$0xff]  }
  0x2f   :  { %1397 = vmatpush3.bf16.msra.mxu0 %v1554_v49  ;;  %v1621_v49 = vld [vmem:[%s2000_s1 + $0x320] sm:$0xff]  }
  0x30   :  { %1398 = vmatprep.subr.bf16.mxu0 %v1557_v52 }
  0x31   :  { %1419 = vmatpush3.bf16.msra.mxu1 %v1556_v51  ;;  %v1623_v51 = vld [vmem:[%s2001_s0 + $0x30] ss:$52 sps:$4 sm:$0xff]  }
  0x32   :  { %1420 = vmatprep.subr.bf16.mxu1 %v1559_v54 }
  0x33   :  { %1399 = vmatpush3.bf16.msra.mxu0 %v1558_v53  ;;  %v1225_v53 = vld [vmem:[%s2002_s2] ss:$0 sm:$0xff] }
  0x34   :  { %1400 = vmatprep.subr.bf16.mxu0 %v1561_v56 }
  0x35   :  { %1421 = vmatpush3.bf16.msra.mxu1 %v1560_v55 }
  0x36   :  { %1422 = vmatprep.subr.bf16.mxu1 %v1563_v58 }
  0x37   :  { %1401 = vmatpush3.bf16.msra.mxu0 %v1562_v57 }
  0x38   :  { %1402 = vmatprep.subr.bf16.mxu0 %v1565_v60 }
  0x39   :  { %1423 = vmatpush3.bf16.msra.mxu1 %v1564_v59 }
  0x3a   :  { %1424 = vmatprep.subr.bf16.mxu1 %v1567_v62 }
  0x3b   :  { %1403 = vmatpush3.bf16.msra.mxu0 %v1566_v61 }
  0x3c   :  { %1404 = vmatprep.subr.bf16.mxu0 %v1569_v0 }
  0x3d   :  { %1425 = vmatpush3.bf16.msra.mxu1 %v1568_v63 }
  0x3e   :  { %1426 = vmatprep.subr.bf16.mxu1 %v1571_v2 }
  0x3f   :  { %1405 = vmatpush3.bf16.msra.mxu0 %v1570_v1 }
  0x40   :  { %1434 = vmatprep.subr.bf16.mxu0 %v1576_v6 }
  0x41   :  { %1427 = vmatpush3.bf16.msra.mxu1 %v1575_v5 }
  0x42   :  { %1036 = vmatmul.mubr.bf16.vlgmr.msra.gmra.mrb[4].mxu0 %v1572_v3  ;;  %1456 = vmatprep.subr.bf16.mxu1 %v1581_v10 }
  0x43   :  { %1435 = vmatpush3.bf16.msra.mxu0 %v1580_v9  ;;  %1117 = vmatprep.mubr.bf16.mxu0 %v1612_v40 }
  0x44   :  { %1077 = vmatmul.mubr.bf16.vlgmr.msra.gmra.mrb[4].mxu1 %v1577_v7  ;;  %1436 = vmatprep.subr.bf16.mxu0 %v1583_v12 }
  0x45   :  { %1457 = vmatpush3.bf16.msra.mxu1 %v1582_v11  ;;  %1158 = vmatprep.mubr.bf16.mxu1 %v1616_v44 }
  0x46   :  { %1458 = vmatprep.subr.bf16.mxu1 %v1585_v14 }
  0x47   :  { %1437 = vmatpush3.bf16.msra.mxu0 %v1584_v13 }
  0x48   :  { %1438 = vmatprep.subr.bf16.mxu0 %v1587_v16 }
  0x49   :  { %1459 = vmatpush3.bf16.msra.mxu1 %v1586_v15 }
  0x4a   :  { %1460 = vmatprep.subr.bf16.mxu1 %v1589_v18 }
  0x4b   :  { %1439 = vmatpush3.bf16.msra.mxu0 %v1588_v17 }
  0x4c   :  { %1440 = vmatprep.subr.bf16.mxu0 %v1591_v20 }
  0x4d   :  { %1461 = vmatpush3.bf16.msra.mxu1 %v1590_v19 }
  0x4e   :  { %1462 = vmatprep.subr.bf16.mxu1 %v1593_v22 }
  0x4f   :  { %1441 = vmatpush3.bf16.msra.mxu0 %v1592_v21 }
  0x50   :  { %1442 = vmatprep.subr.bf16.mxu0 %v1595_v24 }
  0x51   :  { %1463 = vmatpush3.bf16.msra.mxu1 %v1594_v23 }
  0x52   :  { %1464 = vmatprep.subr.bf16.mxu1 %v1597_v26 }
  0x53   :  { %1443 = vmatpush3.bf16.msra.mxu0 %v1596_v25 }
  0x54   :  { %1444 = vmatprep.subr.bf16.mxu0 %v1599_v28 }
  0x55   :  { %1465 = vmatpush3.bf16.msra.mxu1 %v1598_v27 }
  0x56   :  { %1466 = vmatprep.subr.bf16.mxu1 %v1601_v30 }
  0x57   :  { %1445 = vmatpush3.bf16.msra.mxu0 %v1600_v29 }
  0x58   :  { %1446 = vmatprep.subr.bf16.mxu0 %v1603_v32 }
  0x59   :  { %1467 = vmatpush3.bf16.msra.mxu1 %v1602_v31 }
  0x5a   :  { %1468 = vmatprep.subr.bf16.mxu1 %v1605_v34 }
  0x5b   :  { %1447 = vmatpush3.bf16.msra.mxu0 %v1604_v33 }
  0x5c   :  { %1448 = vmatprep.subr.bf16.mxu0 %v1607_v36 }
  0x5d   :  { %1469 = vmatpush3.bf16.msra.mxu1 %v1606_v35 }
  0x5e   :  { %1470 = vmatprep.subr.bf16.mxu1 %v1609_v38 }
  0x5f   :  { %1449 = vmatpush3.bf16.msra.mxu0 %v1608_v37 }
  0x60   :  { %1485 = vmatprep.subr.bf16.mxu0 %v1624_v42 }
  0x61   :  { %1471 = vmatpush3.bf16.msra.mxu1 %v1613_v41 }
  0x62   :  { %1118 = vmatmul.mubr.bf16.vlgmr.msra.gmra.mrb[8].mxu0 %v1610_v39 }
  0x63   :  { %1497 = vmatprep.mubr.msk.bf16.mxu0 %vm1625_vm0, %v1624_v42  ;;  %1486 = vmatpush3.bf16.msra.mxu0 %v1617_v45 }
  0x64   :  { %1159 = vmatmul.mubr.bf16.vlgmr.msra.gmra.mrb[8].mxu1 %v1614_v43  ;;  %1487 = vmatprep.subr.bf16.mxu0 %v1624_v42 }
  0x67   :  { %1488 = vmatpush3.bf16.msra.mxu0 %v1618_v46 }
  0x68   :  { %1489 = vmatprep.subr.bf16.mxu0 %v1624_v42 }
  0x6b   :  { %1490 = vmatpush3.bf16.msra.mxu0 %v1619_v47 }
  0x6c   :  { %1491 = vmatprep.subr.bf16.mxu0 %v1624_v42 }
  0x6f   :  { %1492 = vmatpush3.bf16.msra.mxu0 %v1620_v48 }
  0x70   :  { %1493 = vmatprep.subr.bf16.mxu0 %v1624_v42 }
  0x73   :  { %1494 = vmatpush3.bf16.msra.mxu0 %v1621_v49 }
  0x74   :  { %1495 = vmatprep.subr.bf16.mxu0 %v1624_v42 }
  0x77   :  { %1496 = vmatpush3.bf16.msra.mxu0 %v1622_v50 }
  0x7a   :  { %1498 = vmatmul.mubr.msk.bf16.vlgmr.msra.gmra.mrb[12].mxu0 %vm917_vm1, %v1623_v51 }
  0xf5   :  { %v1362_v52 = vpop.f32.mrb[0].mxu0 }
  0xf6   :  { %v1363_v54 = vpop.f32.mrb[1].mxu0 }
  0xf7   :  { %v1364_v55 = vadd.f32 %v1363_v54, %v1362_v52  ;;  %v1365_v56 = vpop.f32.mrb[2].mxu0  ;;  %v1384_v57 = vpop.f32.mrb[0].mxu1 }
  0xf8   :  { %v1366_v58 = vpop.f32.mrb[3].mxu0  ;;  %v1385_v61 = vpop.f32.mrb[1].mxu1 }
  0xf9   :  { %v956_v59 = vadd.f32 %v1364_v55, %v1225_v53  ;;  %v1367_v60 = vadd.f32 %v1366_v58, %v1365_v56  ;;  %v1386_v62 = vadd.f32 %v1385_v61, %v1384_v57  ;;  %v1387_v63 = vpop.f32.mrb[2].mxu1 }
  0xfa   :  { %v1388_v1 = vpop.f32.mrb[3].mxu1 }
  0xfb   :  { %v959_v0 = vadd.f32 %v1367_v60, %v1225_v53  ;;  %v997_v2 = vadd.f32 %v1386_v62, %v956_v59  ;;  %v1389_v3 = vadd.f32 %v1388_v1, %v1387_v63 }
  0xfd   :  { %v1000_v4 = vadd.f32 %v1389_v3, %v959_v0 }
 0x115   :  { %v1406_v5 = vpop.f32.mrb[4].mxu0 }
 0x116   :  { %v1407_v6 = vpop.f32.mrb[5].mxu0 }
 0x117   :  { %v1408_v7 = vadd.f32 %v1407_v6, %v1406_v5  ;;  %v1409_v8 = vpop.f32.mrb[6].mxu0  ;;  %v1428_v11 = vpop.f32.mrb[4].mxu1 }
 0x118   :  { %v1410_v9 = vpop.f32.mrb[7].mxu0  ;;  %v1429_v13 = vpop.f32.mrb[5].mxu1 }
 0x119   :  { %v1038_v10 = vadd.f32 %v1408_v7, %v997_v2  ;;  %v1411_v12 = vadd.f32 %v1410_v9, %v1409_v8  ;;  %v1430_v15 = vadd.f32 %v1429_v13, %v1428_v11  ;;  %v1431_v16 = vpop.f32.mrb[6].mxu1 }
 0x11a   :  { %v1432_v17 = vpop.f32.mrb[7].mxu1 }
 0x11b   :  { %v1041_v14 = vadd.f32 %v1411_v12, %v1000_v4  ;;  %v1079_v18 = vadd.f32 %v1430_v15, %v1038_v10  ;;  %v1433_v19 = vadd.f32 %v1432_v17, %v1431_v16 }
 0x11d   :  { %v1082_v20 = vadd.f32 %v1433_v19, %v1041_v14 }
 0x135   :  { %v1450_v21 = vpop.f32.mrb[8].mxu0 }
 0x136   :  { %v1451_v22 = vpop.f32.mrb[9].mxu0 }
 0x137   :  { %v1452_v23 = vadd.f32 %v1451_v22, %v1450_v21  ;;  %v1453_v24 = vpop.f32.mrb[10].mxu0  ;;  %v1472_v25 = vpop.f32.mrb[8].mxu1 }
 0x138   :  { %v1454_v26 = vpop.f32.mrb[11].mxu0  ;;  %v1473_v29 = vpop.f32.mrb[9].mxu1 }
 0x139   :  { %v1120_v27 = vadd.f32 %v1452_v23, %v1079_v18  ;;  %v1455_v28 = vadd.f32 %v1454_v26, %v1453_v24  ;;  %v1474_v30 = vadd.f32 %v1473_v29, %v1472_v25  ;;  %v1475_v31 = vpop.f32.mrb[10].mxu1 }
 0x13a   :  { %v1476_v33 = vpop.f32.mrb[11].mxu1 }
 0x13b   :  { %v1123_v32 = vadd.f32 %v1455_v28, %v1082_v20  ;;  %v1477_v34 = vadd.f32 %v1476_v33, %v1475_v31  ;;  %v1161_v35 = vadd.f32 %v1474_v30, %v1120_v27 }
 0x13d   :  { %v1164_v36 = vadd.f32 %v1477_v34, %v1123_v32 }
 0x14d   :  { %v1201_v37 = vpop.f32.mrb[12].mxu0 }
 0x14e   :  { %v1202_v38 = vadd.f32 %v1201_v37, %v1161_v35  ;;  %v1499_v39 = vpop.f32.mrb[13].mxu0 }
 0x14f   :  { %v1204_v40 = vpop.f32.mrb[14].mxu0 }
 0x150   :  { %v1208_v41 = vmax.f32 %v1202_v38, 0.0  ;;  %v1205_v42 = vadd.f32 %v1204_v40, %v1164_v36  ;;  %v1500_v43 = vpop.f32.mrb[15].mxu0 }
 0x152   :  { %v1344_v44 = vpack.c.bf16 %v1208_v41, %v1208_v41  ;;  %v1209_v45 = vmax.f32 %v1205_v42, 0.0 }
 0x154   :  { %1219 = vst.msk [vmem:[%s2003_s3] sm:$0xf] %vm1218_vm2, %v1344_v44  ;;  %v1345_v46 = vpack.c.bf16 %v1209_v45, %v1209_v45 }
 0x156   :  { %1220 = vst.msk [vmem:[%s2003_s3 + $0x4] sm:$0xf] %vm1218_vm2, %v1345_v46 }

// kernel: vae_forward.13
= control target key start
LH: loop header
LB: loop body
LE: loop exit
PB: predicated region body
PF: predicated region fallthrough
CT: control target
= control target key end

     0   :  { %14 = vsyncpa [#allocation3], 0  ;;  %v96_v9 = vlaneseq  ;;  %v1216_v10 = vmov 1966171168   ;;  %s1618_s0 = inlined_call_operand.vmem [shape: bf16[2,512], index: 0, kind: input, shape index: {}]   ;;  %s1619_s1 = inlined_call_operand.vmem [shape: bf16[512,256], index: 1, kind: input, shape index: {}]   ;;  %s1620_s2 = inlined_call_operand.vmem [shape: f32[1,256], index: 2, kind: input, shape index: {}]   ;;  %s1621_s3 = inlined_call_operand.vmem [shape: f32[2,128], index: 3, kind: input, shape index: {}]   ;;  %s1622_s4 = inlined_call_operand.vmem [shape: bf16[128,512], index: 4, kind: input, shape index: {}]   ;;  %s1623_s5 = inlined_call_operand.vmem [shape: f32[1,512], index: 5, kind: input, shape index: {}]   ;;  %s1624_s6 = inlined_call_operand.hbm [shape: f32[2,128], index: 6, kind: output, shape index: {0}]   ;;  %s1625_s7 = inlined_call_operand.hbm [shape: f32[2,128], index: 7, kind: output, shape index: {1}]   ;;  %s1626_s8 = inlined_call_operand.vmem [shape: bf16[2,512], index: 8, kind: output, shape index: {2}]  }
   0x1   :  { %v1022_v0 = vld [vmem:[%s1619_s1 + $0x4] ss:$8 sps:$4 sm:$0xff]   ;;  %v1024_v1 = vld [vmem:[%s1619_s1] ss:$8 sps:$4 sm:$0xff]   ;;  %v1025_v2 = vld [vmem:[%s1619_s1 + $0x14] ss:$8 sps:$4 sm:$0xff]   ;;  %v116_v11 = vunpack.c.l.s4 %v1216_v10 }
   0x2   :  { %455 = vmatprep.subr.bf16.mxu0 %v1022_v0  ;;  %v1027_v3 = vld [vmem:[%s1619_s1 + $0x10] ss:$8 sps:$4 sm:$0xff]   ;;  %v1028_v4 = vld [vmem:[%s1619_s1 + $0x24] ss:$8 sps:$4 sm:$0xff]   ;;  %v1030_v5 = vld [vmem:[%s1619_s1 + $0x20] ss:$8 sps:$4 sm:$0xff]  }
   0x3   :  { %456 = vmatpush1.bf16.msra.mxu0 %v1024_v1  ;;  %v1031_v6 = vld [vmem:[%s1619_s1 + $0x34] ss:$8 sps:$4 sm:$0xff]   ;;  %v1033_v7 = vld [vmem:[%s1619_s1 + $0x30] ss:$8 sps:$4 sm:$0xff]   ;;  %v1034_v8 = vld [vmem:[%s1619_s1 + $0x44] ss:$8 sps:$4 sm:$0xff]   ;;  %v117_v15 = vunpack.c.0.s8 %v116_v11 }
   0x4   :  { %457 = vmatprep.subr.bf16.mxu0 %v1025_v2  ;;  %v1036_v12 = vld [vmem:[%s1619_s1 + $0x40] ss:$8 sps:$4 sm:$0xff]   ;;  %v1037_v13 = vld [vmem:[%s1619_s1 + $0x54] ss:$8 sps:$4 sm:$0xff]   ;;  %v1298_v14 = vshrl.u32 %v96_v9, 7 }
   0x5   :  { %v1039_v16 = vld [vmem:[%s1619_s1 + $0x50] ss:$8 sps:$4 sm:$0xff]   ;;  %v1040_v17 = vld [vmem:[%s1619_s1 + $0x64] ss:$8 sps:$4 sm:$0xff]   ;;  %v1042_v21 = vld [vmem:[%s1619_s1 + $0x60] ss:$8 sps:$4 sm:$0xff]  }
   0x6   :  { %v1307_v18 = vsub.s32 %v117_v15, %v1298_v14  ;;  %v912_v19 = vld.sshfl [vmem:[%s1618_s0] sm:$0x33 pattern:$0x75316420]  ;;  %v1043_v22 = vld [vmem:[%s1619_s1 + $0x74] ss:$8 sps:$4 sm:$0xff]  }
   0x7   :  { %458 = vmatpush1.bf16.msra.mxu0 %v1027_v3  ;;  %v114_v20 = vcombine.high %v912_v19, %v912_v19  ;;  %v1045_v24 = vld [vmem:[%s1619_s1 + $0x70] ss:$8 sps:$4 sm:$0xff]   ;;  %v1046_v25 = vld [vmem:[%s1619_s1 + $0x84] ss:$8 sps:$4 sm:$0xff]   ;;  %v1048_v26 = vld [vmem:[%s1619_s1 + $0x80] ss:$8 sps:$4 sm:$0xff]  }
   0x8   :  { %459 = vmatprep.subr.bf16.mxu0 %v1028_v4  ;;  %v1049_v27 = vld [vmem:[%s1619_s1 + $0x94] ss:$8 sps:$4 sm:$0xff]   ;;  %v1051_v28 = vld [vmem:[%s1619_s1 + $0x90] ss:$8 sps:$4 sm:$0xff]   ;;  %v1052_v29 = vld [vmem:[%s1619_s1 + $0xa4] ss:$8 sps:$4 sm:$0xff]  }
   0x9   :  { %v128_v23 = vrot.slane %v114_v20, %v1307_v18  ;;  %v1054_v30 = vld [vmem:[%s1619_s1 + $0xa0] ss:$8 sps:$4 sm:$0xff]   ;;  %v1055_v31 = vld [vmem:[%s1619_s1 + $0xb4] ss:$8 sps:$4 sm:$0xff]   ;;  %v1057_v32 = vld [vmem:[%s1619_s1 + $0xb0] ss:$8 sps:$4 sm:$0xff]  }
   0xa   :  { %v1058_v33 = vld [vmem:[%s1619_s1 + $0xc4] ss:$8 sps:$4 sm:$0xff]   ;;  %v1120_v35 = vld [vmem:[%s1622_s4] ss:$16 sps:$4 sm:$0xff]   ;;  %v1061_v38 = vld [vmem:[%s1619_s1 + $0xd4] ss:$8 sps:$4 sm:$0xff]  }
   0xb   :  { %460 = vmatpush1.bf16.msra.mxu0 %v1030_v5  ;;  %487 = vmatprep.mubr.bf16.mxu0 %v128_v23  ;;  %v1118_v34 = vld [vmem:[%s1622_s4 + $0x4] ss:$16 sps:$4 sm:$0xff]   ;;  %v1060_v36 = vld [vmem:[%s1619_s1 + $0xc0] ss:$8 sps:$4 sm:$0xff]   ;;  %v1063_v40 = vld [vmem:[%s1619_s1 + $0xd0] ss:$8 sps:$4 sm:$0xff]  }
   0xc   :  { %461 = vmatprep.subr.bf16.mxu0 %v1031_v6  ;;  %v1121_v37 = vld [vmem:[%s1622_s4 + $0x24] ss:$16 sps:$4 sm:$0xff]   ;;  %760 = vmatprep.subr.bf16.mxu1 %v1118_v34  ;;  %v1123_v39 = vld [vmem:[%s1622_s4 + $0x20] ss:$16 sps:$4 sm:$0xff]  }
   0xd   :  { %761 = vmatpush1.bf16.msra.mxu1 %v1120_v35  ;;  %v1064_v41 = vld [vmem:[%s1619_s1 + $0xe4] ss:$8 sps:$4 sm:$0xff]   ;;  %v1066_v42 = vld [vmem:[%s1619_s1 + $0xe0] ss:$8 sps:$4 sm:$0xff]  }
   0xe   :  { %762 = vmatprep.subr.bf16.mxu1 %v1121_v37 }
   0xf   :  { %462 = vmatpush1.bf16.msra.mxu0 %v1033_v7 }
  0x10   :  { %463 = vmatprep.subr.bf16.mxu0 %v1034_v8 }
  0x11   :  { %763 = vmatpush1.bf16.msra.mxu1 %v1123_v39 }
  0x13   :  { %464 = vmatpush1.bf16.msra.mxu0 %v1036_v12 }
  0x14   :  { %465 = vmatprep.subr.bf16.mxu0 %v1037_v13 }
  0x17   :  { %466 = vmatpush1.bf16.msra.mxu0 %v1039_v16 }
  0x18   :  { %467 = vmatprep.subr.bf16.mxu0 %v1040_v17 }
  0x1b   :  { %468 = vmatpush1.bf16.msra.mxu0 %v1042_v21 }
  0x1c   :  { %469 = vmatprep.subr.bf16.mxu0 %v1043_v22 }
  0x1f   :  { %470 = vmatpush1.bf16.msra.mxu0 %v1045_v24 }
  0x20   :  { %471 = vmatprep.subr.bf16.mxu0 %v1046_v25 }
  0x23   :  { %472 = vmatpush1.bf16.msra.mxu0 %v1048_v26 }
  0x24   :  { %473 = vmatprep.subr.bf16.mxu0 %v1049_v27 }
  0x27   :  { %474 = vmatpush1.bf16.msra.mxu0 %v1051_v28 }
  0x28   :  { %475 = vmatprep.subr.bf16.mxu0 %v1052_v29 }
  0x2b   :  { %476 = vmatpush1.bf16.msra.mxu0 %v1054_v30 }
  0x2c   :  { %477 = vmatprep.subr.bf16.mxu0 %v1055_v31 }
  0x2f   :  { %478 = vmatpush1.bf16.msra.mxu0 %v1057_v32 }
  0x30   :  { %479 = vmatprep.subr.bf16.mxu0 %v1058_v33 }
  0x33   :  { %480 = vmatpush1.bf16.msra.mxu0 %v1060_v36 }
  0x34   :  { %481 = vmatprep.subr.bf16.mxu0 %v1061_v38 }
  0x37   :  { %482 = vmatpush1.bf16.msra.mxu0 %v1063_v40 }
  0x38   :  { %15 = vsyncpa [#allocation5], 0  ;;  %483 = vmatprep.subr.bf16.mxu0 %v1064_v41  ;;  %v1067_v43 = vld [vmem:[%s1619_s1 + $0xf4] ss:$8 sps:$4 sm:$0xff]   ;;  %v1069_v44 = vld [vmem:[%s1619_s1 + $0xf0] ss:$8 sps:$4 sm:$0xff]   ;;  %v1386_v46 = vrot.slane %v912_v19, %v1307_v18  ;;  %v130_v47 = vcombine.high %v128_v23, %v128_v23 }
  0x39   :  { %v1072_v45 = vld [vmem:[%s1619_s1 + $0x104] ss:$8 sps:$4 sm:$0xff]   ;;  %v1070_v48 = vld [vmem:[%s1619_s1 + $0x100] ss:$8 sps:$4 sm:$0xff]   ;;  %v1075_v49 = vld [vmem:[%s1619_s1 + $0x114] ss:$8 sps:$4 sm:$0xff]  }
  0x3a   :  { %v1073_v50 = vld [vmem:[%s1619_s1 + $0x110] ss:$8 sps:$4 sm:$0xff]   ;;  %v1078_v51 = vld [vmem:[%s1619_s1 + $0x124] ss:$8 sps:$4 sm:$0xff]   ;;  %v1076_v52 = vld [vmem:[%s1619_s1 + $0x120] ss:$8 sps:$4 sm:$0xff]   ;;  %v129_v16 = vcombine.high %v1386_v46, %v1386_v46 }
  0x3b   :  { %484 = vmatpush1.bf16.msra.mxu0 %v1066_v42  ;;  %v1081_v53 = vld [vmem:[%s1619_s1 + $0x134] ss:$8 sps:$4 sm:$0xff]   ;;  %v1079_v54 = vld [vmem:[%s1619_s1 + $0x130] ss:$8 sps:$4 sm:$0xff]   ;;  %v1084_v55 = vld [vmem:[%s1619_s1 + $0x144] ss:$8 sps:$4 sm:$0xff]  }
  0x3c   :  { %485 = vmatprep.subr.bf16.mxu0 %v1067_v43  ;;  %v1082_v56 = vld [vmem:[%s1619_s1 + $0x140] ss:$8 sps:$4 sm:$0xff]   ;;  %v1087_v57 = vld [vmem:[%s1619_s1 + $0x154] ss:$8 sps:$4 sm:$0xff]   ;;  %v1085_v58 = vld [vmem:[%s1619_s1 + $0x150] ss:$8 sps:$4 sm:$0xff]  }
  0x3d   :  { %v1090_v59 = vld [vmem:[%s1619_s1 + $0x164] ss:$8 sps:$4 sm:$0xff]   ;;  %v1088_v60 = vld [vmem:[%s1619_s1 + $0x160] ss:$8 sps:$4 sm:$0xff]   ;;  %v1093_v61 = vld [vmem:[%s1619_s1 + $0x174] ss:$8 sps:$4 sm:$0xff]  }
  0x3e   :  { %v1091_v62 = vld [vmem:[%s1619_s1 + $0x170] ss:$8 sps:$4 sm:$0xff]   ;;  %v1096_v63 = vld [vmem:[%s1619_s1 + $0x184] ss:$8 sps:$4 sm:$0xff]   ;;  %v1094_v0 = vld [vmem:[%s1619_s1 + $0x180] ss:$8 sps:$4 sm:$0xff]  }
  0x3f   :  { %486 = vmatpush1.bf16.msra.mxu0 %v1069_v44  ;;  %v1099_v1 = vld [vmem:[%s1619_s1 + $0x194] ss:$8 sps:$4 sm:$0xff]   ;;  %v1097_v2 = vld [vmem:[%s1619_s1 + $0x190] ss:$8 sps:$4 sm:$0xff]   ;;  %v1102_v3 = vld [vmem:[%s1619_s1 + $0x1a4] ss:$8 sps:$4 sm:$0xff]  }
  0x40   :  { %496 = vmatprep.subr.bf16.mxu0 %v1072_v45  ;;  %v1100_v4 = vld [vmem:[%s1619_s1 + $0x1a0] ss:$8 sps:$4 sm:$0xff]   ;;  %v1105_v5 = vld [vmem:[%s1619_s1 + $0x1b4] ss:$8 sps:$4 sm:$0xff]   ;;  %v1103_v6 = vld [vmem:[%s1619_s1 + $0x1b0] ss:$8 sps:$4 sm:$0xff]  }
  0x41   :  { %v1108_v7 = vld [vmem:[%s1619_s1 + $0x1c4] ss:$8 sps:$4 sm:$0xff]   ;;  %v1106_v8 = vld [vmem:[%s1619_s1 + $0x1c0] ss:$8 sps:$4 sm:$0xff]   ;;  %v1111_v9 = vld [vmem:[%s1619_s1 + $0x1d4] ss:$8 sps:$4 sm:$0xff]  }
  0x42   :  { %488 = vmatmul.mubr.bf16.vlgmr.msra.gmra.mrb[0].mxu0 %v1386_v46  ;;  %v1109_v10 = vld [vmem:[%s1619_s1 + $0x1d0] ss:$8 sps:$4 sm:$0xff]   ;;  %v1114_v11 = vld [vmem:[%s1619_s1 + $0x1e4] ss:$8 sps:$4 sm:$0xff]   ;;  %v1112_v12 = vld [vmem:[%s1619_s1 + $0x1e0] ss:$8 sps:$4 sm:$0xff]  }
  0x43   :  { %497 = vmatpush1.bf16.msra.mxu0 %v1070_v48  ;;  %528 = vmatprep.mubr.bf16.mxu0 %v130_v47  ;;  %v1117_v13 = vld [vmem:[%s1619_s1 + $0x1f4] ss:$8 sps:$4 sm:$0xff]   ;;  %v1115_v15 = vld [vmem:[%s1619_s1 + $0x1f0] ss:$8 sps:$4 sm:$0xff]   ;;  %v1217_v27 = vmov 0   ;;  %v98_v32 = vsub.s32 0, %v1298_v14 }
  0x44   :  { %498 = vmatprep.subr.bf16.mxu0 %v1075_v49  ;;  %v1124_v17 = vld [vmem:[%s1622_s4 + $0x44] ss:$16 sps:$4 sm:$0xff]   ;;  %v1126_v19 = vld [vmem:[%s1622_s4 + $0x40] ss:$16 sps:$4 sm:$0xff]   ;;  %792 = vmatprep.mubr.bf16.mxu1 %v1217_v27  ;;  %v1144_v31 = vld [vmem:[%s1622_s4 + $0xc] ss:$16 sps:$4 sm:$0xff]  }
  0x45   :  { %764 = vmatprep.subr.bf16.mxu1 %v1124_v17  ;;  %v1127_v20 = vld [vmem:[%s1622_s4 + $0x64] ss:$16 sps:$4 sm:$0xff]   ;;  %v1129_v21 = vld [vmem:[%s1622_s4 + $0x60] ss:$16 sps:$4 sm:$0xff]   ;;  %v102_v34 = vsub.s32 1, %v1298_v14  ;;  %s1218_s14 = smov [#allocation2]  }
  0x46   :  { %765 = vmatpush1.bf16.msra.mxu1 %v1126_v19  ;;  %v1130_v22 = vld [vmem:[%s1622_s4 + $0x84] ss:$16 sps:$4 sm:$0xff]   ;;  %v1132_v23 = vld [vmem:[%s1622_s4 + $0x80] ss:$16 sps:$4 sm:$0xff]   ;;  %v1142_v49 = vld [vmem:[%s1622_s4 + $0x8] ss:$16 sps:$4 sm:$0xff]  }
  0x47   :  { %499 = vmatpush1.bf16.msra.mxu0 %v1073_v50  ;;  %766 = vmatprep.subr.bf16.mxu1 %v1127_v20  ;;  %v1133_v24 = vld [vmem:[%s1622_s4 + $0xa4] ss:$16 sps:$4 sm:$0xff]   ;;  %v1135_v25 = vld [vmem:[%s1622_s4 + $0xa0] ss:$16 sps:$4 sm:$0xff]   ;;  %s886_s15 = sshll.u32 %s1218_s14, 4  ;;  %s887_s15 = int_to_ptr.vmem [resolvable:$true] %s886_s15 }
  0x48   :  { %500 = vmatprep.subr.bf16.mxu0 %v1078_v51  ;;  %v1136_v26 = vld [vmem:[%s1622_s4 + $0xc4] ss:$16 sps:$4 sm:$0xff]   ;;  %v1138_v28 = vld [vmem:[%s1622_s4 + $0xc0] ss:$16 sps:$4 sm:$0xff]   ;;  %v1147_v51 = vld [vmem:[%s1622_s4 + $0x2c] ss:$16 sps:$4 sm:$0xff]   ;;  %p1173_p1 = scmp.lt.s32.totalorder %s887_s15, %s887_s15 }
  0x49   :  { %v1139_v29 = vld [vmem:[%s1622_s4 + $0xe4] ss:$16 sps:$4 sm:$0xff]   ;;  %v1141_v30 = vld [vmem:[%s1622_s4 + $0xe0] ss:$16 sps:$4 sm:$0xff]   ;;  %s1168_s0 = scalar_lea.vmem %s887_s15, 32 }
  0x4a   :  { %767 = vmatpush1.bf16.msra.mxu1 %v1129_v21  ;;  %v94_v33 = vld [vmem:[%s1620_s2] sm:$0x3]  ;;  %p1169_p0 = scmp.ne.s32.totalorder %s887_s15, %s1168_s0  ;;  %p1174_p2 = scmp.lt.s32.totalorder %s1168_s0, %s1168_s0 }
  0x4b   :  { %501 = vmatpush1.bf16.msra.mxu0 %v1076_v52  ;;  %768 = vmatprep.subr.bf16.mxu1 %v1130_v22  ;;  %v99_v35 = vrot.slane %v94_v33, %v98_v32  ;;  %v103_v36 = vrot.slane %v94_v33, %v102_v34  ;;  %v539_v45 = vld [vmem:[%s1621_s3] sm:$0x3]  ;;  %v1145_v52 = vld [vmem:[%s1622_s4 + $0x28] ss:$16 sps:$4 sm:$0xff]   ;;  %s1219_s3 = smov [#allocation4]  }
  0x4c   :  { %502 = vmatprep.subr.bf16.mxu0 %v1081_v53  ;;  %v1150_v53 = vld [vmem:[%s1622_s4 + $0x4c] ss:$16 sps:$4 sm:$0xff]   ;;  %s896_s16 = sshll.u32 %s1219_s3, 4  ;;  %p1175_p3 = por %p1174_p2, %p1173_p1  ;;  %s897_s16 = int_to_ptr.vmem [resolvable:$true] %s896_s16 }
  0x4e   :  { %769 = vmatpush1.bf16.msra.mxu1 %v1132_v23  ;;  %p1176_p4 = pnand %p1175_p3, %p1169_p0 }
  0x4f   :  { %503 = vmatpush1.bf16.msra.mxu0 %v1079_v54  ;;  %770 = vmatprep.subr.bf16.mxu1 %v1133_v24  ;;  %v1148_v54 = vld [vmem:[%s1622_s4 + $0x48] ss:$16 sps:$4 sm:$0xff]  }
  0x50   :  { %504 = vmatprep.subr.bf16.mxu0 %v1084_v55  ;;  %v1153_v55 = vld [vmem:[%s1622_s4 + $0x6c] ss:$16 sps:$4 sm:$0xff]  }
  0x52   :  { %771 = vmatpush1.bf16.msra.mxu1 %v1135_v25 }
  0x53   :  { %505 = vmatpush1.bf16.msra.mxu0 %v1082_v56  ;;  %772 = vmatprep.subr.bf16.mxu1 %v1136_v26  ;;  %v1151_v56 = vld [vmem:[%s1622_s4 + $0x68] ss:$16 sps:$4 sm:$0xff]  }
  0x54   :  { %506 = vmatprep.subr.bf16.mxu0 %v1087_v57  ;;  %v1156_v57 = vld [vmem:[%s1622_s4 + $0x8c] ss:$16 sps:$4 sm:$0xff]  }
  0x56   :  { %773 = vmatpush1.bf16.msra.mxu1 %v1138_v28 }
  0x57   :  { %507 = vmatpush1.bf16.msra.mxu0 %v1085_v58  ;;  %774 = vmatprep.subr.bf16.mxu1 %v1139_v29  ;;  %v1154_v58 = vld [vmem:[%s1622_s4 + $0x88] ss:$16 sps:$4 sm:$0xff]  }
  0x58   :  { %508 = vmatprep.subr.bf16.mxu0 %v1090_v59  ;;  %v1159_v59 = vld [vmem:[%s1622_s4 + $0xac] ss:$16 sps:$4 sm:$0xff]  }
  0x5a   :  { %775 = vmatpush1.bf16.msra.mxu1 %v1141_v30 }
  0x5b   :  { %509 = vmatpush1.bf16.msra.mxu0 %v1088_v60  ;;  %801 = vmatprep.subr.bf16.mxu1 %v1144_v31  ;;  %v1157_v60 = vld [vmem:[%s1622_s4 + $0xa8] ss:$16 sps:$4 sm:$0xff]  }
  0x5c   :  { %510 = vmatprep.subr.bf16.mxu0 %v1093_v61  ;;  %v1162_v61 = vld [vmem:[%s1622_s4 + $0xcc] ss:$16 sps:$4 sm:$0xff]  }
  0x5f   :  { %511 = vmatpush1.bf16.msra.mxu0 %v1091_v62  ;;  %v1160_v62 = vld [vmem:[%s1622_s4 + $0xc8] ss:$16 sps:$4 sm:$0xff]  }
  0x60   :  { %512 = vmatprep.subr.bf16.mxu0 %v1096_v63  ;;  %v1165_v63 = vld [vmem:[%s1622_s4 + $0xec] ss:$16 sps:$4 sm:$0xff]  }
  0x63   :  { %513 = vmatpush1.bf16.msra.mxu0 %v1094_v0  ;;  %v1163_v0 = vld [vmem:[%s1622_s4 + $0xe8] ss:$16 sps:$4 sm:$0xff]  }
  0x64   :  { %514 = vmatprep.subr.bf16.mxu0 %v1099_v1 }
  0x67   :  { %515 = vmatpush1.bf16.msra.mxu0 %v1097_v2 }
  0x68   :  { %516 = vmatprep.subr.bf16.mxu0 %v1102_v3 }
  0x6b   :  { %517 = vmatpush1.bf16.msra.mxu0 %v1100_v4 }
  0x6c   :  { %518 = vmatprep.subr.bf16.mxu0 %v1105_v5 }
  0x6f   :  { %519 = vmatpush1.bf16.msra.mxu0 %v1103_v6 }
  0x70   :  { %520 = vmatprep.subr.bf16.mxu0 %v1108_v7 }
  0x73   :  { %521 = vmatpush1.bf16.msra.mxu0 %v1106_v8 }
  0x74   :  { %522 = vmatprep.subr.bf16.mxu0 %v1111_v9 }
  0x77   :  { %523 = vmatpush1.bf16.msra.mxu0 %v1109_v10 }
  0x78   :  { %524 = vmatprep.subr.bf16.mxu0 %v1114_v11 }
  0x7b   :  { %525 = vmatpush1.bf16.msra.mxu0 %v1112_v12 }
  0x7c   :  { %526 = vmatprep.subr.bf16.mxu0 %v1117_v13 }
  0x7f   :  { %527 = vmatpush1.bf16.msra.mxu0 %v1115_v15 }
  0x82   :  { %529 = vmatmul.mubr.bf16.vlgmr.msra.gmra.mrb[0].mxu0 %v129_v16 }
 0x155   :  { %v530_v37 = vpop.f32.mrb[0].mxu0 }
 0x156   :  { %v1012_v38 = vadd.f32 %v530_v37, %v99_v35  ;;  %v532_v39 = vpop.f32.mrb[1].mxu0 }
 0x157   :  { %v1013_v40 = vadd.f32 %v532_v39, %v103_v36  ;;  %v534_v41 = vpop.f32.mrb[2].mxu0 }
 0x158   :  { %537 = vst [vmem:[#allocation2] sm:$0x3] %v1012_v38  ;;  %v535_v42 = vpop.f32.mrb[3].mxu0 }
 0x159   :  { %v540_v43 = vmul.f32 0.5, %v1013_v40  ;;  %538 = vst [vmem:[#allocation4] sm:$0x3] %v1013_v40 }
 0x15b   :  { %v541_v44 = vmul.f32 1.442695, %v540_v43 }
 0x15d   :  { %1166 = vpow2.f32 %v541_v44 }
 0x167   :  { %v1167_v46 = vpop.eup %1166 }
 0x168   :  { %v543_v47 = vmul.f32 %v1167_v46, %v539_v45 }
 0x16a   :  { %v544_v48 = vadd.f32 %v1012_v38, %v543_v47 }
 0x16c   :  { %v545_v50 = vpack.c.bf16 %v544_v48, %v544_v48 }
 0x16e   :  { %793 = vmatmul.mubr.bf16.vlgmr.msra.gmra.mrb[0].mxu1 %v545_v50 }
 0x16f   :  { %802 = vmatpush1.bf16.msra.mxu1 %v1142_v49  ;;  %833 = vmatprep.mubr.bf16.mxu1 %v1217_v27 }
 0x170   :  { %803 = vmatprep.subr.bf16.mxu1 %v1147_v51 }
 0x173   :  { %804 = vmatpush1.bf16.msra.mxu1 %v1145_v52 }
 0x174   :  { %805 = vmatprep.subr.bf16.mxu1 %v1150_v53 }
 0x177   :  { %806 = vmatpush1.bf16.msra.mxu1 %v1148_v54 }
 0x178   :  { %807 = vmatprep.subr.bf16.mxu1 %v1153_v55 }
 0x17b   :  { %808 = vmatpush1.bf16.msra.mxu1 %v1151_v56 }
 0x17c   :  { %809 = vmatprep.subr.bf16.mxu1 %v1156_v57 }
 0x17f   :  { %810 = vmatpush1.bf16.msra.mxu1 %v1154_v58 }
 0x180   :  { %811 = vmatprep.subr.bf16.mxu1 %v1159_v59 }
 0x183   :  { %812 = vmatpush1.bf16.msra.mxu1 %v1157_v60 }
 0x184   :  { %813 = vmatprep.subr.bf16.mxu1 %v1162_v61 }
 0x187   :  { %814 = vmatpush1.bf16.msra.mxu1 %v1160_v62 }
 0x188   :  { %815 = vmatprep.subr.bf16.mxu1 %v1165_v63 }
 0x18b   :  { %816 = vmatpush1.bf16.msra.mxu1 %v1163_v0 }
 0x18e   :  { %834 = vmatmul.mubr.bf16.vlgmr.msra.gmra.mrb[4].mxu1 %v545_v50 }
 0x18f   :  { %1179 = shalt.err (!%p1176_p4)
}
 0x190   :  { %s1180_s4 = scalar_lea.hbm %s1624_s6, 32 }
 0x191   :  { %p1181_p5 = scmp.ne.s32.totalorder %s1624_s6, %s1180_s4  ;;  %p1184_p6 = scmp.lt.u32.totalorder %s1180_s4, %s1624_s6 }
 0x193   :  { %p1186_p7 = pnand %p1184_p6, %p1181_p5 }
 0x195   :  { %1189 = shalt.err (!%p1186_p7)
}
 0x196   :  { %889 = dma.vmem_to_hbm [thread:$0]  %s887_s15, 32, %s1624_s6, [#allocation3]  }
 0x197   :  { %s1190_s25 = scalar_lea.vmem %s897_s16, 32  ;;  %p1195_p9 = scmp.lt.s32.totalorder %s897_s16, %s897_s16 }
 0x198   :  { %p1191_p8 = scmp.ne.s32.totalorder %s897_s16, %s1190_s25  ;;  %p1196_p10 = scmp.lt.s32.totalorder %s1190_s25, %s1190_s25 }
 0x19a   :  { %p1197_p11 = por %p1196_p10, %p1195_p9 }
 0x19c   :  { %p1198_p12 = pnand %p1197_p11, %p1191_p8 }
 0x19e   :  { %1201 = shalt.err (!%p1198_p12)
}
 0x19f   :  { %s1202_s28 = scalar_lea.hbm %s1625_s7, 32 }
 0x1a0   :  { %p1203_p13 = scmp.ne.s32.totalorder %s1625_s7, %s1202_s28  ;;  %p1206_p0 = scmp.lt.u32.totalorder %s1202_s28, %s1625_s7 }
 0x1a2   :  { %p1208_p1 = pnand %p1206_p0, %p1203_p13 }
 0x1a4   :  { %1211 = shalt.err (!%p1208_p1)
}
 0x1a5   :  { %899 = dma.vmem_to_hbm [thread:$0]  %s897_s16, 32, %s1625_s7, [#allocation5]   ;;  %v578_v1 = vld [vmem:[%s1623_s5] sm:$0xf]  ;;  %v590_v13 = vsub.s32 2, %v1298_v14  ;;  %v594_v15 = vsub.s32 3, %v1298_v14 }
 0x1a6   :  { %v583_v2 = vrot.slane %v578_v1, %v98_v32  ;;  %v587_v3 = vrot.slane %v578_v1, %v102_v34 }
 0x1a7   :  { %v591_v16 = vrot.slane %v578_v1, %v590_v13  ;;  %v595_v17 = vrot.slane %v578_v1, %v594_v15 }
 0x241   :  { %v794_v4 = vpop.f32.mrb[0].mxu1 }
 0x242   :  { %v795_v5 = vadd.f32 %v794_v4, %v583_v2  ;;  %v796_v6 = vpop.f32.mrb[1].mxu1 }
 0x243   :  { %v797_v7 = vadd.f32 %v796_v6, %v587_v3  ;;  %v798_v8 = vpop.f32.mrb[2].mxu1 }
 0x244   :  { %v842_v9 = vmax.f32 %v795_v5, 0.0  ;;  %v799_v10 = vpop.f32.mrb[3].mxu1 }
 0x245   :  { %v843_v11 = vmax.f32 %v797_v7, 0.0 }
 0x247   :  { %v1009_v12 = vpack.c.bf16 %v843_v11, %v842_v9 }
 0x249   :  { %v862_v28 = vrot.slane %v1009_v12, %v1307_v18 }
 0x261   :  { %v835_v19 = vpop.f32.mrb[4].mxu1 }
 0x262   :  { %v836_v20 = vadd.f32 %v835_v19, %v591_v16  ;;  %v837_v21 = vpop.f32.mrb[5].mxu1 }
 0x263   :  { %v838_v22 = vadd.f32 %v837_v21, %v595_v17  ;;  %v839_v23 = vpop.f32.mrb[6].mxu1 }
 0x264   :  { %v844_v24 = vmax.f32 %v836_v20, 0.0  ;;  %v840_v25 = vpop.f32.mrb[7].mxu1 }
 0x265   :  { %v845_v26 = vmax.f32 %v838_v22, 0.0 }
 0x267   :  { %v1010_v27 = vpack.c.bf16 %v845_v26, %v844_v24 }
 0x269   :  { %v869_v29 = vrot.slane %v1010_v27, %v1307_v18 }
 0x26b   :  { %v870_v30 = vcombine.low %v862_v28, %v869_v29 }
 0x26d   :  { %1011 = vst.sshfl [vmem:[%s1626_s8] sm:$0x55 pattern:$0x73625140] %v870_v30 }
 0x26e   :  { %1212 = dma.done.wait [#allocation3], 32  }
 0x26f   :  { %1213 = vsyncadd [#allocation3], 4294967264 }
 0x270   :  { %1214 = dma.done.wait [#allocation5], 32  }
 0x271   :  { %1215 = vsyncadd [#allocation5], 4294967264 }
 0x272   :  { %910 = vsyncpa [#allocation3], 1 }
 0x273   :  { %911 = vsyncpa [#allocation5], 1 }

// kernel: vae_forward.14
= control target key start
LH: loop header
LB: loop body
LE: loop exit
PB: predicated region body
PF: predicated region fallthrough
CT: control target
= control target key end

     0   :  { %s1021_s12 = smov 0   ;;  %s1023_s13 = smov 0   ;;  %s1138_s0 = inlined_call_operand.vmem [shape: bf16[162,32], index: 0, kind: input, shape index: {}]   ;;  %s1139_s1 = inlined_call_operand.vmem [shape: bf16[32,128], index: 1, kind: input, shape index: {}]   ;;  %s1140_s2 = inlined_call_operand.vmem [shape: f32[1,128], index: 2, kind: input, shape index: {}]   ;;  %s1141_s3 = inlined_call_operand.vmem [shape: bf16[162,128], index: 3, kind: output, shape index: {}]  }
   0x1   :  { %s1025_s14 = smov 0  }
   0x2 LB: > { %s1034_s15 = sadd.s32 4294967295, %s967_s14   ;;  %s1036_s16 = sadd.s32 1, %s967_s14   ;;  %s967_s14 = sphi %s1025_s14, %s1148_s14   ;;  %s963_s13 = sphi %s1023_s13, %s1147_s13   ;;  %s959_s12 = sphi %s1021_s12, %s1146_s12  }
   0x3   : > { %s85_s17 = ssub.s32 %s967_s14, %s1036_s16  ;;  %s88_s18 = sadd.s32 1, %s963_s13 }
   0x4   : > { %p86_p0 = scmp.eq.s32.totalorder %s85_s17, 0  ;;  %p98_p1 = scmp.ne.s32.totalorder %s963_s13, %s959_s12 }
   0x5   : > { %p99_p2 = scmp.eq.s32.totalorder %s1034_s15, 1  ;;  %p702_p3 = scmp.ge.s32.totalorder %s967_s14, 1 }
   0x6   : > { %s1044_s19 = scalar_select %p86_p0, %s963_s13, %s88_s18  }
   0x7   : > { %p1046_p4 = por %p99_p2, %p98_p1  ;;  %p146_p5 = scmp.lt.s32.totalorder %s967_s14, 3 }
   0x9   : > { %p147_p6 = pnand %p702_p3, %p146_p5 }
   0xa   : > { %v901_v0 = vld [vmem:[%s1139_s1] sm:$0xff] (!%p147_p6)   ;;  %s1054_s23 = smul.u32 (!%p147_p6), 11, %s1034_s15  ;;  %v902_v1 = vld [vmem:[%s1139_s1 + $0x8] sm:$0xff] (!%p147_p6)   ;;  %vm255_vm0 = vcmask (!%p147_p6), 261120   ;;  %s170_s6 = sand.u32 (!%p147_p6), 1, %s959_s12  }
   0xb   : > { %150 = sbr.rel (%p147_p6) target bundleno = 325 (0x145), region = 32  ;;  %807 = vmatprep.subr.bf16.mxu1 (!%p147_p6), %v901_v0  ;;  %791 = vmatprep.subr.bf16.mxu0 (!%p147_p6), %v901_v0  ;;  %v704_v8 = vld [vmem:[%s1140_s2] ss:$0 sm:$0xff] (!%p147_p6) }
   0xc   : > { %p178_p7 = scmp.lt.s32.totalorder (!%p147_p6), %s1054_s23, 20  ;;  %809 = vmatpush3.bf16.msra.mxu1 (!%p147_p6), %v901_v0  ;;  %792 = vmatpush3.bf16.msra.mxu0 (!%p147_p6), %v901_v0  ;;  %s1068_s7 = smul.u32 (!%p147_p6), 44, %s170_s6 }
   0xd   : > { %808 = vmatprep.subr.bf16.mxu1 (!%p147_p6), %v902_v1  ;;  %793 = vmatprep.subr.bf16.mxu0 (!%p147_p6), %v902_v1 }
   0xe   : > { %s1071_s8 = scalar_lea.vmem (!%p147_p6), [#allocation2], %s1068_s7  }
  0x10   : > { %810 = vmatpush3.bf16.msra.mxu1 (!%p147_p6), %v902_v1  ;;  %794 = vmatpush3.bf16.msra.mxu0 (!%p147_p6), %v902_v1 }
  0x12   : > { %s179_s26 = scalar_select %p178_p7, %s1054_s23, 20 }
  0x13   : > { %s451_s9 = ssub.s32 (%p1046_p4), 21, %s1054_s23  ;;  %s753_s10 = smul.u32 (%p1046_p4), 44, %s1034_s15 }
  0x14   : > { %s703_s27 = sshll.u32 %s179_s26, 2  ;;  %p452_p8 = scmp.lt.s32.totalorder (%p1046_p4), %s451_s9, 11 }
  0x15   : > { %s181_s30 = scalar_lea.vmem %s1138_s0, %s703_s27  ;;  %s1086_s14 = scalar_lea.vmem (%p1046_p4), %s1141_s3, %s753_s10  }
  0x16   : > { %v903_v2 = vld [vmem:[%s181_s30 + $0x10] sm:$0xff]   ;;  %v904_v3 = vld [vmem:[%s181_s30 + $0x18] sm:$0xff]   ;;  %v905_v4 = vld [vmem:[%s181_s30] sm:$0xff]  }
  0x17   : > { %799 = vmatprep.mubr.msk.bf16.mxu1 %vm255_vm0, %v903_v2  ;;  %v906_v5 = vld [vmem:[%s181_s30 + $0x8] sm:$0xff]   ;;  %795 = vmatprep.mubr.msk.bf16.mxu0 %vm255_vm0, %v905_v4  ;;  %v907_v6 = vld [vmem:[%s181_s30 + $0x20] sm:$0xff]  }
  0x18   : > { %800 = vmatmul.mubr.msk.bf16.vlgmr.msra.gmra.mrb[0].mxu1 %vm255_vm0, %v904_v3  ;;  %796 = vmatmul.mubr.msk.bf16.vlgmr.msra.gmra.mrb[0].mxu0 %vm255_vm0, %v906_v5  ;;  %v908_v7 = vld [vmem:[%s181_s30 + $0x28] ss:$0 sps:$4 sm:$0xff]  }
  0x19   : > { %803 = vmatprep.mubr.msk.bf16.mxu1 %vm255_vm0, %v907_v6 }
  0x20   : > { %804 = vmatmul.mubr.msk.bf16.gmra.mrb[4].mxu1 %vm255_vm0, %v908_v7 }
  0xeb   : > { %v801_v9 = vpop.f32.mrb[0].mxu1  ;;  %v797_v14 = vpop.f32.mrb[0].mxu0 }
  0xec   : > { %v333_v10 = vadd.f32 %v801_v9, %v704_v8  ;;  %v324_v11 = vpop.f32.mrb[1].mxu1  ;;  %v317_v17 = vadd.f32 %v797_v14, %v704_v8  ;;  %v308_v19 = vpop.f32.mrb[1].mxu0 }
  0xed   : > { %v325_v12 = vadd.f32 %v704_v8, %v324_v11  ;;  %v802_v13 = vpop.f32.mrb[2].mxu1  ;;  %v309_v22 = vadd.f32 %v704_v8, %v308_v19  ;;  %v798_v23 = vpop.f32.mrb[2].mxu0 }
  0xee   : > { %vm360_vm1 = vcmp.ge.f32.partialorder %v333_v10, 0.0  ;;  %v371_v15 = vmul.f32 0.2, %v333_v10  ;;  %v336_v16 = vadd.f32 %v802_v13, %v704_v8  ;;  %v327_v18 = vpop.f32.mrb[3].mxu1  ;;  %vm356_vm4 = vcmp.ge.f32.partialorder %v317_v17, 0.0  ;;  %v311_v26 = vpop.f32.mrb[3].mxu0 }
  0xef   : > { %vm358_vm2 = vcmp.ge.f32.partialorder %v325_v12, 0.0  ;;  %v369_v20 = vmul.f32 0.2, %v325_v12  ;;  %v328_v21 = vadd.f32 %v704_v8, %v327_v18  ;;  %v367_v28 = vmul.f32 0.2, %v317_v17 }
  0xf0   : > { %v382_v24 = vsel %vm360_vm1, %v333_v10, %v371_v15  ;;  %vm361_vm3 = vcmp.ge.f32.partialorder %v336_v16, 0.0  ;;  %v372_v25 = vmul.f32 0.2, %v336_v16  ;;  %vm354_vm6 = vcmp.ge.f32.partialorder %v309_v22, 0.0 }
  0xf1   : > { %v380_v27 = vsel %vm358_vm2, %v325_v12, %v369_v20  ;;  %vm359_vm5 = vcmp.ge.f32.partialorder %v328_v21, 0.0  ;;  %v370_v29 = vmul.f32 0.2, %v328_v21  ;;  %v365_v31 = vmul.f32 0.2, %v309_v22 }
  0xf2   : > { %v383_v30 = vsel %vm361_vm3, %v336_v16, %v372_v25  ;;  %v320_v32 = vadd.f32 %v798_v23, %v704_v8  ;;  %v378_v34 = vsel %vm356_vm4, %v317_v17, %v367_v28  ;;  %v312_v36 = vadd.f32 %v704_v8, %v311_v26 }
  0xf3   : > { %v772_v33 = vpack.c.bf16 %v383_v30, %v382_v24  ;;  %v381_v35 = vsel %vm359_vm5, %v328_v21, %v370_v29  ;;  %v805_v37 = vpop.f32.mrb[4].mxu1  ;;  %v376_v39 = vsel %vm354_vm6, %v309_v22, %v365_v31 }
  0xf4   : > { %v767_v38 = vpack.c.bf16 %v381_v35, %v380_v27  ;;  %vm357_vm7 = vcmp.ge.f32.partialorder %v320_v32, 0.0  ;;  %v368_v40 = vmul.f32 0.2, %v320_v32  ;;  %v340_v41 = vpop.f32.mrb[5].mxu1  ;;  %vm355_vm8 = vcmp.ge.f32.partialorder %v312_v36, 0.0 }
  0xf5   : > { %781 = vst [vmem:[%s1071_s8 + $0x18] sm:$0xff] %v772_v33   ;;  %v366_v42 = vmul.f32 0.2, %v312_v36  ;;  %v349_v43 = vadd.f32 %v805_v37, %v704_v8  ;;  %v341_v44 = vadd.f32 %v704_v8, %v340_v41  ;;  %v806_v45 = vpop.f32.mrb[6].mxu1 }
  0xf6   : > { %780 = vst [vmem:[%s1071_s8 + $0x10] sm:$0xff] %v767_v38   ;;  %v379_v46 = vsel %vm357_vm7, %v320_v32, %v368_v40  ;;  %v343_v47 = vpop.f32.mrb[7].mxu1 }
  0xf7   : > { %v762_v48 = vpack.c.bf16 %v379_v46, %v378_v34  ;;  %v377_v49 = vsel %vm355_vm8, %v312_v36, %v366_v42  ;;  %vm364_vm9 = vcmp.ge.f32.partialorder %v349_v43, 0.0  ;;  %v375_v50 = vmul.f32 0.2, %v349_v43 }
  0xf8   : > { %v757_v51 = vpack.c.bf16 %v377_v49, %v376_v39  ;;  %v373_v52 = vmul.f32 0.2, %v341_v44  ;;  %v344_v53 = vadd.f32 %v704_v8, %v343_v47  ;;  %vm362_vm10 = vcmp.ge.f32.partialorder %v341_v44, 0.0 }
  0xf9   : > { %779 = vst [vmem:[%s1071_s8 + $0x8] sm:$0xff] %v762_v48   ;;  %v386_v54 = vsel %vm364_vm9, %v349_v43, %v375_v50  ;;  %449 = sbr.rel (!%p1046_p4) target bundleno = 325 (0x145), region = 36 }
  0xfa   : > { %758 = vst [vmem:[%s1071_s8] sm:$0xff] %v757_v51   ;;  %v752_v55 = vpack.c.bf16 %v386_v54, %v386_v54  ;;  %vm363_vm11 = vcmp.ge.f32.partialorder %v344_v53, 0.0  ;;  %v374_v56 = vmul.f32 0.2, %v344_v53  ;;  %v384_v57 = vsel %vm362_vm10, %v341_v44, %v373_v52 }
  0xfc   : > { %442 = vst [vmem:[%s1071_s8 + $0x28] sm:$0xf] %v752_v55  ;;  %v385_v58 = vsel %vm363_vm11, %v344_v53, %v374_v56 }
  0xfd   : > { %v777_v59 = vpack.c.bf16 %v385_v58, %v384_v57 }
  0xff   : > { %782 = vst [vmem:[%s1071_s8 + $0x20] sm:$0xff] %v777_v59  }
 0x100   : > { %s1150_s9 = smov (!%p452_p8, %s451_s9), 11 }
 0x101   : > { %s730_s17 = sshll.u32 %s1150_s9, 6 }
 0x102   : > { %p733_p9 = scmp.eq.s32.totalorder %s730_s17, 0 }
 0x103   : > { %909 = sdivrem.u32 (!%p733_p9), %s1150_s9, 11 }
 0x104   : > { %460 = sbr.rel (%p733_p9) target bundleno = 325 (0x145), region = 40 }
 0x10c   : > { %s1092_s18 = spop.drf %909 }
 0x10d   : > { %p734_p10 = scmp.le.s32.totalorder %s1092_s18, 0 }
 0x10e   : > { %s1143_s15 = smov (!%p734_p10), %s1086_s14  ;;  %s1144_s20 = smov (!%p734_p10), %s1071_s8 }
 0x10f   : > { %655 = sbr.rel (%p734_p10) target bundleno = 296 (0x128), region = 112  ;;  %s1101_s21 = smov (!%p734_p10), 0  }
 0x110   : > { %s1103_s22 = smov (!%p734_p10), 0  }
 0x116 LB: >> { %v477_v60 = vld [vmem:[%s975_s20] sm:$0xf]  ;;  %v479_v61 = vld [vmem:[%s975_s20 + $0x4] sm:$0xf]  ;;  %v481_v62 = vld [vmem:[%s975_s20 + $0x8] sm:$0xf]  ;;  %s983_s22 = sphi %s1103_s22, %s471_s22   ;;  %s979_s21 = sphi %s1101_s21, %s1145_s21   ;;  %s975_s20 = sphi %s1144_s20, %s504_s20   ;;  %s971_s15 = sphi %s1143_s15, %s505_s15  }
 0x117   : >> { %478 = vst [vmem:[%s971_s15] sm:$0xf] %v477_v60  ;;  %480 = vst [vmem:[%s971_s15 + $0x4] sm:$0xf] %v479_v61  ;;  %v483_v63 = vld [vmem:[%s975_s20 + $0xc] sm:$0xf]  ;;  %s499_s23 = sadd.s32 1, %s979_s21 }
 0x118   : >> { %482 = vst [vmem:[%s971_s15 + $0x8] sm:$0xf] %v481_v62  ;;  %v485_v0 = vld [vmem:[%s975_s20 + $0x10] sm:$0xf]  ;;  %v487_v1 = vld [vmem:[%s975_s20 + $0x14] sm:$0xf]  ;;  %p500_p11 = scmp.ge.s32.totalorder %s499_s23, %s1092_s18 }
 0x119   : >> { %484 = vst [vmem:[%s971_s15 + $0xc] sm:$0xf] %v483_v63  ;;  %486 = vst [vmem:[%s971_s15 + $0x10] sm:$0xf] %v485_v0  ;;  %v489_v2 = vld [vmem:[%s975_s20 + $0x18] sm:$0xf] }
 0x11a   : >> { %488 = vst [vmem:[%s971_s15 + $0x14] sm:$0xf] %v487_v1  ;;  %v491_v3 = vld [vmem:[%s975_s20 + $0x1c] sm:$0xf]  ;;  %v493_v4 = vld [vmem:[%s975_s20 + $0x20] sm:$0xf] }
 0x11b   : >> { %490 = vst [vmem:[%s971_s15 + $0x18] sm:$0xf] %v489_v2  ;;  %492 = vst [vmem:[%s971_s15 + $0x1c] sm:$0xf] %v491_v3  ;;  %v495_v5 = vld [vmem:[%s975_s20 + $0x24] sm:$0xf] }
 0x11c   : >> { %494 = vst [vmem:[%s971_s15 + $0x20] sm:$0xf] %v493_v4  ;;  %v497_v6 = vld [vmem:[%s975_s20 + $0x28] sm:$0xf]  ;;  %496 = vst [vmem:[%s971_s15 + $0x24] sm:$0xf] %v495_v5 }
 0x11d   : >> { %498 = vst [vmem:[%s971_s15 + $0x28] sm:$0xf] %v497_v6  ;;  %s1152_s23 = smov (%p500_p11, %s499_s23), 0  ;;  %s471_s22 = sadd.s32 1, %s983_s22  }
 0x11e   : >> { %s502_s24 = smul.u32 44, %s1152_s23  ;;  %p470_p12 = scmp.ge.s32.totalorder %s471_s22, %s1092_s18 }
 0x11f   : >> { %s1145_s21 = smov %s1152_s23 }
 0x120   : >> { %s504_s20 = scalar_lea.vmem %s1071_s8, %s502_s24 [#allocation2]   ;;  %s505_s15 = scalar_lea.vmem %s1086_s14, %s502_s24  }
 0x121   : > { %473 = sbr.rel (!%p470_p12) target bundleno = 278 (0x116), region = 118 }
 0x128 PF: > { %911 = sdivrem.u32 %s1150_s9, 11 }
 0x129   : > { %s735_s25 = smul.u32 44, %s1092_s18 }
 0x12b   : > { %s510_s26 = scalar_lea.vmem %s1071_s8, %s735_s25 [#allocation2]   ;;  %s512_s27 = scalar_lea.vmem %s1086_s14, %s735_s25  }
 0x131   : > { %s912_s28 = spop.drf %911 }
 0x132   : > { %p737_p13 = scmp.le.s32.totalorder %s912_s28, 0 }
 0x133   : > { %s985_s29 = smov (!%p737_p13), %s512_s27   ;;  %s989_s30 = smov (!%p737_p13), %s510_s26  }
 0x134   : > { %669 = sbr.rel (%p737_p13) target bundleno = 325 (0x145), region = 123  ;;  %s993_s4 = smov (!%p737_p13), 0  }
 0x135   : > { %s997_s5 = smov (!%p737_p13), 0  }
 0x13b LB: >> { %v522_v7 = vld [vmem:[%s991_s30] sm:$0xf]  ;;  %s524_s6 = sadd.s32 1, %s995_s4  ;;  %s516_s5 = sadd.s32 1, %s999_s5   ;;  %s999_s5 = sphi %s997_s5, %s516_s5   ;;  %s995_s4 = sphi %s993_s4, %s994_s4   ;;  %s991_s30 = sphi %s989_s30, %s529_s30   ;;  %s987_s29 = sphi %s985_s29, %s530_s29  }
 0x13c   : >> { %523 = vst [vmem:[%s987_s29] sm:$0xf] %v522_v7  ;;  %p525_p0 = scmp.ge.s32.totalorder %s524_s6, %s912_s28  ;;  %p515_p1 = scmp.ge.s32.totalorder %s516_s5, %s912_s28 }
 0x13e   : >> { %s1154_s6 = smov (%p525_p0, %s524_s6), 0  ;;  %518 = sbr.rel (!%p515_p1) target bundleno = 315 (0x13b), region = 129 }
 0x13f   : >> { %s738_s7 = sshll.u32 %s1154_s6, 2  ;;  %s994_s4 = smov %s1154_s6  }
 0x140   : >> { %s529_s30 = scalar_lea.vmem %s510_s26, %s738_s7 [#allocation2]   ;;  %s530_s29 = scalar_lea.vmem %s512_s27, %s738_s7  }
 0x145 PF: > { %p10_p2 = scmp.ge.s32.totalorder %s1036_s16, 4   ;;  %s1146_s12 = smov %s963_s13 }
 0x146   : > { %s1147_s13 = smov %s1044_s19  ;;  %s1148_s14 = smov %s1036_s16 }
 0x147   :  { %12 = sbr.rel (!%p10_p2) target bundleno = 2 (0x2), region = 140 }

// kernel: vae_forward.15
= control target key start
LH: loop header
LB: loop body
LE: loop exit
PB: predicated region body
PF: predicated region fallthrough
CT: control target
= control target key end

     0   :  { %s1479_s12 = smov 0   ;;  %s1481_s13 = smov 0   ;;  %s1758_s0 = inlined_call_operand.vmem [shape: bf16[324,192], index: 0, kind: input, shape index: {}]   ;;  %s1759_s1 = inlined_call_operand.vmem [shape: bf16[192,128], index: 1, kind: input, shape index: {}]   ;;  %s1760_s2 = inlined_call_operand.vmem [shape: f32[1,128], index: 2, kind: input, shape index: {}]   ;;  %s1761_s3 = inlined_call_operand.vmem [shape: bf16[324,128], index: 3, kind: output, shape index: {}]  }
   0x1   :  { %s1483_s14 = smov 0  }
   0x2 LB: > { %s1492_s15 = sadd.s32 4294967295, %s1424_s14   ;;  %s1494_s16 = sadd.s32 1, %s1424_s14   ;;  %s1424_s14 = sphi %s1483_s14, %s1768_s14   ;;  %s1420_s13 = sphi %s1481_s13, %s1767_s13   ;;  %s1416_s12 = sphi %s1479_s12, %s1766_s12  }
   0x3   : > { %s85_s17 = ssub.s32 %s1424_s14, %s1494_s16  ;;  %s88_s18 = sadd.s32 1, %s1420_s13 }
   0x4   : > { %p86_p0 = scmp.eq.s32.totalorder %s85_s17, 0  ;;  %p98_p1 = scmp.ne.s32.totalorder %s1420_s13, %s1416_s12 }
   0x5   : > { %p99_p2 = scmp.eq.s32.totalorder %s1492_s15, 1  ;;  %p1043_p3 = scmp.ge.s32.totalorder %s1424_s14, 1 }
   0x6   : > { %s1502_s19 = scalar_select %p86_p0, %s1420_s13, %s88_s18  }
   0x7   : > { %p1504_p4 = por %p99_p2, %p98_p1  ;;  %p149_p5 = scmp.lt.s32.totalorder %s1424_s14, 3 }
   0x9   : > { %p150_p6 = pnand %p1043_p3, %p149_p5 }
   0xa   : > { %v1322_v0 = vld [vmem:[%s1759_s1] sm:$0xff] (!%p150_p6)   ;;  %v1458_v1 = vmov (!%p150_p6), 0   ;;  %s1514_s23 = smul.u32 (!%p150_p6), 21, %s1492_s15  ;;  %v1323_v2 = vld [vmem:[%s1759_s1 + $0x8] sm:$0xff] (!%p150_p6)   ;;  %v1324_v3 = vld [vmem:[%s1759_s1 + $0x10] sm:$0xff] (!%p150_p6)   ;;  %vm421_vm0 = vcmask (!%p150_p6), 523264  }
   0xb   : > { %153 = sbr.rel (%p150_p6) target bundleno = 396 (0x18c), region = 32  ;;  %455 = vmatprep.subr.bf16.mxu0 (!%p150_p6), %v1458_v1  ;;  %1207 = vmatprep.subr.bf16.mxu1 (!%p150_p6), %v1458_v1  ;;  %v1325_v4 = vld [vmem:[%s1759_s1 + $0x18] sm:$0xff] (!%p150_p6)   ;;  %v1326_v6 = vld [vmem:[%s1759_s1 + $0x20] sm:$0xff] (!%p150_p6)   ;;  %v1327_v8 = vld [vmem:[%s1759_s1 + $0x28] sm:$0xff] (!%p150_p6)   ;;  %s175_s6 = sand.u32 (!%p150_p6), 1, %s1416_s12  }
   0xc   : > { %456 = vmatpush1.bf16.msra.mxu0 (!%p150_p6), %v1322_v0  ;;  %1219 = vmatpush1.bf16.msra.mxu1 (!%p150_p6), %v1322_v0  ;;  %p184_p7 = scmp.lt.s32.totalorder (!%p150_p6), %s1514_s23, 40  ;;  %v1328_v9 = vld [vmem:[%s1759_s1 + $0x30] sm:$0xff] (!%p150_p6)   ;;  %v1329_v10 = vld [vmem:[%s1759_s1 + $0x38] sm:$0xff] (!%p150_p6)   ;;  %v1330_v11 = vld [vmem:[%s1759_s1 + $0x40] sm:$0xff] (!%p150_p6)   ;;  %s1231_s8 = smul.u32 (!%p150_p6), 84, %s175_s6 }
   0xd   : > { %457 = vmatprep.subr.bf16.mxu0 (!%p150_p6), %v1458_v1  ;;  %1208 = vmatprep.subr.bf16.mxu1 (!%p150_p6), %v1458_v1  ;;  %v1331_v12 = vld [vmem:[%s1759_s1 + $0x48] sm:$0xff] (!%p150_p6)   ;;  %v1332_v13 = vld [vmem:[%s1759_s1 + $0x50] sm:$0xff] (!%p150_p6)   ;;  %v1333_v14 = vld [vmem:[%s1759_s1 + $0x58] sm:$0xff] (!%p150_p6)  }
   0xe   : > { %v1613_v36 = vld [vmem:[%s1760_s2] ss:$0 sm:$0xff] (!%p150_p6)  ;;  %s1622_s12 = scalar_lea.vmem (!%p150_p6), [#allocation2], %s1231_s8  }
  0x10   : > { %458 = vmatpush1.bf16.msra.mxu0 (!%p150_p6), %v1323_v2  ;;  %1220 = vmatpush1.bf16.msra.mxu1 (!%p150_p6), %v1323_v2 }
  0x11   : > { %459 = vmatprep.subr.bf16.mxu0 (!%p150_p6), %v1458_v1  ;;  %1209 = vmatprep.subr.bf16.mxu1 (!%p150_p6), %v1458_v1 }
  0x12   : > { %s185_s26 = scalar_select %p184_p7, %s1514_s23, 40 }
  0x13   : > { %s1147_s9 = smul.u32 (%p1504_p4), 84, %s1492_s15 }
  0x14   : > { %s1125_s29 = sshll.u32 %s185_s26, 3  ;;  %460 = vmatpush1.bf16.msra.mxu0 %v1324_v3  ;;  %1221 = vmatpush1.bf16.msra.mxu1 %v1324_v3 }
  0x15   : > { %s1534_s7 = scalar_lea.vmem %s1758_s0, %s1125_s29  ;;  %461 = vmatprep.subr.bf16.mxu0 %v1458_v1  ;;  %1210 = vmatprep.subr.bf16.mxu1 %v1458_v1  ;;  %s1657_s14 = scalar_lea.vmem (%p1504_p4), %s1761_s3, %s1147_s9  }
  0x16   : > { %v1336_v5 = vld [vmem:[%s1534_s7 + $0x4] ss:$8 sps:$4 sm:$0xff]   ;;  %v1334_v15 = vld [vmem:[%s1534_s7] ss:$8 sps:$4 sm:$0xff]   ;;  %v1340_v17 = vld [vmem:[%s1534_s7 + $0x14] ss:$8 sps:$4 sm:$0xff]  }
  0x17   : > { %v1339_v7 = vld [vmem:[%s1534_s7 + $0x64] ss:$8 sps:$4 sm:$0xff]   ;;  %1081 = vmatprep.mubr.msk.bf16.mxu0 %vm421_vm0, %v1336_v5  ;;  %v1337_v16 = vld [vmem:[%s1534_s7 + $0x60] ss:$8 sps:$4 sm:$0xff]   ;;  %v1343_v18 = vld [vmem:[%s1534_s7 + $0x74] ss:$8 sps:$4 sm:$0xff]  }
  0x18   : > { %462 = vmatpush1.bf16.msra.mxu0 %v1325_v4  ;;  %1222 = vmatpush1.bf16.msra.mxu1 %v1325_v4  ;;  %v1342_v19 = vld [vmem:[%s1534_s7 + $0x10] ss:$8 sps:$4 sm:$0xff]   ;;  %v1346_v21 = vld [vmem:[%s1534_s7 + $0x24] ss:$8 sps:$4 sm:$0xff]   ;;  %v1348_v23 = vld [vmem:[%s1534_s7 + $0x20] ss:$8 sps:$4 sm:$0xff]  }
  0x19   : > { %463 = vmatprep.subr.bf16.mxu0 %v1458_v1  ;;  %1211 = vmatprep.subr.bf16.mxu1 %v1458_v1  ;;  %v1345_v20 = vld [vmem:[%s1534_s7 + $0x70] ss:$8 sps:$4 sm:$0xff]   ;;  %v1349_v22 = vld [vmem:[%s1534_s7 + $0x84] ss:$8 sps:$4 sm:$0xff]   ;;  %v1351_v24 = vld [vmem:[%s1534_s7 + $0x80] ss:$8 sps:$4 sm:$0xff]  }
  0x1a   : > { %1087 = vmatprep.mubr.msk.bf16.mxu1 %vm421_vm0, %v1339_v7  ;;  %v1352_v25 = vld [vmem:[%s1534_s7 + $0x34] ss:$8 sps:$4 sm:$0xff]   ;;  %v221_v27 = vld [vmem:[%s1534_s7 + $0xa0] sm:$0xff]  ;;  %v1354_v28 = vld [vmem:[%s1534_s7 + $0x30] ss:$8 sps:$4 sm:$0xff]  }
  0x1b   : > { %v1355_v26 = vld [vmem:[%s1534_s7 + $0x94] ss:$8 sps:$4 sm:$0xff]   ;;  %v1357_v29 = vld [vmem:[%s1534_s7 + $0x90] ss:$8 sps:$4 sm:$0xff]   ;;  %v1358_v30 = vld [vmem:[%s1534_s7 + $0x44] ss:$8 sps:$4 sm:$0xff]   ;;  %v1068_v31 = vcombine.high %v221_v27, %v221_v27  ;;  %v1067_v33 = vcombine.low %v221_v27, %v221_v27 }
  0x1c   : > { %464 = vmatpush1.bf16.msra.mxu0 %v1326_v6  ;;  %1223 = vmatpush1.bf16.msra.mxu1 %v1326_v6  ;;  %v1360_v32 = vld [vmem:[%s1534_s7 + $0x40] ss:$8 sps:$4 sm:$0xff]   ;;  %v1362_v34 = vld [vmem:[%s1534_s7 + $0x54] ss:$8 sps:$4 sm:$0xff]   ;;  %v1365_v35 = vld [vmem:[%s1534_s7 + $0x50] ss:$8 sps:$4 sm:$0xff]  }
  0x1d   : > { %465 = vmatprep.subr.bf16.mxu0 %v1458_v1  ;;  %1212 = vmatprep.subr.bf16.mxu1 %v1458_v1  ;;  %s752_s7 = ssub.s32 (%p1504_p4), 41, %s1514_s23 }
  0x1e   : > { %p753_p8 = scmp.lt.s32.totalorder (%p1504_p4), %s752_s7, 21 }
  0x20   : > { %466 = vmatpush1.bf16.msra.mxu0 %v1327_v8  ;;  %1224 = vmatpush1.bf16.msra.mxu1 %v1327_v8 }
  0x21   : > { %467 = vmatprep.subr.bf16.mxu0 %v1458_v1  ;;  %1213 = vmatprep.subr.bf16.mxu1 %v1458_v1 }
  0x24   : > { %468 = vmatpush1.bf16.msra.mxu0 %v1328_v9  ;;  %1225 = vmatpush1.bf16.msra.mxu1 %v1328_v9 }
  0x25   : > { %469 = vmatprep.subr.bf16.mxu0 %v1458_v1  ;;  %1214 = vmatprep.subr.bf16.mxu1 %v1458_v1 }
  0x28   : > { %470 = vmatpush1.bf16.msra.mxu0 %v1329_v10  ;;  %1226 = vmatpush1.bf16.msra.mxu1 %v1329_v10 }
  0x29   : > { %471 = vmatprep.subr.bf16.mxu0 %v1458_v1  ;;  %1215 = vmatprep.subr.bf16.mxu1 %v1458_v1 }
  0x2c   : > { %472 = vmatpush1.bf16.msra.mxu0 %v1330_v11  ;;  %1227 = vmatpush1.bf16.msra.mxu1 %v1330_v11 }
  0x2d   : > { %473 = vmatprep.subr.bf16.mxu0 %v1458_v1  ;;  %1216 = vmatprep.subr.bf16.mxu1 %v1458_v1 }
  0x30   : > { %474 = vmatpush1.bf16.msra.mxu0 %v1331_v12  ;;  %1228 = vmatpush1.bf16.msra.mxu1 %v1331_v12 }
  0x31   : > { %475 = vmatprep.subr.bf16.mxu0 %v1458_v1  ;;  %1217 = vmatprep.subr.bf16.mxu1 %v1458_v1 }
  0x34   : > { %476 = vmatpush1.bf16.msra.mxu0 %v1332_v13  ;;  %1229 = vmatpush1.bf16.msra.mxu1 %v1332_v13 }
  0x35   : > { %477 = vmatprep.subr.bf16.mxu0 %v1458_v1  ;;  %1218 = vmatprep.subr.bf16.mxu1 %v1458_v1 }
  0x38   : > { %478 = vmatpush1.bf16.msra.mxu0 %v1333_v14  ;;  %1230 = vmatpush1.bf16.msra.mxu1 %v1333_v14 }
  0x3b   : > { %488 = vmatmul.mubr.bf16.vlgmr.msra.gmra.mrb[0].mxu0 %v1334_v15  ;;  %536 = vmatmul.mubr.bf16.vlgmr.msra.gmra.mrb[0].mxu1 %v1337_v16 }
  0x3c   : > { %1082 = vmatprep.mubr.msk.bf16.mxu0 %vm421_vm0, %v1340_v17  ;;  %1088 = vmatprep.mubr.msk.bf16.mxu1 %vm421_vm0, %v1343_v18 }
  0x43   : > { %496 = vmatmul.mubr.bf16.gmra.mrb[4].mxu0 %v1342_v19  ;;  %544 = vmatmul.mubr.bf16.gmra.mrb[4].mxu1 %v1345_v20 }
  0x44   : > { %1083 = vmatprep.mubr.msk.bf16.mxu0 %vm421_vm0, %v1346_v21  ;;  %1089 = vmatprep.mubr.msk.bf16.mxu1 %vm421_vm0, %v1349_v22 }
  0x4b   : > { %504 = vmatmul.mubr.bf16.gmra.mrb[8].mxu0 %v1348_v23  ;;  %552 = vmatmul.mubr.bf16.gmra.mrb[8].mxu1 %v1351_v24 }
  0x4c   : > { %1084 = vmatprep.mubr.msk.bf16.mxu0 %vm421_vm0, %v1352_v25  ;;  %1090 = vmatprep.mubr.msk.bf16.mxu1 %vm421_vm0, %v1355_v26 }
  0x53   : > { %512 = vmatmul.mubr.bf16.gmra.mrb[12].mxu0 %v1354_v28  ;;  %560 = vmatmul.mubr.bf16.gmra.mrb[12].mxu1 %v1357_v29 }
  0x54   : > { %1085 = vmatprep.mubr.msk.bf16.mxu0 %vm421_vm0, %v1358_v30  ;;  %1091 = vmatprep.mubr.msk.bf16.mxu1 %vm421_vm0, %v1068_v31 }
  0x5b   : > { %520 = vmatmul.mubr.bf16.gmra.mrb[16].mxu0 %v1360_v32  ;;  %568 = vmatmul.mubr.bf16.gmra.mrb[16].mxu1 %v1067_v33 }
  0x5c   : > { %1086 = vmatprep.mubr.msk.bf16.mxu0 %vm421_vm0, %v1362_v34 }
  0x63   : > { %528 = vmatmul.mubr.bf16.gmra.mrb[20].mxu0 %v1365_v35 }
 0x10e   : > { %v489_v37 = vpop.f32.mrb[0].mxu0  ;;  %v537_v38 = vpop.f32.mrb[0].mxu1 }
 0x10f   : > { %v490_v39 = vadd.f32 %v1613_v36, %v489_v37  ;;  %v491_v40 = vpop.f32.mrb[1].mxu0  ;;  %v538_v41 = vadd.f32 %v1613_v36, %v537_v38  ;;  %v539_v42 = vpop.f32.mrb[1].mxu1 }
 0x110   : > { %v492_v43 = vpop.f32.mrb[2].mxu0  ;;  %v540_v44 = vpop.f32.mrb[2].mxu1 }
 0x111   : > { %v596_v45 = vmul.f32 0.1, %v490_v39  ;;  %v493_v46 = vadd.f32 %v1613_v36, %v492_v43  ;;  %v494_v47 = vpop.f32.mrb[3].mxu0  ;;  %vm587_vm1 = vcmp.ge.f32.partialorder %v538_v41, 0.0  ;;  %v542_v48 = vpop.f32.mrb[3].mxu1  ;;  %vm575_vm2 = vcmp.ge.f32.partialorder %v490_v39, 0.0 }
 0x112   : > { %v608_v49 = vmul.f32 0.1, %v538_v41  ;;  %v541_v50 = vadd.f32 %v1613_v36, %v540_v44 }
 0x113   : > { %vm576_vm3 = vcmp.ge.f32.partialorder %v493_v46, 0.0  ;;  %v597_v51 = vmul.f32 0.1, %v493_v46  ;;  %v617_v54 = vsel %vm575_vm2, %v490_v39, %v596_v45 }
 0x114   : > { %v629_v52 = vsel %vm587_vm1, %v538_v41, %v608_v49  ;;  %vm588_vm4 = vcmp.ge.f32.partialorder %v541_v50, 0.0  ;;  %v609_v53 = vmul.f32 0.1, %v541_v50 }
 0x115   : > { %v618_v55 = vsel %vm576_vm3, %v493_v46, %v597_v51 }
 0x116   : > { %v1151_v56 = vpack.c.bf16 %v618_v55, %v617_v54  ;;  %v497_v57 = vpop.f32.mrb[4].mxu0  ;;  %v630_v58 = vsel %vm588_vm4, %v541_v50, %v609_v53  ;;  %v545_v59 = vpop.f32.mrb[4].mxu1 }
 0x117   : > { %v498_v60 = vadd.f32 %v1613_v36, %v497_v57  ;;  %v1181_v61 = vpack.c.bf16 %v630_v58, %v629_v52  ;;  %v499_v62 = vpop.f32.mrb[5].mxu0  ;;  %v546_v63 = vadd.f32 %v1613_v36, %v545_v59  ;;  %v547_v0 = vpop.f32.mrb[5].mxu1 }
 0x118   : > { %1152 = vst [vmem:[%s1622_s12] sm:$0xff] %v1151_v56   ;;  %v500_v1 = vpop.f32.mrb[6].mxu0  ;;  %v548_v2 = vpop.f32.mrb[6].mxu1 }
 0x119   : > { %v598_v3 = vmul.f32 0.1, %v498_v60  ;;  %1203 = vst [vmem:[%s1622_s12 + $0x30] sm:$0xff] %v1181_v61   ;;  %v501_v4 = vadd.f32 %v1613_v36, %v500_v1  ;;  %v502_v5 = vpop.f32.mrb[7].mxu0  ;;  %vm589_vm5 = vcmp.ge.f32.partialorder %v546_v63, 0.0  ;;  %v550_v6 = vpop.f32.mrb[7].mxu1  ;;  %v549_v8 = vadd.f32 %v1613_v36, %v548_v2 }
 0x11a   : > { %vm577_vm6 = vcmp.ge.f32.partialorder %v498_v60, 0.0  ;;  %v610_v7 = vmul.f32 0.1, %v546_v63 }
 0x11b   : > { %vm578_vm7 = vcmp.ge.f32.partialorder %v501_v4, 0.0  ;;  %v599_v9 = vmul.f32 0.1, %v501_v4  ;;  %vm590_vm8 = vcmp.ge.f32.partialorder %v549_v8, 0.0  ;;  %v611_v11 = vmul.f32 0.1, %v549_v8 }
 0x11c   : > { %v631_v10 = vsel %vm589_vm5, %v546_v63, %v610_v7  ;;  %v619_v12 = vsel %vm577_vm6, %v498_v60, %v598_v3 }
 0x11d   : > { %v620_v13 = vsel %vm578_vm7, %v501_v4, %v599_v9  ;;  %v632_v16 = vsel %vm590_vm8, %v549_v8, %v611_v11 }
 0x11e   : > { %v1156_v14 = vpack.c.bf16 %v620_v13, %v619_v12  ;;  %v505_v15 = vpop.f32.mrb[8].mxu0  ;;  %v553_v17 = vpop.f32.mrb[8].mxu1  ;;  %v1186_v19 = vpack.c.bf16 %v632_v16, %v631_v10 }
 0x11f   : > { %v506_v18 = vadd.f32 %v1613_v36, %v505_v15  ;;  %v507_v20 = vpop.f32.mrb[9].mxu0  ;;  %v554_v21 = vadd.f32 %v1613_v36, %v553_v17  ;;  %v555_v22 = vpop.f32.mrb[9].mxu1 }
 0x120   : > { %1198 = vst [vmem:[%s1622_s12 + $0x8] sm:$0xff] %v1156_v14   ;;  %v508_v23 = vpop.f32.mrb[10].mxu0  ;;  %v556_v24 = vpop.f32.mrb[10].mxu1  ;;  %1204 = vst [vmem:[%s1622_s12 + $0x38] sm:$0xff] %v1186_v19  }
 0x121   : > { %v600_v25 = vmul.f32 0.1, %v506_v18  ;;  %v509_v26 = vadd.f32 %v1613_v36, %v508_v23  ;;  %v510_v27 = vpop.f32.mrb[11].mxu0  ;;  %vm591_vm9 = vcmp.ge.f32.partialorder %v554_v21, 0.0  ;;  %v558_v28 = vpop.f32.mrb[11].mxu1  ;;  %vm579_vm10 = vcmp.ge.f32.partialorder %v506_v18, 0.0 }
 0x122   : > { %v612_v29 = vmul.f32 0.1, %v554_v21  ;;  %v557_v30 = vadd.f32 %v1613_v36, %v556_v24 }
 0x123   : > { %vm580_vm11 = vcmp.ge.f32.partialorder %v509_v26, 0.0  ;;  %v601_v31 = vmul.f32 0.1, %v509_v26  ;;  %v621_v34 = vsel %vm579_vm10, %v506_v18, %v600_v25 }
 0x124   : > { %v633_v32 = vsel %vm591_vm9, %v554_v21, %v612_v29  ;;  %vm592_vm12 = vcmp.ge.f32.partialorder %v557_v30, 0.0  ;;  %v613_v33 = vmul.f32 0.1, %v557_v30 }
 0x125   : > { %v622_v35 = vsel %vm580_vm11, %v509_v26, %v601_v31 }
 0x126   : > { %v1161_v37 = vpack.c.bf16 %v622_v35, %v621_v34  ;;  %v513_v38 = vpop.f32.mrb[12].mxu0  ;;  %v634_v39 = vsel %vm592_vm12, %v557_v30, %v613_v33  ;;  %v561_v40 = vpop.f32.mrb[12].mxu1 }
 0x127   : > { %v514_v41 = vadd.f32 %v1613_v36, %v513_v38  ;;  %v1191_v42 = vpack.c.bf16 %v634_v39, %v633_v32  ;;  %v515_v43 = vpop.f32.mrb[13].mxu0  ;;  %v562_v44 = vadd.f32 %v1613_v36, %v561_v40  ;;  %v563_v45 = vpop.f32.mrb[13].mxu1 }
 0x128   : > { %1199 = vst [vmem:[%s1622_s12 + $0x10] sm:$0xff] %v1161_v37   ;;  %v516_v46 = vpop.f32.mrb[14].mxu0  ;;  %v564_v47 = vpop.f32.mrb[14].mxu1 }
 0x129   : > { %v602_v48 = vmul.f32 0.1, %v514_v41  ;;  %1205 = vst [vmem:[%s1622_s12 + $0x40] sm:$0xff] %v1191_v42   ;;  %v517_v49 = vadd.f32 %v1613_v36, %v516_v46  ;;  %v518_v50 = vpop.f32.mrb[15].mxu0  ;;  %vm593_vm13 = vcmp.ge.f32.partialorder %v562_v44, 0.0  ;;  %v566_v51 = vpop.f32.mrb[15].mxu1  ;;  %v565_v53 = vadd.f32 %v1613_v36, %v564_v47 }
 0x12a   : > { %vm581_vm14 = vcmp.ge.f32.partialorder %v514_v41, 0.0  ;;  %v614_v52 = vmul.f32 0.1, %v562_v44 }
 0x12b   : > { %vm582_vm15 = vcmp.ge.f32.partialorder %v517_v49, 0.0  ;;  %v603_v54 = vmul.f32 0.1, %v517_v49  ;;  %vm594_vm0 = vcmp.ge.f32.partialorder %v565_v53, 0.0  ;;  %v615_v56 = vmul.f32 0.1, %v565_v53 }
 0x12c   : > { %v635_v55 = vsel %vm593_vm13, %v562_v44, %v614_v52  ;;  %v623_v57 = vsel %vm581_vm14, %v514_v41, %v602_v48 }
 0x12d   : > { %v624_v58 = vsel %vm582_vm15, %v517_v49, %v603_v54  ;;  %v636_v61 = vsel %vm594_vm0, %v565_v53, %v615_v56 }
 0x12e   : > { %v1166_v59 = vpack.c.bf16 %v624_v58, %v623_v57  ;;  %v521_v60 = vpop.f32.mrb[16].mxu0  ;;  %v569_v62 = vpop.f32.mrb[16].mxu1  ;;  %v1196_v0 = vpack.c.bf16 %v636_v61, %v635_v55 }
 0x12f   : > { %v522_v63 = vadd.f32 %v1613_v36, %v521_v60  ;;  %v523_v1 = vpop.f32.mrb[17].mxu0  ;;  %v570_v2 = vadd.f32 %v1613_v36, %v569_v62  ;;  %v571_v3 = vpop.f32.mrb[17].mxu1 }
 0x130   : > { %1200 = vst [vmem:[%s1622_s12 + $0x18] sm:$0xff] %v1166_v59   ;;  %v524_v4 = vpop.f32.mrb[18].mxu0  ;;  %v572_v5 = vpop.f32.mrb[18].mxu1  ;;  %1206 = vst [vmem:[%s1622_s12 + $0x48] sm:$0xff] %v1196_v0  }
 0x131   : > { %v604_v6 = vmul.f32 0.1, %v522_v63  ;;  %v525_v7 = vadd.f32 %v1613_v36, %v524_v4  ;;  %v526_v8 = vpop.f32.mrb[19].mxu0  ;;  %vm595_vm1 = vcmp.ge.f32.partialorder %v570_v2, 0.0  ;;  %v573_v9 = vpop.f32.mrb[19].mxu1  ;;  %vm583_vm2 = vcmp.ge.f32.partialorder %v522_v63, 0.0 }
 0x132   : > { %v616_v10 = vmul.f32 0.1, %v570_v2 }
 0x133   : > { %vm584_vm3 = vcmp.ge.f32.partialorder %v525_v7, 0.0  ;;  %v605_v11 = vmul.f32 0.1, %v525_v7  ;;  %v625_v13 = vsel %vm583_vm2, %v522_v63, %v604_v6 }
 0x134   : > { %v637_v12 = vsel %vm595_vm1, %v570_v2, %v616_v10 }
 0x135   : > { %v626_v14 = vsel %vm584_vm3, %v525_v7, %v605_v11  ;;  %v1146_v15 = vpack.c.bf16 %v637_v12, %v637_v12 }
 0x136   : > { %v1171_v16 = vpack.c.bf16 %v626_v14, %v625_v13  ;;  %v529_v17 = vpop.f32.mrb[20].mxu0 }
 0x137   : > { %743 = vst [vmem:[%s1622_s12 + $0x50] sm:$0xf] %v1146_v15  ;;  %v530_v18 = vadd.f32 %v1613_v36, %v529_v17  ;;  %v531_v19 = vpop.f32.mrb[21].mxu0 }
 0x138   : > { %1201 = vst [vmem:[%s1622_s12 + $0x20] sm:$0xff] %v1171_v16   ;;  %v532_v20 = vpop.f32.mrb[22].mxu0 }
 0x139   : > { %v606_v21 = vmul.f32 0.1, %v530_v18  ;;  %v533_v22 = vadd.f32 %v1613_v36, %v532_v20  ;;  %v534_v23 = vpop.f32.mrb[23].mxu0  ;;  %vm585_vm4 = vcmp.ge.f32.partialorder %v530_v18, 0.0 }
 0x13a   : > { %750 = sbr.rel (!%p1504_p4) target bundleno = 396 (0x18c), region = 36 }
 0x13b   : > { %vm586_vm5 = vcmp.ge.f32.partialorder %v533_v22, 0.0  ;;  %v607_v24 = vmul.f32 0.1, %v533_v22  ;;  %v627_v25 = vsel %vm585_vm4, %v530_v18, %v606_v21 }
 0x13d   : > { %v628_v26 = vsel %vm586_vm5, %v533_v22, %v607_v24 }
 0x13e   : > { %v1176_v27 = vpack.c.bf16 %v628_v26, %v627_v25 }
 0x140   : > { %1202 = vst [vmem:[%s1622_s12 + $0x28] sm:$0xff] %v1176_v27  }
 0x141   : > { %s1770_s7 = smov (!%p753_p8, %s752_s7), 21 }
 0x142   : > { %s1113_s17 = sshll.u32 %s1770_s7, 6 }
 0x143   : > { %p1116_p9 = scmp.eq.s32.totalorder %s1113_s17, 0 }
 0x144   : > { %1366 = sdivrem.u32 (!%p1116_p9), %s1770_s7, 21 }
 0x145   : > { %761 = sbr.rel (%p1116_p9) target bundleno = 396 (0x18c), region = 40 }
 0x14d   : > { %s1663_s20 = spop.drf %1366 }
 0x14e   : > { %p1117_p10 = scmp.le.s32.totalorder %s1663_s20, 0 }
 0x14f   : > { %s1763_s15 = smov (!%p1117_p10), %s1657_s14  ;;  %s1764_s23 = smov (!%p1117_p10), %s1622_s12 }
 0x150   : > { %996 = sbr.rel (%p1117_p10) target bundleno = 367 (0x16f), region = 112  ;;  %s1672_s18 = smov (!%p1117_p10), 0  }
 0x151   : > { %s1674_s21 = smov (!%p1117_p10), 0  }
 0x157 LB: >> { %v778_v36 = vld [vmem:[%s1432_s23] sm:$0xf]  ;;  %v780_v28 = vld [vmem:[%s1432_s23 + $0x4] sm:$0xf]  ;;  %v782_v29 = vld [vmem:[%s1432_s23 + $0x8] sm:$0xf]  ;;  %s1440_s21 = sphi %s1674_s21, %s772_s21   ;;  %s1436_s18 = sphi %s1672_s18, %s1765_s18   ;;  %s1432_s23 = sphi %s1764_s23, %s825_s23   ;;  %s1428_s15 = sphi %s1763_s15, %s826_s15  }
 0x158   : >> { %779 = vst [vmem:[%s1428_s15] sm:$0xf] %v778_v36  ;;  %781 = vst [vmem:[%s1428_s15 + $0x4] sm:$0xf] %v780_v28  ;;  %v784_v30 = vld [vmem:[%s1432_s23 + $0xc] sm:$0xf]  ;;  %s820_s22 = sadd.s32 1, %s1436_s18 }
 0x159   : >> { %783 = vst [vmem:[%s1428_s15 + $0x8] sm:$0xf] %v782_v29  ;;  %v786_v31 = vld [vmem:[%s1432_s23 + $0x10] sm:$0xf]  ;;  %v788_v32 = vld [vmem:[%s1432_s23 + $0x14] sm:$0xf]  ;;  %p821_p11 = scmp.ge.s32.totalorder %s820_s22, %s1663_s20 }
 0x15a   : >> { %785 = vst [vmem:[%s1428_s15 + $0xc] sm:$0xf] %v784_v30  ;;  %787 = vst [vmem:[%s1428_s15 + $0x10] sm:$0xf] %v786_v31  ;;  %v790_v33 = vld [vmem:[%s1432_s23 + $0x18] sm:$0xf] }
 0x15b   : >> { %789 = vst [vmem:[%s1428_s15 + $0x14] sm:$0xf] %v788_v32  ;;  %v792_v34 = vld [vmem:[%s1432_s23 + $0x1c] sm:$0xf]  ;;  %v794_v35 = vld [vmem:[%s1432_s23 + $0x20] sm:$0xf] }
 0x15c   : >> { %791 = vst [vmem:[%s1428_s15 + $0x18] sm:$0xf] %v790_v33  ;;  %793 = vst [vmem:[%s1428_s15 + $0x1c] sm:$0xf] %v792_v34  ;;  %v796_v37 = vld [vmem:[%s1432_s23 + $0x24] sm:$0xf] }
 0x15d   : >> { %795 = vst [vmem:[%s1428_s15 + $0x20] sm:$0xf] %v794_v35  ;;  %v798_v38 = vld [vmem:[%s1432_s23 + $0x28] sm:$0xf]  ;;  %v800_v39 = vld [vmem:[%s1432_s23 + $0x2c] sm:$0xf] }
 0x15e   : >> { %797 = vst [vmem:[%s1428_s15 + $0x24] sm:$0xf] %v796_v37  ;;  %799 = vst [vmem:[%s1428_s15 + $0x28] sm:$0xf] %v798_v38  ;;  %v802_v40 = vld [vmem:[%s1432_s23 + $0x30] sm:$0xf] }
 0x15f   : >> { %801 = vst [vmem:[%s1428_s15 + $0x2c] sm:$0xf] %v800_v39  ;;  %v804_v41 = vld [vmem:[%s1432_s23 + $0x34] sm:$0xf]  ;;  %v806_v42 = vld [vmem:[%s1432_s23 + $0x38] sm:$0xf] }
 0x160   : >> { %803 = vst [vmem:[%s1428_s15 + $0x30] sm:$0xf] %v802_v40  ;;  %805 = vst [vmem:[%s1428_s15 + $0x34] sm:$0xf] %v804_v41  ;;  %v808_v43 = vld [vmem:[%s1432_s23 + $0x3c] sm:$0xf] }
 0x161   : >> { %807 = vst [vmem:[%s1428_s15 + $0x38] sm:$0xf] %v806_v42  ;;  %v810_v44 = vld [vmem:[%s1432_s23 + $0x40] sm:$0xf]  ;;  %v812_v45 = vld [vmem:[%s1432_s23 + $0x44] sm:$0xf] }
 0x162   : >> { %809 = vst [vmem:[%s1428_s15 + $0x3c] sm:$0xf] %v808_v43  ;;  %811 = vst [vmem:[%s1428_s15 + $0x40] sm:$0xf] %v810_v44  ;;  %v814_v46 = vld [vmem:[%s1432_s23 + $0x48] sm:$0xf] }
 0x163   : >> { %813 = vst [vmem:[%s1428_s15 + $0x44] sm:$0xf] %v812_v45  ;;  %v816_v47 = vld [vmem:[%s1432_s23 + $0x4c] sm:$0xf]  ;;  %v818_v48 = vld [vmem:[%s1432_s23 + $0x50] sm:$0xf] }
 0x164   : >> { %815 = vst [vmem:[%s1428_s15 + $0x48] sm:$0xf] %v814_v46  ;;  %817 = vst [vmem:[%s1428_s15 + $0x4c] sm:$0xf] %v816_v47  ;;  %s1772_s22 = smov (%p821_p11, %s820_s22), 0  ;;  %s772_s21 = sadd.s32 1, %s1440_s21  }
 0x165   : >> { %819 = vst [vmem:[%s1428_s15 + $0x50] sm:$0xf] %v818_v48  ;;  %s823_s24 = smul.u32 84, %s1772_s22  ;;  %p771_p12 = scmp.ge.s32.totalorder %s772_s21, %s1663_s20 }
 0x166   : >> { %s1765_s18 = smov %s1772_s22 }
 0x167   : >> { %s825_s23 = scalar_lea.vmem %s1622_s12, %s823_s24 [#allocation2]   ;;  %s826_s15 = scalar_lea.vmem %s1657_s14, %s823_s24  }
 0x168   : > { %774 = sbr.rel (!%p771_p12) target bundleno = 343 (0x157), region = 118 }
 0x16f PF: > { %1368 = sdivrem.u32 %s1770_s7, 21 }
 0x170   : > { %s1118_s25 = smul.u32 84, %s1663_s20 }
 0x172   : > { %s831_s26 = scalar_lea.vmem %s1622_s12, %s1118_s25 [#allocation2]   ;;  %s833_s27 = scalar_lea.vmem %s1657_s14, %s1118_s25  }
 0x178   : > { %s1369_s28 = spop.drf %1368 }
 0x179   : > { %p1120_p13 = scmp.le.s32.totalorder %s1369_s28, 0 }
 0x17a   : > { %s1442_s29 = smov (!%p1120_p13), %s833_s27   ;;  %s1446_s30 = smov (!%p1120_p13), %s831_s26  }
 0x17b   : > { %1010 = sbr.rel (%p1120_p13) target bundleno = 396 (0x18c), region = 123  ;;  %s1450_s4 = smov (!%p1120_p13), 0  }
 0x17c   : > { %s1454_s5 = smov (!%p1120_p13), 0  }
 0x182 LB: >> { %v843_v49 = vld [vmem:[%s1448_s30] sm:$0xf]  ;;  %s845_s6 = sadd.s32 1, %s1452_s4  ;;  %s837_s5 = sadd.s32 1, %s1456_s5   ;;  %s1456_s5 = sphi %s1454_s5, %s837_s5   ;;  %s1452_s4 = sphi %s1450_s4, %s1451_s4   ;;  %s1448_s30 = sphi %s1446_s30, %s850_s30   ;;  %s1444_s29 = sphi %s1442_s29, %s851_s29  }
 0x183   : >> { %844 = vst [vmem:[%s1444_s29] sm:$0xf] %v843_v49  ;;  %p846_p0 = scmp.ge.s32.totalorder %s845_s6, %s1369_s28  ;;  %p836_p1 = scmp.ge.s32.totalorder %s837_s5, %s1369_s28 }
 0x185   : >> { %s1774_s6 = smov (%p846_p0, %s845_s6), 0  ;;  %839 = sbr.rel (!%p836_p1) target bundleno = 386 (0x182), region = 129 }
 0x186   : >> { %s1121_s8 = sshll.u32 %s1774_s6, 2  ;;  %s1451_s4 = smov %s1774_s6  }
 0x187   : >> { %s850_s30 = scalar_lea.vmem %s831_s26, %s1121_s8 [#allocation2]   ;;  %s851_s29 = scalar_lea.vmem %s833_s27, %s1121_s8  }
 0x18c PF: > { %p10_p2 = scmp.ge.s32.totalorder %s1494_s16, 4   ;;  %s1766_s12 = smov %s1420_s13 }
 0x18d   : > { %s1767_s13 = smov %s1502_s19  ;;  %s1768_s14 = smov %s1494_s16 }
 0x18e   :  { %12 = sbr.rel (!%p10_p2) target bundleno = 2 (0x2), region = 140 }

// kernel: vae_forward.16
= control target key start
LH: loop header
LB: loop body
LE: loop exit
PB: predicated region body
PF: predicated region fallthrough
CT: control target
= control target key end

     0   :  { %s2607_s12 = smov 0   ;;  %s2891_s0 = inlined_call_operand.vmem [shape: bf16[1406,96], index: 0, kind: input, shape index: {}]   ;;  %s2892_s1 = inlined_call_operand.vmem [shape: bf16[96,128], index: 1, kind: input, shape index: {}]   ;;  %s2893_s2 = inlined_call_operand.vmem [shape: f32[1,128], index: 2, kind: input, shape index: {}]   ;;  %s2894_s3 = inlined_call_operand.vmem [shape: bf16[1406,128], index: 3, kind: output, shape index: {}]  }
   0x1 LB: > { %s1816_s13 = sadd.s32 4294967295, %s2585_s12   ;;  %p1820_p0 = scmp.ge.s32.totalorder %s2585_s12, 1  ;;  %s2585_s12 = sphi %s2607_s12, %s13_s12  }
   0x2   : > { %p138_p1 = scmp.lt.s32.totalorder %s2585_s12, 3 }
   0x4   : > { %p139_p2 = pnand %p1820_p0, %p138_p1 }
   0x5   : > { %v2529_v0 = vld [vmem:[%s2892_s1] sm:$0xff] (!%p139_p2)   ;;  %s162_s16 = smul.u32 (!%p139_p2), 88, %s1816_s13  ;;  %v2530_v1 = vld [vmem:[%s2892_s1 + $0x8] sm:$0xff] (!%p139_p2)   ;;  %v2531_v2 = vld [vmem:[%s2892_s1 + $0x10] sm:$0xff] (!%p139_p2)   ;;  %vm538_vm0 = vcmask (!%p139_p2), 785408  }
   0x6   : > { %142 = sbr.rel (%p139_p2) target bundleno = 346 (0x15a), region = 32  ;;  %2409 = vmatprep.subr.bf16.mxu0 (!%p139_p2), %v2529_v0  ;;  %2509 = vmatprep.subr.bf16.mxu1 (!%p139_p2), %v2529_v0  ;;  %v2532_v3 = vld [vmem:[%s2892_s1 + $0x18] sm:$0xff] (!%p139_p2)   ;;  %v2533_v6 = vld [vmem:[%s2892_s1 + $0x20] sm:$0xff] (!%p139_p2)   ;;  %v2534_v7 = vld [vmem:[%s2892_s1 + $0x28] sm:$0xff] (!%p139_p2)  }
   0x7   : > { %p163_p3 = scmp.lt.s32.totalorder (!%p139_p2), %s162_s16, 175  ;;  %2410 = vmatpush3.bf16.msra.mxu0 (!%p139_p2), %v2529_v0  ;;  %2515 = vmatpush3.bf16.msra.mxu1 (!%p139_p2), %v2529_v0  ;;  %v2734_v50 = vld [vmem:[%s2893_s2] ss:$0 sm:$0xff] (!%p139_p2) }
   0x8   : > { %2411 = vmatprep.subr.bf16.mxu0 (!%p139_p2), %v2530_v1  ;;  %2510 = vmatprep.subr.bf16.mxu1 (!%p139_p2), %v2530_v1 }
   0xb   : > { %2412 = vmatpush3.bf16.msra.mxu0 (!%p139_p2), %v2530_v1  ;;  %2516 = vmatpush3.bf16.msra.mxu1 (!%p139_p2), %v2530_v1 }
   0xc   : > { %2413 = vmatprep.subr.bf16.mxu0 (!%p139_p2), %v2531_v2  ;;  %2511 = vmatprep.subr.bf16.mxu1 (!%p139_p2), %v2531_v2 }
   0xd   : > { %s2896_s16 = smov (!%p163_p3, %s162_s16), 175 }
   0xe   : > { %s1821_s21 = sshll.u32 %s2896_s16, 2 }
   0xf   : > { %s2635_s26 = scalar_lea.vmem %s2891_s0, %s1821_s21  ;;  %2414 = vmatpush3.bf16.msra.mxu0 %v2531_v2  ;;  %2517 = vmatpush3.bf16.msra.mxu1 %v2531_v2  ;;  %s2751_s8 = scalar_lea.vmem %s2894_s3, %s1821_s21 }
  0x10   : > { %v2535_v4 = vld [vmem:[%s2635_s26] sm:$0xff]   ;;  %v2536_v5 = vld [vmem:[%s2635_s26 + $0xb0] sm:$0xff]   ;;  %2415 = vmatprep.subr.bf16.mxu0 %v2532_v3  ;;  %2512 = vmatprep.subr.bf16.mxu1 %v2532_v3  ;;  %v2537_v8 = vld [vmem:[%s2635_s26 + $0x8] sm:$0xff]  }
  0x11   : > { %2421 = vmatprep.mubr.msk.bf16.mxu0 %vm538_vm0, %v2535_v4  ;;  %2465 = vmatprep.mubr.msk.bf16.mxu1 %vm538_vm0, %v2536_v5  ;;  %v2538_v9 = vld [vmem:[%s2635_s26 + $0xb8] sm:$0xff]   ;;  %v2539_v10 = vld [vmem:[%s2635_s26 + $0x10] sm:$0xff]   ;;  %v2540_v11 = vld [vmem:[%s2635_s26 + $0xc0] sm:$0xff]  }
  0x12   : > { %v2541_v12 = vld [vmem:[%s2635_s26 + $0x18] sm:$0xff]   ;;  %v2542_v13 = vld [vmem:[%s2635_s26 + $0xc8] sm:$0xff]   ;;  %v2543_v14 = vld [vmem:[%s2635_s26 + $0x20] sm:$0xff]  }
  0x13   : > { %2416 = vmatpush3.bf16.msra.mxu0 %v2532_v3  ;;  %2518 = vmatpush3.bf16.msra.mxu1 %v2532_v3  ;;  %v2544_v15 = vld [vmem:[%s2635_s26 + $0xd0] sm:$0xff]   ;;  %v2545_v16 = vld [vmem:[%s2635_s26 + $0x28] sm:$0xff]   ;;  %v2546_v17 = vld [vmem:[%s2635_s26 + $0xd8] sm:$0xff]  }
  0x14   : > { %2417 = vmatprep.subr.bf16.mxu0 %v2533_v6  ;;  %2513 = vmatprep.subr.bf16.mxu1 %v2533_v6  ;;  %v2547_v18 = vld [vmem:[%s2635_s26 + $0x30] sm:$0xff]   ;;  %v2548_v19 = vld [vmem:[%s2635_s26 + $0xe0] sm:$0xff]   ;;  %v2549_v20 = vld [vmem:[%s2635_s26 + $0x38] sm:$0xff]  }
  0x15   : > { %v2550_v21 = vld [vmem:[%s2635_s26 + $0xe8] sm:$0xff]   ;;  %v2551_v22 = vld [vmem:[%s2635_s26 + $0x40] sm:$0xff]   ;;  %v2552_v23 = vld [vmem:[%s2635_s26 + $0xf0] sm:$0xff]  }
  0x16   : > { %v2553_v24 = vld [vmem:[%s2635_s26 + $0x48] sm:$0xff]   ;;  %v2554_v25 = vld [vmem:[%s2635_s26 + $0xf8] sm:$0xff]   ;;  %v2555_v26 = vld [vmem:[%s2635_s26 + $0x50] sm:$0xff]  }
  0x17   : > { %2418 = vmatpush3.bf16.msra.mxu0 %v2533_v6  ;;  %2519 = vmatpush3.bf16.msra.mxu1 %v2533_v6  ;;  %v2556_v27 = vld [vmem:[%s2635_s26 + $0x100] sm:$0xff]   ;;  %v2557_v28 = vld [vmem:[%s2635_s26 + $0x58] sm:$0xff]   ;;  %v2558_v29 = vld [vmem:[%s2635_s26 + $0x108] sm:$0xff]  }
  0x18   : > { %2419 = vmatprep.subr.bf16.mxu0 %v2534_v7  ;;  %2514 = vmatprep.subr.bf16.mxu1 %v2534_v7  ;;  %v2559_v30 = vld [vmem:[%s2635_s26 + $0x60] sm:$0xff]   ;;  %v2560_v31 = vld [vmem:[%s2635_s26 + $0x110] sm:$0xff]   ;;  %v2561_v32 = vld [vmem:[%s2635_s26 + $0x68] sm:$0xff]  }
  0x19   : > { %v2562_v33 = vld [vmem:[%s2635_s26 + $0x118] sm:$0xff]   ;;  %v2563_v34 = vld [vmem:[%s2635_s26 + $0x70] sm:$0xff]   ;;  %v2564_v35 = vld [vmem:[%s2635_s26 + $0x120] sm:$0xff]  }
  0x1a   : > { %v2565_v36 = vld [vmem:[%s2635_s26 + $0x78] sm:$0xff]   ;;  %v2566_v37 = vld [vmem:[%s2635_s26 + $0x128] sm:$0xff]   ;;  %v2567_v38 = vld [vmem:[%s2635_s26 + $0x80] sm:$0xff]  }
  0x1b   : > { %2420 = vmatpush3.bf16.msra.mxu0 %v2534_v7  ;;  %2520 = vmatpush3.bf16.msra.mxu1 %v2534_v7  ;;  %v2568_v39 = vld [vmem:[%s2635_s26 + $0x130] sm:$0xff]   ;;  %v2569_v40 = vld [vmem:[%s2635_s26 + $0x88] sm:$0xff]   ;;  %v2570_v41 = vld [vmem:[%s2635_s26 + $0x138] sm:$0xff]  }
  0x1c   : > { %v2571_v42 = vld [vmem:[%s2635_s26 + $0x90] sm:$0xff]   ;;  %v2572_v43 = vld [vmem:[%s2635_s26 + $0x140] sm:$0xff]   ;;  %v2573_v44 = vld [vmem:[%s2635_s26 + $0x98] sm:$0xff]  }
  0x1d   : > { %v2574_v45 = vld [vmem:[%s2635_s26 + $0x148] sm:$0xff]   ;;  %v2575_v46 = vld [vmem:[%s2635_s26 + $0xa0] sm:$0xff]   ;;  %v2576_v47 = vld [vmem:[%s2635_s26 + $0x150] sm:$0xff]  }
  0x1e   : > { %2422 = vmatmul.mubr.msk.bf16.vlgmr.msra.gmra.mrb[0].mxu0 %vm538_vm0, %v2537_v8  ;;  %2466 = vmatmul.mubr.msk.bf16.vlgmr.msra.gmra.mrb[0].mxu1 %vm538_vm0, %v2538_v9  ;;  %v2577_v48 = vld [vmem:[%s2635_s26 + $0xa8] sm:$0xff]   ;;  %v2578_v49 = vld [vmem:[%s2635_s26 + $0x158] sm:$0xff]  }
  0x1f   : > { %2425 = vmatprep.mubr.msk.bf16.mxu0 %vm538_vm0, %v2539_v10  ;;  %2469 = vmatprep.mubr.msk.bf16.mxu1 %vm538_vm0, %v2540_v11 }
  0x26   : > { %2426 = vmatmul.mubr.msk.bf16.gmra.mrb[4].mxu0 %vm538_vm0, %v2541_v12  ;;  %2470 = vmatmul.mubr.msk.bf16.gmra.mrb[4].mxu1 %vm538_vm0, %v2542_v13 }
  0x27   : > { %2429 = vmatprep.mubr.msk.bf16.mxu0 %vm538_vm0, %v2543_v14  ;;  %2473 = vmatprep.mubr.msk.bf16.mxu1 %vm538_vm0, %v2544_v15 }
  0x2e   : > { %2430 = vmatmul.mubr.msk.bf16.gmra.mrb[8].mxu0 %vm538_vm0, %v2545_v16  ;;  %2474 = vmatmul.mubr.msk.bf16.gmra.mrb[8].mxu1 %vm538_vm0, %v2546_v17 }
  0x2f   : > { %2433 = vmatprep.mubr.msk.bf16.mxu0 %vm538_vm0, %v2547_v18  ;;  %2477 = vmatprep.mubr.msk.bf16.mxu1 %vm538_vm0, %v2548_v19 }
  0x36   : > { %2434 = vmatmul.mubr.msk.bf16.gmra.mrb[12].mxu0 %vm538_vm0, %v2549_v20  ;;  %2478 = vmatmul.mubr.msk.bf16.gmra.mrb[12].mxu1 %vm538_vm0, %v2550_v21 }
  0x37   : > { %2437 = vmatprep.mubr.msk.bf16.mxu0 %vm538_vm0, %v2551_v22  ;;  %2481 = vmatprep.mubr.msk.bf16.mxu1 %vm538_vm0, %v2552_v23 }
  0x3e   : > { %2438 = vmatmul.mubr.msk.bf16.gmra.mrb[16].mxu0 %vm538_vm0, %v2553_v24  ;;  %2482 = vmatmul.mubr.msk.bf16.gmra.mrb[16].mxu1 %vm538_vm0, %v2554_v25 }
  0x3f   : > { %2441 = vmatprep.mubr.msk.bf16.mxu0 %vm538_vm0, %v2555_v26  ;;  %2485 = vmatprep.mubr.msk.bf16.mxu1 %vm538_vm0, %v2556_v27 }
  0x46   : > { %2442 = vmatmul.mubr.msk.bf16.gmra.mrb[20].mxu0 %vm538_vm0, %v2557_v28  ;;  %2486 = vmatmul.mubr.msk.bf16.gmra.mrb[20].mxu1 %vm538_vm0, %v2558_v29 }
  0x47   : > { %2445 = vmatprep.mubr.msk.bf16.mxu0 %vm538_vm0, %v2559_v30  ;;  %2489 = vmatprep.mubr.msk.bf16.mxu1 %vm538_vm0, %v2560_v31 }
  0x4e   : > { %2446 = vmatmul.mubr.msk.bf16.gmra.mrb[24].mxu0 %vm538_vm0, %v2561_v32  ;;  %2490 = vmatmul.mubr.msk.bf16.gmra.mrb[24].mxu1 %vm538_vm0, %v2562_v33 }
  0x4f   : > { %2449 = vmatprep.mubr.msk.bf16.mxu0 %vm538_vm0, %v2563_v34  ;;  %2493 = vmatprep.mubr.msk.bf16.mxu1 %vm538_vm0, %v2564_v35 }
  0x56   : > { %2450 = vmatmul.mubr.msk.bf16.gmra.mrb[28].mxu0 %vm538_vm0, %v2565_v36  ;;  %2494 = vmatmul.mubr.msk.bf16.gmra.mrb[28].mxu1 %vm538_vm0, %v2566_v37 }
  0x57   : > { %2453 = vmatprep.mubr.msk.bf16.mxu0 %vm538_vm0, %v2567_v38  ;;  %2497 = vmatprep.mubr.msk.bf16.mxu1 %vm538_vm0, %v2568_v39 }
  0x5e   : > { %2454 = vmatmul.mubr.msk.bf16.gmra.mrb[32].mxu0 %vm538_vm0, %v2569_v40  ;;  %2498 = vmatmul.mubr.msk.bf16.gmra.mrb[32].mxu1 %vm538_vm0, %v2570_v41 }
  0x5f   : > { %2457 = vmatprep.mubr.msk.bf16.mxu0 %vm538_vm0, %v2571_v42  ;;  %2501 = vmatprep.mubr.msk.bf16.mxu1 %vm538_vm0, %v2572_v43 }
  0x66   : > { %2458 = vmatmul.mubr.msk.bf16.gmra.mrb[36].mxu0 %vm538_vm0, %v2573_v44  ;;  %2502 = vmatmul.mubr.msk.bf16.gmra.mrb[36].mxu1 %vm538_vm0, %v2574_v45 }
  0x67   : > { %2461 = vmatprep.mubr.msk.bf16.mxu0 %vm538_vm0, %v2575_v46  ;;  %2505 = vmatprep.mubr.msk.bf16.mxu1 %vm538_vm0, %v2576_v47 }
  0x6e   : > { %2462 = vmatmul.mubr.msk.bf16.gmra.mrb[40].mxu0 %vm538_vm0, %v2577_v48  ;;  %2506 = vmatmul.mubr.msk.bf16.gmra.mrb[40].mxu1 %vm538_vm0, %v2578_v49 }
  0xf1   : > { %v2423_v51 = vpop.f32.mrb[0].mxu0  ;;  %v2467_v52 = vpop.f32.mrb[0].mxu1 }
  0xf2   : > { %v714_v53 = vadd.f32 %v2423_v51, %v2734_v50  ;;  %v890_v54 = vadd.f32 %v2467_v52, %v2734_v50  ;;  %v705_v55 = vpop.f32.mrb[1].mxu0  ;;  %v881_v56 = vpop.f32.mrb[1].mxu1 }
  0xf3   : > { %v706_v57 = vadd.f32 %v2734_v50, %v705_v55  ;;  %v882_v58 = vadd.f32 %v2734_v50, %v881_v56  ;;  %v2424_v59 = vpop.f32.mrb[2].mxu0  ;;  %v2468_v60 = vpop.f32.mrb[2].mxu1 }
  0xf4   : > { %vm1058_vm1 = vcmp.ge.f32.partialorder %v714_v53, 0.0  ;;  %v1146_v61 = vmul.f32 0.2, %v714_v53  ;;  %vm1102_vm2 = vcmp.ge.f32.partialorder %v890_v54, 0.0  ;;  %v1190_v62 = vmul.f32 0.2, %v890_v54 }
  0xf5   : > { %vm1056_vm3 = vcmp.ge.f32.partialorder %v706_v57, 0.0  ;;  %v1144_v63 = vmul.f32 0.2, %v706_v57  ;;  %vm1100_vm4 = vcmp.ge.f32.partialorder %v882_v58, 0.0  ;;  %v1188_v0 = vmul.f32 0.2, %v882_v58 }
  0xf6   : > { %v717_v1 = vadd.f32 %v2424_v59, %v2734_v50  ;;  %v893_v2 = vadd.f32 %v2468_v60, %v2734_v50  ;;  %v708_v3 = vpop.f32.mrb[3].mxu0  ;;  %v884_v4 = vpop.f32.mrb[3].mxu1  ;;  %v1234_v5 = vsel %vm1058_vm1, %v714_v53, %v1146_v61  ;;  %v1278_v6 = vsel %vm1102_vm2, %v890_v54, %v1190_v62 }
  0xf7   : > { %v709_v7 = vadd.f32 %v2734_v50, %v708_v3  ;;  %v885_v8 = vadd.f32 %v2734_v50, %v884_v4  ;;  %v1232_v13 = vsel %vm1056_vm3, %v706_v57, %v1144_v63  ;;  %v1276_v14 = vsel %vm1100_vm4, %v882_v58, %v1188_v0 }
  0xf8   : > { %vm1059_vm5 = vcmp.ge.f32.partialorder %v717_v1, 0.0  ;;  %v1147_v9 = vmul.f32 0.2, %v717_v1  ;;  %vm1103_vm6 = vcmp.ge.f32.partialorder %v893_v2, 0.0  ;;  %v1191_v10 = vmul.f32 0.2, %v893_v2 }
  0xf9   : > { %vm1057_vm7 = vcmp.ge.f32.partialorder %v709_v7, 0.0  ;;  %v1145_v11 = vmul.f32 0.2, %v709_v7  ;;  %vm1101_vm8 = vcmp.ge.f32.partialorder %v885_v8, 0.0  ;;  %v1189_v12 = vmul.f32 0.2, %v885_v8 }
  0xfa   : > { %v1235_v15 = vsel %vm1059_vm5, %v717_v1, %v1147_v9  ;;  %v1279_v16 = vsel %vm1103_vm6, %v893_v2, %v1191_v10  ;;  %v2427_v17 = vpop.f32.mrb[4].mxu0  ;;  %v2471_v18 = vpop.f32.mrb[4].mxu1 }
  0xfb   : > { %v2104_v19 = vpack.c.bf16 %v1235_v15, %v1234_v5  ;;  %v2214_v20 = vpack.c.bf16 %v1279_v16, %v1278_v6  ;;  %v1233_v21 = vsel %vm1057_vm7, %v709_v7, %v1145_v11  ;;  %v1277_v22 = vsel %vm1101_vm8, %v885_v8, %v1189_v12  ;;  %v721_v23 = vpop.f32.mrb[5].mxu0  ;;  %v897_v24 = vpop.f32.mrb[5].mxu1 }
  0xfc   : > { %v2099_v25 = vpack.c.bf16 %v1233_v21, %v1232_v13  ;;  %v2209_v26 = vpack.c.bf16 %v1277_v22, %v1276_v14  ;;  %v730_v27 = vadd.f32 %v2427_v17, %v2734_v50  ;;  %v906_v28 = vadd.f32 %v2471_v18, %v2734_v50  ;;  %v2428_v29 = vpop.f32.mrb[6].mxu0  ;;  %v2472_v30 = vpop.f32.mrb[6].mxu1 }
  0xfd   : > { %2316 = vst [vmem:[%s2751_s8 + $0x8] sm:$0xff] %v2104_v19   ;;  %2338 = vst [vmem:[%s2751_s8 + $0xb8] sm:$0xff] %v2214_v20   ;;  %v722_v31 = vadd.f32 %v2734_v50, %v721_v23  ;;  %v898_v32 = vadd.f32 %v2734_v50, %v897_v24  ;;  %v733_v33 = vadd.f32 %v2428_v29, %v2734_v50  ;;  %v724_v35 = vpop.f32.mrb[7].mxu0  ;;  %v900_v36 = vpop.f32.mrb[7].mxu1 }
  0xfe   : > { %v909_v34 = vadd.f32 %v2472_v30, %v2734_v50  ;;  %2100 = vst [vmem:[%s2751_s8] sm:$0xff] %v2099_v25   ;;  %2337 = vst [vmem:[%s2751_s8 + $0xb0] sm:$0xff] %v2209_v26   ;;  %vm1062_vm9 = vcmp.ge.f32.partialorder %v730_v27, 0.0  ;;  %v1150_v37 = vmul.f32 0.2, %v730_v27  ;;  %vm1106_vm10 = vcmp.ge.f32.partialorder %v906_v28, 0.0 }
  0xff   : > { %v1194_v38 = vmul.f32 0.2, %v906_v28  ;;  %vm1060_vm11 = vcmp.ge.f32.partialorder %v722_v31, 0.0  ;;  %v1148_v39 = vmul.f32 0.2, %v722_v31  ;;  %vm1104_vm12 = vcmp.ge.f32.partialorder %v898_v32, 0.0 }
 0x100   : > { %v1192_v40 = vmul.f32 0.2, %v898_v32  ;;  %v1238_v41 = vsel %vm1062_vm9, %v730_v27, %v1150_v37  ;;  %vm1063_vm13 = vcmp.ge.f32.partialorder %v733_v33, 0.0  ;;  %v1151_v43 = vmul.f32 0.2, %v733_v33 }
 0x101   : > { %v1282_v42 = vsel %vm1106_vm10, %v906_v28, %v1194_v38  ;;  %v1236_v44 = vsel %vm1060_vm11, %v722_v31, %v1148_v39  ;;  %vm1107_vm14 = vcmp.ge.f32.partialorder %v909_v34, 0.0  ;;  %v1195_v46 = vmul.f32 0.2, %v909_v34  ;;  %v2431_v47 = vpop.f32.mrb[8].mxu0  ;;  %v2475_v48 = vpop.f32.mrb[8].mxu1 }
 0x102   : > { %v1280_v45 = vsel %vm1104_vm12, %v898_v32, %v1192_v40  ;;  %v1239_v49 = vsel %vm1063_vm13, %v733_v33, %v1151_v43  ;;  %v725_v51 = vadd.f32 %v2734_v50, %v724_v35  ;;  %v901_v52 = vadd.f32 %v2734_v50, %v900_v36  ;;  %v737_v54 = vpop.f32.mrb[9].mxu0  ;;  %v913_v55 = vpop.f32.mrb[9].mxu1 }
 0x103   : > { %v746_v53 = vadd.f32 %v2431_v47, %v2734_v50  ;;  %v2114_v56 = vpack.c.bf16 %v1239_v49, %v1238_v41  ;;  %v1283_v57 = vsel %vm1107_vm14, %v909_v34, %v1195_v46  ;;  %v922_v58 = vadd.f32 %v2475_v48, %v2734_v50  ;;  %v2432_v60 = vpop.f32.mrb[10].mxu0  ;;  %v2476_v61 = vpop.f32.mrb[10].mxu1 }
 0x104   : > { %v738_v59 = vadd.f32 %v2734_v50, %v737_v54  ;;  %v2224_v62 = vpack.c.bf16 %v1283_v57, %v1282_v42  ;;  %vm1061_vm15 = vcmp.ge.f32.partialorder %v725_v51, 0.0  ;;  %v1149_v63 = vmul.f32 0.2, %v725_v51  ;;  %v740_v0 = vpop.f32.mrb[11].mxu0  ;;  %v916_v1 = vpop.f32.mrb[11].mxu1 }
 0x105   : > { %vm1105_vm0 = vcmp.ge.f32.partialorder %v901_v52, 0.0  ;;  %2318 = vst [vmem:[%s2751_s8 + $0x18] sm:$0xff] %v2114_v56   ;;  %v1193_v2 = vmul.f32 0.2, %v901_v52  ;;  %vm1066_vm1 = vcmp.ge.f32.partialorder %v746_v53, 0.0  ;;  %vm1110_vm2 = vcmp.ge.f32.partialorder %v922_v58, 0.0 }
 0x106   : > { %v1154_v3 = vmul.f32 0.2, %v746_v53  ;;  %2340 = vst [vmem:[%s2751_s8 + $0xc8] sm:$0xff] %v2224_v62   ;;  %v1237_v4 = vsel %vm1061_vm15, %v725_v51, %v1149_v63  ;;  %v1198_v5 = vmul.f32 0.2, %v922_v58  ;;  %vm1064_vm3 = vcmp.ge.f32.partialorder %v738_v59, 0.0 }
 0x107   : > { %v1152_v6 = vmul.f32 0.2, %v738_v59  ;;  %v2109_v7 = vpack.c.bf16 %v1237_v4, %v1236_v44  ;;  %v1281_v8 = vsel %vm1105_vm0, %v901_v52, %v1193_v2  ;;  %v914_v10 = vadd.f32 %v2734_v50, %v913_v55 }
 0x108   : > { %v1242_v9 = vsel %vm1066_vm1, %v746_v53, %v1154_v3  ;;  %v2219_v11 = vpack.c.bf16 %v1281_v8, %v1280_v45  ;;  %v1286_v12 = vsel %vm1110_vm2, %v922_v58, %v1198_v5  ;;  %v749_v14 = vadd.f32 %v2432_v60, %v2734_v50 }
 0x109   : > { %v1240_v13 = vsel %vm1064_vm3, %v738_v59, %v1152_v6  ;;  %2317 = vst [vmem:[%s2751_s8 + $0x10] sm:$0xff] %v2109_v7   ;;  %vm1108_vm4 = vcmp.ge.f32.partialorder %v914_v10, 0.0  ;;  %v1196_v15 = vmul.f32 0.2, %v914_v10  ;;  %v925_v16 = vadd.f32 %v2476_v61, %v2734_v50  ;;  %v2435_v18 = vpop.f32.mrb[12].mxu0  ;;  %v2479_v19 = vpop.f32.mrb[12].mxu1 }
 0x10a   : > { %v741_v17 = vadd.f32 %v2734_v50, %v740_v0  ;;  %2339 = vst [vmem:[%s2751_s8 + $0xc0] sm:$0xff] %v2219_v11   ;;  %vm1067_vm5 = vcmp.ge.f32.partialorder %v749_v14, 0.0  ;;  %v1155_v20 = vmul.f32 0.2, %v749_v14  ;;  %v917_v21 = vadd.f32 %v2734_v50, %v916_v1  ;;  %v753_v23 = vpop.f32.mrb[13].mxu0  ;;  %v929_v24 = vpop.f32.mrb[13].mxu1 }
 0x10b   : > { %v762_v22 = vadd.f32 %v2435_v18, %v2734_v50  ;;  %v1284_v25 = vsel %vm1108_vm4, %v914_v10, %v1196_v15  ;;  %vm1111_vm6 = vcmp.ge.f32.partialorder %v925_v16, 0.0  ;;  %v1199_v26 = vmul.f32 0.2, %v925_v16  ;;  %v2436_v27 = vpop.f32.mrb[14].mxu0  ;;  %v2480_v28 = vpop.f32.mrb[14].mxu1 }
 0x10c   : > { %vm1065_vm7 = vcmp.ge.f32.partialorder %v741_v17, 0.0  ;;  %v1243_v29 = vsel %vm1067_vm5, %v749_v14, %v1155_v20  ;;  %v1153_v30 = vmul.f32 0.2, %v741_v17  ;;  %vm1109_vm8 = vcmp.ge.f32.partialorder %v917_v21, 0.0  ;;  %v756_v32 = vpop.f32.mrb[15].mxu0  ;;  %v932_v36 = vpop.f32.mrb[15].mxu1 }
 0x10d   : > { %v1197_v31 = vmul.f32 0.2, %v917_v21  ;;  %v2124_v33 = vpack.c.bf16 %v1243_v29, %v1242_v9  ;;  %v1287_v34 = vsel %vm1111_vm6, %v925_v16, %v1199_v26  ;;  %vm1070_vm9 = vcmp.ge.f32.partialorder %v762_v22, 0.0 }
 0x10e   : > { %v1158_v35 = vmul.f32 0.2, %v762_v22  ;;  %v2234_v37 = vpack.c.bf16 %v1287_v34, %v1286_v12  ;;  %v1241_v38 = vsel %vm1065_vm7, %v741_v17, %v1153_v30  ;;  %v938_v40 = vadd.f32 %v2479_v19, %v2734_v50 }
 0x10f   : > { %v1285_v39 = vsel %vm1109_vm8, %v917_v21, %v1197_v31  ;;  %2320 = vst [vmem:[%s2751_s8 + $0x28] sm:$0xff] %v2124_v33   ;;  %v2119_v41 = vpack.c.bf16 %v1241_v38, %v1240_v13  ;;  %v754_v44 = vadd.f32 %v2734_v50, %v753_v23  ;;  %v930_v46 = vadd.f32 %v2734_v50, %v929_v24 }
 0x110   : > { %v2229_v42 = vpack.c.bf16 %v1285_v39, %v1284_v25  ;;  %v1246_v43 = vsel %vm1070_vm9, %v762_v22, %v1158_v35  ;;  %2342 = vst [vmem:[%s2751_s8 + $0xd8] sm:$0xff] %v2234_v37   ;;  %vm1114_vm10 = vcmp.ge.f32.partialorder %v938_v40, 0.0  ;;  %v1202_v45 = vmul.f32 0.2, %v938_v40 }
 0x111   : > { %v765_v47 = vadd.f32 %v2436_v27, %v2734_v50  ;;  %2319 = vst [vmem:[%s2751_s8 + $0x20] sm:$0xff] %v2119_v41   ;;  %vm1068_vm11 = vcmp.ge.f32.partialorder %v754_v44, 0.0  ;;  %v1156_v48 = vmul.f32 0.2, %v754_v44  ;;  %v941_v49 = vadd.f32 %v2480_v28, %v2734_v50  ;;  %v2439_v52 = vpop.f32.mrb[16].mxu0  ;;  %v2483_v53 = vpop.f32.mrb[16].mxu1 }
 0x112   : > { %2341 = vst [vmem:[%s2751_s8 + $0xd0] sm:$0xff] %v2229_v42   ;;  %v757_v51 = vadd.f32 %v2734_v50, %v756_v32  ;;  %v1290_v54 = vsel %vm1114_vm10, %v938_v40, %v1202_v45  ;;  %vm1112_vm12 = vcmp.ge.f32.partialorder %v930_v46, 0.0  ;;  %v1200_v55 = vmul.f32 0.2, %v930_v46  ;;  %v769_v56 = vpop.f32.mrb[17].mxu0  ;;  %v945_v57 = vpop.f32.mrb[17].mxu1 }
 0x113   : > { %vm1071_vm13 = vcmp.ge.f32.partialorder %v765_v47, 0.0  ;;  %v1244_v58 = vsel %vm1068_vm11, %v754_v44, %v1156_v48  ;;  %v1159_v59 = vmul.f32 0.2, %v765_v47  ;;  %vm1115_vm14 = vcmp.ge.f32.partialorder %v941_v49, 0.0  ;;  %v2440_v61 = vpop.f32.mrb[18].mxu0  ;;  %v2484_v1 = vpop.f32.mrb[18].mxu1 }
 0x114   : > { %v1203_v60 = vmul.f32 0.2, %v941_v49  ;;  %v1288_v62 = vsel %vm1112_vm12, %v930_v46, %v1200_v55  ;;  %vm1069_vm15 = vcmp.ge.f32.partialorder %v757_v51, 0.0  ;;  %v1157_v63 = vmul.f32 0.2, %v757_v51  ;;  %v772_v2 = vpop.f32.mrb[19].mxu0 }
 0x115   : > { %v933_v0 = vadd.f32 %v2734_v50, %v932_v36  ;;  %v1247_v3 = vsel %vm1071_vm13, %v765_v47, %v1159_v59  ;;  %v778_v5 = vadd.f32 %v2439_v52, %v2734_v50  ;;  %v954_v6 = vadd.f32 %v2483_v53, %v2734_v50  ;;  %v948_v7 = vpop.f32.mrb[19].mxu1 }
 0x116   : > { %v1291_v4 = vsel %vm1115_vm14, %v941_v49, %v1203_v60  ;;  %v2134_v8 = vpack.c.bf16 %v1247_v3, %v1246_v43  ;;  %v1245_v10 = vsel %vm1069_vm15, %v757_v51, %v1157_v63  ;;  %v770_v15 = vadd.f32 %v2734_v50, %v769_v56 }
 0x117   : > { %v2244_v9 = vpack.c.bf16 %v1291_v4, %v1290_v54  ;;  %vm1113_vm0 = vcmp.ge.f32.partialorder %v933_v0, 0.0  ;;  %v2129_v11 = vpack.c.bf16 %v1245_v10, %v1244_v58  ;;  %v1201_v12 = vmul.f32 0.2, %v933_v0 }
 0x118   : > { %vm1074_vm1 = vcmp.ge.f32.partialorder %v778_v5, 0.0  ;;  %v1162_v13 = vmul.f32 0.2, %v778_v5  ;;  %2322 = vst [vmem:[%s2751_s8 + $0x38] sm:$0xff] %v2134_v8   ;;  %vm1118_vm2 = vcmp.ge.f32.partialorder %v954_v6, 0.0  ;;  %v946_v16 = vadd.f32 %v2734_v50, %v945_v57 }
 0x119   : > { %2344 = vst [vmem:[%s2751_s8 + $0xe8] sm:$0xff] %v2244_v9   ;;  %v1206_v14 = vmul.f32 0.2, %v954_v6  ;;  %2321 = vst [vmem:[%s2751_s8 + $0x30] sm:$0xff] %v2129_v11   ;;  %v1289_v17 = vsel %vm1113_vm0, %v933_v0, %v1201_v12  ;;  %v781_v19 = vadd.f32 %v2440_v61, %v2734_v50  ;;  %v957_v20 = vadd.f32 %v2484_v1, %v2734_v50  ;;  %v2443_v21 = vpop.f32.mrb[20].mxu0  ;;  %v2487_v22 = vpop.f32.mrb[20].mxu1 }
 0x11a   : > { %v1250_v18 = vsel %vm1074_vm1, %v778_v5, %v1162_v13  ;;  %v2239_v23 = vpack.c.bf16 %v1289_v17, %v1288_v62  ;;  %vm1072_vm3 = vcmp.ge.f32.partialorder %v770_v15, 0.0  ;;  %v1160_v25 = vmul.f32 0.2, %v770_v15  ;;  %v785_v26 = vpop.f32.mrb[21].mxu0  ;;  %v961_v27 = vpop.f32.mrb[21].mxu1 }
 0x11b   : > { %v1294_v24 = vsel %vm1118_vm2, %v954_v6, %v1206_v14  ;;  %vm1116_vm4 = vcmp.ge.f32.partialorder %v946_v16, 0.0  ;;  %v1204_v28 = vmul.f32 0.2, %v946_v16  ;;  %vm1075_vm5 = vcmp.ge.f32.partialorder %v781_v19, 0.0  ;;  %v2444_v33 = vpop.f32.mrb[22].mxu0  ;;  %v2488_v34 = vpop.f32.mrb[22].mxu1 }
 0x11c   : > { %v1163_v29 = vmul.f32 0.2, %v781_v19  ;;  %2343 = vst [vmem:[%s2751_s8 + $0xe0] sm:$0xff] %v2239_v23   ;;  %v1248_v30 = vsel %vm1072_vm3, %v770_v15, %v1160_v25  ;;  %vm1119_vm6 = vcmp.ge.f32.partialorder %v957_v20, 0.0  ;;  %v1207_v31 = vmul.f32 0.2, %v957_v20 }
 0x11d   : > { %v773_v32 = vadd.f32 %v2734_v50, %v772_v2  ;;  %v1292_v35 = vsel %vm1116_vm4, %v946_v16, %v1204_v28  ;;  %v949_v37 = vadd.f32 %v2734_v50, %v948_v7  ;;  %v794_v38 = vadd.f32 %v2443_v21, %v2734_v50  ;;  %v788_v39 = vpop.f32.mrb[23].mxu0  ;;  %v964_v40 = vpop.f32.mrb[23].mxu1 }
 0x11e   : > { %v1251_v36 = vsel %vm1075_vm5, %v781_v19, %v1163_v29  ;;  %v1295_v42 = vsel %vm1119_vm6, %v957_v20, %v1207_v31  ;;  %v970_v48 = vadd.f32 %v2487_v22, %v2734_v50  ;;  %v786_v49 = vadd.f32 %v2734_v50, %v785_v26 }
 0x11f   : > { %v2144_v41 = vpack.c.bf16 %v1251_v36, %v1250_v18  ;;  %vm1073_vm7 = vcmp.ge.f32.partialorder %v773_v32, 0.0  ;;  %v1161_v43 = vmul.f32 0.2, %v773_v32  ;;  %v2254_v44 = vpack.c.bf16 %v1295_v42, %v1294_v24 }
 0x120   : > { %vm1117_vm8 = vcmp.ge.f32.partialorder %v949_v37, 0.0  ;;  %v1205_v45 = vmul.f32 0.2, %v949_v37  ;;  %vm1078_vm9 = vcmp.ge.f32.partialorder %v794_v38, 0.0  ;;  %v1166_v47 = vmul.f32 0.2, %v794_v38 }
 0x121   : > { %2324 = vst [vmem:[%s2751_s8 + $0x48] sm:$0xff] %v2144_v41   ;;  %v1249_v46 = vsel %vm1073_vm7, %v773_v32, %v1161_v43  ;;  %2346 = vst [vmem:[%s2751_s8 + $0xf8] sm:$0xff] %v2254_v44   ;;  %v962_v53 = vadd.f32 %v2734_v50, %v961_v27  ;;  %v797_v54 = vadd.f32 %v2444_v33, %v2734_v50  ;;  %v2447_v55 = vpop.f32.mrb[24].mxu0  ;;  %v2491_v56 = vpop.f32.mrb[24].mxu1  ;;  %vm1122_vm10 = vcmp.ge.f32.partialorder %v970_v48, 0.0 }
 0x122   : > { %v2139_v51 = vpack.c.bf16 %v1249_v46, %v1248_v30  ;;  %v1293_v52 = vsel %vm1117_vm8, %v949_v37, %v1205_v45  ;;  %v1254_v58 = vsel %vm1078_vm9, %v794_v38, %v1166_v47  ;;  %v1210_v59 = vmul.f32 0.2, %v970_v48  ;;  %v801_v60 = vpop.f32.mrb[25].mxu0  ;;  %v977_v61 = vpop.f32.mrb[25].mxu1 }
 0x123   : > { %v2249_v57 = vpack.c.bf16 %v1293_v52, %v1292_v35  ;;  %vm1076_vm11 = vcmp.ge.f32.partialorder %v786_v49, 0.0  ;;  %v1164_v62 = vmul.f32 0.2, %v786_v49  ;;  %vm1120_vm12 = vcmp.ge.f32.partialorder %v962_v53, 0.0  ;;  %v2448_v3 = vpop.f32.mrb[26].mxu0  ;;  %v2492_v4 = vpop.f32.mrb[26].mxu1 }
 0x124   : > { %2323 = vst [vmem:[%s2751_s8 + $0x40] sm:$0xff] %v2139_v51   ;;  %v1208_v63 = vmul.f32 0.2, %v962_v53  ;;  %v1298_v0 = vsel %vm1122_vm10, %v970_v48, %v1210_v59  ;;  %vm1079_vm13 = vcmp.ge.f32.partialorder %v797_v54, 0.0  ;;  %v1167_v1 = vmul.f32 0.2, %v797_v54 }
 0x125   : > { %2345 = vst [vmem:[%s2751_s8 + $0xf0] sm:$0xff] %v2249_v57   ;;  %v973_v2 = vadd.f32 %v2488_v34, %v2734_v50  ;;  %v1252_v5 = vsel %vm1076_vm11, %v786_v49, %v1164_v62  ;;  %v789_v7 = vadd.f32 %v2734_v50, %v788_v39  ;;  %v965_v8 = vadd.f32 %v2734_v50, %v964_v40  ;;  %v804_v9 = vpop.f32.mrb[27].mxu0  ;;  %v980_v10 = vpop.f32.mrb[27].mxu1 }
 0x126   : > { %v1296_v6 = vsel %vm1120_vm12, %v962_v53, %v1208_v63  ;;  %v1255_v11 = vsel %vm1079_vm13, %v797_v54, %v1167_v1  ;;  %v810_v13 = vadd.f32 %v2447_v55, %v2734_v50  ;;  %v986_v21 = vadd.f32 %v2491_v56, %v2734_v50 }
 0x127   : > { %vm1123_vm14 = vcmp.ge.f32.partialorder %v973_v2, 0.0  ;;  %v1211_v12 = vmul.f32 0.2, %v973_v2  ;;  %v2154_v14 = vpack.c.bf16 %v1255_v11, %v1254_v58  ;;  %vm1077_vm15 = vcmp.ge.f32.partialorder %v789_v7, 0.0 }
 0x128   : > { %v1165_v15 = vmul.f32 0.2, %v789_v7  ;;  %vm1121_vm0 = vcmp.ge.f32.partialorder %v965_v8, 0.0  ;;  %v1209_v17 = vmul.f32 0.2, %v965_v8  ;;  %vm1082_vm1 = vcmp.ge.f32.partialorder %v810_v13, 0.0 }
 0x129   : > { %v1299_v16 = vsel %vm1123_vm14, %v973_v2, %v1211_v12  ;;  %v1170_v18 = vmul.f32 0.2, %v810_v13  ;;  %2326 = vst [vmem:[%s2751_s8 + $0x58] sm:$0xff] %v2154_v14   ;;  %v802_v22 = vadd.f32 %v2734_v50, %v801_v60  ;;  %v2451_v23 = vpop.f32.mrb[28].mxu0  ;;  %v2495_v24 = vpop.f32.mrb[28].mxu1  ;;  %v978_v28 = vadd.f32 %v2734_v50, %v977_v61 }
 0x12a   : > { %v2264_v19 = vpack.c.bf16 %v1299_v16, %v1298_v0  ;;  %v1253_v20 = vsel %vm1077_vm15, %v789_v7, %v1165_v15  ;;  %v1297_v26 = vsel %vm1121_vm0, %v965_v8, %v1209_v17  ;;  %v817_v29 = vpop.f32.mrb[29].mxu0  ;;  %v993_v30 = vpop.f32.mrb[29].mxu1  ;;  %vm1126_vm2 = vcmp.ge.f32.partialorder %v986_v21, 0.0 }
 0x12b   : > { %v2149_v25 = vpack.c.bf16 %v1253_v20, %v1252_v5  ;;  %v1258_v27 = vsel %vm1082_vm1, %v810_v13, %v1170_v18  ;;  %v2259_v31 = vpack.c.bf16 %v1297_v26, %v1296_v6  ;;  %v1214_v32 = vmul.f32 0.2, %v986_v21  ;;  %v2452_v33 = vpop.f32.mrb[30].mxu0  ;;  %v2496_v34 = vpop.f32.mrb[30].mxu1 }
 0x12c   : > { %2348 = vst [vmem:[%s2751_s8 + $0x108] sm:$0xff] %v2264_v19   ;;  %vm1080_vm3 = vcmp.ge.f32.partialorder %v802_v22, 0.0  ;;  %v1168_v35 = vmul.f32 0.2, %v802_v22  ;;  %vm1124_vm4 = vcmp.ge.f32.partialorder %v978_v28, 0.0  ;;  %v813_v37 = vadd.f32 %v2448_v3, %v2734_v50  ;;  %v820_v38 = vpop.f32.mrb[31].mxu0 }
 0x12d   : > { %2325 = vst [vmem:[%s2751_s8 + $0x50] sm:$0xff] %v2149_v25   ;;  %v1212_v36 = vmul.f32 0.2, %v978_v28  ;;  %2347 = vst [vmem:[%s2751_s8 + $0x100] sm:$0xff] %v2259_v31   ;;  %v1302_v39 = vsel %vm1126_vm2, %v986_v21, %v1214_v32  ;;  %v989_v40 = vadd.f32 %v2492_v4, %v2734_v50  ;;  %v805_v41 = vadd.f32 %v2734_v50, %v804_v9  ;;  %v996_v43 = vpop.f32.mrb[31].mxu1 }
 0x12e   : > { %v981_v42 = vadd.f32 %v2734_v50, %v980_v10  ;;  %v1256_v44 = vsel %vm1080_vm3, %v802_v22, %v1168_v35  ;;  %vm1083_vm5 = vcmp.ge.f32.partialorder %v813_v37, 0.0  ;;  %v1171_v46 = vmul.f32 0.2, %v813_v37 }
 0x12f   : > { %v1300_v45 = vsel %vm1124_vm4, %v978_v28, %v1212_v36  ;;  %vm1127_vm6 = vcmp.ge.f32.partialorder %v989_v40, 0.0  ;;  %v1215_v47 = vmul.f32 0.2, %v989_v40  ;;  %vm1081_vm7 = vcmp.ge.f32.partialorder %v805_v41, 0.0 }
 0x130   : > { %v1169_v48 = vmul.f32 0.2, %v805_v41  ;;  %v1259_v49 = vsel %vm1083_vm5, %v813_v37, %v1171_v46  ;;  %vm1125_vm8 = vcmp.ge.f32.partialorder %v981_v42, 0.0  ;;  %v1213_v51 = vmul.f32 0.2, %v981_v42 }
 0x131   : > { %v826_v52 = vadd.f32 %v2451_v23, %v2734_v50  ;;  %v2164_v53 = vpack.c.bf16 %v1259_v49, %v1258_v27  ;;  %v1303_v54 = vsel %vm1127_vm6, %v989_v40, %v1215_v47  ;;  %v1002_v56 = vadd.f32 %v2495_v24, %v2734_v50  ;;  %v2455_v57 = vpop.f32.mrb[32].mxu0  ;;  %v2499_v58 = vpop.f32.mrb[32].mxu1 }
 0x132   : > { %v1257_v55 = vsel %vm1081_vm7, %v805_v41, %v1169_v48  ;;  %v2274_v59 = vpack.c.bf16 %v1303_v54, %v1302_v39  ;;  %v1301_v61 = vsel %vm1125_vm8, %v981_v42, %v1213_v51  ;;  %v833_v62 = vpop.f32.mrb[33].mxu0  ;;  %v1009_v63 = vpop.f32.mrb[33].mxu1  ;;  %v818_v4 = vadd.f32 %v2734_v50, %v817_v29 }
 0x133   : > { %v2159_v60 = vpack.c.bf16 %v1257_v55, %v1256_v44  ;;  %vm1086_vm9 = vcmp.ge.f32.partialorder %v826_v52, 0.0  ;;  %2328 = vst [vmem:[%s2751_s8 + $0x68] sm:$0xff] %v2164_v53   ;;  %v2269_v0 = vpack.c.bf16 %v1301_v61, %v1300_v45  ;;  %v1174_v1 = vmul.f32 0.2, %v826_v52  ;;  %v2456_v3 = vpop.f32.mrb[34].mxu0  ;;  %v2500_v8 = vpop.f32.mrb[34].mxu1 }
 0x134   : > { %vm1130_vm10 = vcmp.ge.f32.partialorder %v1002_v56, 0.0  ;;  %v1218_v2 = vmul.f32 0.2, %v1002_v56  ;;  %2350 = vst [vmem:[%s2751_s8 + $0x118] sm:$0xff] %v2274_v59   ;;  %v994_v5 = vadd.f32 %v2734_v50, %v993_v30  ;;  %v829_v6 = vadd.f32 %v2452_v33, %v2734_v50  ;;  %v836_v9 = vpop.f32.mrb[35].mxu0  ;;  %v1012_v14 = vpop.f32.mrb[35].mxu1 }
 0x135   : > { %2327 = vst [vmem:[%s2751_s8 + $0x60] sm:$0xff] %v2159_v60   ;;  %v1005_v7 = vadd.f32 %v2496_v34, %v2734_v50  ;;  %2349 = vst [vmem:[%s2751_s8 + $0x110] sm:$0xff] %v2269_v0   ;;  %v1262_v10 = vsel %vm1086_vm9, %v826_v52, %v1174_v1  ;;  %v821_v12 = vadd.f32 %v2734_v50, %v820_v38  ;;  %vm1084_vm11 = vcmp.ge.f32.partialorder %v818_v4, 0.0 }
 0x136   : > { %v1306_v11 = vsel %vm1130_vm10, %v1002_v56, %v1218_v2  ;;  %v997_v13 = vadd.f32 %v2734_v50, %v996_v43  ;;  %v1172_v15 = vmul.f32 0.2, %v818_v4  ;;  %vm1128_vm12 = vcmp.ge.f32.partialorder %v994_v5, 0.0 }
 0x137   : > { %v1216_v16 = vmul.f32 0.2, %v994_v5  ;;  %vm1087_vm13 = vcmp.ge.f32.partialorder %v829_v6, 0.0  ;;  %v1175_v17 = vmul.f32 0.2, %v829_v6  ;;  %vm1131_vm14 = vcmp.ge.f32.partialorder %v1005_v7, 0.0 }
 0x138   : > { %v1219_v18 = vmul.f32 0.2, %v1005_v7  ;;  %v1260_v19 = vsel %vm1084_vm11, %v818_v4, %v1172_v15  ;;  %vm1085_vm15 = vcmp.ge.f32.partialorder %v821_v12, 0.0  ;;  %v1173_v21 = vmul.f32 0.2, %v821_v12 }
 0x139   : > { %v1304_v20 = vsel %vm1128_vm12, %v994_v5, %v1216_v16  ;;  %v1263_v22 = vsel %vm1087_vm13, %v829_v6, %v1175_v17  ;;  %vm1129_vm0 = vcmp.ge.f32.partialorder %v997_v13, 0.0  ;;  %v1217_v24 = vmul.f32 0.2, %v997_v13  ;;  %v2459_v25 = vpop.f32.mrb[36].mxu0  ;;  %v2503_v26 = vpop.f32.mrb[36].mxu1 }
 0x13a   : > { %v1307_v23 = vsel %vm1131_vm14, %v1005_v7, %v1219_v18  ;;  %v2174_v27 = vpack.c.bf16 %v1263_v22, %v1262_v10  ;;  %v1261_v29 = vsel %vm1085_vm15, %v821_v12, %v1173_v21  ;;  %v842_v30 = vadd.f32 %v2455_v57, %v2734_v50  ;;  %v2839_v31 = vpop.f32.mrb[37].mxu0  ;;  %v2841_v32 = vpop.f32.mrb[37].mxu1 }
 0x13b   : > { %v2284_v28 = vpack.c.bf16 %v1307_v23, %v1306_v11  ;;  %v2169_v33 = vpack.c.bf16 %v1261_v29, %v1260_v19  ;;  %v1305_v34 = vsel %vm1129_vm0, %v997_v13, %v1217_v24  ;;  %v1018_v35 = vadd.f32 %v2499_v58, %v2734_v50  ;;  %v2460_v37 = vpop.f32.mrb[38].mxu0  ;;  %v2504_v38 = vpop.f32.mrb[38].mxu1 }
 0x13c   : > { %v834_v36 = vadd.f32 %v2734_v50, %v833_v62  ;;  %2330 = vst [vmem:[%s2751_s8 + $0x78] sm:$0xff] %v2174_v27   ;;  %v2279_v39 = vpack.c.bf16 %v1305_v34, %v1304_v20  ;;  %vm1090_vm1 = vcmp.ge.f32.partialorder %v842_v30, 0.0  ;;  %v1178_v40 = vmul.f32 0.2, %v842_v30  ;;  %v852_v42 = vpop.f32.mrb[39].mxu0  ;;  %v1028_v43 = vpop.f32.mrb[39].mxu1 }
 0x13d   : > { %2352 = vst [vmem:[%s2751_s8 + $0x128] sm:$0xff] %v2284_v28   ;;  %v1010_v41 = vadd.f32 %v2734_v50, %v1009_v63  ;;  %2329 = vst [vmem:[%s2751_s8 + $0x70] sm:$0xff] %v2169_v33   ;;  %vm1134_vm2 = vcmp.ge.f32.partialorder %v1018_v35, 0.0  ;;  %v1222_v44 = vmul.f32 0.2, %v1018_v35  ;;  %v845_v48 = vadd.f32 %v2456_v3, %v2734_v50 }
 0x13e   : > { %vm1088_vm3 = vcmp.ge.f32.partialorder %v834_v36, 0.0  ;;  %v1176_v45 = vmul.f32 0.2, %v834_v36  ;;  %2351 = vst [vmem:[%s2751_s8 + $0x120] sm:$0xff] %v2279_v39   ;;  %v1266_v46 = vsel %vm1090_vm1, %v842_v30, %v1178_v40  ;;  %v1021_v52 = vadd.f32 %v2500_v8, %v2734_v50 }
 0x13f   : > { %vm1132_vm4 = vcmp.ge.f32.partialorder %v1010_v41, 0.0  ;;  %v1220_v47 = vmul.f32 0.2, %v1010_v41  ;;  %v1310_v49 = vsel %vm1134_vm2, %v1018_v35, %v1222_v44  ;;  %v837_v53 = vadd.f32 %v2734_v50, %v836_v9 }
 0x140   : > { %v1264_v51 = vsel %vm1088_vm3, %v834_v36, %v1176_v45  ;;  %vm1091_vm5 = vcmp.ge.f32.partialorder %v845_v48, 0.0  ;;  %v1179_v55 = vmul.f32 0.2, %v845_v48  ;;  %v1013_v56 = vadd.f32 %v2734_v50, %v1012_v14 }
 0x141   : > { %v1308_v54 = vsel %vm1132_vm4, %v1010_v41, %v1220_v47  ;;  %vm1135_vm6 = vcmp.ge.f32.partialorder %v1021_v52, 0.0  ;;  %v1223_v57 = vmul.f32 0.2, %v1021_v52  ;;  %vm1089_vm7 = vcmp.ge.f32.partialorder %v837_v53, 0.0  ;;  %v2463_v62 = vpop.f32.mrb[40].mxu0  ;;  %v2507_v63 = vpop.f32.mrb[40].mxu1 }
 0x142   : > { %v1177_v58 = vmul.f32 0.2, %v837_v53  ;;  %v1267_v59 = vsel %vm1091_vm5, %v845_v48, %v1179_v55  ;;  %vm1133_vm8 = vcmp.ge.f32.partialorder %v1013_v56, 0.0  ;;  %v1221_v60 = vmul.f32 0.2, %v1013_v56  ;;  %v865_v4 = vpop.f32.mrb[41].mxu0 }
 0x143   : > { %v858_v61 = vadd.f32 %v2459_v25, %v2734_v50  ;;  %v2184_v0 = vpack.c.bf16 %v1267_v59, %v1266_v46  ;;  %v1311_v1 = vsel %vm1135_vm6, %v1021_v52, %v1223_v57  ;;  %v1034_v3 = vadd.f32 %v2503_v26, %v2734_v50  ;;  %v1041_v5 = vpop.f32.mrb[41].mxu1  ;;  %v2464_v9 = vpop.f32.mrb[42].mxu0 }
 0x144   : > { %v1265_v2 = vsel %vm1089_vm7, %v837_v53, %v1177_v58  ;;  %v2294_v6 = vpack.c.bf16 %v1311_v1, %v1310_v49  ;;  %v1309_v8 = vsel %vm1133_vm8, %v1013_v56, %v1221_v60  ;;  %v2508_v10 = vpop.f32.mrb[42].mxu1  ;;  %v868_v14 = vpop.f32.mrb[43].mxu0  ;;  %v850_v15 = vadd.f32 %v2734_v50, %v2839_v31 }
 0x145   : > { %v2179_v7 = vpack.c.bf16 %v1265_v2, %v1264_v51  ;;  %vm1094_vm9 = vcmp.ge.f32.partialorder %v858_v61, 0.0  ;;  %2332 = vst [vmem:[%s2751_s8 + $0x88] sm:$0xff] %v2184_v0   ;;  %v2289_v11 = vpack.c.bf16 %v1309_v8, %v1308_v54  ;;  %v1182_v12 = vmul.f32 0.2, %v858_v61  ;;  %v1044_v19 = vpop.f32.mrb[43].mxu1 }
 0x146   : > { %vm1138_vm10 = vcmp.ge.f32.partialorder %v1034_v3, 0.0  ;;  %v1226_v13 = vmul.f32 0.2, %v1034_v3  ;;  %2354 = vst [vmem:[%s2751_s8 + $0x138] sm:$0xff] %v2294_v6   ;;  %v1026_v16 = vadd.f32 %v2734_v50, %v2841_v32  ;;  %v861_v17 = vadd.f32 %v2460_v37, %v2734_v50 }
 0x147   : > { %2331 = vst [vmem:[%s2751_s8 + $0x80] sm:$0xff] %v2179_v7   ;;  %v1037_v18 = vadd.f32 %v2504_v38, %v2734_v50  ;;  %2353 = vst [vmem:[%s2751_s8 + $0x130] sm:$0xff] %v2289_v11   ;;  %v1270_v20 = vsel %vm1094_vm9, %v858_v61, %v1182_v12  ;;  %v853_v22 = vadd.f32 %v2734_v50, %v852_v42  ;;  %vm1092_vm11 = vcmp.ge.f32.partialorder %v850_v15, 0.0 }
 0x148   : > { %v1314_v21 = vsel %vm1138_vm10, %v1034_v3, %v1226_v13  ;;  %v1029_v23 = vadd.f32 %v2734_v50, %v1028_v43  ;;  %v1180_v24 = vmul.f32 0.2, %v850_v15  ;;  %vm1136_vm12 = vcmp.ge.f32.partialorder %v1026_v16, 0.0 }
 0x149   : > { %v1224_v25 = vmul.f32 0.2, %v1026_v16  ;;  %vm1095_vm13 = vcmp.ge.f32.partialorder %v861_v17, 0.0  ;;  %v1183_v26 = vmul.f32 0.2, %v861_v17  ;;  %vm1139_vm14 = vcmp.ge.f32.partialorder %v1037_v18, 0.0 }
 0x14a   : > { %v1227_v27 = vmul.f32 0.2, %v1037_v18  ;;  %v1268_v28 = vsel %vm1092_vm11, %v850_v15, %v1180_v24  ;;  %vm1093_vm15 = vcmp.ge.f32.partialorder %v853_v22, 0.0  ;;  %v1181_v30 = vmul.f32 0.2, %v853_v22 }
 0x14b   : > { %v1312_v29 = vsel %vm1136_vm12, %v1026_v16, %v1224_v25  ;;  %v1271_v31 = vsel %vm1095_vm13, %v861_v17, %v1183_v26  ;;  %vm1137_vm0 = vcmp.ge.f32.partialorder %v1029_v23, 0.0  ;;  %v1225_v33 = vmul.f32 0.2, %v1029_v23 }
 0x14c   : > { %v1315_v32 = vsel %vm1139_vm14, %v1037_v18, %v1227_v27  ;;  %v2194_v34 = vpack.c.bf16 %v1271_v31, %v1270_v20  ;;  %v1269_v36 = vsel %vm1093_vm15, %v853_v22, %v1181_v30  ;;  %v874_v37 = vadd.f32 %v2463_v62, %v2734_v50 }
 0x14d   : > { %v2304_v35 = vpack.c.bf16 %v1315_v32, %v1314_v21  ;;  %v2189_v38 = vpack.c.bf16 %v1269_v36, %v1268_v28  ;;  %v1313_v39 = vsel %vm1137_vm0, %v1029_v23, %v1225_v33  ;;  %v1050_v40 = vadd.f32 %v2507_v63, %v2734_v50 }
 0x14e   : > { %v866_v41 = vadd.f32 %v2734_v50, %v865_v4  ;;  %2334 = vst [vmem:[%s2751_s8 + $0x98] sm:$0xff] %v2194_v34   ;;  %v2299_v42 = vpack.c.bf16 %v1313_v39, %v1312_v29  ;;  %vm1098_vm1 = vcmp.ge.f32.partialorder %v874_v37, 0.0  ;;  %v1186_v43 = vmul.f32 0.2, %v874_v37 }
 0x14f   : > { %2356 = vst [vmem:[%s2751_s8 + $0x148] sm:$0xff] %v2304_v35   ;;  %v1042_v44 = vadd.f32 %v2734_v50, %v1041_v5  ;;  %2333 = vst [vmem:[%s2751_s8 + $0x90] sm:$0xff] %v2189_v38   ;;  %vm1142_vm2 = vcmp.ge.f32.partialorder %v1050_v40, 0.0  ;;  %v1230_v45 = vmul.f32 0.2, %v1050_v40  ;;  %v877_v47 = vadd.f32 %v2464_v9, %v2734_v50 }
 0x150   : > { %2355 = vst [vmem:[%s2751_s8 + $0x140] sm:$0xff] %v2299_v42   ;;  %vm1096_vm3 = vcmp.ge.f32.partialorder %v866_v41, 0.0  ;;  %v1184_v46 = vmul.f32 0.2, %v866_v41  ;;  %v1274_v48 = vsel %vm1098_vm1, %v874_v37, %v1186_v43  ;;  %v1053_v49 = vadd.f32 %v2508_v10, %v2734_v50 }
 0x151   : > { %vm1140_vm4 = vcmp.ge.f32.partialorder %v1042_v44, 0.0  ;;  %v869_v51 = vadd.f32 %v2734_v50, %v868_v14  ;;  %v1228_v52 = vmul.f32 0.2, %v1042_v44  ;;  %vm1099_vm5 = vcmp.ge.f32.partialorder %v877_v47, 0.0 }
 0x152   : > { %v1187_v53 = vmul.f32 0.2, %v877_v47  ;;  %v1045_v54 = vadd.f32 %v2734_v50, %v1044_v19  ;;  %vm1143_vm6 = vcmp.ge.f32.partialorder %v1053_v49, 0.0  ;;  %v1231_v55 = vmul.f32 0.2, %v1053_v49 }
 0x153   : > { %vm1097_vm7 = vcmp.ge.f32.partialorder %v869_v51, 0.0  ;;  %v1185_v56 = vmul.f32 0.2, %v869_v51  ;;  %v1318_v57 = vsel %vm1142_vm2, %v1050_v40, %v1230_v45  ;;  %v1272_v60 = vsel %vm1096_vm3, %v866_v41, %v1184_v46 }
 0x154   : > { %v1275_v58 = vsel %vm1099_vm5, %v877_v47, %v1187_v53  ;;  %vm1141_vm8 = vcmp.ge.f32.partialorder %v1045_v54, 0.0  ;;  %v1229_v59 = vmul.f32 0.2, %v1045_v54  ;;  %v1319_v62 = vsel %vm1143_vm6, %v1053_v49, %v1231_v55 }
 0x155   : > { %v2204_v61 = vpack.c.bf16 %v1275_v58, %v1274_v48  ;;  %v1273_v63 = vsel %vm1097_vm7, %v869_v51, %v1185_v56  ;;  %v1316_v50 = vsel %vm1140_vm4, %v1042_v44, %v1228_v52  ;;  %v2314_v0 = vpack.c.bf16 %v1319_v62, %v1318_v57 }
 0x156   : > { %v2199_v1 = vpack.c.bf16 %v1273_v63, %v1272_v60  ;;  %v1317_v2 = vsel %vm1141_vm8, %v1045_v54, %v1229_v59 }
 0x157   : > { %2336 = vst [vmem:[%s2751_s8 + $0xa8] sm:$0xff] %v2204_v61   ;;  %v2309_v3 = vpack.c.bf16 %v1317_v2, %v1316_v50  ;;  %2358 = vst [vmem:[%s2751_s8 + $0x158] sm:$0xff] %v2314_v0  }
 0x158   : > { %2335 = vst [vmem:[%s2751_s8 + $0xa0] sm:$0xff] %v2199_v1  }
 0x159   : > { %2357 = vst [vmem:[%s2751_s8 + $0x150] sm:$0xff] %v2309_v3  }
 0x15a PF: > { %s13_s12 = sadd.s32 1, %s2585_s12  }
 0x15b   : > { %p10_p4 = scmp.ge.s32.totalorder %s13_s12, 4  }
 0x15d   :  { %12 = sbr.rel (!%p10_p4) target bundleno = 1 (0x1), region = 62 }

// kernel: vae_forward.17
= control target key start
LH: loop header
LB: loop body
LE: loop exit
PB: predicated region body
PF: predicated region fallthrough
CT: control target
= control target key end

     0   :  { %s4245_s12 = smov 0   ;;  %s4247_s13 = smov 0   ;;  %s5025_s0 = inlined_call_operand.vmem [shape: bf16[450,1056], index: 0, kind: input, shape index: {}]   ;;  %s5026_s1 = inlined_call_operand.vmem [shape: bf16[1056,128], index: 1, kind: input, shape index: {}]   ;;  %s5027_s2 = inlined_call_operand.vmem [shape: f32[1,128], index: 2, kind: input, shape index: {}]   ;;  %s5028_s3 = inlined_call_operand.vmem [shape: f32[450,128], index: 3, kind: output, shape index: {}]  }
   0x1   :  { %s4249_s14 = smov 0  }
   0x2 LB: > { %s4258_s15 = sadd.s32 4294967295, %s4189_s14   ;;  %s4260_s16 = sadd.s32 1, %s4189_s14   ;;  %s4189_s14 = sphi %s4249_s14, %s5037_s14   ;;  %s4185_s13 = sphi %s4247_s13, %s5036_s13   ;;  %s4181_s12 = sphi %s4245_s12, %s5035_s12  }
   0x3   : > { %s85_s17 = ssub.s32 %s4189_s14, %s4260_s16  ;;  %s88_s18 = sadd.s32 1, %s4185_s13 }
   0x4   : > { %p86_p0 = scmp.eq.s32.totalorder %s85_s17, 0  ;;  %p98_p1 = scmp.ne.s32.totalorder %s4185_s13, %s4181_s12 }
   0x5   : > { %p99_p2 = scmp.eq.s32.totalorder %s4258_s15, 1  ;;  %p2883_p3 = scmp.ge.s32.totalorder %s4189_s14, 1 }
   0x6   : > { %s4268_s19 = scalar_select %p86_p0, %s4185_s13, %s88_s18  }
   0x7   : > { %p4270_p4 = por %p99_p2, %p98_p1  ;;  %p149_p5 = scmp.lt.s32.totalorder %s4189_s14, 3 }
   0x9   : > { %p150_p6 = pnand %p2883_p3, %p149_p5 }
   0xa   : > { %v3758_v0 = vld [vmem:[%s5026_s1 + $0x40] sm:$0xff] (!%p150_p6)   ;;  %s4278_s23 = smul.u32 (!%p150_p6), 29, %s4258_s15  ;;  %v3760_v2 = vld [vmem:[%s5026_s1 + $0x48] sm:$0xff] (!%p150_p6)   ;;  %v3762_v4 = vld [vmem:[%s5026_s1 + $0x50] sm:$0xff] (!%p150_p6)   ;;  %vm4224_vm0 = vmmov (!%p150_p6), 0   ;;  %vm1542_vm1 = vcmask (!%p150_p6), 261120  }
   0xb   : > { %153 = sbr.rel (%p150_p6) target bundleno = 648 (0x288), region = 32  ;;  %v3759_v1 = vld [vmem:[%s5026_s1] sm:$0xff] (!%p150_p6)   ;;  %3144 = vmatprep.subr.bf16.mxu0 (!%p150_p6), %v3758_v0  ;;  %3649 = vmatprep.subr.bf16.mxu1 (!%p150_p6), %v3758_v0  ;;  %v3761_v3 = vld [vmem:[%s5026_s1 + $0x8] sm:$0xff] (!%p150_p6)   ;;  %v3763_v5 = vld [vmem:[%s5026_s1 + $0x10] sm:$0xff] (!%p150_p6)  }
   0xc   : > { %p184_p7 = scmp.lt.s32.totalorder (!%p150_p6), %s4278_s23, 56  ;;  %3145 = vmatpush3.bf16.msra.mxu0 (!%p150_p6), %v3759_v1  ;;  %3657 = vmatpush3.bf16.msra.mxu1 (!%p150_p6), %v3759_v1  ;;  %v3764_v6 = vld [vmem:[%s5026_s1 + $0x58] sm:$0xff] (!%p150_p6)   ;;  %v3766_v8 = vld [vmem:[%s5026_s1 + $0x60] sm:$0xff] (!%p150_p6)   ;;  %v3768_v10 = vld [vmem:[%s5026_s1 + $0x68] sm:$0xff] (!%p150_p6)  }
   0xd   : > { %3146 = vmatprep.subr.bf16.mxu0 (!%p150_p6), %v3760_v2  ;;  %3650 = vmatprep.subr.bf16.mxu1 (!%p150_p6), %v3760_v2  ;;  %v3765_v7 = vld [vmem:[%s5026_s1 + $0x18] sm:$0xff] (!%p150_p6)   ;;  %v3767_v9 = vld [vmem:[%s5026_s1 + $0x20] sm:$0xff] (!%p150_p6)   ;;  %v3769_v13 = vld [vmem:[%s5026_s1 + $0x28] sm:$0xff] (!%p150_p6)  }
   0xe   : > { %v3770_v14 = vld [vmem:[%s5026_s1 + $0x70] sm:$0xff] (!%p150_p6)   ;;  %v3772_v16 = vld [vmem:[%s5026_s1 + $0x78] sm:$0xff] (!%p150_p6)   ;;  %v3780_v18 = vld [vmem:[%s5026_s1 + $0x140] sm:$0xff] (!%p150_p6)  }
   0xf   : > { %v3771_v15 = vld [vmem:[%s5026_s1 + $0x30] sm:$0xff] (!%p150_p6)   ;;  %v3773_v17 = vld [vmem:[%s5026_s1 + $0x38] sm:$0xff] (!%p150_p6)   ;;  %v3782_v20 = vld [vmem:[%s5026_s1 + $0xc0] sm:$0xff] (!%p150_p6)  }
  0x10   : > { %3147 = vmatpush3.bf16.msra.mxu0 (!%p150_p6), %v3761_v3  ;;  %3658 = vmatpush3.bf16.msra.mxu1 (!%p150_p6), %v3761_v3  ;;  %v3781_v22 = vld [vmem:[%s5026_s1 + $0x100] sm:$0xff] (!%p150_p6)   ;;  %v3790_v26 = vld [vmem:[%s5026_s1 + $0x148] sm:$0xff] (!%p150_p6)   ;;  %v3800_v30 = vld [vmem:[%s5026_s1 + $0x150] sm:$0xff] (!%p150_p6)  }
  0x11   : > { %3148 = vmatprep.subr.bf16.mxu0 (!%p150_p6), %v3762_v4  ;;  %3651 = vmatprep.subr.bf16.mxu1 (!%p150_p6), %v3762_v4  ;;  %v3783_v23 = vld [vmem:[%s5026_s1 + $0x80] sm:$0xff] (!%p150_p6)   ;;  %v3791_v27 = vld [vmem:[%s5026_s1 + $0x108] sm:$0xff] (!%p150_p6)   ;;  %v3801_v33 = vld [vmem:[%s5026_s1 + $0xd0] sm:$0xff] (!%p150_p6)  }
  0x12   : > { %s185_s5 = scalar_select %p184_p7, %s4278_s23, 56  ;;  %v3792_v28 = vld [vmem:[%s5026_s1 + $0xc8] sm:$0xff]   ;;  %v3802_v36 = vld [vmem:[%s5026_s1 + $0x110] sm:$0xff]   ;;  %v3810_v38 = vld [vmem:[%s5026_s1 + $0xd8] sm:$0xff]  }
  0x13   : > { %v3793_v29 = vld [vmem:[%s5026_s1 + $0x88] sm:$0xff]   ;;  %v3803_v37 = vld [vmem:[%s5026_s1 + $0x90] sm:$0xff]   ;;  %v3811_v39 = vld [vmem:[%s5026_s1 + $0x158] sm:$0xff]   ;;  %s2559_s28 = ssub.s32 (%p4270_p4), 57, %s4278_s23  ;;  %s3143_s29 = smul.u32 (%p4270_p4), 232, %s4258_s15 }
  0x14   : > { %s3666_s10 = smul.u32 36, %s185_s5  ;;  %3149 = vmatpush3.bf16.msra.mxu0 %v3763_v5  ;;  %3659 = vmatpush3.bf16.msra.mxu1 %v3763_v5  ;;  %v3812_v40 = vld [vmem:[%s5026_s1 + $0x98] sm:$0xff]   ;;  %v3818_v45 = vld [vmem:[%s5026_s1 + $0xe0] sm:$0xff]   ;;  %v3824_v50 = vld [vmem:[%s5026_s1 + $0xe8] sm:$0xff]   ;;  %p2560_p8 = scmp.lt.s32.totalorder (%p4270_p4), %s2559_s28, 29 }
  0x15   : > { %3150 = vmatprep.subr.bf16.mxu0 %v3764_v6  ;;  %3652 = vmatprep.subr.bf16.mxu1 %v3764_v6  ;;  %v3813_v43 = vld [vmem:[%s5026_s1 + $0x118] sm:$0xff]   ;;  %v3821_v47 = vld [vmem:[%s5026_s1 + $0xa0] sm:$0xff]   ;;  %v3829_v55 = vld [vmem:[%s5026_s1 + $0xa8] sm:$0xff]   ;;  %s4907_s5 = scalar_lea.vmem (%p4270_p4), %s5028_s3, %s3143_s29  }
  0x16   : > { %s4309_s24 = scalar_lea.vmem %s5025_s0, %s3666_s10  ;;  %v3822_v48 = vld [vmem:[%s5026_s1 + $0x160] sm:$0xff]   ;;  %v3832_v56 = vld [vmem:[%s5026_s1 + $0x168] sm:$0xff]   ;;  %v3834_v58 = vld [vmem:[%s5026_s1 + $0xf0] sm:$0xff]  }
  0x17   : > { %v3776_v11 = vld [vmem:[%s4309_s24 + $0x4] ss:$36 sps:$4 sm:$0xff]   ;;  %v3784_v24 = vld [vmem:[%s4309_s24 + $0x4c] ss:$36 sps:$4 sm:$0xff]   ;;  %v3794_v34 = vld [vmem:[%s4309_s24 + $0x94] ss:$36 sps:$4 sm:$0xff]  }
  0x18   : > { %3151 = vmatpush3.bf16.msra.mxu0 %v3765_v7  ;;  %3660 = vmatpush3.bf16.msra.mxu1 %v3765_v7  ;;  %v3779_v12 = vld [vmem:[%s4309_s24 + $0x244] ss:$36 sps:$4 sm:$0xff]   ;;  %v3786_v25 = vld [vmem:[%s4309_s24 + $0x28c] ss:$36 sps:$4 sm:$0xff]   ;;  %v3796_v35 = vld [vmem:[%s4309_s24 + $0x2d4] ss:$36 sps:$4 sm:$0xff]  }
  0x19   : > { %3152 = vmatprep.subr.bf16.mxu0 %v3766_v8  ;;  %3653 = vmatprep.subr.bf16.mxu1 %v3766_v8  ;;  %v3774_v19 = vld [vmem:[%s4309_s24] ss:$36 sps:$4 sm:$0xff]   ;;  %v3788_v31 = vld [vmem:[%s4309_s24 + $0x48] ss:$36 sps:$4 sm:$0xff]   ;;  %v3798_v41 = vld [vmem:[%s4309_s24 + $0x90] ss:$36 sps:$4 sm:$0xff]  }
  0x1a   : > { %1620 = vmatprep.mubr.bf16.mxu0 %v3776_v11  ;;  %1684 = vmatprep.mubr.bf16.mxu1 %v3779_v12  ;;  %v3777_v21 = vld [vmem:[%s4309_s24 + $0x240] ss:$36 sps:$4 sm:$0xff]   ;;  %v3789_v32 = vld [vmem:[%s4309_s24 + $0x288] ss:$36 sps:$4 sm:$0xff]   ;;  %v3799_v42 = vld [vmem:[%s4309_s24 + $0x2d0] ss:$36 sps:$4 sm:$0xff]  }
  0x1b   : > { %v3804_v44 = vld [vmem:[%s4309_s24 + $0xdc] ss:$36 sps:$4 sm:$0xff]   ;;  %v3814_v53 = vld [vmem:[%s4309_s24 + $0x124] ss:$36 sps:$4 sm:$0xff]   ;;  %v3835_v59 = vld [vmem:[%s5026_s1 + $0xb0] sm:$0xff]   ;;  %v4223_v12 = vmov 0.0  }
  0x1c   : > { %3153 = vmatpush3.bf16.msra.mxu0 %v3767_v9  ;;  %3661 = vmatpush3.bf16.msra.mxu1 %v3767_v9  ;;  %v3806_v46 = vld [vmem:[%s4309_s24 + $0x31c] ss:$36 sps:$4 sm:$0xff]   ;;  %v3816_v54 = vld [vmem:[%s4309_s24 + $0x364] ss:$36 sps:$4 sm:$0xff]   ;;  %v3841_v62 = vld [vmem:[%s5026_s1 + $0x170] sm:$0xff]  }
  0x1d   : > { %3154 = vmatprep.subr.bf16.mxu0 %v3768_v10  ;;  %3654 = vmatprep.subr.bf16.mxu1 %v3768_v10  ;;  %v3823_v49 = vld [vmem:[%s5026_s1 + $0x120] sm:$0xff]   ;;  %v3808_v51 = vld [vmem:[%s4309_s24 + $0xd8] ss:$36 sps:$4 sm:$0xff]   ;;  %v3833_v57 = vld [vmem:[%s5026_s1 + $0x128] sm:$0xff]  }
  0x1e   : > { %v3809_v52 = vld [vmem:[%s4309_s24 + $0x318] ss:$36 sps:$4 sm:$0xff]   ;;  %v3819_v60 = vld [vmem:[%s4309_s24 + $0x120] ss:$36 sps:$4 sm:$0xff]   ;;  %v3825_v63 = vld [vmem:[%s4309_s24 + $0x16c] ss:$36 sps:$4 sm:$0xff]  }
  0x1f   : > { %v3820_v61 = vld [vmem:[%s4309_s24 + $0x360] ss:$36 sps:$4 sm:$0xff]   ;;  %v3827_v0 = vld [vmem:[%s4309_s24 + $0x3ac] ss:$36 sps:$4 sm:$0xff]   ;;  %v3843_v2 = vld [vmem:[%s5026_s1 + $0xf8] sm:$0xff]  }
  0x20   : > { %3155 = vmatpush3.bf16.msra.mxu0 %v3769_v13  ;;  %3662 = vmatpush3.bf16.msra.mxu1 %v3769_v13  ;;  %v3842_v1 = vld [vmem:[%s5026_s1 + $0x130] sm:$0xff]   ;;  %v3844_v3 = vld [vmem:[%s5026_s1 + $0xb8] sm:$0xff]   ;;  %v3830_v6 = vld [vmem:[%s4309_s24 + $0x168] ss:$36 sps:$4 sm:$0xff]  }
  0x21   : > { %3156 = vmatprep.subr.bf16.mxu0 %v3770_v14  ;;  %3655 = vmatprep.subr.bf16.mxu1 %v3770_v14  ;;  %v341_v4 = vld [vmem:[%s4309_s24 + $0x3f0] sm:$0xff]  ;;  %v3851_v5 = vld [vmem:[%s5026_s1 + $0x178] sm:$0xff]   ;;  %v3853_v8 = vld [vmem:[%s5026_s1 + $0x1c0] sm:$0xff]  }
  0x22   : > { %v3852_v7 = vld [vmem:[%s5026_s1 + $0x138] sm:$0xff]   ;;  %v3831_v9 = vld [vmem:[%s4309_s24 + $0x3a8] ss:$36 sps:$4 sm:$0xff]   ;;  %v3013_v11 = vcombine.high %v341_v4, %v341_v4  ;;  %v3839_v13 = vld [vmem:[%s4309_s24 + $0x1b0] ss:$36 sps:$4 sm:$0xff]   ;;  %v3012_v14 = vcombine.low %v341_v4, %v341_v4 }
  0x23   : > { %v3836_v10 = vld [vmem:[%s4309_s24 + $0x1b4] ss:$36 sps:$4 sm:$0xff]  }
  0x24   : > { %3157 = vmatpush3.bf16.msra.mxu0 %v3771_v15  ;;  %3663 = vmatpush3.bf16.msra.mxu1 %v3771_v15  ;;  %v3845_v15 = vld [vmem:[%s4309_s24 + $0x1fc] ss:$36 sps:$4 sm:$0xff]   ;;  %v3913_v4 = vld [vmem:[%s4309_s24 + $0x294] ss:$36 sps:$4 sm:$0xff]  }
  0x25   : > { %3158 = vmatprep.subr.bf16.mxu0 %v3772_v16  ;;  %3656 = vmatprep.subr.bf16.mxu1 %v3772_v16  ;;  %v3849_v16 = vld [vmem:[%s4309_s24 + $0xc] ss:$36 sps:$4 sm:$0xff]  }
  0x28   : > { %3159 = vmatpush3.bf16.msra.mxu0 %v3773_v17  ;;  %3664 = vmatpush3.bf16.msra.mxu1 %v3773_v17  ;;  %v3847_v17 = vld [vmem:[%s4309_s24 + $0x8] ss:$36 sps:$4 sm:$0xff]  }
  0x29   : > { %3356 = vmatprep.subr.bf16.mxu0 %v3780_v18  ;;  %3250 = vmatprep.subr.bf16.mxu1 %v3782_v20  ;;  %v3850_v18 = vld [vmem:[%s4309_s24 + $0x1f8] ss:$36 sps:$4 sm:$0xff]  }
  0x2a   : > { %v3855_v20 = vld [vmem:[%s4309_s24 + $0x54] ss:$36 sps:$4 sm:$0xff]  }
  0x2b   : > { %1621 = vmatmul.mubr.bf16.vlgmr.msra.gmra.mrb[0].mxu0 %v3774_v19  ;;  %1685 = vmatmul.mubr.bf16.vlgmr.msra.gmra.mrb[0].mxu1 %v3777_v21  ;;  %v3854_v19 = vld [vmem:[%s5026_s1 + $0x180] sm:$0xff]   ;;  %v3859_v21 = vld [vmem:[%s4309_s24 + $0x14] ss:$36 sps:$4 sm:$0xff]  }
  0x2c   : > { %3357 = vmatpush3.bf16.msra.mxu0 %v3781_v22  ;;  %3251 = vmatpush3.bf16.msra.mxu1 %v3783_v23  ;;  %v3868_v22 = vld [vmem:[%s5026_s1 + $0x1c8] sm:$0xff]  }
  0x2d   : > { %1628 = vmatprep.mubr.bf16.mxu0 %v3784_v24  ;;  %1692 = vmatprep.mubr.bf16.mxu1 %v3786_v25  ;;  %v3869_v23 = vld [vmem:[%s5026_s1 + $0x188] sm:$0xff]   ;;  %v3882_v24 = vld [vmem:[%s5026_s1 + $0x1d0] sm:$0xff]  }
  0x2e   : > { %3358 = vmatprep.subr.bf16.mxu0 %v3790_v26  ;;  %3252 = vmatprep.subr.bf16.mxu1 %v3792_v28  ;;  %v3857_v25 = vld [vmem:[%s4309_s24 + $0x10] ss:$36 sps:$4 sm:$0xff]   ;;  %v3862_v28 = vld [vmem:[%s4309_s24 + $0x9c] ss:$36 sps:$4 sm:$0xff]  }
  0x2f   : > { %v3860_v26 = vld [vmem:[%s4309_s24 + $0x50] ss:$36 sps:$4 sm:$0xff]  }
  0x30   : > { %3359 = vmatpush3.bf16.msra.mxu0 %v3791_v27  ;;  %3253 = vmatpush3.bf16.msra.mxu1 %v3793_v29  ;;  %v3861_v27 = vld [vmem:[%s5026_s1 + $0x200] sm:$0xff]  }
  0x31   : > { %3360 = vmatprep.subr.bf16.mxu0 %v3800_v30  ;;  %3254 = vmatprep.subr.bf16.mxu1 %v3801_v33  ;;  %v3864_v29 = vld [vmem:[%s4309_s24 + $0x5c] ss:$36 sps:$4 sm:$0xff]   ;;  %v3883_v30 = vld [vmem:[%s5026_s1 + $0x190] sm:$0xff]  }
  0x32   : > { %v3866_v33 = vld [vmem:[%s4309_s24 + $0x98] ss:$36 sps:$4 sm:$0xff]  }
  0x33   : > { %1629 = vmatmul.mubr.bf16.gmra.mrb[4].mxu0 %v3788_v31  ;;  %1693 = vmatmul.mubr.bf16.gmra.mrb[4].mxu1 %v3789_v32  ;;  %v3896_v31 = vld [vmem:[%s5026_s1 + $0x1d8] sm:$0xff]  }
  0x34   : > { %1636 = vmatprep.mubr.bf16.mxu0 %v3794_v34  ;;  %1700 = vmatprep.mubr.bf16.mxu1 %v3796_v35  ;;  %v3897_v32 = vld [vmem:[%s5026_s1 + $0x198] sm:$0xff]   ;;  %v3908_v34 = vld [vmem:[%s5026_s1 + $0x1e0] sm:$0xff]   ;;  %v3912_v35 = vld [vmem:[%s5026_s1 + $0x208] sm:$0xff]  }
  0x35   : > { %3361 = vmatpush3.bf16.msra.mxu0 %v3802_v36  ;;  %3255 = vmatpush3.bf16.msra.mxu1 %v3803_v37  ;;  %v3867_v36 = vld [vmem:[%s4309_s24 + $0x58] ss:$36 sps:$4 sm:$0xff]   ;;  %v3870_v37 = vld [vmem:[%s4309_s24 + $0xe4] ss:$36 sps:$4 sm:$0xff]  }
  0x36   : > { %3256 = vmatprep.subr.bf16.mxu1 %v3810_v38  ;;  %3362 = vmatprep.subr.bf16.mxu0 %v3811_v39  ;;  %v3872_v38 = vld [vmem:[%s4309_s24 + $0xa4] ss:$36 sps:$4 sm:$0xff]  }
  0x37   : > { %v3911_v39 = vld [vmem:[%s5026_s1 + $0x1a0] sm:$0xff]  }
  0x39   : > { %3257 = vmatpush3.bf16.msra.mxu1 %v3812_v40  ;;  %3363 = vmatpush3.bf16.msra.mxu0 %v3813_v43  ;;  %v3919_v40 = vld [vmem:[%s5026_s1 + $0x1e8] sm:$0xff]   ;;  %v3875_v43 = vld [vmem:[%s4309_s24 + $0xa0] ss:$36 sps:$4 sm:$0xff]  }
  0x3a   : > { %3258 = vmatprep.subr.bf16.mxu1 %v3818_v45  ;;  %3364 = vmatprep.subr.bf16.mxu0 %v3822_v48  ;;  %v3878_v45 = vld [vmem:[%s4309_s24 + $0xec] ss:$36 sps:$4 sm:$0xff]  }
  0x3b   : > { %1637 = vmatmul.mubr.bf16.gmra.mrb[8].mxu0 %v3798_v41  ;;  %1701 = vmatmul.mubr.bf16.gmra.mrb[8].mxu1 %v3799_v42  ;;  %v3924_v41 = vld [vmem:[%s5026_s1 + $0x1a8] sm:$0xff]   ;;  %v3874_v42 = vld [vmem:[%s4309_s24 + $0xe0] ss:$36 sps:$4 sm:$0xff]  }
  0x3c   : > { %1644 = vmatprep.mubr.bf16.mxu0 %v3804_v44  ;;  %1708 = vmatprep.mubr.bf16.mxu1 %v3806_v46  ;;  %v3876_v44 = vld [vmem:[%s4309_s24 + $0x12c] ss:$36 sps:$4 sm:$0xff]  }
  0x3d   : > { %3259 = vmatpush3.bf16.msra.mxu1 %v3821_v47  ;;  %3365 = vmatpush3.bf16.msra.mxu0 %v3823_v49  ;;  %v3933_v46 = vld [vmem:[%s5026_s1 + $0x1f0] sm:$0xff]   ;;  %v3880_v48 = vld [vmem:[%s4309_s24 + $0x128] ss:$36 sps:$4 sm:$0xff]  }
  0x3e   : > { %3260 = vmatprep.subr.bf16.mxu1 %v3824_v50  ;;  %3366 = vmatprep.subr.bf16.mxu0 %v3832_v56  ;;  %v3934_v47 = vld [vmem:[%s5026_s1 + $0x1b0] sm:$0xff]   ;;  %v3881_v49 = vld [vmem:[%s4309_s24 + $0xe8] ss:$36 sps:$4 sm:$0xff]   ;;  %v3890_v56 = vld [vmem:[%s4309_s24 + $0x1bc] ss:$36 sps:$4 sm:$0xff]  }
  0x3f   : > { %v3884_v50 = vld [vmem:[%s4309_s24 + $0x174] ss:$36 sps:$4 sm:$0xff]  }
  0x41   : > { %3261 = vmatpush3.bf16.msra.mxu1 %v3829_v55  ;;  %3367 = vmatpush3.bf16.msra.mxu0 %v3833_v57  ;;  %v3889_v55 = vld [vmem:[%s4309_s24 + $0x130] ss:$36 sps:$4 sm:$0xff]   ;;  %v3892_v57 = vld [vmem:[%s4309_s24 + $0x17c] ss:$36 sps:$4 sm:$0xff]  }
  0x42   : > { %3262 = vmatprep.subr.bf16.mxu1 %v3834_v58  ;;  %3368 = vmatprep.subr.bf16.mxu0 %v3841_v62  ;;  %v3894_v58 = vld [vmem:[%s4309_s24 + $0x1b8] ss:$36 sps:$4 sm:$0xff]   ;;  %v3902_v62 = vld [vmem:[%s4309_s24 + $0x200] ss:$36 sps:$4 sm:$0xff]  }
  0x43   : > { %1645 = vmatmul.mubr.bf16.gmra.mrb[12].mxu0 %v3808_v51  ;;  %1709 = vmatmul.mubr.bf16.gmra.mrb[12].mxu1 %v3809_v52  ;;  %v3886_v51 = vld [vmem:[%s4309_s24 + $0x134] ss:$36 sps:$4 sm:$0xff]  }
  0x44   : > { %1652 = vmatprep.mubr.bf16.mxu0 %v3814_v53  ;;  %1716 = vmatprep.mubr.bf16.mxu1 %v3816_v54  ;;  %v3947_v52 = vld [vmem:[%s5026_s1 + $0x1f8] sm:$0xff]   ;;  %v3888_v54 = vld [vmem:[%s4309_s24 + $0x170] ss:$36 sps:$4 sm:$0xff]  }
  0x45   : > { %3263 = vmatpush3.bf16.msra.mxu1 %v3835_v59  ;;  %3369 = vmatpush3.bf16.msra.mxu0 %v3842_v1  ;;  %v3948_v53 = vld [vmem:[%s5026_s1 + $0x1b8] sm:$0xff]   ;;  %v3906_v1 = vld [vmem:[%s4309_s24 + $0x20c] ss:$36 sps:$4 sm:$0xff]  }
  0x46   : > { %3264 = vmatprep.subr.bf16.mxu1 %v3843_v2  ;;  %3370 = vmatprep.subr.bf16.mxu0 %v3851_v5  ;;  %v3895_v59 = vld [vmem:[%s4309_s24 + $0x178] ss:$36 sps:$4 sm:$0xff]   ;;  %v3909_v2 = vld [vmem:[%s4309_s24 + $0x248] ss:$36 sps:$4 sm:$0xff]  }
  0x47   : > { %v3915_v5 = vld [vmem:[%s4309_s24 + $0x254] ss:$36 sps:$4 sm:$0xff]  }
  0x49   : > { %3265 = vmatpush3.bf16.msra.mxu1 %v3844_v3  ;;  %3371 = vmatpush3.bf16.msra.mxu0 %v3852_v7  ;;  %v3910_v3 = vld [vmem:[%s4309_s24 + $0x208] ss:$36 sps:$4 sm:$0xff]   ;;  %v3918_v7 = vld [vmem:[%s4309_s24 + $0x250] ss:$36 sps:$4 sm:$0xff]  }
  0x4a   : > { %3462 = vmatprep.subr.bf16.mxu1 %v3853_v8  ;;  %3585 = vmatprep.subr.bf16.mxu0 %v4223_v12  ;;  %v3920_v8 = vld [vmem:[%s4309_s24 + $0x2dc] ss:$36 sps:$4 sm:$0xff]  }
  0x4b   : > { %1653 = vmatmul.mubr.bf16.gmra.mrb[16].mxu0 %v3819_v60  ;;  %1717 = vmatmul.mubr.bf16.gmra.mrb[16].mxu1 %v3820_v61  ;;  %v3898_v60 = vld [vmem:[%s4309_s24 + $0x204] ss:$36 sps:$4 sm:$0xff]  }
  0x4c   : > { %1660 = vmatprep.mubr.bf16.mxu0 %v3825_v63  ;;  %1724 = vmatprep.mubr.bf16.mxu1 %v3827_v0  ;;  %v3900_v61 = vld [vmem:[%s4309_s24 + $0x1c4] ss:$36 sps:$4 sm:$0xff]   ;;  %v3904_v0 = vld [vmem:[%s4309_s24 + $0x24c] ss:$36 sps:$4 sm:$0xff]  }
  0x4d   : > { %v3903_v63 = vld [vmem:[%s4309_s24 + $0x1c0] ss:$36 sps:$4 sm:$0xff]  }
  0x53   : > { %1661 = vmatmul.mubr.bf16.gmra.mrb[20].mxu0 %v3830_v6  ;;  %1725 = vmatmul.mubr.bf16.gmra.mrb[20].mxu1 %v3831_v9  ;;  %v3917_v6 = vld [vmem:[%s4309_s24 + $0x290] ss:$36 sps:$4 sm:$0xff]   ;;  %v3922_v9 = vld [vmem:[%s4309_s24 + $0x29c] ss:$36 sps:$4 sm:$0xff]  }
  0x54   : > { %1668 = vmatprep.mubr.bf16.mxu0 %v3836_v10  ;;  %1732 = vmatprep.mubr.bf16.mxu1 %v3013_v11  ;;  %v3925_v10 = vld [vmem:[%s4309_s24 + $0x2d8] ss:$36 sps:$4 sm:$0xff]  }
  0x55   : > { %v3926_v11 = vld [vmem:[%s4309_s24 + $0x298] ss:$36 sps:$4 sm:$0xff]  }
  0x5b   : > { %1669 = vmatmul.mubr.bf16.gmra.mrb[24].mxu0 %v3839_v13  ;;  %1733 = vmatmul.mubr.bf16.gmra.mrb[24].mxu1 %v3012_v14  ;;  %v3927_v13 = vld [vmem:[%s4309_s24 + $0x324] ss:$36 sps:$4 sm:$0xff]  }
  0x5c   : > { %1676 = vmatprep.mubr.bf16.mxu0 %v3845_v15  ;;  %1772 = vmatprep.mubr.bf16.mxu1 %v3849_v16  ;;  %v3929_v14 = vld [vmem:[%s4309_s24 + $0x2e4] ss:$36 sps:$4 sm:$0xff]  }
  0x5d   : > { %v3931_v15 = vld [vmem:[%s4309_s24 + $0x320] ss:$36 sps:$4 sm:$0xff]  }
  0x5e   : > { %v3932_v16 = vld [vmem:[%s4309_s24 + $0x2e0] ss:$36 sps:$4 sm:$0xff]  }
  0x63   : > { %1677 = vmatmul.mubr.bf16.gmra.mrb[28].mxu0 %v3850_v18  ;;  %1773 = vmatmul.mubr.bf16.vlgmr.msra.gmra.mrb[28].mxu1 %v3847_v17  ;;  %v3935_v17 = vld [vmem:[%s4309_s24 + $0x36c] ss:$36 sps:$4 sm:$0xff]  }
  0x64   : > { %3463 = vmatpush3.bf16.msra.mxu1 %v3854_v19  ;;  %1780 = vmatprep.mubr.bf16.mxu1 %v3855_v20  ;;  %v3937_v18 = vld [vmem:[%s4309_s24 + $0x32c] ss:$36 sps:$4 sm:$0xff]  }
  0x65   : > { %1924 = vmatprep.mubr.bf16.mxu0 %v3859_v21  ;;  %3464 = vmatprep.subr.bf16.mxu1 %v3868_v22  ;;  %v3939_v19 = vld [vmem:[%s4309_s24 + $0x368] ss:$36 sps:$4 sm:$0xff]   ;;  %v3941_v21 = vld [vmem:[%s4309_s24 + $0x3b4] ss:$36 sps:$4 sm:$0xff]  }
  0x66   : > { %v3940_v20 = vld [vmem:[%s4309_s24 + $0x328] ss:$36 sps:$4 sm:$0xff]   ;;  %v3943_v22 = vld [vmem:[%s4309_s24 + $0x374] ss:$36 sps:$4 sm:$0xff]  }
  0x68   : > { %3465 = vmatpush3.bf16.msra.mxu1 %v3869_v23  ;;  %v342_v23 = vld [vmem:[%s4309_s24 + $0x3f8] sm:$0xff] }
  0x69   : > { %3466 = vmatprep.subr.bf16.mxu1 %v3882_v24  ;;  %v3945_v24 = vld [vmem:[%s4309_s24 + $0x3b0] ss:$36 sps:$4 sm:$0xff]  }
  0x6b   : > { %1781 = vmatmul.mubr.bf16.gmra.mrb[32].mxu1 %v3860_v26  ;;  %1925 = vmatmul.mubr.bf16.vlgmr.msra.gmra.mrb[32].mxu0 %v3857_v25  ;;  %v3946_v25 = vld [vmem:[%s4309_s24 + $0x370] ss:$36 sps:$4 sm:$0xff]   ;;  %v3015_v26 = vcombine.high %v342_v23, %v342_v23 }
  0x6c   : > { %3586 = vmatpush3.bf16.msra.mxu0 %v3861_v27  ;;  %1788 = vmatprep.mubr.bf16.mxu1 %v3862_v28  ;;  %v3950_v27 = vld [vmem:[%s4309_s24 + $0x3bc] ss:$36 sps:$4 sm:$0xff]  }
  0x6d   : > { %1932 = vmatprep.mubr.bf16.mxu0 %v3864_v29  ;;  %3467 = vmatpush3.bf16.msra.mxu1 %v3883_v30  ;;  %v343_v28 = vld [vmem:[%s4309_s24 + $0x400] sm:$0xff]  ;;  %v3014_v29 = vcombine.low %v342_v23, %v342_v23  ;;  %v3953_v30 = vld [vmem:[%s4309_s24 + $0x3b8] ss:$36 sps:$4 sm:$0xff]  }
  0x6e   : > { %3468 = vmatprep.subr.bf16.mxu1 %v3896_v31  ;;  %3587 = vmatprep.subr.bf16.mxu0 %v4223_v12  ;;  %v3017_v31 = vcombine.high %v343_v28, %v343_v28 }
  0x70   : > { %3588 = vmatpush3.bf16.msra.mxu0 %v3912_v35  ;;  %v3959_v35 = vld [vmem:[%s4309_s24 + $0x64] ss:$36 sps:$4 sm:$0xff]  }
  0x71   : > { %3469 = vmatpush3.bf16.msra.mxu1 %v3897_v32  ;;  %v3957_v32 = vld [vmem:[%s4309_s24 + $0x1c] ss:$36 sps:$4 sm:$0xff]  }
  0x72   : > { %3470 = vmatprep.subr.bf16.mxu1 %v3908_v34  ;;  %v3016_v34 = vcombine.low %v343_v28, %v343_v28 }
  0x73   : > { %1789 = vmatmul.mubr.bf16.gmra.mrb[36].mxu1 %v3866_v33  ;;  %1933 = vmatmul.mubr.bf16.gmra.mrb[36].mxu0 %v3867_v36  ;;  %v3955_v33 = vld [vmem:[%s4309_s24 + $0x18] ss:$36 sps:$4 sm:$0xff]   ;;  %v3961_v36 = vld [vmem:[%s4309_s24 + $0x60] ss:$36 sps:$4 sm:$0xff]  }
  0x74   : > { %1796 = vmatprep.mubr.bf16.mxu1 %v3870_v37  ;;  %1940 = vmatprep.mubr.bf16.mxu0 %v3872_v38  ;;  %v3962_v37 = vld [vmem:[%s4309_s24 + $0x20] ss:$36 sps:$4 sm:$0xff]   ;;  %v3963_v38 = vld [vmem:[%s4309_s24 + $0xac] ss:$36 sps:$4 sm:$0xff]  }
  0x75   : > { %3471 = vmatpush3.bf16.msra.mxu1 %v3911_v39  ;;  %v3965_v39 = vld [vmem:[%s4309_s24 + $0xa8] ss:$36 sps:$4 sm:$0xff]  }
  0x76   : > { %3472 = vmatprep.subr.bf16.mxu1 %v3919_v40  ;;  %v3966_v40 = vld [vmem:[%s4309_s24 + $0x68] ss:$36 sps:$4 sm:$0xff]  }
  0x79   : > { %3473 = vmatpush3.bf16.msra.mxu1 %v3924_v41  ;;  %v3967_v41 = vld [vmem:[%s4309_s24 + $0xf4] ss:$36 sps:$4 sm:$0xff]  }
  0x7a   : > { %3474 = vmatprep.subr.bf16.mxu1 %v3933_v46  ;;  %v3974_v46 = vld [vmem:[%s4309_s24 + $0xf8] ss:$36 sps:$4 sm:$0xff]  }
  0x7b   : > { %1797 = vmatmul.mubr.bf16.gmra.mrb[40].mxu1 %v3874_v42  ;;  %1941 = vmatmul.mubr.bf16.gmra.mrb[40].mxu0 %v3875_v43  ;;  %v3969_v42 = vld [vmem:[%s4309_s24 + $0xf0] ss:$36 sps:$4 sm:$0xff]  }
  0x7c   : > { %1804 = vmatprep.mubr.bf16.mxu1 %v3876_v44  ;;  %1948 = vmatprep.mubr.bf16.mxu0 %v3878_v45  ;;  %v3970_v43 = vld [vmem:[%s4309_s24 + $0xb0] ss:$36 sps:$4 sm:$0xff]   ;;  %v3971_v44 = vld [vmem:[%s4309_s24 + $0x13c] ss:$36 sps:$4 sm:$0xff]  }
  0x7d   : > { %3475 = vmatpush3.bf16.msra.mxu1 %v3934_v47  ;;  %v3973_v45 = vld [vmem:[%s4309_s24 + $0x138] ss:$36 sps:$4 sm:$0xff]   ;;  %v3975_v47 = vld [vmem:[%s4309_s24 + $0x184] ss:$36 sps:$4 sm:$0xff]  }
  0x7e   : > { %3476 = vmatprep.subr.bf16.mxu1 %v3947_v52  ;;  %v3977_v52 = vld [vmem:[%s4309_s24 + $0x180] ss:$36 sps:$4 sm:$0xff]  }
  0x81   : > { %3477 = vmatpush3.bf16.msra.mxu1 %v3948_v53  ;;  %v3978_v53 = vld [vmem:[%s4309_s24 + $0x140] ss:$36 sps:$4 sm:$0xff]  }
  0x83   : > { %1805 = vmatmul.mubr.bf16.gmra.mrb[44].mxu1 %v3880_v48  ;;  %1949 = vmatmul.mubr.bf16.gmra.mrb[44].mxu0 %v3881_v49 }
  0x84   : > { %1812 = vmatprep.mubr.bf16.mxu1 %v3884_v50  ;;  %1956 = vmatprep.mubr.bf16.mxu0 %v3886_v51 }
  0x8b   : > { %1813 = vmatmul.mubr.bf16.gmra.mrb[48].mxu1 %v3888_v54  ;;  %1957 = vmatmul.mubr.bf16.gmra.mrb[48].mxu0 %v3889_v55 }
  0x8c   : > { %1820 = vmatprep.mubr.bf16.mxu1 %v3890_v56  ;;  %1964 = vmatprep.mubr.bf16.mxu0 %v3892_v57 }
  0x93   : > { %1821 = vmatmul.mubr.bf16.gmra.mrb[52].mxu1 %v3894_v58  ;;  %1965 = vmatmul.mubr.bf16.gmra.mrb[52].mxu0 %v3895_v59  ;;  %v3979_v58 = vld [vmem:[%s4309_s24 + $0x1cc] ss:$36 sps:$4 sm:$0xff]   ;;  %v4608_v59 = vld [vmem:[%s5027_s2] ss:$0 sm:$0xff] }
  0x94   : > { %1828 = vmatprep.mubr.bf16.mxu1 %v3898_v60  ;;  %1972 = vmatprep.mubr.bf16.mxu0 %v3900_v61 }
  0x9b   : > { %1829 = vmatmul.mubr.bf16.gmra.mrb[56].mxu1 %v3902_v62  ;;  %1973 = vmatmul.mubr.bf16.gmra.mrb[56].mxu0 %v3903_v63 }
  0x9c   : > { %1836 = vmatprep.mubr.bf16.mxu1 %v3904_v0  ;;  %1980 = vmatprep.mubr.bf16.mxu0 %v3906_v1 }
  0xa3   : > { %1837 = vmatmul.mubr.bf16.gmra.mrb[60].mxu1 %v3909_v2  ;;  %1981 = vmatmul.mubr.bf16.gmra.mrb[60].mxu0 %v3910_v3 }
  0xa4   : > { %1844 = vmatprep.mubr.bf16.mxu1 %v3913_v4  ;;  %1988 = vmatprep.mubr.bf16.mxu0 %v3915_v5 }
  0xab   : > { %1845 = vmatmul.mubr.bf16.gmra.mrb[64].mxu1 %v3917_v6  ;;  %1989 = vmatmul.mubr.bf16.gmra.mrb[64].mxu0 %v3918_v7  ;;  %v3981_v6 = vld [vmem:[%s4309_s24 + $0x1c8] ss:$36 sps:$4 sm:$0xff]  }
  0xac   : > { %1852 = vmatprep.mubr.bf16.mxu1 %v3920_v8  ;;  %1996 = vmatprep.mubr.bf16.mxu0 %v3922_v9  ;;  %v3982_v7 = vld [vmem:[%s4309_s24 + $0x188] ss:$36 sps:$4 sm:$0xff]  }
  0xb3   : > { %1853 = vmatmul.mubr.bf16.gmra.mrb[68].mxu1 %v3925_v10  ;;  %1997 = vmatmul.mubr.bf16.gmra.mrb[68].mxu0 %v3926_v11 }
  0xb4   : > { %1860 = vmatprep.mubr.bf16.mxu1 %v3927_v13  ;;  %2004 = vmatprep.mubr.bf16.mxu0 %v3929_v14  ;;  %v3983_v13 = vld [vmem:[%s4309_s24 + $0x214] ss:$36 sps:$4 sm:$0xff]  }
  0xbb   : > { %1861 = vmatmul.mubr.bf16.gmra.mrb[72].mxu1 %v3931_v15  ;;  %2005 = vmatmul.mubr.bf16.gmra.mrb[72].mxu0 %v3932_v16 }
  0xbc   : > { %1868 = vmatprep.mubr.bf16.mxu1 %v3935_v17  ;;  %2012 = vmatprep.mubr.bf16.mxu0 %v3937_v18 }
  0xc3   : > { %1869 = vmatmul.mubr.bf16.gmra.mrb[76].mxu1 %v3939_v19  ;;  %2013 = vmatmul.mubr.bf16.gmra.mrb[76].mxu0 %v3940_v20 }
  0xc4   : > { %1876 = vmatprep.mubr.bf16.mxu1 %v3941_v21  ;;  %2020 = vmatprep.mubr.bf16.mxu0 %v3943_v22 }
  0xcb   : > { %1877 = vmatmul.mubr.bf16.gmra.mrb[80].mxu1 %v3945_v24  ;;  %2021 = vmatmul.mubr.bf16.gmra.mrb[80].mxu0 %v3946_v25  ;;  %v3985_v24 = vld [vmem:[%s4309_s24 + $0x210] ss:$36 sps:$4 sm:$0xff]  }
  0xcc   : > { %1884 = vmatprep.mubr.bf16.mxu1 %v3015_v26  ;;  %2028 = vmatprep.mubr.bf16.mxu0 %v3950_v27  ;;  %v3986_v25 = vld [vmem:[%s4309_s24 + $0x1d0] ss:$36 sps:$4 sm:$0xff]  }
  0xd3   : > { %1885 = vmatmul.mubr.bf16.gmra.mrb[84].mxu1 %v3014_v29  ;;  %2029 = vmatmul.mubr.bf16.gmra.mrb[84].mxu0 %v3953_v30  ;;  %v3987_v30 = vld [vmem:[%s4309_s24 + $0x25c] ss:$36 sps:$4 sm:$0xff]  }
  0xd4   : > { %2036 = vmatprep.mubr.bf16.mxu0 %v3017_v31  ;;  %2076 = vmatprep.mubr.bf16.mxu1 %v3957_v32 }
  0xdb   : > { %2037 = vmatmul.mubr.bf16.gmra.mrb[88].mxu0 %v3016_v34  ;;  %2077 = vmatmul.mubr.bf16.vlgmr.msra.gmra.mrb[88].mxu1 %v3955_v33 }
  0xdc   : > { %2084 = vmatprep.mubr.bf16.mxu1 %v3959_v35  ;;  %3589 = vmatprep.mubr.msk.bf16.mxu0 %vm4224_vm0, %v4223_v12 }
  0xe3   : > { %2085 = vmatmul.mubr.bf16.gmra.mrb[92].mxu1 %v3961_v36  ;;  %3590 = vmatmul.mubr.msk.bf16.vlgmr.msra.gmra.mrb[92].mxu0 %vm1542_vm1, %v3962_v37 }
  0xe4   : > { %2092 = vmatprep.mubr.bf16.mxu1 %v3963_v38  ;;  %3593 = vmatprep.mubr.msk.bf16.mxu0 %vm4224_vm0, %v4223_v12 }
  0xeb   : > { %2093 = vmatmul.mubr.bf16.gmra.mrb[96].mxu1 %v3965_v39  ;;  %3594 = vmatmul.mubr.msk.bf16.gmra.mrb[96].mxu0 %vm1542_vm1, %v3966_v40 }
  0xec   : > { %2100 = vmatprep.mubr.bf16.mxu1 %v3967_v41  ;;  %3597 = vmatprep.mubr.msk.bf16.mxu0 %vm4224_vm0, %v4223_v12  ;;  %v3989_v41 = vld [vmem:[%s4309_s24 + $0x258] ss:$36 sps:$4 sm:$0xff]  }
  0xf3   : > { %2101 = vmatmul.mubr.bf16.gmra.mrb[100].mxu1 %v3969_v42  ;;  %3598 = vmatmul.mubr.msk.bf16.gmra.mrb[100].mxu0 %vm1542_vm1, %v3970_v43  ;;  %v3990_v42 = vld [vmem:[%s4309_s24 + $0x218] ss:$36 sps:$4 sm:$0xff]  }
  0xf4   : > { %2108 = vmatprep.mubr.bf16.mxu1 %v3971_v44  ;;  %3601 = vmatprep.mubr.msk.bf16.mxu0 %vm4224_vm0, %v4223_v12 }
  0xfb   : > { %2109 = vmatmul.mubr.bf16.gmra.mrb[104].mxu1 %v3973_v45  ;;  %3602 = vmatmul.mubr.msk.bf16.gmra.mrb[104].mxu0 %vm1542_vm1, %v3974_v46 }
  0xfc   : > { %2116 = vmatprep.mubr.bf16.mxu1 %v3975_v47  ;;  %3605 = vmatprep.mubr.msk.bf16.mxu0 %vm4224_vm0, %v4223_v12  ;;  %v3991_v47 = vld [vmem:[%s4309_s24 + $0x2a4] ss:$36 sps:$4 sm:$0xff]  }
  0xfe   : > { %v3160_v48 = vpop.f32.mrb[0].mxu0  ;;  %v3208_v49 = vpop.f32.mrb[0].mxu1 }
  0xff   : > { %v3161_v50 = vpop.f32.mrb[1].mxu0  ;;  %v3209_v51 = vpop.f32.mrb[1].mxu1 }
 0x100   : > { %v4602_v54 = vadd.f32 %v3161_v50, %v3160_v48  ;;  %v3163_v55 = vpop.f32.mrb[2].mxu0  ;;  %v3210_v56 = vadd.f32 %v3209_v51, %v3208_v49  ;;  %v3211_v57 = vpop.f32.mrb[2].mxu1 }
 0x101   : > { %v3164_v60 = vpop.f32.mrb[3].mxu0  ;;  %v3212_v61 = vpop.f32.mrb[3].mxu1 }
 0x102   : > { %v4611_v62 = vadd.f32 %v3210_v56, %v4608_v59  ;;  %v4613_v63 = vadd.f32 %v3164_v60, %v3163_v55  ;;  %v3213_v0 = vadd.f32 %v3212_v61, %v3211_v57  ;;  %v3993_v60 = vld [vmem:[%s4309_s24 + $0x2a0] ss:$36 sps:$4 sm:$0xff]  }
 0x103   : > { %2117 = vmatmul.mubr.bf16.gmra.mrb[108].mxu1 %v3977_v52  ;;  %3606 = vmatmul.mubr.msk.bf16.gmra.mrb[108].mxu0 %vm1542_vm1, %v3978_v53  ;;  %v3994_v61 = vld [vmem:[%s4309_s24 + $0x260] ss:$36 sps:$4 sm:$0xff]  }
 0x104   : > { %v4617_v1 = vadd.f32 %v3213_v0, %v4608_v59  ;;  %2124 = vmatprep.mubr.bf16.mxu1 %v3979_v58  ;;  %3609 = vmatprep.mubr.msk.bf16.mxu0 %vm4224_vm0, %v4223_v12 }
 0x106   : > { %v3166_v2 = vpop.f32.mrb[4].mxu0  ;;  %v3214_v3 = vpop.f32.mrb[4].mxu1 }
 0x107   : > { %v3167_v4 = vpop.f32.mrb[5].mxu0  ;;  %v3215_v5 = vpop.f32.mrb[5].mxu1 }
 0x108   : > { %v4623_v8 = vadd.f32 %v3167_v4, %v3166_v2  ;;  %v3169_v9 = vpop.f32.mrb[6].mxu0  ;;  %v3216_v10 = vadd.f32 %v3215_v5, %v3214_v3  ;;  %v3217_v11 = vpop.f32.mrb[6].mxu1  ;;  %v3995_v5 = vld [vmem:[%s4309_s24 + $0x2ec] ss:$36 sps:$4 sm:$0xff]  }
 0x109   : > { %v3170_v14 = vpop.f32.mrb[7].mxu0  ;;  %v3218_v15 = vpop.f32.mrb[7].mxu1 }
 0x10a   : > { %v4627_v16 = vadd.f32 %v3216_v10, %v4608_v59  ;;  %v4629_v17 = vadd.f32 %v3170_v14, %v3169_v9  ;;  %v3219_v18 = vadd.f32 %v3218_v15, %v3217_v11 }
 0x10b   : > { %2125 = vmatmul.mubr.bf16.gmra.mrb[112].mxu1 %v3981_v6  ;;  %3610 = vmatmul.mubr.msk.bf16.gmra.mrb[112].mxu0 %vm1542_vm1, %v3982_v7 }
 0x10c   : > { %v4633_v19 = vadd.f32 %v3219_v18, %v4608_v59  ;;  %2132 = vmatprep.mubr.bf16.mxu1 %v3983_v13  ;;  %3613 = vmatprep.mubr.msk.bf16.mxu0 %vm4224_vm0, %v4223_v12 }
 0x10e   : > { %v3172_v20 = vpop.f32.mrb[8].mxu0  ;;  %v3220_v21 = vpop.f32.mrb[8].mxu1 }
 0x10f   : > { %v3173_v22 = vpop.f32.mrb[9].mxu0  ;;  %v3221_v23 = vpop.f32.mrb[9].mxu1 }
 0x110   : > { %v4639_v26 = vadd.f32 %v3173_v22, %v3172_v20  ;;  %v3175_v27 = vpop.f32.mrb[10].mxu0  ;;  %v3222_v28 = vadd.f32 %v3221_v23, %v3220_v21  ;;  %v3223_v29 = vpop.f32.mrb[10].mxu1  ;;  %v3997_v21 = vld [vmem:[%s4309_s24 + $0x2e8] ss:$36 sps:$4 sm:$0xff]  }
 0x111   : > { %v3176_v31 = vpop.f32.mrb[11].mxu0  ;;  %v3224_v32 = vpop.f32.mrb[11].mxu1  ;;  %v3998_v22 = vld [vmem:[%s4309_s24 + $0x2a8] ss:$36 sps:$4 sm:$0xff]  }
 0x112   : > { %v4643_v33 = vadd.f32 %v3222_v28, %v4608_v59  ;;  %v4645_v34 = vadd.f32 %v3176_v31, %v3175_v27  ;;  %v3225_v35 = vadd.f32 %v3224_v32, %v3223_v29  ;;  %v3999_v28 = vld [vmem:[%s4309_s24 + $0x334] ss:$36 sps:$4 sm:$0xff]  }
 0x113   : > { %2133 = vmatmul.mubr.bf16.gmra.mrb[116].mxu1 %v3985_v24  ;;  %3614 = vmatmul.mubr.msk.bf16.gmra.mrb[116].mxu0 %vm1542_vm1, %v3986_v25 }
 0x114   : > { %v4649_v36 = vadd.f32 %v3225_v35, %v4608_v59  ;;  %2140 = vmatprep.mubr.bf16.mxu1 %v3987_v30  ;;  %3617 = vmatprep.mubr.msk.bf16.mxu0 %vm4224_vm0, %v4223_v12 }
 0x116   : > { %v3178_v37 = vpop.f32.mrb[12].mxu0  ;;  %v3226_v38 = vpop.f32.mrb[12].mxu1 }
 0x117   : > { %v3179_v39 = vpop.f32.mrb[13].mxu0  ;;  %v3227_v40 = vpop.f32.mrb[13].mxu1 }
 0x118   : > { %v4655_v43 = vadd.f32 %v3179_v39, %v3178_v37  ;;  %v3181_v44 = vpop.f32.mrb[14].mxu0  ;;  %v3228_v45 = vadd.f32 %v3227_v40, %v3226_v38  ;;  %v3229_v46 = vpop.f32.mrb[14].mxu1 }
 0x119   : > { %v3182_v48 = vpop.f32.mrb[15].mxu0  ;;  %v3230_v49 = vpop.f32.mrb[15].mxu1 }
 0x11a   : > { %v4659_v50 = vadd.f32 %v3228_v45, %v4608_v59  ;;  %v4661_v51 = vadd.f32 %v3182_v48, %v3181_v44  ;;  %v3231_v52 = vadd.f32 %v3230_v49, %v3229_v46  ;;  %v4002_v44 = vld [vmem:[%s4309_s24 + $0x2f0] ss:$36 sps:$4 sm:$0xff]   ;;  %v4003_v49 = vld [vmem:[%s4309_s24 + $0x37c] ss:$36 sps:$4 sm:$0xff]  }
 0x11b   : > { %2141 = vmatmul.mubr.bf16.gmra.mrb[120].mxu1 %v3989_v41  ;;  %3618 = vmatmul.mubr.msk.bf16.gmra.mrb[120].mxu0 %vm1542_vm1, %v3990_v42  ;;  %v4001_v42 = vld [vmem:[%s4309_s24 + $0x330] ss:$36 sps:$4 sm:$0xff]  }
 0x11c   : > { %v4665_v53 = vadd.f32 %v3231_v52, %v4608_v59  ;;  %2148 = vmatprep.mubr.bf16.mxu1 %v3991_v47  ;;  %3621 = vmatprep.mubr.msk.bf16.mxu0 %vm4224_vm0, %v4223_v12 }
 0x11e   : > { %v3184_v55 = vpop.f32.mrb[16].mxu0  ;;  %v3232_v56 = vpop.f32.mrb[16].mxu1 }
 0x11f   : > { %v3185_v57 = vpop.f32.mrb[17].mxu0  ;;  %v3233_v58 = vpop.f32.mrb[17].mxu1 }
 0x120   : > { %v4671_v0 = vadd.f32 %v3185_v57, %v3184_v55  ;;  %v3187_v2 = vpop.f32.mrb[18].mxu0  ;;  %v3234_v3 = vadd.f32 %v3233_v58, %v3232_v56  ;;  %v3235_v4 = vpop.f32.mrb[18].mxu1 }
 0x121   : > { %v3188_v6 = vpop.f32.mrb[19].mxu0  ;;  %v3236_v7 = vpop.f32.mrb[19].mxu1 }
 0x122   : > { %v4675_v9 = vadd.f32 %v3234_v3, %v4608_v59  ;;  %v4677_v10 = vadd.f32 %v3188_v6, %v3187_v2  ;;  %v3237_v11 = vadd.f32 %v3236_v7, %v3235_v4  ;;  %v4005_v3 = vld [vmem:[%s4309_s24 + $0x378] ss:$36 sps:$4 sm:$0xff]  }
 0x123   : > { %2149 = vmatmul.mubr.bf16.gmra.mrb[124].mxu1 %v3993_v60  ;;  %3622 = vmatmul.mubr.msk.bf16.gmra.mrb[124].mxu0 %vm1542_vm1, %v3994_v61  ;;  %v4006_v4 = vld [vmem:[%s4309_s24 + $0x338] ss:$36 sps:$4 sm:$0xff]  }
 0x124   : > { %v4681_v13 = vadd.f32 %v3237_v11, %v4608_v59  ;;  %2156 = vmatprep.mubr.bf16.mxu1 %v3995_v5  ;;  %3625 = vmatprep.mubr.msk.bf16.mxu0 %vm4224_vm0, %v4223_v12  ;;  %v1623_v5 = vadd.f32 %v4602_v54, %v4608_v59 }
 0x126   : > { %v3190_v14 = vpop.f32.mrb[20].mxu0  ;;  %v3238_v15 = vpop.f32.mrb[20].mxu1 }
 0x127   : > { %v3191_v18 = vpop.f32.mrb[21].mxu0  ;;  %v3239_v20 = vpop.f32.mrb[21].mxu1 }
 0x128   : > { %v4687_v23 = vadd.f32 %v3191_v18, %v3190_v14  ;;  %v3193_v24 = vpop.f32.mrb[22].mxu0  ;;  %v3240_v25 = vadd.f32 %v3239_v20, %v3238_v15  ;;  %v3241_v27 = vpop.f32.mrb[22].mxu1  ;;  %v4007_v15 = vld [vmem:[%s4309_s24 + $0x3c4] ss:$36 sps:$4 sm:$0xff]  }
 0x129   : > { %v3194_v29 = vpop.f32.mrb[23].mxu0  ;;  %v3242_v30 = vpop.f32.mrb[23].mxu1 }
 0x12a   : > { %v4691_v31 = vadd.f32 %v3240_v25, %v4608_v59  ;;  %v4693_v32 = vadd.f32 %v3194_v29, %v3193_v24  ;;  %v3243_v35 = vadd.f32 %v3242_v30, %v3241_v27  ;;  %v344_v27 = vld [vmem:[%s4309_s24 + $0x408] sm:$0xff] }
 0x12b   : > { %2157 = vmatmul.mubr.bf16.gmra.mrb[128].mxu1 %v3997_v21  ;;  %3626 = vmatmul.mubr.msk.bf16.gmra.mrb[128].mxu0 %vm1542_vm1, %v3998_v22  ;;  %v1626_v21 = vadd.f32 %v4613_v63, %v4608_v59  ;;  %v1631_v63 = vadd.f32 %v4623_v8, %v4608_v59 }
 0x12c   : > { %v4697_v37 = vadd.f32 %v3243_v35, %v4608_v59  ;;  %2164 = vmatprep.mubr.bf16.mxu1 %v3999_v28  ;;  %3629 = vmatprep.mubr.msk.bf16.mxu0 %vm4224_vm0, %v4223_v12 }
 0x12e   : > { %v3196_v38 = vpop.f32.mrb[24].mxu0  ;;  %v3244_v39 = vpop.f32.mrb[24].mxu1 }
 0x12f   : > { %v3197_v40 = vpop.f32.mrb[25].mxu0  ;;  %v3245_v41 = vpop.f32.mrb[25].mxu1 }
 0x130   : > { %v4703_v45 = vadd.f32 %v3197_v40, %v3196_v38  ;;  %v3199_v46 = vpop.f32.mrb[26].mxu0  ;;  %v3246_v47 = vadd.f32 %v3245_v41, %v3244_v39  ;;  %v3247_v48 = vpop.f32.mrb[26].mxu1  ;;  %v4009_v38 = vld [vmem:[%s4309_s24 + $0x3c0] ss:$36 sps:$4 sm:$0xff]  }
 0x131   : > { %v3200_v52 = vpop.f32.mrb[27].mxu0  ;;  %v3248_v55 = vpop.f32.mrb[27].mxu1  ;;  %v4010_v39 = vld [vmem:[%s4309_s24 + $0x380] ss:$36 sps:$4 sm:$0xff]  }
 0x132   : > { %v4707_v56 = vadd.f32 %v3246_v47, %v4608_v59  ;;  %v4709_v57 = vadd.f32 %v3200_v52, %v3199_v46  ;;  %v3019_v46 = vcombine.high %v344_v27, %v344_v27  ;;  %v1634_v47 = vadd.f32 %v4629_v17, %v4608_v59 }
 0x133   : > { %2165 = vmatmul.mubr.bf16.gmra.mrb[132].mxu1 %v4001_v42  ;;  %3630 = vmatmul.mubr.msk.bf16.gmra.mrb[132].mxu0 %vm1542_vm1, %v4002_v44 }
 0x134   : > { %2172 = vmatprep.mubr.bf16.mxu1 %v4003_v49  ;;  %3633 = vmatprep.mubr.msk.bf16.mxu0 %vm4224_vm0, %v4223_v12 }
 0x136   : > { %v3202_v58 = vpop.f32.mrb[28].mxu0  ;;  %v3266_v60 = vpop.f32.mrb[28].mxu1 }
 0x137   : > { %v3203_v61 = vpop.f32.mrb[29].mxu0  ;;  %v3267_v2 = vpop.f32.mrb[29].mxu1 }
 0x138   : > { %v4718_v6 = vadd.f32 %v3203_v61, %v3202_v58  ;;  %v3268_v7 = vadd.f32 %v3267_v2, %v3266_v60  ;;  %v3205_v11 = vpop.f32.mrb[30].mxu0  ;;  %v3269_v14 = vpop.f32.mrb[30].mxu1 }
 0x139   : > { %v3206_v18 = vpop.f32.mrb[31].mxu0  ;;  %v3270_v20 = vpop.f32.mrb[31].mxu1 }
 0x13a   : > { %v1775_v22 = vadd.f32 %v3268_v7, %v1623_v5  ;;  %v4723_v24 = vadd.f32 %v3206_v18, %v3205_v11  ;;  %v3271_v25 = vadd.f32 %v3270_v20, %v3269_v14  ;;  %v3018_v5 = vcombine.low %v344_v27, %v344_v27  ;;  %v4013_v7 = vld [vmem:[%s4309_s24 + $0x3c8] ss:$36 sps:$4 sm:$0xff]  }
 0x13b   : > { %2173 = vmatmul.mubr.bf16.gmra.mrb[136].mxu1 %v4005_v3  ;;  %3634 = vmatmul.mubr.msk.bf16.gmra.mrb[136].mxu0 %vm1542_vm1, %v4006_v4  ;;  %v1639_v11 = vadd.f32 %v4639_v26, %v4608_v59 }
 0x13c   : > { %v1778_v54 = vadd.f32 %v3271_v25, %v1626_v21  ;;  %2180 = vmatprep.mubr.bf16.mxu1 %v4007_v15  ;;  %3637 = vmatprep.mubr.msk.bf16.mxu0 %vm4224_vm0, %v4223_v12  ;;  %v1642_v21 = vadd.f32 %v4645_v34, %v4608_v59 }
 0x13e   : > { %v3272_v28 = vpop.f32.mrb[32].mxu1  ;;  %v3372_v29 = vpop.f32.mrb[32].mxu0 }
 0x13f   : > { %v3273_v30 = vpop.f32.mrb[33].mxu1  ;;  %v3373_v35 = vpop.f32.mrb[33].mxu0 }
 0x140   : > { %v3274_v40 = vadd.f32 %v3273_v30, %v3272_v28  ;;  %v3374_v41 = vadd.f32 %v3373_v35, %v3372_v29  ;;  %v3275_v42 = vpop.f32.mrb[34].mxu1  ;;  %v3375_v44 = vpop.f32.mrb[34].mxu0 }
 0x141   : > { %v3276_v48 = vpop.f32.mrb[35].mxu1  ;;  %v3376_v49 = vpop.f32.mrb[35].mxu0 }
 0x142   : > { %v1783_v52 = vadd.f32 %v3274_v40, %v1631_v63  ;;  %v4735_v55 = vadd.f32 %v3374_v41, %v1775_v22  ;;  %v3277_v58 = vadd.f32 %v3276_v48, %v3275_v42  ;;  %v3377_v60 = vadd.f32 %v3376_v49, %v3375_v44  ;;  %v4014_v63 = vld [vmem:[%s4309_s24 + $0x410] ss:$0 sps:$4 sm:$0xff]   ;;  %s175_s24 = sand.u32 1, %s4181_s12  }
 0x143   : > { %2181 = vmatmul.mubr.bf16.gmra.mrb[140].mxu1 %v4009_v38  ;;  %3638 = vmatmul.mubr.msk.bf16.gmra.mrb[140].mxu0 %vm1542_vm1, %v4010_v39  ;;  %v1647_v40 = vadd.f32 %v4655_v43, %v4608_v59  ;;  %s3665_s27 = smul.u32 232, %s175_s24 }
 0x144   : > { %v1786_v8 = vadd.f32 %v3277_v58, %v1634_v47  ;;  %v4738_v61 = vadd.f32 %v3377_v60, %v1778_v54  ;;  %2188 = vmatprep.mubr.bf16.mxu1 %v3019_v46  ;;  %3641 = vmatprep.mubr.msk.bf16.mxu0 %vm4224_vm0, %v4223_v12  ;;  %v1650_v47 = vadd.f32 %v4661_v51, %v4608_v59 }
 0x145   : > { %s4849_s12 = scalar_lea.vmem [#allocation2], %s3665_s27  }
 0x146   : > { %v3278_v2 = vpop.f32.mrb[36].mxu1  ;;  %v3378_v17 = vpop.f32.mrb[36].mxu0 }
 0x147   : > { %v3279_v3 = vpop.f32.mrb[37].mxu1  ;;  %v3379_v4 = vpop.f32.mrb[37].mxu0 }
 0x148   : > { %v3280_v14 = vadd.f32 %v3279_v3, %v3278_v2  ;;  %v3380_v15 = vadd.f32 %v3379_v4, %v3378_v17  ;;  %v3281_v18 = vpop.f32.mrb[38].mxu1  ;;  %v3381_v20 = vpop.f32.mrb[38].mxu0 }
 0x149   : > { %v3282_v22 = vpop.f32.mrb[39].mxu1  ;;  %v3382_v25 = vpop.f32.mrb[39].mxu0 }
 0x14a   : > { %v1791_v54 = vadd.f32 %v3280_v14, %v1639_v11  ;;  %v4747_v28 = vadd.f32 %v3380_v15, %v1783_v52  ;;  %v3283_v29 = vadd.f32 %v3282_v22, %v3281_v18  ;;  %v3383_v30 = vadd.f32 %v3382_v25, %v3381_v20 }
 0x14b   : > { %2189 = vmatmul.mubr.bf16.gmra.mrb[144].mxu1 %v3018_v5  ;;  %3642 = vmatmul.mubr.msk.bf16.gmra.mrb[144].mxu0 %vm1542_vm1, %v4013_v7  ;;  %v1655_v5 = vadd.f32 %v4671_v0, %v4608_v59  ;;  %v1658_v15 = vadd.f32 %v4677_v10, %v4608_v59 }
 0x14c   : > { %v1794_v27 = vadd.f32 %v3283_v29, %v1642_v21  ;;  %v4750_v26 = vadd.f32 %v3383_v30, %v1786_v8  ;;  %3645 = vmatprep.mubr.msk.bf16.mxu0 %vm4224_vm0, %v4223_v12 }
 0x14e   : > { %v3284_v35 = vpop.f32.mrb[40].mxu1  ;;  %v3384_v38 = vpop.f32.mrb[40].mxu0 }
 0x14f   : > { %v3285_v34 = vpop.f32.mrb[41].mxu1  ;;  %v3385_v39 = vpop.f32.mrb[41].mxu0 }
 0x150   : > { %v3286_v41 = vadd.f32 %v3285_v34, %v3284_v35  ;;  %v3386_v42 = vadd.f32 %v3385_v39, %v3384_v38  ;;  %v3287_v44 = vpop.f32.mrb[42].mxu1  ;;  %v3387_v46 = vpop.f32.mrb[42].mxu0  ;;  %v1663_v34 = vadd.f32 %v4687_v23, %v4608_v59 }
 0x151   : > { %v3288_v48 = vpop.f32.mrb[43].mxu1  ;;  %v3388_v49 = vpop.f32.mrb[43].mxu0 }
 0x152   : > { %v1799_v52 = vadd.f32 %v3286_v41, %v1647_v40  ;;  %v4759_v58 = vadd.f32 %v3386_v42, %v1791_v54  ;;  %v3289_v12 = vadd.f32 %v3288_v48, %v3287_v44  ;;  %v3389_v60 = vadd.f32 %v3388_v49, %v3387_v46 }
 0x153   : > { %3646 = vmatmul.mubr.msk.bf16.gmra.mrb[148].mxu0 %vm1542_vm1, %v4014_v63  ;;  %v1666_v41 = vadd.f32 %v4693_v32, %v4608_v59 }
 0x154   : > { %v1802_v8 = vadd.f32 %v3289_v12, %v1650_v47  ;;  %v4762_v2 = vadd.f32 %v3389_v60, %v1794_v27 }
 0x156   : > { %v3290_v43 = vpop.f32.mrb[44].mxu1  ;;  %v3390_v17 = vpop.f32.mrb[44].mxu0 }
 0x157   : > { %v3291_v3 = vpop.f32.mrb[45].mxu1  ;;  %v3391_v4 = vpop.f32.mrb[45].mxu0 }
 0x158   : > { %v3292_v51 = vadd.f32 %v3291_v3, %v3290_v43  ;;  %v3392_v7 = vadd.f32 %v3391_v4, %v3390_v17  ;;  %v3293_v11 = vpop.f32.mrb[46].mxu1  ;;  %v3393_v14 = vpop.f32.mrb[46].mxu0  ;;  %v1671_v17 = vadd.f32 %v4703_v45, %v4608_v59 }
 0x159   : > { %v3294_v18 = vpop.f32.mrb[47].mxu1  ;;  %v3394_v20 = vpop.f32.mrb[47].mxu0 }
 0x15a   : > { %v1807_v21 = vadd.f32 %v3292_v51, %v1655_v5  ;;  %v4768_v22 = vadd.f32 %v3392_v7, %v1799_v52  ;;  %v3295_v25 = vadd.f32 %v3294_v18, %v3293_v11  ;;  %v3395_v54 = vadd.f32 %v3394_v20, %v3393_v14 }
 0x15b   : > { %v1674_v51 = vadd.f32 %v4709_v57, %v4608_v59 }
 0x15c   : > { %v1810_v29 = vadd.f32 %v3295_v25, %v1658_v15  ;;  %v4770_v30 = vadd.f32 %v3395_v54, %v1802_v8 }
 0x15e   : > { %v3296_v27 = vpop.f32.mrb[48].mxu1  ;;  %v3396_v35 = vpop.f32.mrb[48].mxu0 }
 0x15f   : > { %v3297_v0 = vpop.f32.mrb[49].mxu1  ;;  %v3397_v38 = vpop.f32.mrb[49].mxu0 }
 0x160   : > { %v3298_v39 = vadd.f32 %v3297_v0, %v3296_v27  ;;  %v3398_v63 = vadd.f32 %v3397_v38, %v3396_v35  ;;  %v3299_v10 = vpop.f32.mrb[50].mxu1  ;;  %v3399_v40 = vpop.f32.mrb[50].mxu0  ;;  %v1679_v35 = vadd.f32 %v4718_v6, %v4608_v59 }
 0x161   : > { %v3300_v42 = vpop.f32.mrb[51].mxu1  ;;  %v3400_v44 = vpop.f32.mrb[51].mxu0 }
 0x162   : > { %v1815_v46 = vadd.f32 %v3298_v39, %v1663_v34  ;;  %v4776_v47 = vadd.f32 %v3398_v63, %v1807_v21  ;;  %v3301_v48 = vadd.f32 %v3300_v42, %v3299_v10  ;;  %v3401_v49 = vadd.f32 %v3400_v44, %v3399_v40 }
 0x163   : > { %v1682_v39 = vadd.f32 %v4723_v24, %v4608_v59 }
 0x164   : > { %v1818_v52 = vadd.f32 %v3301_v48, %v1666_v41  ;;  %v4778_v12 = vadd.f32 %v3401_v49, %v1810_v29 }
 0x166   : > { %v3302_v60 = vpop.f32.mrb[52].mxu1  ;;  %v3402_v8 = vpop.f32.mrb[52].mxu0 }
 0x167   : > { %v3303_v23 = vpop.f32.mrb[53].mxu1  ;;  %v3403_v43 = vpop.f32.mrb[53].mxu0 }
 0x168   : > { %v3304_v3 = vadd.f32 %v3303_v23, %v3302_v60  ;;  %v3404_v4 = vadd.f32 %v3403_v43, %v3402_v8  ;;  %v3305_v32 = vpop.f32.mrb[54].mxu1  ;;  %v3405_v5 = vpop.f32.mrb[54].mxu0 }
 0x169   : > { %v3306_v7 = vpop.f32.mrb[55].mxu1  ;;  %v3406_v11 = vpop.f32.mrb[55].mxu0 }
 0x16a   : > { %v1823_v14 = vadd.f32 %v3304_v3, %v1671_v17  ;;  %v4784_v15 = vadd.f32 %v3404_v4, %v1815_v46  ;;  %v3307_v18 = vadd.f32 %v3306_v7, %v3305_v32  ;;  %v3407_v20 = vadd.f32 %v3406_v11, %v3405_v5 }
 0x16c   : > { %v1826_v21 = vadd.f32 %v3307_v18, %v1674_v51  ;;  %v4786_v25 = vadd.f32 %v3407_v20, %v1818_v52 }
 0x16e   : > { %v3308_v54 = vpop.f32.mrb[56].mxu1  ;;  %v3408_v29 = vpop.f32.mrb[56].mxu0 }
 0x16f   : > { %v3309_v45 = vpop.f32.mrb[57].mxu1  ;;  %v3409_v27 = vpop.f32.mrb[57].mxu0 }
 0x170   : > { %v3310_v0 = vadd.f32 %v3309_v45, %v3308_v54  ;;  %v3410_v38 = vadd.f32 %v3409_v27, %v3408_v29  ;;  %v3311_v57 = vpop.f32.mrb[58].mxu1  ;;  %v3411_v34 = vpop.f32.mrb[58].mxu0 }
 0x171   : > { %v3312_v63 = vpop.f32.mrb[59].mxu1  ;;  %v3412_v10 = vpop.f32.mrb[59].mxu0 }
 0x172   : > { %v1831_v40 = vadd.f32 %v3310_v0, %v1679_v35  ;;  %v4792_v41 = vadd.f32 %v3410_v38, %v1823_v14  ;;  %v3313_v42 = vadd.f32 %v3312_v63, %v3311_v57  ;;  %v3413_v44 = vadd.f32 %v3412_v10, %v3411_v34 }
 0x174   : > { %v1834_v46 = vadd.f32 %v3313_v42, %v1682_v39  ;;  %v4794_v48 = vadd.f32 %v3413_v44, %v1826_v21 }
 0x176   : > { %v3314_v49 = vpop.f32.mrb[60].mxu1  ;;  %v3414_v52 = vpop.f32.mrb[60].mxu0 }
 0x177   : > { %v3315_v6 = vpop.f32.mrb[61].mxu1  ;;  %v3415_v60 = vpop.f32.mrb[61].mxu0 }
 0x178   : > { %v3316_v8 = vadd.f32 %v3315_v6, %v3314_v49  ;;  %v3416_v23 = vadd.f32 %v3415_v60, %v3414_v52  ;;  %v3317_v43 = vpop.f32.mrb[62].mxu1  ;;  %v3417_v17 = vpop.f32.mrb[62].mxu0 }
 0x179   : > { %v3318_v3 = vpop.f32.mrb[63].mxu1  ;;  %v3418_v59 = vpop.f32.mrb[63].mxu0 }
 0x17a   : > { %v1839_v24 = vadd.f32 %v3316_v8, %v4611_v62  ;;  %v4797_v4 = vadd.f32 %v3416_v23, %v1831_v40  ;;  %v3319_v32 = vadd.f32 %v3318_v3, %v3317_v43  ;;  %v3419_v5 = vadd.f32 %v3418_v59, %v3417_v17 }
 0x17c   : > { %v1842_v51 = vadd.f32 %v3319_v32, %v4617_v1  ;;  %v4800_v7 = vadd.f32 %v3419_v5, %v1834_v46 }
 0x17e   : > { %v3320_v11 = vpop.f32.mrb[64].mxu1  ;;  %v3420_v14 = vpop.f32.mrb[64].mxu0 }
 0x17f   : > { %v3321_v18 = vpop.f32.mrb[65].mxu1  ;;  %v3421_v20 = vpop.f32.mrb[65].mxu0 }
 0x180   : > { %v3322_v21 = vadd.f32 %v3321_v18, %v3320_v11  ;;  %v3422_v54 = vadd.f32 %v3421_v20, %v3420_v14  ;;  %v3323_v29 = vpop.f32.mrb[66].mxu1  ;;  %v3423_v45 = vpop.f32.mrb[66].mxu0 }
 0x181   : > { %v3324_v27 = vpop.f32.mrb[67].mxu1  ;;  %v3424_v35 = vpop.f32.mrb[67].mxu0 }
 0x182   : > { %v1847_v62 = vadd.f32 %v3322_v21, %v4627_v16  ;;  %v4803_v0 = vadd.f32 %v3422_v54, %v1839_v24  ;;  %v3325_v38 = vadd.f32 %v3324_v27, %v3323_v29  ;;  %v3425_v57 = vadd.f32 %v3424_v35, %v3423_v45 }
 0x184   : > { %v1850_v1 = vadd.f32 %v3325_v38, %v4633_v19  ;;  %v4806_v34 = vadd.f32 %v3425_v57, %v1842_v51 }
 0x186   : > { %v3326_v39 = vpop.f32.mrb[68].mxu1  ;;  %v3426_v63 = vpop.f32.mrb[68].mxu0 }
 0x187   : > { %v3327_v10 = vpop.f32.mrb[69].mxu1  ;;  %v3427_v40 = vpop.f32.mrb[69].mxu0 }
 0x188   : > { %v3328_v42 = vadd.f32 %v3327_v10, %v3326_v39  ;;  %v3428_v44 = vadd.f32 %v3427_v40, %v3426_v63  ;;  %v3329_v46 = vpop.f32.mrb[70].mxu1  ;;  %v3429_v49 = vpop.f32.mrb[70].mxu0 }
 0x189   : > { %v3330_v52 = vpop.f32.mrb[71].mxu1  ;;  %v3430_v6 = vpop.f32.mrb[71].mxu0 }
 0x18a   : > { %v1855_v16 = vadd.f32 %v3328_v42, %v4643_v33  ;;  %v4809_v60 = vadd.f32 %v3428_v44, %v1847_v62  ;;  %v3331_v8 = vadd.f32 %v3330_v52, %v3329_v46  ;;  %v3431_v23 = vadd.f32 %v3430_v6, %v3429_v49 }
 0x18c   : > { %v1858_v19 = vadd.f32 %v3331_v8, %v4649_v36  ;;  %v4812_v43 = vadd.f32 %v3431_v23, %v1850_v1 }
 0x18e   : > { %v3332_v17 = vpop.f32.mrb[72].mxu1  ;;  %v3432_v3 = vpop.f32.mrb[72].mxu0 }
 0x18f   : > { %v3333_v59 = vpop.f32.mrb[73].mxu1  ;;  %v3433_v24 = vpop.f32.mrb[73].mxu0 }
 0x190   : > { %v3334_v32 = vadd.f32 %v3333_v59, %v3332_v17  ;;  %v3434_v5 = vadd.f32 %v3433_v24, %v3432_v3  ;;  %v3335_v51 = vpop.f32.mrb[74].mxu1  ;;  %v3435_v11 = vpop.f32.mrb[74].mxu0 }
 0x191   : > { %v3336_v14 = vpop.f32.mrb[75].mxu1  ;;  %v3436_v18 = vpop.f32.mrb[75].mxu0 }
 0x192   : > { %v1863_v33 = vadd.f32 %v3334_v32, %v4659_v50  ;;  %v4815_v20 = vadd.f32 %v3434_v5, %v1855_v16  ;;  %v3337_v21 = vadd.f32 %v3336_v14, %v3335_v51  ;;  %v3437_v54 = vadd.f32 %v3436_v18, %v3435_v11 }
 0x194   : > { %v1866_v36 = vadd.f32 %v3337_v21, %v4665_v53  ;;  %v4818_v29 = vadd.f32 %v3437_v54, %v1858_v19 }
 0x196   : > { %v3338_v45 = vpop.f32.mrb[76].mxu1  ;;  %v3438_v27 = vpop.f32.mrb[76].mxu0 }
 0x197   : > { %v3339_v35 = vpop.f32.mrb[77].mxu1  ;;  %v3439_v62 = vpop.f32.mrb[77].mxu0 }
 0x198   : > { %v3340_v38 = vadd.f32 %v3339_v35, %v3338_v45  ;;  %v3440_v57 = vadd.f32 %v3439_v62, %v3438_v27  ;;  %v3341_v1 = vpop.f32.mrb[78].mxu1  ;;  %v3441_v39 = vpop.f32.mrb[78].mxu0 }
 0x199   : > { %v3342_v63 = vpop.f32.mrb[79].mxu1  ;;  %v3442_v10 = vpop.f32.mrb[79].mxu0 }
 0x19a   : > { %v1871_v50 = vadd.f32 %v3340_v38, %v4675_v9  ;;  %v4821_v40 = vadd.f32 %v3440_v57, %v1863_v33  ;;  %v3343_v42 = vadd.f32 %v3342_v63, %v3341_v1  ;;  %v3443_v44 = vadd.f32 %v3442_v10, %v3441_v39 }
 0x19c   : > { %v1874_v53 = vadd.f32 %v3343_v42, %v4681_v13  ;;  %v4824_v46 = vadd.f32 %v3443_v44, %v1866_v36 }
 0x19e   : > { %v3344_v49 = vpop.f32.mrb[80].mxu1  ;;  %v3444_v52 = vpop.f32.mrb[80].mxu0 }
 0x19f   : > { %v3345_v6 = vpop.f32.mrb[81].mxu1  ;;  %v3445_v16 = vpop.f32.mrb[81].mxu0 }
 0x1a0   : > { %v3346_v8 = vadd.f32 %v3345_v6, %v3344_v49  ;;  %v3446_v23 = vadd.f32 %v3445_v16, %v3444_v52  ;;  %v3347_v19 = vpop.f32.mrb[82].mxu1  ;;  %v3447_v17 = vpop.f32.mrb[82].mxu0 }
 0x1a1   : > { %v3348_v3 = vpop.f32.mrb[83].mxu1  ;;  %v3448_v59 = vpop.f32.mrb[83].mxu0 }
 0x1a2   : > { %v1879_v9 = vadd.f32 %v3346_v8, %v4691_v31  ;;  %v4827_v24 = vadd.f32 %v3446_v23, %v1871_v50  ;;  %v3349_v32 = vadd.f32 %v3348_v3, %v3347_v19  ;;  %v3449_v5 = vadd.f32 %v3448_v59, %v3447_v17 }
 0x1a4   : > { %v1882_v13 = vadd.f32 %v3349_v32, %v4697_v37  ;;  %v4830_v51 = vadd.f32 %v3449_v5, %v1874_v53 }
 0x1a6   : > { %v3350_v11 = vpop.f32.mrb[84].mxu1  ;;  %v3450_v14 = vpop.f32.mrb[84].mxu0 }
 0x1a7   : > { %v3351_v18 = vpop.f32.mrb[85].mxu1  ;;  %v3451_v33 = vpop.f32.mrb[85].mxu0 }
 0x1a8   : > { %v3352_v21 = vadd.f32 %v3351_v18, %v3350_v11  ;;  %v3452_v54 = vadd.f32 %v3451_v33, %v3450_v14  ;;  %v3453_v36 = vpop.f32.mrb[86].mxu0  ;;  %v3353_v45 = vpop.f32.mrb[86].mxu1 }
 0x1a9   : > { %v3454_v27 = vpop.f32.mrb[87].mxu0  ;;  %v3354_v35 = vpop.f32.mrb[87].mxu1 }
 0x1aa   : > { %v1887_v31 = vadd.f32 %v3352_v21, %v4707_v56  ;;  %v4833_v62 = vadd.f32 %v3452_v54, %v1879_v9  ;;  %v3455_v38 = vadd.f32 %v3454_v27, %v3453_v36 }
 0x1ac   : > { %v4835_v57 = vadd.f32 %v3455_v38, %v1882_v13 }
 0x1ae   : > { %v3456_v37 = vpop.f32.mrb[88].mxu0  ;;  %v3478_v1 = vpop.f32.mrb[88].mxu1 }
 0x1af   : > { %v3457_v39 = vpop.f32.mrb[89].mxu0  ;;  %v3479_v63 = vpop.f32.mrb[89].mxu1 }
 0x1b0   : > { %v3458_v10 = vadd.f32 %v3457_v39, %v3456_v37  ;;  %v3480_v50 = vadd.f32 %v3479_v63, %v3478_v1  ;;  %v3459_v42 = vpop.f32.mrb[90].mxu0  ;;  %v3481_v44 = vpop.f32.mrb[90].mxu1 }
 0x1b1   : > { %v3460_v53 = vpop.f32.mrb[91].mxu0  ;;  %v3482_v49 = vpop.f32.mrb[91].mxu1 }
 0x1b2   : > { %v4837_v52 = vadd.f32 %v3458_v10, %v1887_v31  ;;  %v3483_v6 = vadd.f32 %v3482_v49, %v3481_v44  ;;  %v2079_v56 = vadd.f32 %v3480_v50, %v4735_v55 }
 0x1b4   : > { %v2082_v16 = vadd.f32 %v3483_v6, %v4738_v61 }
 0x1b6   : > { %v3484_v8 = vpop.f32.mrb[92].mxu1  ;;  %v2230_v23 = vpop.f32.mrb[92].mxu0 }
 0x1b7   : > { %v2231_v19 = vadd.f32 %v2230_v23, %v2079_v56  ;;  %v3485_v17 = vpop.f32.mrb[93].mxu1  ;;  %v3591_v3 = vpop.f32.mrb[93].mxu0 }
 0x1b8   : > { %v3486_v59 = vadd.f32 %v3485_v17, %v3484_v8  ;;  %v3487_v9 = vpop.f32.mrb[94].mxu1  ;;  %v2233_v32 = vpop.f32.mrb[94].mxu0 }
 0x1b9   : > { %v3102_v5 = vmul.f32 -1.442695, %v2231_v19  ;;  %v2234_v13 = vadd.f32 %v2233_v32, %v2082_v16  ;;  %v3488_v11 = vpop.f32.mrb[95].mxu1  ;;  %v3592_v14 = vpop.f32.mrb[95].mxu0 }
 0x1ba   : > { %v3489_v18 = vadd.f32 %v3488_v11, %v3487_v9  ;;  %v2087_v33 = vadd.f32 %v3486_v59, %v4747_v28 }
 0x1bb   : > { %4015 = vpow2.f32 %v3102_v5  ;;  %v3103_v21 = vmul.f32 -1.442695, %v2234_v13 }
 0x1bc   : > { %v2090_v55 = vadd.f32 %v3489_v18, %v4750_v26 }
 0x1bd   : > { %4017 = vpow2.f32 %v3103_v21 }
 0x1be   : > { %v3490_v61 = vpop.f32.mrb[96].mxu1  ;;  %v2238_v54 = vpop.f32.mrb[96].mxu0 }
 0x1bf   : > { %v2239_v36 = vadd.f32 %v2238_v54, %v2087_v33  ;;  %v3491_v45 = vpop.f32.mrb[97].mxu1  ;;  %v3595_v27 = vpop.f32.mrb[97].mxu0 }
 0x1c0   : > { %v3492_v35 = vadd.f32 %v3491_v45, %v3490_v61  ;;  %v3493_v31 = vpop.f32.mrb[98].mxu1  ;;  %v2241_v38 = vpop.f32.mrb[98].mxu0 }
 0x1c1   : > { %v3104_v37 = vmul.f32 -1.442695, %v2239_v36  ;;  %v2242_v1 = vadd.f32 %v2241_v38, %v2090_v55  ;;  %v3494_v39 = vpop.f32.mrb[99].mxu1  ;;  %v3596_v63 = vpop.f32.mrb[99].mxu0 }
 0x1c2   : > { %v3495_v10 = vadd.f32 %v3494_v39, %v3493_v31  ;;  %v2095_v28 = vadd.f32 %v3492_v35, %v4759_v58 }
 0x1c3   : > { %4019 = vpow2.f32 %v3104_v37  ;;  %v3105_v50 = vmul.f32 -1.442695, %v2242_v1 }
 0x1c4   : > { %v2098_v26 = vadd.f32 %v3495_v10, %v4762_v2 }
 0x1c5   : > { %v4016_v42 = vpop.eup %4015  ;;  %4021 = vpow2.f32 %v3105_v50 }
 0x1c6   : > { %v2435_v44 = vadd.f32 1.0, %v4016_v42  ;;  %v3496_v53 = vpop.f32.mrb[100].mxu1  ;;  %v2246_v49 = vpop.f32.mrb[100].mxu0 }
 0x1c7   : > { %v4018_v6 = vpop.eup %4017  ;;  %v2247_v56 = vadd.f32 %v2246_v49, %v2095_v28  ;;  %v3497_v16 = vpop.f32.mrb[101].mxu1 }
 0x1c8   : > { %v3599_v8 = vpop.f32.mrb[101].mxu0  ;;  %4023 = vrcp.f32 %v2435_v44  ;;  %v2436_v23 = vadd.f32 1.0, %v4018_v6  ;;  %v3498_v19 = vadd.f32 %v3497_v16, %v3496_v53  ;;  %v3499_v17 = vpop.f32.mrb[102].mxu1 }
 0x1c9   : > { %v2249_v3 = vpop.f32.mrb[102].mxu0  ;;  %v3106_v58 = vmul.f32 -1.442695, %v2247_v56  ;;  %v3500_v9 = vpop.f32.mrb[103].mxu1 }
 0x1ca   : > { %v2250_v59 = vadd.f32 %v2249_v3, %v2098_v26  ;;  %v3600_v32 = vpop.f32.mrb[103].mxu0  ;;  %4025 = vrcp.f32 %v2436_v23  ;;  %v3501_v2 = vadd.f32 %v3500_v9, %v3499_v17  ;;  %v2103_v5 = vadd.f32 %v3498_v19, %v4768_v22 }
 0x1cb   : > { %4027 = vpow2.f32 %v3106_v58 }
 0x1cc   : > { %v3107_v13 = vmul.f32 -1.442695, %v2250_v59  ;;  %v2106_v11 = vadd.f32 %v3501_v2, %v4770_v30 }
 0x1cd   : > { %v4020_v14 = vpop.eup %4019 }
 0x1ce   : > { %4029 = vpow2.f32 %v3107_v13  ;;  %v2437_v18 = vadd.f32 1.0, %v4020_v14  ;;  %v3502_v33 = vpop.f32.mrb[104].mxu1  ;;  %v2254_v21 = vpop.f32.mrb[104].mxu0 }
 0x1cf   : > { %v4022_v55 = vpop.eup %4021  ;;  %v2255_v61 = vadd.f32 %v2254_v21, %v2103_v5  ;;  %v3503_v54 = vpop.f32.mrb[105].mxu1 }
 0x1d0   : > { %v3603_v36 = vpop.f32.mrb[105].mxu0  ;;  %4031 = vrcp.f32 %v2437_v18  ;;  %v2438_v45 = vadd.f32 1.0, %v4022_v55  ;;  %v3504_v27 = vadd.f32 %v3503_v54, %v3502_v33  ;;  %v3505_v35 = vpop.f32.mrb[106].mxu1 }
 0x1d1   : > { %v2257_v31 = vpop.f32.mrb[106].mxu0  ;;  %v3108_v22 = vmul.f32 -1.442695, %v2255_v61  ;;  %v3506_v37 = vpop.f32.mrb[107].mxu1 }
 0x1d2   : > { %v2258_v38 = vadd.f32 %v2257_v31, %v2106_v11  ;;  %v3604_v1 = vpop.f32.mrb[107].mxu0  ;;  %v4024_v39 = vpop.eup %4023  ;;  %4033 = vrcp.f32 %v2438_v45  ;;  %v3507_v30 = vadd.f32 %v3506_v37, %v3505_v35  ;;  %v2111_v63 = vadd.f32 %v3504_v27, %v4776_v47 }
 0x1d3   : > { %2522 = vst [vmem:[%s4849_s12] sm:$0xff] %v4024_v39  ;;  %4035 = vpow2.f32 %v3108_v22 }
 0x1d4   : > { %v3109_v10 = vmul.f32 -1.442695, %v2258_v38  ;;  %v4026_v28 = vpop.eup %4025  ;;  %v2114_v50 = vadd.f32 %v3507_v30, %v4778_v12 }
 0x1d5   : > { %v4028_v26 = vpop.eup %4027  ;;  %2523 = vst [vmem:[%s4849_s12 + $0x8] sm:$0xff] %v4026_v28 }
 0x1d6   : > { %4037 = vpow2.f32 %v3109_v10  ;;  %v2439_v42 = vadd.f32 1.0, %v4028_v26  ;;  %v3508_v44 = vpop.f32.mrb[108].mxu1  ;;  %v2262_v53 = vpop.f32.mrb[108].mxu0 }
 0x1d7   : > { %v2263_v6 = vadd.f32 %v2262_v53, %v2111_v63  ;;  %v3509_v47 = vpop.f32.mrb[109].mxu1  ;;  %v3607_v56 = vpop.f32.mrb[109].mxu0 }
 0x1d8   : > { %v4030_v49 = vpop.eup %4029  ;;  %4039 = vrcp.f32 %v2439_v42  ;;  %v3510_v8 = vadd.f32 %v3509_v47, %v3508_v44  ;;  %v3511_v23 = vpop.f32.mrb[110].mxu1 }
 0x1d9   : > { %v2440_v16 = vadd.f32 1.0, %v4030_v49  ;;  %v2265_v19 = vpop.f32.mrb[110].mxu0  ;;  %v3110_v17 = vmul.f32 -1.442695, %v2263_v6  ;;  %v3512_v12 = vpop.f32.mrb[111].mxu1 }
 0x1da   : > { %v2266_v3 = vadd.f32 %v2265_v19, %v2114_v50  ;;  %v3608_v58 = vpop.f32.mrb[111].mxu0  ;;  %v4032_v59 = vpop.eup %4031  ;;  %v3513_v9 = vadd.f32 %v3512_v12, %v3511_v23  ;;  %v2119_v32 = vadd.f32 %v3510_v8, %v4784_v15 }
 0x1db   : > { %4041 = vrcp.f32 %v2440_v16  ;;  %2524 = vst [vmem:[%s4849_s12 + $0x10] sm:$0xff] %v4032_v59 }
 0x1dc   : > { %4043 = vpow2.f32 %v3110_v17  ;;  %v3111_v2 = vmul.f32 -1.442695, %v2266_v3  ;;  %v4034_v5 = vpop.eup %4033  ;;  %v2122_v13 = vadd.f32 %v3513_v9, %v4786_v25 }
 0x1dd   : > { %v4036_v11 = vpop.eup %4035  ;;  %2525 = vst [vmem:[%s4849_s12 + $0x18] sm:$0xff] %v4034_v5 }
 0x1de   : > { %4045 = vpow2.f32 %v3111_v2  ;;  %v2441_v14 = vadd.f32 1.0, %v4036_v11  ;;  %v3514_v18 = vpop.f32.mrb[112].mxu1  ;;  %v2270_v33 = vpop.f32.mrb[112].mxu0 }
 0x1df   : > { %v2271_v55 = vadd.f32 %v2270_v33, %v2119_v32  ;;  %v3515_v61 = vpop.f32.mrb[113].mxu1  ;;  %v3611_v54 = vpop.f32.mrb[113].mxu0 }
 0x1e0   : > { %v4038_v21 = vpop.eup %4037  ;;  %4047 = vrcp.f32 %v2441_v14  ;;  %v3516_v15 = vadd.f32 %v3515_v61, %v3514_v18  ;;  %v3517_v45 = vpop.f32.mrb[114].mxu1 }
 0x1e1   : > { %v2442_v36 = vadd.f32 1.0, %v4038_v21  ;;  %v2273_v27 = vpop.f32.mrb[114].mxu0  ;;  %v3112_v35 = vmul.f32 -1.442695, %v2271_v55  ;;  %v3518_v25 = vpop.f32.mrb[115].mxu1 }
 0x1e2   : > { %v2274_v31 = vadd.f32 %v2273_v27, %v2122_v13  ;;  %v3612_v22 = vpop.f32.mrb[115].mxu0  ;;  %v4040_v38 = vpop.eup %4039  ;;  %v3519_v37 = vadd.f32 %v3518_v25, %v3517_v45  ;;  %v2127_v1 = vadd.f32 %v3516_v15, %v4792_v41 }
 0x1e3   : > { %4049 = vrcp.f32 %v2442_v36  ;;  %2526 = vst [vmem:[%s4849_s12 + $0x20] sm:$0xff] %v4040_v38 }
 0x1e4   : > { %4051 = vpow2.f32 %v3112_v35  ;;  %v3113_v39 = vmul.f32 -1.442695, %v2274_v31  ;;  %v2130_v63 = vadd.f32 %v3519_v37, %v4794_v48 }
 0x1e5   : > { %v4042_v30 = vpop.eup %4041 }
 0x1e6   : > { %v4044_v10 = vpop.eup %4043  ;;  %2527 = vst [vmem:[%s4849_s12 + $0x28] sm:$0xff] %v4042_v30  ;;  %4053 = vpow2.f32 %v3113_v39  ;;  %v3520_v50 = vpop.f32.mrb[116].mxu1 }
 0x1e7   : > { %v2443_v28 = vadd.f32 1.0, %v4044_v10  ;;  %v2278_v26 = vpop.f32.mrb[116].mxu0  ;;  %v3521_v53 = vpop.f32.mrb[117].mxu1 }
 0x1e8   : > { %v4046_v42 = vpop.eup %4045  ;;  %v2279_v44 = vadd.f32 %v2278_v26, %v2127_v1  ;;  %v3615_v49 = vpop.f32.mrb[117].mxu0  ;;  %v3522_v41 = vadd.f32 %v3521_v53, %v3520_v50 }
 0x1e9   : > { %4055 = vrcp.f32 %v2443_v28  ;;  %v2444_v6 = vadd.f32 1.0, %v4046_v42  ;;  %v3523_v47 = vpop.f32.mrb[118].mxu1  ;;  %v2281_v56 = vpop.f32.mrb[118].mxu0 }
 0x1ea   : > { %v3114_v16 = vmul.f32 -1.442695, %v2279_v44  ;;  %v2282_v8 = vadd.f32 %v2281_v56, %v2130_v63  ;;  %v3524_v48 = vpop.f32.mrb[119].mxu1  ;;  %v3616_v23 = vpop.f32.mrb[119].mxu0  ;;  %v2135_v3 = vadd.f32 %v3522_v41, %v4797_v4 }
 0x1eb   : > { %v4048_v19 = vpop.eup %4047  ;;  %4057 = vrcp.f32 %v2444_v6  ;;  %v3525_v17 = vadd.f32 %v3524_v48, %v3523_v47 }
 0x1ec   : > { %2528 = vst [vmem:[%s4849_s12 + $0x30] sm:$0xff] %v4048_v19  ;;  %4059 = vpow2.f32 %v3114_v16  ;;  %v3115_v12 = vmul.f32 -1.442695, %v2282_v8 }
 0x1ed   : > { %v4050_v58 = vpop.eup %4049  ;;  %v2138_v59 = vadd.f32 %v3525_v17, %v4800_v7 }
 0x1ee   : > { %v4052_v9 = vpop.eup %4051  ;;  %2529 = vst [vmem:[%s4849_s12 + $0x38] sm:$0xff] %v4050_v58  ;;  %4061 = vpow2.f32 %v3115_v12  ;;  %v3526_v2 = vpop.f32.mrb[120].mxu1 }
 0x1ef   : > { %v2445_v32 = vadd.f32 1.0, %v4052_v9  ;;  %v2286_v5 = vpop.f32.mrb[120].mxu0  ;;  %v3527_v14 = vpop.f32.mrb[121].mxu1 }
 0x1f0   : > { %v4054_v13 = vpop.eup %4053  ;;  %v2287_v11 = vadd.f32 %v2286_v5, %v2135_v3  ;;  %v3619_v18 = vpop.f32.mrb[121].mxu0  ;;  %v3528_v4 = vadd.f32 %v3527_v14, %v3526_v2 }
 0x1f1   : > { %4063 = vrcp.f32 %v2445_v32  ;;  %v2446_v33 = vadd.f32 1.0, %v4054_v13  ;;  %v3529_v21 = vpop.f32.mrb[122].mxu1  ;;  %v2289_v55 = vpop.f32.mrb[122].mxu0 }
 0x1f2   : > { %v3116_v61 = vmul.f32 -1.442695, %v2287_v11  ;;  %v2290_v54 = vadd.f32 %v2289_v55, %v2138_v59  ;;  %v3530_v7 = vpop.f32.mrb[123].mxu1  ;;  %v3620_v36 = vpop.f32.mrb[123].mxu0  ;;  %v2143_v27 = vadd.f32 %v3528_v4, %v4803_v0 }
 0x1f3   : > { %v4056_v15 = vpop.eup %4055  ;;  %4065 = vrcp.f32 %v2446_v33  ;;  %v3531_v45 = vadd.f32 %v3530_v7, %v3529_v21 }
 0x1f4   : > { %2530 = vst [vmem:[%s4849_s12 + $0x40] sm:$0xff] %v4056_v15  ;;  %4067 = vpow2.f32 %v3116_v61  ;;  %v3117_v35 = vmul.f32 -1.442695, %v2290_v54 }
 0x1f5   : > { %v4058_v31 = vpop.eup %4057  ;;  %v2146_v25 = vadd.f32 %v3531_v45, %v4806_v34 }
 0x1f6   : > { %v4060_v22 = vpop.eup %4059  ;;  %2531 = vst [vmem:[%s4849_s12 + $0x48] sm:$0xff] %v4058_v31  ;;  %4069 = vpow2.f32 %v3117_v35  ;;  %v3532_v37 = vpop.f32.mrb[124].mxu1 }
 0x1f7   : > { %v2447_v38 = vadd.f32 1.0, %v4060_v22  ;;  %v2294_v1 = vpop.f32.mrb[124].mxu0  ;;  %v3533_v63 = vpop.f32.mrb[125].mxu1 }
 0x1f8   : > { %v4062_v39 = vpop.eup %4061  ;;  %v2295_v30 = vadd.f32 %v2294_v1, %v2143_v27  ;;  %v3623_v10 = vpop.f32.mrb[125].mxu0  ;;  %v3534_v0 = vadd.f32 %v3533_v63, %v3532_v37 }
 0x1f9   : > { %4071 = vrcp.f32 %v2447_v38  ;;  %v2448_v28 = vadd.f32 1.0, %v4062_v39  ;;  %v3535_v50 = vpop.f32.mrb[126].mxu1  ;;  %v2297_v26 = vpop.f32.mrb[126].mxu0 }
 0x1fa   : > { %v3118_v42 = vmul.f32 -1.442695, %v2295_v30  ;;  %v2298_v44 = vadd.f32 %v2297_v26, %v2146_v25  ;;  %v3536_v34 = vpop.f32.mrb[127].mxu1  ;;  %v3624_v53 = vpop.f32.mrb[127].mxu0  ;;  %v2151_v41 = vadd.f32 %v3534_v0, %v4809_v60 }
 0x1fb   : > { %v4064_v49 = vpop.eup %4063  ;;  %4073 = vrcp.f32 %v2448_v28  ;;  %v3537_v6 = vadd.f32 %v3536_v34, %v3535_v50 }
 0x1fc   : > { %2532 = vst [vmem:[%s4849_s12 + $0x50] sm:$0xff] %v4064_v49  ;;  %4075 = vpow2.f32 %v3118_v42  ;;  %v3119_v47 = vmul.f32 -1.442695, %v2298_v44 }
 0x1fd   : > { %v4066_v56 = vpop.eup %4065  ;;  %v2154_v16 = vadd.f32 %v3537_v6, %v4812_v43 }
 0x1fe   : > { %v4068_v8 = vpop.eup %4067  ;;  %2533 = vst [vmem:[%s4849_s12 + $0x58] sm:$0xff] %v4066_v56  ;;  %4077 = vpow2.f32 %v3119_v47  ;;  %v3538_v23 = vpop.f32.mrb[128].mxu1 }
 0x1ff   : > { %v2449_v48 = vadd.f32 1.0, %v4068_v8  ;;  %v2302_v19 = vpop.f32.mrb[128].mxu0  ;;  %v3539_v12 = vpop.f32.mrb[129].mxu1 }
 0x200   : > { %v4070_v17 = vpop.eup %4069  ;;  %v2303_v3 = vadd.f32 %v2302_v19, %v2151_v41  ;;  %v3627_v58 = vpop.f32.mrb[129].mxu0  ;;  %v3540_v60 = vadd.f32 %v3539_v12, %v3538_v23 }
 0x201   : > { %4079 = vrcp.f32 %v2449_v48  ;;  %v2450_v59 = vadd.f32 1.0, %v4070_v17  ;;  %v3541_v9 = vpop.f32.mrb[130].mxu1  ;;  %v2305_v32 = vpop.f32.mrb[130].mxu0 }
 0x202   : > { %v3120_v2 = vmul.f32 -1.442695, %v2303_v3  ;;  %v2306_v5 = vadd.f32 %v2305_v32, %v2154_v16  ;;  %v3542_v43 = vpop.f32.mrb[131].mxu1  ;;  %v3628_v13 = vpop.f32.mrb[131].mxu0  ;;  %v2159_v18 = vadd.f32 %v3540_v60, %v4815_v20 }
 0x203   : > { %v4072_v11 = vpop.eup %4071  ;;  %4081 = vrcp.f32 %v2450_v59  ;;  %v3543_v14 = vadd.f32 %v3542_v43, %v3541_v9 }
 0x204   : > { %2534 = vst [vmem:[%s4849_s12 + $0x60] sm:$0xff] %v4072_v11  ;;  %4083 = vpow2.f32 %v3120_v2  ;;  %v3121_v33 = vmul.f32 -1.442695, %v2306_v5 }
 0x205   : > { %v4074_v4 = vpop.eup %4073  ;;  %v2162_v21 = vadd.f32 %v3543_v14, %v4818_v29 }
 0x206   : > { %v4076_v55 = vpop.eup %4075  ;;  %2535 = vst [vmem:[%s4849_s12 + $0x68] sm:$0xff] %v4074_v4  ;;  %4085 = vpow2.f32 %v3121_v33  ;;  %v3544_v54 = vpop.f32.mrb[132].mxu1 }
 0x207   : > { %v2451_v61 = vadd.f32 1.0, %v4076_v55  ;;  %v2310_v7 = vpop.f32.mrb[132].mxu0  ;;  %v3545_v45 = vpop.f32.mrb[133].mxu1 }
 0x208   : > { %v4078_v36 = vpop.eup %4077  ;;  %v2311_v15 = vadd.f32 %v2310_v7, %v2159_v18  ;;  %v3631_v27 = vpop.f32.mrb[133].mxu0  ;;  %v3546_v20 = vadd.f32 %v3545_v45, %v3544_v54 }
 0x209   : > { %4087 = vrcp.f32 %v2451_v61  ;;  %v2452_v35 = vadd.f32 1.0, %v4078_v36  ;;  %v3547_v31 = vpop.f32.mrb[134].mxu1  ;;  %v2313_v25 = vpop.f32.mrb[134].mxu0 }
 0x20a   : > { %v3122_v22 = vmul.f32 -1.442695, %v2311_v15  ;;  %v2314_v38 = vadd.f32 %v2313_v25, %v2162_v21  ;;  %v3548_v29 = vpop.f32.mrb[135].mxu1  ;;  %v3632_v37 = vpop.f32.mrb[135].mxu0  ;;  %v2167_v30 = vadd.f32 %v3546_v20, %v4821_v40 }
 0x20b   : > { %v4080_v1 = vpop.eup %4079  ;;  %4089 = vrcp.f32 %v2452_v35  ;;  %v3549_v39 = vadd.f32 %v3548_v29, %v3547_v31 }
 0x20c   : > { %2536 = vst [vmem:[%s4849_s12 + $0x70] sm:$0xff] %v4080_v1  ;;  %4091 = vpow2.f32 %v3122_v22  ;;  %v3123_v63 = vmul.f32 -1.442695, %v2314_v38 }
 0x20d   : > { %v4082_v10 = vpop.eup %4081  ;;  %v2170_v28 = vadd.f32 %v3549_v39, %v4824_v46 }
 0x20e   : > { %v4084_v0 = vpop.eup %4083  ;;  %2537 = vst [vmem:[%s4849_s12 + $0x78] sm:$0xff] %v4082_v10  ;;  %4093 = vpow2.f32 %v3123_v63  ;;  %v3550_v26 = vpop.f32.mrb[136].mxu1 }
 0x20f   : > { %v2453_v50 = vadd.f32 1.0, %v4084_v0  ;;  %v2318_v42 = vpop.f32.mrb[136].mxu0  ;;  %v3551_v53 = vpop.f32.mrb[137].mxu1 }
 0x210   : > { %v4086_v44 = vpop.eup %4085  ;;  %v2319_v34 = vadd.f32 %v2318_v42, %v2167_v30  ;;  %v3635_v49 = vpop.f32.mrb[137].mxu0  ;;  %v3552_v40 = vadd.f32 %v3551_v53, %v3550_v26 }
 0x211   : > { %4095 = vrcp.f32 %v2453_v50  ;;  %v2454_v6 = vadd.f32 1.0, %v4086_v44  ;;  %v3553_v41 = vpop.f32.mrb[138].mxu1  ;;  %v2321_v47 = vpop.f32.mrb[138].mxu0 }
 0x212   : > { %v3124_v56 = vmul.f32 -1.442695, %v2319_v34  ;;  %v2322_v16 = vadd.f32 %v2321_v47, %v2170_v28  ;;  %v3554_v46 = vpop.f32.mrb[139].mxu1  ;;  %v3636_v8 = vpop.f32.mrb[139].mxu0  ;;  %v2175_v19 = vadd.f32 %v3552_v40, %v4827_v24 }
 0x213   : > { %v4088_v48 = vpop.eup %4087  ;;  %4097 = vrcp.f32 %v2454_v6  ;;  %v3555_v23 = vadd.f32 %v3554_v46, %v3553_v41 }
 0x214   : > { %2538 = vst [vmem:[%s4849_s12 + $0x80] sm:$0xff] %v4088_v48  ;;  %4099 = vpow2.f32 %v3124_v56  ;;  %v3125_v17 = vmul.f32 -1.442695, %v2322_v16 }
 0x215   : > { %v4090_v3 = vpop.eup %4089  ;;  %v2178_v12 = vadd.f32 %v3555_v23, %v4830_v51 }
 0x216   : > { %v4092_v58 = vpop.eup %4091  ;;  %2539 = vst [vmem:[%s4849_s12 + $0x88] sm:$0xff] %v4090_v3  ;;  %4101 = vpow2.f32 %v3125_v17  ;;  %v3556_v60 = vpop.f32.mrb[140].mxu1 }
 0x217   : > { %v2455_v59 = vadd.f32 1.0, %v4092_v58  ;;  %v2326_v9 = vpop.f32.mrb[140].mxu0  ;;  %v3557_v5 = vpop.f32.mrb[141].mxu1 }
 0x218   : > { %v4094_v32 = vpop.eup %4093  ;;  %v2327_v2 = vadd.f32 %v2326_v9, %v2175_v19  ;;  %v3639_v43 = vpop.f32.mrb[141].mxu0  ;;  %v3558_v24 = vadd.f32 %v3557_v5, %v3556_v60 }
 0x219   : > { %4103 = vrcp.f32 %v2455_v59  ;;  %v2456_v13 = vadd.f32 1.0, %v4094_v32  ;;  %v3559_v11 = vpop.f32.mrb[142].mxu1  ;;  %v2329_v14 = vpop.f32.mrb[142].mxu0 }
 0x21a   : > { %v3126_v18 = vmul.f32 -1.442695, %v2327_v2  ;;  %v2330_v33 = vadd.f32 %v2329_v14, %v2178_v12  ;;  %v3560_v51 = vpop.f32.mrb[143].mxu1  ;;  %v3640_v4 = vpop.f32.mrb[143].mxu0  ;;  %v2183_v61 = vadd.f32 %v3558_v24, %v4833_v62 }
 0x21b   : > { %v4096_v21 = vpop.eup %4095  ;;  %4105 = vrcp.f32 %v2456_v13  ;;  %v3561_v55 = vadd.f32 %v3560_v51, %v3559_v11 }
 0x21c   : > { %2540 = vst [vmem:[%s4849_s12 + $0x90] sm:$0xff] %v4096_v21  ;;  %4107 = vpow2.f32 %v3126_v18  ;;  %v3127_v54 = vmul.f32 -1.442695, %v2330_v33 }
 0x21d   : > { %v4098_v7 = vpop.eup %4097  ;;  %v2186_v36 = vadd.f32 %v3561_v55, %v4835_v57 }
 0x21e   : > { %v4100_v15 = vpop.eup %4099  ;;  %2541 = vst [vmem:[%s4849_s12 + $0x98] sm:$0xff] %v4098_v7  ;;  %4109 = vpow2.f32 %v3127_v54  ;;  %v3562_v27 = vpop.f32.mrb[144].mxu1 }
 0x21f   : > { %v2457_v45 = vadd.f32 1.0, %v4100_v15  ;;  %v2334_v35 = vpop.f32.mrb[144].mxu0  ;;  %v3563_v25 = vpop.f32.mrb[145].mxu1 }
 0x220   : > { %v4102_v20 = vpop.eup %4101  ;;  %v2335_v31 = vadd.f32 %v2334_v35, %v2183_v61  ;;  %v3643_v22 = vpop.f32.mrb[145].mxu0  ;;  %v3564_v62 = vadd.f32 %v3563_v25, %v3562_v27 }
 0x221   : > { %4111 = vrcp.f32 %v2457_v45  ;;  %v2458_v38 = vadd.f32 1.0, %v4102_v20  ;;  %v2337_v29 = vpop.f32.mrb[146].mxu0  ;;  %v3565_v37 = vpop.f32.mrb[146].mxu1 }
 0x222   : > { %v3128_v1 = vmul.f32 -1.442695, %v2335_v31  ;;  %v2338_v39 = vadd.f32 %v2337_v29, %v2186_v36  ;;  %v3644_v57 = vpop.f32.mrb[147].mxu0  ;;  %v3566_v30 = vpop.f32.mrb[147].mxu1  ;;  %v2191_v10 = vadd.f32 %v3564_v62, %v4837_v52 }
 0x223   : > { %v4104_v63 = vpop.eup %4103  ;;  %4113 = vrcp.f32 %v2458_v38 }
 0x224   : > { %2542 = vst [vmem:[%s4849_s12 + $0xa0] sm:$0xff] %v4104_v63  ;;  %4115 = vpow2.f32 %v3128_v1  ;;  %v3129_v28 = vmul.f32 -1.442695, %v2338_v39 }
 0x225   : > { %v4106_v0 = vpop.eup %4105 }
 0x226   : > { %v4108_v50 = vpop.eup %4107  ;;  %2543 = vst [vmem:[%s4849_s12 + $0xa8] sm:$0xff] %v4106_v0  ;;  %4117 = vpow2.f32 %v3129_v28  ;;  %v2342_v42 = vpop.f32.mrb[148].mxu0 }
 0x227   : > { %v2459_v26 = vadd.f32 1.0, %v4108_v50  ;;  %v2343_v34 = vadd.f32 %v2342_v42, %v2191_v10  ;;  %v3647_v53 = vpop.f32.mrb[149].mxu0 }
 0x228   : > { %v4110_v44 = vpop.eup %4109  ;;  %v2345_v6 = vpop.f32.mrb[150].mxu0 }
 0x229   : > { %4119 = vrcp.f32 %v2459_v26  ;;  %v2460_v49 = vadd.f32 1.0, %v4110_v44  ;;  %v3130_v40 = vmul.f32 -1.442695, %v2343_v34  ;;  %v3648_v52 = vpop.f32.mrb[151].mxu0 }
 0x22b   : > { %v4112_v41 = vpop.eup %4111  ;;  %4121 = vrcp.f32 %v2460_v49 }
 0x22c   : > { %2544 = vst [vmem:[%s4849_s12 + $0xb0] sm:$0xff] %v4112_v41  ;;  %4123 = vpow2.f32 %v3130_v40 }
 0x22d   : > { %v4114_v47 = vpop.eup %4113 }
 0x22e   : > { %v4116_v56 = vpop.eup %4115  ;;  %2545 = vst [vmem:[%s4849_s12 + $0xb8] sm:$0xff] %v4114_v47 }
 0x22f   : > { %v2461_v16 = vadd.f32 1.0, %v4116_v56 }
 0x230   : > { %v4118_v46 = vpop.eup %4117 }
 0x231   : > { %4125 = vrcp.f32 %v2461_v16  ;;  %v2462_v8 = vadd.f32 1.0, %v4118_v46 }
 0x233   : > { %v4120_v48 = vpop.eup %4119  ;;  %4127 = vrcp.f32 %v2462_v8 }
 0x234   : > { %2546 = vst [vmem:[%s4849_s12 + $0xc0] sm:$0xff] %v4120_v48 }
 0x235   : > { %v4122_v23 = vpop.eup %4121 }
 0x236   : > { %v4124_v19 = vpop.eup %4123  ;;  %2547 = vst [vmem:[%s4849_s12 + $0xc8] sm:$0xff] %v4122_v23 }
 0x237   : > { %v2463_v17 = vadd.f32 1.0, %v4124_v19 }
 0x239   : > { %4129 = vrcp.f32 %v2463_v17 }
 0x23b   : > { %v4126_v3 = vpop.eup %4125 }
 0x23c   : > { %2548 = vst [vmem:[%s4849_s12 + $0xd0] sm:$0xff] %v4126_v3 }
 0x23d   : > { %v4128_v12 = vpop.eup %4127 }
 0x23e   : > { %2549 = vst [vmem:[%s4849_s12 + $0xd8] sm:$0xff] %v4128_v12  ;;  %2557 = sbr.rel (!%p4270_p4) target bundleno = 648 (0x288), region = 36 }
 0x243   : > { %v4130_v58 = vpop.eup %4129 }
 0x244   : > { %2550 = vst [vmem:[%s4849_s12 + $0xe0] sm:$0xff] %v4130_v58 }
 0x245   : > { %s5039_s28 = smov (!%p2560_p8, %s2559_s28), 29 }
 0x246   : > { %s3131_s6 = sshll.u32 %s5039_s28, 7 }
 0x247   : > { %p3134_p9 = scmp.eq.s32.totalorder %s3131_s6, 0 }
 0x248   : > { %4131 = sdivrem.u32 (!%p3134_p9), %s5039_s28, 29 }
 0x249   : > { %2568 = sbr.rel (%p3134_p9) target bundleno = 648 (0x288), region = 40 }
 0x251   : > { %s4913_s20 = spop.drf %4131 }
 0x252   : > { %p3135_p10 = scmp.le.s32.totalorder %s4913_s20, 0 }
 0x253   : > { %s5030_s15 = smov (!%p3135_p10), %s4907_s5  ;;  %s5031_s23 = smov (!%p3135_p10), %s4849_s12 }
 0x254   : > { %2836 = sbr.rel (%p3135_p10) target bundleno = 619 (0x26b), region = 116  ;;  %s4922_s7 = smov (!%p3135_p10), 0  }
 0x255   : > { %s4924_s8 = smov (!%p3135_p10), 0  }
 0x25b LB: >> { %v2688_v59 = vld [vmem:[%s4197_s23] sm:$0xff]  ;;  %v2690_v60 = vld [vmem:[%s4197_s23 + $0x8] sm:$0xff]  ;;  %v2692_v9 = vld [vmem:[%s4197_s23 + $0x10] sm:$0xff]  ;;  %s2746_s9 = sadd.s32 1, %s4201_s7  ;;  %s2682_s8 = sadd.s32 1, %s4205_s8   ;;  %s4205_s8 = sphi %s4924_s8, %s2682_s8   ;;  %s4201_s7 = sphi %s4922_s7, %s5034_s7   ;;  %s4197_s23 = sphi %s5031_s23, %s5033_s23   ;;  %s4193_s15 = sphi %s5030_s15, %s5032_s15  }
 0x25c   : >> { %2689 = vst [vmem:[%s4193_s15] sm:$0xff] %v2688_v59  ;;  %2691 = vst [vmem:[%s4193_s15 + $0x8] sm:$0xff] %v2690_v60  ;;  %v2694_v32 = vld [vmem:[%s4197_s23 + $0x18] sm:$0xff]  ;;  %v2696_v2 = vld [vmem:[%s4197_s23 + $0x20] sm:$0xff]  ;;  %p2747_p11 = scmp.ge.s32.totalorder %s2746_s9, %s4913_s20  ;;  %p2681_p12 = scmp.ge.s32.totalorder %s2682_s8, %s4913_s20 }
 0x25d   : >> { %2693 = vst [vmem:[%s4193_s15 + $0x10] sm:$0xff] %v2692_v9  ;;  %v2698_v5 = vld [vmem:[%s4197_s23 + $0x28] sm:$0xff]  ;;  %2695 = vst [vmem:[%s4193_s15 + $0x18] sm:$0xff] %v2694_v32  ;;  %v2700_v43 = vld [vmem:[%s4197_s23 + $0x30] sm:$0xff] }
 0x25e   : >> { %2697 = vst [vmem:[%s4193_s15 + $0x20] sm:$0xff] %v2696_v2  ;;  %2699 = vst [vmem:[%s4193_s15 + $0x28] sm:$0xff] %v2698_v5  ;;  %v2702_v13 = vld [vmem:[%s4197_s23 + $0x38] sm:$0xff]  ;;  %v2704_v24 = vld [vmem:[%s4197_s23 + $0x40] sm:$0xff]  ;;  %s5041_s9 = smov (%p2747_p11, %s2746_s9), 0 }
 0x25f   : >> { %2701 = vst [vmem:[%s4193_s15 + $0x30] sm:$0xff] %v2700_v43  ;;  %2703 = vst [vmem:[%s4193_s15 + $0x38] sm:$0xff] %v2702_v13  ;;  %v2706_v11 = vld [vmem:[%s4197_s23 + $0x48] sm:$0xff]  ;;  %v2708_v14 = vld [vmem:[%s4197_s23 + $0x50] sm:$0xff]  ;;  %s2749_s10 = smul.u32 232, %s5041_s9  ;;  %s5034_s7 = smov %s5041_s9 }
 0x260   : >> { %2705 = vst [vmem:[%s4193_s15 + $0x40] sm:$0xff] %v2704_v24  ;;  %v2710_v18 = vld [vmem:[%s4197_s23 + $0x58] sm:$0xff]  ;;  %2707 = vst [vmem:[%s4193_s15 + $0x48] sm:$0xff] %v2706_v11  ;;  %v2712_v33 = vld [vmem:[%s4197_s23 + $0x60] sm:$0xff] }
 0x261   : >> { %2709 = vst [vmem:[%s4193_s15 + $0x50] sm:$0xff] %v2708_v14  ;;  %2711 = vst [vmem:[%s4193_s15 + $0x58] sm:$0xff] %v2710_v18  ;;  %v2714_v51 = vld [vmem:[%s4197_s23 + $0x68] sm:$0xff]  ;;  %v2716_v4 = vld [vmem:[%s4197_s23 + $0x70] sm:$0xff]  ;;  %s2751_s11 = scalar_lea.vmem %s4849_s12, %s2749_s10 [#allocation2]   ;;  %s2752_s14 = scalar_lea.vmem %s4907_s5, %s2749_s10  }
 0x262   : >> { %2713 = vst [vmem:[%s4193_s15 + $0x60] sm:$0xff] %v2712_v33  ;;  %2715 = vst [vmem:[%s4193_s15 + $0x68] sm:$0xff] %v2714_v51  ;;  %v2718_v21 = vld [vmem:[%s4197_s23 + $0x78] sm:$0xff]  ;;  %v2720_v55 = vld [vmem:[%s4197_s23 + $0x80] sm:$0xff] }
 0x263   : >> { %2717 = vst [vmem:[%s4193_s15 + $0x70] sm:$0xff] %v2716_v4  ;;  %v2722_v61 = vld [vmem:[%s4197_s23 + $0x88] sm:$0xff]  ;;  %2719 = vst [vmem:[%s4193_s15 + $0x78] sm:$0xff] %v2718_v21  ;;  %v2724_v54 = vld [vmem:[%s4197_s23 + $0x90] sm:$0xff] }
 0x264   : >> { %2721 = vst [vmem:[%s4193_s15 + $0x80] sm:$0xff] %v2720_v55  ;;  %2723 = vst [vmem:[%s4193_s15 + $0x88] sm:$0xff] %v2722_v61  ;;  %v2726_v7 = vld [vmem:[%s4197_s23 + $0x98] sm:$0xff]  ;;  %v2728_v36 = vld [vmem:[%s4197_s23 + $0xa0] sm:$0xff]  ;;  %2684 = sbr.rel (!%p2681_p12) target bundleno = 603 (0x25b), region = 122 }
 0x265   : >> { %2725 = vst [vmem:[%s4193_s15 + $0x90] sm:$0xff] %v2724_v54  ;;  %2727 = vst [vmem:[%s4193_s15 + $0x98] sm:$0xff] %v2726_v7  ;;  %v2730_v15 = vld [vmem:[%s4197_s23 + $0xa8] sm:$0xff]  ;;  %v2732_v45 = vld [vmem:[%s4197_s23 + $0xb0] sm:$0xff] }
 0x266   : >> { %2729 = vst [vmem:[%s4193_s15 + $0xa0] sm:$0xff] %v2728_v36  ;;  %v2734_v27 = vld [vmem:[%s4197_s23 + $0xb8] sm:$0xff]  ;;  %2731 = vst [vmem:[%s4193_s15 + $0xa8] sm:$0xff] %v2730_v15  ;;  %v2736_v35 = vld [vmem:[%s4197_s23 + $0xc0] sm:$0xff] }
 0x267   : >> { %2733 = vst [vmem:[%s4193_s15 + $0xb0] sm:$0xff] %v2732_v45  ;;  %2735 = vst [vmem:[%s4193_s15 + $0xb8] sm:$0xff] %v2734_v27  ;;  %v2738_v20 = vld [vmem:[%s4197_s23 + $0xc8] sm:$0xff]  ;;  %v2740_v31 = vld [vmem:[%s4197_s23 + $0xd0] sm:$0xff] }
 0x268   : >> { %2737 = vst [vmem:[%s4193_s15 + $0xc0] sm:$0xff] %v2736_v35  ;;  %2739 = vst [vmem:[%s4193_s15 + $0xc8] sm:$0xff] %v2738_v20  ;;  %v2742_v25 = vld [vmem:[%s4197_s23 + $0xd8] sm:$0xff]  ;;  %v2744_v22 = vld [vmem:[%s4197_s23 + $0xe0] sm:$0xff]  ;;  %s5033_s23 = smov %s2751_s11 }
 0x269   : >> { %2741 = vst [vmem:[%s4193_s15 + $0xd0] sm:$0xff] %v2740_v31  ;;  %2743 = vst [vmem:[%s4193_s15 + $0xd8] sm:$0xff] %v2742_v25 }
 0x26a   : >> { %2745 = vst [vmem:[%s4193_s15 + $0xe0] sm:$0xff] %v2744_v22  ;;  %s5032_s15 = smov %s2752_s14 }
 0x26b PF: > { %4133 = sdivrem.u32 %s5039_s28, 29 }
 0x26c   : > { %s3136_s17 = smul.u32 232, %s4913_s20 }
 0x26e   : > { %s2757_s18 = scalar_lea.vmem %s4849_s12, %s3136_s17 [#allocation2]   ;;  %s2759_s21 = scalar_lea.vmem %s4907_s5, %s3136_s17  }
 0x274   : > { %s4134_s22 = spop.drf %4133 }
 0x275   : > { %p3138_p13 = scmp.le.s32.totalorder %s4134_s22, 0 }
 0x276   : > { %s4207_s25 = smov (!%p3138_p13), %s2759_s21   ;;  %s4211_s26 = smov (!%p3138_p13), %s2757_s18  }
 0x277   : > { %2850 = sbr.rel (%p3138_p13) target bundleno = 648 (0x288), region = 127  ;;  %s4215_s24 = smov (!%p3138_p13), 0  }
 0x278   : > { %s4219_s27 = smov (!%p3138_p13), 0  }
 0x27e LB: >> { %v2769_v38 = vld [vmem:[%s4213_s26] sm:$0xff]  ;;  %s2771_s29 = sadd.s32 1, %s4217_s24  ;;  %s2763_s27 = sadd.s32 1, %s4221_s27   ;;  %s4221_s27 = sphi %s4219_s27, %s2763_s27   ;;  %s4217_s24 = sphi %s4215_s24, %s4216_s24   ;;  %s4213_s26 = sphi %s4211_s26, %s2776_s26   ;;  %s4209_s25 = sphi %s4207_s25, %s2777_s25  }
 0x27f   : >> { %2770 = vst [vmem:[%s4209_s25] sm:$0xff] %v2769_v38  ;;  %p2772_p0 = scmp.ge.s32.totalorder %s2771_s29, %s4134_s22  ;;  %p2762_p1 = scmp.ge.s32.totalorder %s2763_s27, %s4134_s22 }
 0x281   : >> { %s5043_s29 = smov (%p2772_p0, %s2771_s29), 0  ;;  %2765 = sbr.rel (!%p2762_p1) target bundleno = 638 (0x27e), region = 133 }
 0x282   : >> { %s3139_s12 = sshll.u32 %s5043_s29, 3  ;;  %s4216_s24 = smov %s5043_s29  }
 0x283   : >> { %s2776_s26 = scalar_lea.vmem %s2757_s18, %s3139_s12 [#allocation2]   ;;  %s2777_s25 = scalar_lea.vmem %s2759_s21, %s3139_s12  }
 0x288 PF: > { %p10_p2 = scmp.ge.s32.totalorder %s4260_s16, 4   ;;  %s5035_s12 = smov %s4185_s13 }
 0x289   : > { %s5036_s13 = smov %s4268_s19  ;;  %s5037_s14 = smov %s4260_s16 }
 0x28a   :  { %12 = sbr.rel (!%p10_p2) target bundleno = 2 (0x2), region = 144 }

</bundles_post_ra>
